<compile_context>
chip_gen: v7x
topology: tpu7x:2x2x1
jax: 0.10.0
libtpu: 0.0.40
codegen_flags: <defaults>
</compile_context>

<pallas_src>
import functools

import jax
import jax.numpy as jnp
from jax import lax
from jax.experimental import pallas as pl
from jax.experimental.pallas import tpu as pltpu

LANE = 128  # TPU lane width; all channel dims are zero-padded to this.


def _make_fused_cls_head_kernel(H, W, Cpad, num_layers):
    """Fused kernel: all conv/BN/act layers for one batch element per grid step.

    Refs per grid step b:
      x_ref     : (1, H, W, Cpad)        channel-padded NHWC input tile
      w_ref     : (L, 9*Cpad, Cpad)      matmul-ready weights (im2col layout)
      scale_ref : (L, 1, Cpad)           folded BN scale (1 for final layer)
      bias_ref  : (L, 1, Cpad)           folded conv-bias + BN shift
      o_ref     : (1, H*W, Cpad)         lane-dense output slab (final layer only)
      buf_a/b   : (H+2, W+2, Cpad) VMEM  ping-pong activation buffers w/ zero halo
      col_ref   : (H*W, 9*Cpad)    VMEM  im2col slab
    """
    HW = H * W

    def kernel(x_ref, w_ref, scale_ref, bias_ref, o_ref, buf_a, buf_b, col_ref):
        # Zero both ping-pong buffers: this establishes the 1-pixel zero halo
        # (pad=1) for every layer; interiors are fully overwritten below.
        buf_a[...] = jnp.zeros_like(buf_a)
        buf_b[...] = jnp.zeros_like(buf_b)
        # Load the input tile into the interior of buf_a.
        buf_a[1:H + 1, 1:W + 1, :] = x_ref[0]

        bufs = (buf_a, buf_b)
        for layer in range(num_layers):           # static unroll (L = 5 here)
            src = bufs[layer % 2]
            dst = bufs[(layer + 1) % 2]

            # im2col: gather the 9 shifted (H, W, Cpad) taps into a lane-dense
            # (H*W, 9*Cpad) slab -> the 3x3 conv becomes ONE matmul, K = 9*Cpad.
            for dy in range(3):
                for dx in range(3):
                    tap = dy * 3 + dx
                    col_ref[:, tap * Cpad:(tap + 1) * Cpad] = (
                        src[dy:dy + H, dx:dx + W, :].reshape(HW, Cpad))

            acc = jnp.dot(col_ref[...], w_ref[layer],
                          preferred_element_type=jnp.float32)   # (HW, Cpad)
            y = acc * scale_ref[layer] + bias_ref[layer]         # fused affine

            if layer < num_layers - 1:
                # Hidden layer: ReLU, keep activation resident in VMEM.
                dst[1:H + 1, 1:W + 1, :] = jnp.maximum(y, 0.0).reshape(H, W, Cpad)
            else:
                # Final layer: sigmoid, single lane-dense store to HBM.
                o_ref[0] = jax.nn.sigmoid(y).astype(o_ref.dtype)

    return kernel


@functools.partial(jax.jit, static_argnames=("num_anchors", "num_classes"))
def cls_head_forward(x_nchw, packed, *, num_anchors, num_classes):
    """x_nchw: (B, Cin, H, W) like PyTorch. Returns (B, H*W*num_anchors, num_classes)."""
    B, Cin, H, W = x_nchw.shape
    L, _, Cpad = packed["w"].shape

    # NCHW -> NHWC (channels land on TPU lanes) + one-time lane padding to 128.
    x = jnp.transpose(x_nchw, (0, 2, 3, 1))
    x = jnp.pad(x, ((0, 0), (0, 0), (0, 0), (0, Cpad - Cin)))

    kernel = _make_fused_cls_head_kernel(H, W, Cpad, L)
    out = pl.pallas_call(
        kernel,
        out_shape=jax.ShapeDtypeStruct((B, H * W, Cpad), jnp.float32),
        grid=(B,),
        in_specs=[
            pl.BlockSpec((1, H, W, Cpad), lambda b: (b, 0, 0, 0)),
            pl.BlockSpec((L, 9 * Cpad, Cpad), lambda b: (0, 0, 0)),
            pl.BlockSpec((L, 1, Cpad), lambda b: (0, 0, 0)),
            pl.BlockSpec((L, 1, Cpad), lambda b: (0, 0, 0)),
        ],
        out_specs=pl.BlockSpec((1, H * W, Cpad), lambda b: (b, 0, 0)),
        scratch_shapes=[
            pltpu.VMEM((H + 2, W + 2, Cpad), jnp.float32),   # ping (with halo)
            pltpu.VMEM((H + 2, W + 2, Cpad), jnp.float32),   # pong (with halo)
            pltpu.VMEM((H * W, 9 * Cpad), jnp.float32),      # im2col slab
        ],
        compiler_params=pltpu.CompilerParams(
            dimension_semantics=("parallel",)),
        # ~7.6 MiB total VMEM at this config -> fits every generation's default
        # scoped limit; larger FPN sizes would add a spatial tile axis +
        # vmem_limit_bytes.
    )(x, packed["w"], packed["scale"], packed["bias"])

    cout = num_anchors * num_classes
    # Equivalent to permute(0,2,3,1).reshape(B, -1, num_classes) of the reference.
    return out[:, :, :cout].reshape(B, H * W * num_anchors, num_classes)


def init_params(key, num_features_in, feature_size, num_anchors, num_classes,
                stack_layers):
    """Deterministic synthetic parameters (normal_init std=0.01, BN defaults).

    Returns a list of per-layer dicts of ARRAYS: conv weight (HWIO) plus the
    eval-mode BatchNorm folded into a per-channel (scale, bias). Activation is
    implied by position: ReLU for layers [0, stack_layers), Sigmoid last.
    """
    eps = 1e-5
    params = []
    keys = jax.random.split(key, stack_layers + 1)
    for i in range(stack_layers):
        cin = num_features_in if i == 0 else feature_size
        kw, kb = jax.random.split(keys[i])
        w = 0.01 * jax.random.normal(kw, (3, 3, cin, feature_size), jnp.float32)
        conv_b = 0.01 * jax.random.normal(kb, (feature_size,), jnp.float32)
        # BatchNorm defaults: gamma=1, beta=0, running_mean=0, running_var=1.
        gamma = jnp.ones((feature_size,), jnp.float32)
        beta = jnp.zeros((feature_size,), jnp.float32)
        run_mean = jnp.zeros((feature_size,), jnp.float32)
        run_var = jnp.ones((feature_size,), jnp.float32)
        scale = gamma / jnp.sqrt(run_var + eps)
        bias = (conv_b - run_mean) * scale + beta
        params.append(dict(w=w, scale=scale, bias=bias))
    # Final conv: feature_size -> num_anchors * num_classes (sigmoid applied).
    kw, kb = jax.random.split(keys[-1])
    cout = num_anchors * num_classes
    w = 0.01 * jax.random.normal(kw, (3, 3, feature_size, cout), jnp.float32)
    conv_b = 0.01 * jax.random.normal(kb, (cout,), jnp.float32)
    params.append(dict(w=w, scale=jnp.ones((cout,), jnp.float32), bias=conv_b))
    return params


def pack_params(params, cpad=LANE):
    """Pack per-layer HWIO weights into matmul-ready, lane-padded stacked arrays.

      w:     (L, 9*cpad, cpad)   row index = (dy*3+dx)*cpad + cin  (im2col layout)
      scale: (L, 1, cpad)
      bias:  (L, 1, cpad)
    Padded input/output channels carry zero weights/bias, so they stay zero
    through every ReLU layer and are sliced off after the final sigmoid.
    """
    ws, scales, biases = [], [], []
    for p in params:
        _, _, cin, cout = p["w"].shape
        wp = jnp.zeros((3, 3, cpad, cpad), jnp.float32)
        wp = wp.at[:, :, :cin, :cout].set(p["w"])
        ws.append(wp.reshape(9 * cpad, cpad))
        scales.append(jnp.zeros((cpad,), jnp.float32).at[:cout].set(p["scale"]))
        biases.append(jnp.zeros((cpad,), jnp.float32).at[:cout].set(p["bias"]))
    return dict(w=jnp.stack(ws),
                scale=jnp.stack(scales)[:, None, :],
                bias=jnp.stack(biases)[:, None, :])


def reference_forward(x_nchw, params, num_classes):
    """Pure-JAX reference using lax.conv for verification."""
    B = x_nchw.shape[0]
    x = jnp.transpose(x_nchw, (0, 2, 3, 1))
    dn = ("NHWC", "HWIO", "NHWC")
    for i, p in enumerate(params):
        y = lax.conv_general_dilated(x, p["w"], (1, 1), "SAME",
                                     dimension_numbers=dn,
                                     precision=lax.Precision.HIGHEST)
        y = y * p["scale"] + p["bias"]
        x = jnp.maximum(y, 0.0) if i < len(params) - 1 else jax.nn.sigmoid(y)
    return x.reshape(B, -1, num_classes)


if __name__ == "__main__":
    # Small config: num_features_in=4, cfg.mid_channel=8, cfg.out_channel=2,
    # num_anchors=3, stack_layers (default) = 4.
    B, CIN, H, W = 2, 4, 16, 16
    FEATURE_SIZE = 8
    NUM_ANCHORS = 3
    NUM_CLASSES = 2
    STACK_LAYERS = 4

    key = jax.random.PRNGKey(0)
    k_x, k_p = jax.random.split(key)
    x = jax.random.normal(k_x, (B, CIN, H, W), jnp.float32)
    params = init_params(k_p, CIN, FEATURE_SIZE, NUM_ANCHORS, NUM_CLASSES,
                         STACK_LAYERS)
    packed = pack_params(params)

    out = cls_head_forward(x, packed, num_anchors=NUM_ANCHORS,
                           num_classes=NUM_CLASSES)
    out = jax.block_until_ready(out)

    expected_shape = (B, H * W * NUM_ANCHORS, NUM_CLASSES)
    assert out.shape == expected_shape, (out.shape, expected_shape)

    ref = reference_forward(x, params, NUM_CLASSES)
    max_err = float(jnp.max(jnp.abs(out - ref)))
    assert max_err < 1e-4, max_err

    print("KERNEL_OK")
</pallas_src>

<mosaic_0001>
module attributes {stable_mosaic.version = 11 : i64} {
  func.func @kernel(%arg0: i32, %arg1: memref<1x16x16x128xf32, #tpu.memory_space<vmem>>, %arg2: memref<5x1152x128xf32, #tpu.memory_space<vmem>>, %arg3: memref<5x1x128xf32, #tpu.memory_space<vmem>>, %arg4: memref<5x1x128xf32, #tpu.memory_space<vmem>>, %arg5: memref<1x256x128xf32, #tpu.memory_space<vmem>>, %arg6: memref<18x18x128xf32, #tpu.memory_space<vmem>>, %arg7: memref<18x18x128xf32, #tpu.memory_space<vmem>>, %arg8: memref<256x1152xf32, #tpu.memory_space<vmem>>) attributes {dimension_semantics = [#tpu.dimension_semantics<parallel>], iteration_bounds = array<i64: 2>, scalar_prefetch = 0 : i64, scratch_operands = 3 : i64, tpu.core_type = #tpu.core_type<tc>, window_params = [{transform_indices = @transform_0, window_bounds = array<i64: 1, 16, 16, 128>}, {pipeline_mode = #tpu.pipeline_mode<synchronous>, transform_indices = @transform_1, window_bounds = array<i64: 5, 1152, 128>}, {pipeline_mode = #tpu.pipeline_mode<synchronous>, transform_indices = @transform_2, window_bounds = array<i64: 5, 1, 128>}, {pipeline_mode = #tpu.pipeline_mode<synchronous>, transform_indices = @transform_3, window_bounds = array<i64: 5, 1, 128>}, {transform_indices = @transform_4, window_bounds = array<i64: 1, 256, 128>}]} {
    %cst = arith.constant 0.000000e+00 : f32
    %0 = vector.broadcast %cst : f32 to vector<18x18x128xf32>
    %c0 = arith.constant 0 : index
    %c0_0 = arith.constant 0 : index
    %c0_1 = arith.constant 0 : index
    %1 = vector.load %arg6[%c0, %c0_0, %c0_1] : memref<18x18x128xf32, #tpu.memory_space<vmem>>, vector<18x18x128xf32>
    tpu.vector_store %arg6[%c0, %c0_0, %c0_1], %0 {strides = array<i32>} : memref<18x18x128xf32, #tpu.memory_space<vmem>>, vector<18x18x128xf32>,
    %cst_2 = arith.constant 0.000000e+00 : f32
    %2 = vector.broadcast %cst_2 : f32 to vector<18x18x128xf32>
    %c0_3 = arith.constant 0 : index
    %c0_4 = arith.constant 0 : index
    %c0_5 = arith.constant 0 : index
    %3 = vector.load %arg7[%c0_3, %c0_4, %c0_5] : memref<18x18x128xf32, #tpu.memory_space<vmem>>, vector<18x18x128xf32>
    tpu.vector_store %arg7[%c0_3, %c0_4, %c0_5], %2 {strides = array<i32>} : memref<18x18x128xf32, #tpu.memory_space<vmem>>, vector<18x18x128xf32>,
    %c0_6 = arith.constant 0 : index
    %c0_7 = arith.constant 0 : index
    %c0_8 = arith.constant 0 : index
    %c0_9 = arith.constant 0 : index
    %4 = vector.load %arg1[%c0_6, %c0_7, %c0_8, %c0_9] : memref<1x16x16x128xf32, #tpu.memory_space<vmem>>, vector<1x16x16x128xf32>
    %5 = vector.shape_cast %4 : vector<1x16x16x128xf32> to vector<16x16x128xf32>
    %c1 = arith.constant 1 : index
    %c1_10 = arith.constant 1 : index
    %c0_11 = arith.constant 0 : index
    %6 = vector.load %arg6[%c1, %c1_10, %c0_11] : memref<18x18x128xf32, #tpu.memory_space<vmem>>, vector<16x16x128xf32>
    tpu.vector_store %arg6[%c1, %c1_10, %c0_11], %5 {strides = array<i32>} : memref<18x18x128xf32, #tpu.memory_space<vmem>>, vector<16x16x128xf32>,
    %c0_12 = arith.constant 0 : index
    %c0_13 = arith.constant 0 : index
    %c0_14 = arith.constant 0 : index
    %7 = vector.load %arg6[%c0_12, %c0_13, %c0_14] : memref<18x18x128xf32, #tpu.memory_space<vmem>>, vector<16x16x128xf32>
    %8 = vector.shape_cast %7 : vector<16x16x128xf32> to vector<256x128xf32>
    %c0_15 = arith.constant 0 : index
    %c0_16 = arith.constant 0 : index
    %9 = vector.load %arg8[%c0_15, %c0_16] : memref<256x1152xf32, #tpu.memory_space<vmem>>, vector<256x128xf32>
    tpu.vector_store %arg8[%c0_15, %c0_16], %8 {strides = array<i32>} : memref<256x1152xf32, #tpu.memory_space<vmem>>, vector<256x128xf32>,
    %c0_17 = arith.constant 0 : index
    %c1_18 = arith.constant 1 : index
    %c0_19 = arith.constant 0 : index
    %10 = vector.load %arg6[%c0_17, %c1_18, %c0_19] : memref<18x18x128xf32, #tpu.memory_space<vmem>>, vector<16x16x128xf32>
    %11 = vector.shape_cast %10 : vector<16x16x128xf32> to vector<256x128xf32>
    %c0_20 = arith.constant 0 : index
    %c128 = arith.constant 128 : index
    %12 = vector.load %arg8[%c0_20, %c128] : memref<256x1152xf32, #tpu.memory_space<vmem>>, vector<256x128xf32>
    tpu.vector_store %arg8[%c0_20, %c128], %11 {strides = array<i32>} : memref<256x1152xf32, #tpu.memory_space<vmem>>, vector<256x128xf32>,
    %c0_21 = arith.constant 0 : index
    %c2 = arith.constant 2 : index
    %c0_22 = arith.constant 0 : index
    %13 = vector.load %arg6[%c0_21, %c2, %c0_22] : memref<18x18x128xf32, #tpu.memory_space<vmem>>, vector<16x16x128xf32>
    %14 = vector.shape_cast %13 : vector<16x16x128xf32> to vector<256x128xf32>
    %c0_23 = arith.constant 0 : index
    %c256 = arith.constant 256 : index
    %15 = vector.load %arg8[%c0_23, %c256] : memref<256x1152xf32, #tpu.memory_space<vmem>>, vector<256x128xf32>
    tpu.vector_store %arg8[%c0_23, %c256], %14 {strides = array<i32>} : memref<256x1152xf32, #tpu.memory_space<vmem>>, vector<256x128xf32>,
    %c1_24 = arith.constant 1 : index
    %c0_25 = arith.constant 0 : index
    %c0_26 = arith.constant 0 : index
    %16 = vector.load %arg6[%c1_24, %c0_25, %c0_26] : memref<18x18x128xf32, #tpu.memory_space<vmem>>, vector<16x16x128xf32>
    %17 = vector.shape_cast %16 : vector<16x16x128xf32> to vector<256x128xf32>
    %c0_27 = arith.constant 0 : index
    %c384 = arith.constant 384 : index
    %18 = vector.load %arg8[%c0_27, %c384] : memref<256x1152xf32, #tpu.memory_space<vmem>>, vector<256x128xf32>
    tpu.vector_store %arg8[%c0_27, %c384], %17 {strides = array<i32>} : memref<256x1152xf32, #tpu.memory_space<vmem>>, vector<256x128xf32>,
    %c1_28 = arith.constant 1 : index
    %c1_29 = arith.constant 1 : index
    %c0_30 = arith.constant 0 : index
    %19 = vector.load %arg6[%c1_28, %c1_29, %c0_30] : memref<18x18x128xf32, #tpu.memory_space<vmem>>, vector<16x16x128xf32>
    %20 = vector.shape_cast %19 : vector<16x16x128xf32> to vector<256x128xf32>
    %c0_31 = arith.constant 0 : index
    %c512 = arith.constant 512 : index
    %21 = vector.load %arg8[%c0_31, %c512] : memref<256x1152xf32, #tpu.memory_space<vmem>>, vector<256x128xf32>
    tpu.vector_store %arg8[%c0_31, %c512], %20 {strides = array<i32>} : memref<256x1152xf32, #tpu.memory_space<vmem>>, vector<256x128xf32>,
    %c1_32 = arith.constant 1 : index
    %c2_33 = arith.constant 2 : index
    %c0_34 = arith.constant 0 : index
    %22 = vector.load %arg6[%c1_32, %c2_33, %c0_34] : memref<18x18x128xf32, #tpu.memory_space<vmem>>, vector<16x16x128xf32>
    %23 = vector.shape_cast %22 : vector<16x16x128xf32> to vector<256x128xf32>
    %c0_35 = arith.constant 0 : index
    %c640 = arith.constant 640 : index
    %24 = vector.load %arg8[%c0_35, %c640] : memref<256x1152xf32, #tpu.memory_space<vmem>>, vector<256x128xf32>
    tpu.vector_store %arg8[%c0_35, %c640], %23 {strides = array<i32>} : memref<256x1152xf32, #tpu.memory_space<vmem>>, vector<256x128xf32>,
    %c2_36 = arith.constant 2 : index
    %c0_37 = arith.constant 0 : index
    %c0_38 = arith.constant 0 : index
    %25 = vector.load %arg6[%c2_36, %c0_37, %c0_38] : memref<18x18x128xf32, #tpu.memory_space<vmem>>, vector<16x16x128xf32>
    %26 = vector.shape_cast %25 : vector<16x16x128xf32> to vector<256x128xf32>
    %c0_39 = arith.constant 0 : index
    %c768 = arith.constant 768 : index
    %27 = vector.load %arg8[%c0_39, %c768] : memref<256x1152xf32, #tpu.memory_space<vmem>>, vector<256x128xf32>
    tpu.vector_store %arg8[%c0_39, %c768], %26 {strides = array<i32>} : memref<256x1152xf32, #tpu.memory_space<vmem>>, vector<256x128xf32>,
    %c2_40 = arith.constant 2 : index
    %c1_41 = arith.constant 1 : index
    %c0_42 = arith.constant 0 : index
    %28 = vector.load %arg6[%c2_40, %c1_41, %c0_42] : memref<18x18x128xf32, #tpu.memory_space<vmem>>, vector<16x16x128xf32>
    %29 = vector.shape_cast %28 : vector<16x16x128xf32> to vector<256x128xf32>
    %c0_43 = arith.constant 0 : index
    %c896 = arith.constant 896 : index
    %30 = vector.load %arg8[%c0_43, %c896] : memref<256x1152xf32, #tpu.memory_space<vmem>>, vector<256x128xf32>
    tpu.vector_store %arg8[%c0_43, %c896], %29 {strides = array<i32>} : memref<256x1152xf32, #tpu.memory_space<vmem>>, vector<256x128xf32>,
    %c2_44 = arith.constant 2 : index
    %c2_45 = arith.constant 2 : index
    %c0_46 = arith.constant 0 : index
    %31 = vector.load %arg6[%c2_44, %c2_45, %c0_46] : memref<18x18x128xf32, #tpu.memory_space<vmem>>, vector<16x16x128xf32>
    %32 = vector.shape_cast %31 : vector<16x16x128xf32> to vector<256x128xf32>
    %c0_47 = arith.constant 0 : index
    %c1024 = arith.constant 1024 : index
    %33 = vector.load %arg8[%c0_47, %c1024] : memref<256x1152xf32, #tpu.memory_space<vmem>>, vector<256x128xf32>
    tpu.vector_store %arg8[%c0_47, %c1024], %32 {strides = array<i32>} : memref<256x1152xf32, #tpu.memory_space<vmem>>, vector<256x128xf32>,
    %c0_48 = arith.constant 0 : index
    %c0_49 = arith.constant 0 : index
    %34 = vector.load %arg8[%c0_48, %c0_49] : memref<256x1152xf32, #tpu.memory_space<vmem>>, vector<256x1152xf32>
    %c0_50 = arith.constant 0 : index
    %c0_51 = arith.constant 0 : index
    %c0_52 = arith.constant 0 : index
    %35 = vector.load %arg2[%c0_50, %c0_51, %c0_52] : memref<5x1152x128xf32, #tpu.memory_space<vmem>>, vector<1x1152x128xf32>
    %36 = vector.shape_cast %35 : vector<1x1152x128xf32> to vector<1152x128xf32>
    %cst_53 = arith.constant dense<0.000000e+00> : vector<256x128xf32>
    %37 = tpu.matmul %34, %36, %cst_53 {dimension_numbers = #tpu.dot_dimension_numbers<[1], [0], [0], [1], [0, 0, 1, 1], [], []>} : vector<256x1152xf32>, vector<1152x128xf32>, vector<256x128xf32> -> vector<256x128xf32>
    %c0_54 = arith.constant 0 : index
    %c0_55 = arith.constant 0 : index
    %c0_56 = arith.constant 0 : index
    %38 = vector.load %arg3[%c0_54, %c0_55, %c0_56] : memref<5x1x128xf32, #tpu.memory_space<vmem>>, vector<1x1x128xf32>
    %39 = vector.shape_cast %38 : vector<1x1x128xf32> to vector<1x128xf32>
    %40 = vector.broadcast %39 : vector<1x128xf32> to vector<256x128xf32>
    %41 = arith.mulf %37, %40 : vector<256x128xf32>
    %c0_57 = arith.constant 0 : index
    %c0_58 = arith.constant 0 : index
    %c0_59 = arith.constant 0 : index
    %42 = vector.load %arg4[%c0_57, %c0_58, %c0_59] : memref<5x1x128xf32, #tpu.memory_space<vmem>>, vector<1x1x128xf32>
    %43 = vector.shape_cast %42 : vector<1x1x128xf32> to vector<1x128xf32>
    %44 = vector.broadcast %43 : vector<1x128xf32> to vector<256x128xf32>
    %45 = arith.addf %41, %44 : vector<256x128xf32>
    %cst_60 = arith.constant 0.000000e+00 : f32
    %46 = vector.broadcast %cst_60 : f32 to vector<256x128xf32>
    %47 = arith.maximumf %45, %46 : vector<256x128xf32>
    %48 = vector.shape_cast %47 : vector<256x128xf32> to vector<16x16x128xf32>
    %c1_61 = arith.constant 1 : index
    %c1_62 = arith.constant 1 : index
    %c0_63 = arith.constant 0 : index
    %49 = vector.load %arg7[%c1_61, %c1_62, %c0_63] : memref<18x18x128xf32, #tpu.memory_space<vmem>>, vector<16x16x128xf32>
    tpu.vector_store %arg7[%c1_61, %c1_62, %c0_63], %48 {strides = array<i32>} : memref<18x18x128xf32, #tpu.memory_space<vmem>>, vector<16x16x128xf32>,
    %c0_64 = arith.constant 0 : index
    %c0_65 = arith.constant 0 : index
    %c0_66 = arith.constant 0 : index
    %50 = vector.load %arg7[%c0_64, %c0_65, %c0_66] : memref<18x18x128xf32, #tpu.memory_space<vmem>>, vector<16x16x128xf32>
    %51 = vector.shape_cast %50 : vector<16x16x128xf32> to vector<256x128xf32>
    %c0_67 = arith.constant 0 : index
    %c0_68 = arith.constant 0 : index
    %52 = vector.load %arg8[%c0_67, %c0_68] : memref<256x1152xf32, #tpu.memory_space<vmem>>, vector<256x128xf32>
    tpu.vector_store %arg8[%c0_67, %c0_68], %51 {strides = array<i32>} : memref<256x1152xf32, #tpu.memory_space<vmem>>, vector<256x128xf32>,
    %c0_69 = arith.constant 0 : index
    %c1_70 = arith.constant 1 : index
    %c0_71 = arith.constant 0 : index
    %53 = vector.load %arg7[%c0_69, %c1_70, %c0_71] : memref<18x18x128xf32, #tpu.memory_space<vmem>>, vector<16x16x128xf32>
    %54 = vector.shape_cast %53 : vector<16x16x128xf32> to vector<256x128xf32>
    %c0_72 = arith.constant 0 : index
    %c128_73 = arith.constant 128 : index
    %55 = vector.load %arg8[%c0_72, %c128_73] : memref<256x1152xf32, #tpu.memory_space<vmem>>, vector<256x128xf32>
    tpu.vector_store %arg8[%c0_72, %c128_73], %54 {strides = array<i32>} : memref<256x1152xf32, #tpu.memory_space<vmem>>, vector<256x128xf32>,
    %c0_74 = arith.constant 0 : index
    %c2_75 = arith.constant 2 : index
    %c0_76 = arith.constant 0 : index
    %56 = vector.load %arg7[%c0_74, %c2_75, %c0_76] : memref<18x18x128xf32, #tpu.memory_space<vmem>>, vector<16x16x128xf32>
    %57 = vector.shape_cast %56 : vector<16x16x128xf32> to vector<256x128xf32>
    %c0_77 = arith.constant 0 : index
    %c256_78 = arith.constant 256 : index
    %58 = vector.load %arg8[%c0_77, %c256_78] : memref<256x1152xf32, #tpu.memory_space<vmem>>, vector<256x128xf32>
    tpu.vector_store %arg8[%c0_77, %c256_78], %57 {strides = array<i32>} : memref<256x1152xf32, #tpu.memory_space<vmem>>, vector<256x128xf32>,
    %c1_79 = arith.constant 1 : index
    %c0_80 = arith.constant 0 : index
    %c0_81 = arith.constant 0 : index
    %59 = vector.load %arg7[%c1_79, %c0_80, %c0_81] : memref<18x18x128xf32, #tpu.memory_space<vmem>>, vector<16x16x128xf32>
    %60 = vector.shape_cast %59 : vector<16x16x128xf32> to vector<256x128xf32>
    %c0_82 = arith.constant 0 : index
    %c384_83 = arith.constant 384 : index
    %61 = vector.load %arg8[%c0_82, %c384_83] : memref<256x1152xf32, #tpu.memory_space<vmem>>, vector<256x128xf32>
    tpu.vector_store %arg8[%c0_82, %c384_83], %60 {strides = array<i32>} : memref<256x1152xf32, #tpu.memory_space<vmem>>, vector<256x128xf32>,
    %c1_84 = arith.constant 1 : index
    %c1_85 = arith.constant 1 : index
    %c0_86 = arith.constant 0 : index
    %62 = vector.load %arg7[%c1_84, %c1_85, %c0_86] : memref<18x18x128xf32, #tpu.memory_space<vmem>>, vector<16x16x128xf32>
    %63 = vector.shape_cast %62 : vector<16x16x128xf32> to vector<256x128xf32>
    %c0_87 = arith.constant 0 : index
    %c512_88 = arith.constant 512 : index
    %64 = vector.load %arg8[%c0_87, %c512_88] : memref<256x1152xf32, #tpu.memory_space<vmem>>, vector<256x128xf32>
    tpu.vector_store %arg8[%c0_87, %c512_88], %63 {strides = array<i32>} : memref<256x1152xf32, #tpu.memory_space<vmem>>, vector<256x128xf32>,
    %c1_89 = arith.constant 1 : index
    %c2_90 = arith.constant 2 : index
    %c0_91 = arith.constant 0 : index
    %65 = vector.load %arg7[%c1_89, %c2_90, %c0_91] : memref<18x18x128xf32, #tpu.memory_space<vmem>>, vector<16x16x128xf32>
    %66 = vector.shape_cast %65 : vector<16x16x128xf32> to vector<256x128xf32>
    %c0_92 = arith.constant 0 : index
    %c640_93 = arith.constant 640 : index
    %67 = vector.load %arg8[%c0_92, %c640_93] : memref<256x1152xf32, #tpu.memory_space<vmem>>, vector<256x128xf32>
    tpu.vector_store %arg8[%c0_92, %c640_93], %66 {strides = array<i32>} : memref<256x1152xf32, #tpu.memory_space<vmem>>, vector<256x128xf32>,
    %c2_94 = arith.constant 2 : index
    %c0_95 = arith.constant 0 : index
    %c0_96 = arith.constant 0 : index
    %68 = vector.load %arg7[%c2_94, %c0_95, %c0_96] : memref<18x18x128xf32, #tpu.memory_space<vmem>>, vector<16x16x128xf32>
    %69 = vector.shape_cast %68 : vector<16x16x128xf32> to vector<256x128xf32>
    %c0_97 = arith.constant 0 : index
    %c768_98 = arith.constant 768 : index
    %70 = vector.load %arg8[%c0_97, %c768_98] : memref<256x1152xf32, #tpu.memory_space<vmem>>, vector<256x128xf32>
    tpu.vector_store %arg8[%c0_97, %c768_98], %69 {strides = array<i32>} : memref<256x1152xf32, #tpu.memory_space<vmem>>, vector<256x128xf32>,
    %c2_99 = arith.constant 2 : index
    %c1_100 = arith.constant 1 : index
    %c0_101 = arith.constant 0 : index
    %71 = vector.load %arg7[%c2_99, %c1_100, %c0_101] : memref<18x18x128xf32, #tpu.memory_space<vmem>>, vector<16x16x128xf32>
    %72 = vector.shape_cast %71 : vector<16x16x128xf32> to vector<256x128xf32>
    %c0_102 = arith.constant 0 : index
    %c896_103 = arith.constant 896 : index
    %73 = vector.load %arg8[%c0_102, %c896_103] : memref<256x1152xf32, #tpu.memory_space<vmem>>, vector<256x128xf32>
    tpu.vector_store %arg8[%c0_102, %c896_103], %72 {strides = array<i32>} : memref<256x1152xf32, #tpu.memory_space<vmem>>, vector<256x128xf32>,
    %c2_104 = arith.constant 2 : index
    %c2_105 = arith.constant 2 : index
    %c0_106 = arith.constant 0 : index
    %74 = vector.load %arg7[%c2_104, %c2_105, %c0_106] : memref<18x18x128xf32, #tpu.memory_space<vmem>>, vector<16x16x128xf32>
    %75 = vector.shape_cast %74 : vector<16x16x128xf32> to vector<256x128xf32>
    %c0_107 = arith.constant 0 : index
    %c1024_108 = arith.constant 1024 : index
    %76 = vector.load %arg8[%c0_107, %c1024_108] : memref<256x1152xf32, #tpu.memory_space<vmem>>, vector<256x128xf32>
    tpu.vector_store %arg8[%c0_107, %c1024_108], %75 {strides = array<i32>} : memref<256x1152xf32, #tpu.memory_space<vmem>>, vector<256x128xf32>,
    %c0_109 = arith.constant 0 : index
    %c0_110 = arith.constant 0 : index
    %77 = vector.load %arg8[%c0_109, %c0_110] : memref<256x1152xf32, #tpu.memory_space<vmem>>, vector<256x1152xf32>
    %c1_111 = arith.constant 1 : index
    %c0_112 = arith.constant 0 : index
    %c0_113 = arith.constant 0 : index
    %78 = vector.load %arg2[%c1_111, %c0_112, %c0_113] : memref<5x1152x128xf32, #tpu.memory_space<vmem>>, vector<1x1152x128xf32>
    %79 = vector.shape_cast %78 : vector<1x1152x128xf32> to vector<1152x128xf32>
    %cst_114 = arith.constant dense<0.000000e+00> : vector<256x128xf32>
    %80 = tpu.matmul %77, %79, %cst_114 {dimension_numbers = #tpu.dot_dimension_numbers<[1], [0], [0], [1], [0, 0, 1, 1], [], []>} : vector<256x1152xf32>, vector<1152x128xf32>, vector<256x128xf32> -> vector<256x128xf32>
    %c1_115 = arith.constant 1 : index
    %c0_116 = arith.constant 0 : index
    %c0_117 = arith.constant 0 : index
    %81 = vector.load %arg3[%c1_115, %c0_116, %c0_117] : memref<5x1x128xf32, #tpu.memory_space<vmem>>, vector<1x1x128xf32>
    %82 = vector.shape_cast %81 : vector<1x1x128xf32> to vector<1x128xf32>
    %83 = vector.broadcast %82 : vector<1x128xf32> to vector<256x128xf32>
    %84 = arith.mulf %80, %83 : vector<256x128xf32>
    %c1_118 = arith.constant 1 : index
    %c0_119 = arith.constant 0 : index
    %c0_120 = arith.constant 0 : index
    %85 = vector.load %arg4[%c1_118, %c0_119, %c0_120] : memref<5x1x128xf32, #tpu.memory_space<vmem>>, vector<1x1x128xf32>
    %86 = vector.shape_cast %85 : vector<1x1x128xf32> to vector<1x128xf32>
    %87 = vector.broadcast %86 : vector<1x128xf32> to vector<256x128xf32>
    %88 = arith.addf %84, %87 : vector<256x128xf32>
    %cst_121 = arith.constant 0.000000e+00 : f32
    %89 = vector.broadcast %cst_121 : f32 to vector<256x128xf32>
    %90 = arith.maximumf %88, %89 : vector<256x128xf32>
    %91 = vector.shape_cast %90 : vector<256x128xf32> to vector<16x16x128xf32>
    %c1_122 = arith.constant 1 : index
    %c1_123 = arith.constant 1 : index
    %c0_124 = arith.constant 0 : index
    %92 = vector.load %arg6[%c1_122, %c1_123, %c0_124] : memref<18x18x128xf32, #tpu.memory_space<vmem>>, vector<16x16x128xf32>
    tpu.vector_store %arg6[%c1_122, %c1_123, %c0_124], %91 {strides = array<i32>} : memref<18x18x128xf32, #tpu.memory_space<vmem>>, vector<16x16x128xf32>,
    %c0_125 = arith.constant 0 : index
    %c0_126 = arith.constant 0 : index
    %c0_127 = arith.constant 0 : index
    %93 = vector.load %arg6[%c0_125, %c0_126, %c0_127] : memref<18x18x128xf32, #tpu.memory_space<vmem>>, vector<16x16x128xf32>
    %94 = vector.shape_cast %93 : vector<16x16x128xf32> to vector<256x128xf32>
    %c0_128 = arith.constant 0 : index
    %c0_129 = arith.constant 0 : index
    %95 = vector.load %arg8[%c0_128, %c0_129] : memref<256x1152xf32, #tpu.memory_space<vmem>>, vector<256x128xf32>
    tpu.vector_store %arg8[%c0_128, %c0_129], %94 {strides = array<i32>} : memref<256x1152xf32, #tpu.memory_space<vmem>>, vector<256x128xf32>,
    %c0_130 = arith.constant 0 : index
    %c1_131 = arith.constant 1 : index
    %c0_132 = arith.constant 0 : index
    %96 = vector.load %arg6[%c0_130, %c1_131, %c0_132] : memref<18x18x128xf32, #tpu.memory_space<vmem>>, vector<16x16x128xf32>
    %97 = vector.shape_cast %96 : vector<16x16x128xf32> to vector<256x128xf32>
    %c0_133 = arith.constant 0 : index
    %c128_134 = arith.constant 128 : index
    %98 = vector.load %arg8[%c0_133, %c128_134] : memref<256x1152xf32, #tpu.memory_space<vmem>>, vector<256x128xf32>
    tpu.vector_store %arg8[%c0_133, %c128_134], %97 {strides = array<i32>} : memref<256x1152xf32, #tpu.memory_space<vmem>>, vector<256x128xf32>,
    %c0_135 = arith.constant 0 : index
    %c2_136 = arith.constant 2 : index
    %c0_137 = arith.constant 0 : index
    %99 = vector.load %arg6[%c0_135, %c2_136, %c0_137] : memref<18x18x128xf32, #tpu.memory_space<vmem>>, vector<16x16x128xf32>
    %100 = vector.shape_cast %99 : vector<16x16x128xf32> to vector<256x128xf32>
    %c0_138 = arith.constant 0 : index
    %c256_139 = arith.constant 256 : index
    %101 = vector.load %arg8[%c0_138, %c256_139] : memref<256x1152xf32, #tpu.memory_space<vmem>>, vector<256x128xf32>
    tpu.vector_store %arg8[%c0_138, %c256_139], %100 {strides = array<i32>} : memref<256x1152xf32, #tpu.memory_space<vmem>>, vector<256x128xf32>,
    %c1_140 = arith.constant 1 : index
    %c0_141 = arith.constant 0 : index
    %c0_142 = arith.constant 0 : index
    %102 = vector.load %arg6[%c1_140, %c0_141, %c0_142] : memref<18x18x128xf32, #tpu.memory_space<vmem>>, vector<16x16x128xf32>
    %103 = vector.shape_cast %102 : vector<16x16x128xf32> to vector<256x128xf32>
    %c0_143 = arith.constant 0 : index
    %c384_144 = arith.constant 384 : index
    %104 = vector.load %arg8[%c0_143, %c384_144] : memref<256x1152xf32, #tpu.memory_space<vmem>>, vector<256x128xf32>
    tpu.vector_store %arg8[%c0_143, %c384_144], %103 {strides = array<i32>} : memref<256x1152xf32, #tpu.memory_space<vmem>>, vector<256x128xf32>,
    %c1_145 = arith.constant 1 : index
    %c1_146 = arith.constant 1 : index
    %c0_147 = arith.constant 0 : index
    %105 = vector.load %arg6[%c1_145, %c1_146, %c0_147] : memref<18x18x128xf32, #tpu.memory_space<vmem>>, vector<16x16x128xf32>
    %106 = vector.shape_cast %105 : vector<16x16x128xf32> to vector<256x128xf32>
    %c0_148 = arith.constant 0 : index
    %c512_149 = arith.constant 512 : index
    %107 = vector.load %arg8[%c0_148, %c512_149] : memref<256x1152xf32, #tpu.memory_space<vmem>>, vector<256x128xf32>
    tpu.vector_store %arg8[%c0_148, %c512_149], %106 {strides = array<i32>} : memref<256x1152xf32, #tpu.memory_space<vmem>>, vector<256x128xf32>,
    %c1_150 = arith.constant 1 : index
    %c2_151 = arith.constant 2 : index
    %c0_152 = arith.constant 0 : index
    %108 = vector.load %arg6[%c1_150, %c2_151, %c0_152] : memref<18x18x128xf32, #tpu.memory_space<vmem>>, vector<16x16x128xf32>
    %109 = vector.shape_cast %108 : vector<16x16x128xf32> to vector<256x128xf32>
    %c0_153 = arith.constant 0 : index
    %c640_154 = arith.constant 640 : index
    %110 = vector.load %arg8[%c0_153, %c640_154] : memref<256x1152xf32, #tpu.memory_space<vmem>>, vector<256x128xf32>
    tpu.vector_store %arg8[%c0_153, %c640_154], %109 {strides = array<i32>} : memref<256x1152xf32, #tpu.memory_space<vmem>>, vector<256x128xf32>,
    %c2_155 = arith.constant 2 : index
    %c0_156 = arith.constant 0 : index
    %c0_157 = arith.constant 0 : index
    %111 = vector.load %arg6[%c2_155, %c0_156, %c0_157] : memref<18x18x128xf32, #tpu.memory_space<vmem>>, vector<16x16x128xf32>
    %112 = vector.shape_cast %111 : vector<16x16x128xf32> to vector<256x128xf32>
    %c0_158 = arith.constant 0 : index
    %c768_159 = arith.constant 768 : index
    %113 = vector.load %arg8[%c0_158, %c768_159] : memref<256x1152xf32, #tpu.memory_space<vmem>>, vector<256x128xf32>
    tpu.vector_store %arg8[%c0_158, %c768_159], %112 {strides = array<i32>} : memref<256x1152xf32, #tpu.memory_space<vmem>>, vector<256x128xf32>,
    %c2_160 = arith.constant 2 : index
    %c1_161 = arith.constant 1 : index
    %c0_162 = arith.constant 0 : index
    %114 = vector.load %arg6[%c2_160, %c1_161, %c0_162] : memref<18x18x128xf32, #tpu.memory_space<vmem>>, vector<16x16x128xf32>
    %115 = vector.shape_cast %114 : vector<16x16x128xf32> to vector<256x128xf32>
    %c0_163 = arith.constant 0 : index
    %c896_164 = arith.constant 896 : index
    %116 = vector.load %arg8[%c0_163, %c896_164] : memref<256x1152xf32, #tpu.memory_space<vmem>>, vector<256x128xf32>
    tpu.vector_store %arg8[%c0_163, %c896_164], %115 {strides = array<i32>} : memref<256x1152xf32, #tpu.memory_space<vmem>>, vector<256x128xf32>,
    %c2_165 = arith.constant 2 : index
    %c2_166 = arith.constant 2 : index
    %c0_167 = arith.constant 0 : index
    %117 = vector.load %arg6[%c2_165, %c2_166, %c0_167] : memref<18x18x128xf32, #tpu.memory_space<vmem>>, vector<16x16x128xf32>
    %118 = vector.shape_cast %117 : vector<16x16x128xf32> to vector<256x128xf32>
    %c0_168 = arith.constant 0 : index
    %c1024_169 = arith.constant 1024 : index
    %119 = vector.load %arg8[%c0_168, %c1024_169] : memref<256x1152xf32, #tpu.memory_space<vmem>>, vector<256x128xf32>
    tpu.vector_store %arg8[%c0_168, %c1024_169], %118 {strides = array<i32>} : memref<256x1152xf32, #tpu.memory_space<vmem>>, vector<256x128xf32>,
    %c0_170 = arith.constant 0 : index
    %c0_171 = arith.constant 0 : index
    %120 = vector.load %arg8[%c0_170, %c0_171] : memref<256x1152xf32, #tpu.memory_space<vmem>>, vector<256x1152xf32>
    %c2_172 = arith.constant 2 : index
    %c0_173 = arith.constant 0 : index
    %c0_174 = arith.constant 0 : index
    %121 = vector.load %arg2[%c2_172, %c0_173, %c0_174] : memref<5x1152x128xf32, #tpu.memory_space<vmem>>, vector<1x1152x128xf32>
    %122 = vector.shape_cast %121 : vector<1x1152x128xf32> to vector<1152x128xf32>
    %cst_175 = arith.constant dense<0.000000e+00> : vector<256x128xf32>
    %123 = tpu.matmul %120, %122, %cst_175 {dimension_numbers = #tpu.dot_dimension_numbers<[1], [0], [0], [1], [0, 0, 1, 1], [], []>} : vector<256x1152xf32>, vector<1152x128xf32>, vector<256x128xf32> -> vector<256x128xf32>
    %c2_176 = arith.constant 2 : index
    %c0_177 = arith.constant 0 : index
    %c0_178 = arith.constant 0 : index
    %124 = vector.load %arg3[%c2_176, %c0_177, %c0_178] : memref<5x1x128xf32, #tpu.memory_space<vmem>>, vector<1x1x128xf32>
    %125 = vector.shape_cast %124 : vector<1x1x128xf32> to vector<1x128xf32>
    %126 = vector.broadcast %125 : vector<1x128xf32> to vector<256x128xf32>
    %127 = arith.mulf %123, %126 : vector<256x128xf32>
    %c2_179 = arith.constant 2 : index
    %c0_180 = arith.constant 0 : index
    %c0_181 = arith.constant 0 : index
    %128 = vector.load %arg4[%c2_179, %c0_180, %c0_181] : memref<5x1x128xf32, #tpu.memory_space<vmem>>, vector<1x1x128xf32>
    %129 = vector.shape_cast %128 : vector<1x1x128xf32> to vector<1x128xf32>
    %130 = vector.broadcast %129 : vector<1x128xf32> to vector<256x128xf32>
    %131 = arith.addf %127, %130 : vector<256x128xf32>
    %cst_182 = arith.constant 0.000000e+00 : f32
    %132 = vector.broadcast %cst_182 : f32 to vector<256x128xf32>
    %133 = arith.maximumf %131, %132 : vector<256x128xf32>
    %134 = vector.shape_cast %133 : vector<256x128xf32> to vector<16x16x128xf32>
    %c1_183 = arith.constant 1 : index
    %c1_184 = arith.constant 1 : index
    %c0_185 = arith.constant 0 : index
    %135 = vector.load %arg7[%c1_183, %c1_184, %c0_185] : memref<18x18x128xf32, #tpu.memory_space<vmem>>, vector<16x16x128xf32>
    tpu.vector_store %arg7[%c1_183, %c1_184, %c0_185], %134 {strides = array<i32>} : memref<18x18x128xf32, #tpu.memory_space<vmem>>, vector<16x16x128xf32>,
    %c0_186 = arith.constant 0 : index
    %c0_187 = arith.constant 0 : index
    %c0_188 = arith.constant 0 : index
    %136 = vector.load %arg7[%c0_186, %c0_187, %c0_188] : memref<18x18x128xf32, #tpu.memory_space<vmem>>, vector<16x16x128xf32>
    %137 = vector.shape_cast %136 : vector<16x16x128xf32> to vector<256x128xf32>
    %c0_189 = arith.constant 0 : index
    %c0_190 = arith.constant 0 : index
    %138 = vector.load %arg8[%c0_189, %c0_190] : memref<256x1152xf32, #tpu.memory_space<vmem>>, vector<256x128xf32>
    tpu.vector_store %arg8[%c0_189, %c0_190], %137 {strides = array<i32>} : memref<256x1152xf32, #tpu.memory_space<vmem>>, vector<256x128xf32>,
    %c0_191 = arith.constant 0 : index
    %c1_192 = arith.constant 1 : index
    %c0_193 = arith.constant 0 : index
    %139 = vector.load %arg7[%c0_191, %c1_192, %c0_193] : memref<18x18x128xf32, #tpu.memory_space<vmem>>, vector<16x16x128xf32>
    %140 = vector.shape_cast %139 : vector<16x16x128xf32> to vector<256x128xf32>
    %c0_194 = arith.constant 0 : index
    %c128_195 = arith.constant 128 : index
    %141 = vector.load %arg8[%c0_194, %c128_195] : memref<256x1152xf32, #tpu.memory_space<vmem>>, vector<256x128xf32>
    tpu.vector_store %arg8[%c0_194, %c128_195], %140 {strides = array<i32>} : memref<256x1152xf32, #tpu.memory_space<vmem>>, vector<256x128xf32>,
    %c0_196 = arith.constant 0 : index
    %c2_197 = arith.constant 2 : index
    %c0_198 = arith.constant 0 : index
    %142 = vector.load %arg7[%c0_196, %c2_197, %c0_198] : memref<18x18x128xf32, #tpu.memory_space<vmem>>, vector<16x16x128xf32>
    %143 = vector.shape_cast %142 : vector<16x16x128xf32> to vector<256x128xf32>
    %c0_199 = arith.constant 0 : index
    %c256_200 = arith.constant 256 : index
    %144 = vector.load %arg8[%c0_199, %c256_200] : memref<256x1152xf32, #tpu.memory_space<vmem>>, vector<256x128xf32>
    tpu.vector_store %arg8[%c0_199, %c256_200], %143 {strides = array<i32>} : memref<256x1152xf32, #tpu.memory_space<vmem>>, vector<256x128xf32>,
    %c1_201 = arith.constant 1 : index
    %c0_202 = arith.constant 0 : index
    %c0_203 = arith.constant 0 : index
    %145 = vector.load %arg7[%c1_201, %c0_202, %c0_203] : memref<18x18x128xf32, #tpu.memory_space<vmem>>, vector<16x16x128xf32>
    %146 = vector.shape_cast %145 : vector<16x16x128xf32> to vector<256x128xf32>
    %c0_204 = arith.constant 0 : index
    %c384_205 = arith.constant 384 : index
    %147 = vector.load %arg8[%c0_204, %c384_205] : memref<256x1152xf32, #tpu.memory_space<vmem>>, vector<256x128xf32>
    tpu.vector_store %arg8[%c0_204, %c384_205], %146 {strides = array<i32>} : memref<256x1152xf32, #tpu.memory_space<vmem>>, vector<256x128xf32>,
    %c1_206 = arith.constant 1 : index
    %c1_207 = arith.constant 1 : index
    %c0_208 = arith.constant 0 : index
    %148 = vector.load %arg7[%c1_206, %c1_207, %c0_208] : memref<18x18x128xf32, #tpu.memory_space<vmem>>, vector<16x16x128xf32>
    %149 = vector.shape_cast %148 : vector<16x16x128xf32> to vector<256x128xf32>
    %c0_209 = arith.constant 0 : index
    %c512_210 = arith.constant 512 : index
    %150 = vector.load %arg8[%c0_209, %c512_210] : memref<256x1152xf32, #tpu.memory_space<vmem>>, vector<256x128xf32>
    tpu.vector_store %arg8[%c0_209, %c512_210], %149 {strides = array<i32>} : memref<256x1152xf32, #tpu.memory_space<vmem>>, vector<256x128xf32>,
    %c1_211 = arith.constant 1 : index
    %c2_212 = arith.constant 2 : index
    %c0_213 = arith.constant 0 : index
    %151 = vector.load %arg7[%c1_211, %c2_212, %c0_213] : memref<18x18x128xf32, #tpu.memory_space<vmem>>, vector<16x16x128xf32>
    %152 = vector.shape_cast %151 : vector<16x16x128xf32> to vector<256x128xf32>
    %c0_214 = arith.constant 0 : index
    %c640_215 = arith.constant 640 : index
    %153 = vector.load %arg8[%c0_214, %c640_215] : memref<256x1152xf32, #tpu.memory_space<vmem>>, vector<256x128xf32>
    tpu.vector_store %arg8[%c0_214, %c640_215], %152 {strides = array<i32>} : memref<256x1152xf32, #tpu.memory_space<vmem>>, vector<256x128xf32>,
    %c2_216 = arith.constant 2 : index
    %c0_217 = arith.constant 0 : index
    %c0_218 = arith.constant 0 : index
    %154 = vector.load %arg7[%c2_216, %c0_217, %c0_218] : memref<18x18x128xf32, #tpu.memory_space<vmem>>, vector<16x16x128xf32>
    %155 = vector.shape_cast %154 : vector<16x16x128xf32> to vector<256x128xf32>
    %c0_219 = arith.constant 0 : index
    %c768_220 = arith.constant 768 : index
    %156 = vector.load %arg8[%c0_219, %c768_220] : memref<256x1152xf32, #tpu.memory_space<vmem>>, vector<256x128xf32>
    tpu.vector_store %arg8[%c0_219, %c768_220], %155 {strides = array<i32>} : memref<256x1152xf32, #tpu.memory_space<vmem>>, vector<256x128xf32>,
    %c2_221 = arith.constant 2 : index
    %c1_222 = arith.constant 1 : index
    %c0_223 = arith.constant 0 : index
    %157 = vector.load %arg7[%c2_221, %c1_222, %c0_223] : memref<18x18x128xf32, #tpu.memory_space<vmem>>, vector<16x16x128xf32>
    %158 = vector.shape_cast %157 : vector<16x16x128xf32> to vector<256x128xf32>
    %c0_224 = arith.constant 0 : index
    %c896_225 = arith.constant 896 : index
    %159 = vector.load %arg8[%c0_224, %c896_225] : memref<256x1152xf32, #tpu.memory_space<vmem>>, vector<256x128xf32>
    tpu.vector_store %arg8[%c0_224, %c896_225], %158 {strides = array<i32>} : memref<256x1152xf32, #tpu.memory_space<vmem>>, vector<256x128xf32>,
    %c2_226 = arith.constant 2 : index
    %c2_227 = arith.constant 2 : index
    %c0_228 = arith.constant 0 : index
    %160 = vector.load %arg7[%c2_226, %c2_227, %c0_228] : memref<18x18x128xf32, #tpu.memory_space<vmem>>, vector<16x16x128xf32>
    %161 = vector.shape_cast %160 : vector<16x16x128xf32> to vector<256x128xf32>
    %c0_229 = arith.constant 0 : index
    %c1024_230 = arith.constant 1024 : index
    %162 = vector.load %arg8[%c0_229, %c1024_230] : memref<256x1152xf32, #tpu.memory_space<vmem>>, vector<256x128xf32>
    tpu.vector_store %arg8[%c0_229, %c1024_230], %161 {strides = array<i32>} : memref<256x1152xf32, #tpu.memory_space<vmem>>, vector<256x128xf32>,
    %c0_231 = arith.constant 0 : index
    %c0_232 = arith.constant 0 : index
    %163 = vector.load %arg8[%c0_231, %c0_232] : memref<256x1152xf32, #tpu.memory_space<vmem>>, vector<256x1152xf32>
    %c3 = arith.constant 3 : index
    %c0_233 = arith.constant 0 : index
    %c0_234 = arith.constant 0 : index
    %164 = vector.load %arg2[%c3, %c0_233, %c0_234] : memref<5x1152x128xf32, #tpu.memory_space<vmem>>, vector<1x1152x128xf32>
    %165 = vector.shape_cast %164 : vector<1x1152x128xf32> to vector<1152x128xf32>
    %cst_235 = arith.constant dense<0.000000e+00> : vector<256x128xf32>
    %166 = tpu.matmul %163, %165, %cst_235 {dimension_numbers = #tpu.dot_dimension_numbers<[1], [0], [0], [1], [0, 0, 1, 1], [], []>} : vector<256x1152xf32>, vector<1152x128xf32>, vector<256x128xf32> -> vector<256x128xf32>
    %c3_236 = arith.constant 3 : index
    %c0_237 = arith.constant 0 : index
    %c0_238 = arith.constant 0 : index
    %167 = vector.load %arg3[%c3_236, %c0_237, %c0_238] : memref<5x1x128xf32, #tpu.memory_space<vmem>>, vector<1x1x128xf32>
    %168 = vector.shape_cast %167 : vector<1x1x128xf32> to vector<1x128xf32>
    %169 = vector.broadcast %168 : vector<1x128xf32> to vector<256x128xf32>
    %170 = arith.mulf %166, %169 : vector<256x128xf32>
    %c3_239 = arith.constant 3 : index
    %c0_240 = arith.constant 0 : index
    %c0_241 = arith.constant 0 : index
    %171 = vector.load %arg4[%c3_239, %c0_240, %c0_241] : memref<5x1x128xf32, #tpu.memory_space<vmem>>, vector<1x1x128xf32>
    %172 = vector.shape_cast %171 : vector<1x1x128xf32> to vector<1x128xf32>
    %173 = vector.broadcast %172 : vector<1x128xf32> to vector<256x128xf32>
    %174 = arith.addf %170, %173 : vector<256x128xf32>
    %cst_242 = arith.constant 0.000000e+00 : f32
    %175 = vector.broadcast %cst_242 : f32 to vector<256x128xf32>
    %176 = arith.maximumf %174, %175 : vector<256x128xf32>
    %177 = vector.shape_cast %176 : vector<256x128xf32> to vector<16x16x128xf32>
    %c1_243 = arith.constant 1 : index
    %c1_244 = arith.constant 1 : index
    %c0_245 = arith.constant 0 : index
    %178 = vector.load %arg6[%c1_243, %c1_244, %c0_245] : memref<18x18x128xf32, #tpu.memory_space<vmem>>, vector<16x16x128xf32>
    tpu.vector_store %arg6[%c1_243, %c1_244, %c0_245], %177 {strides = array<i32>} : memref<18x18x128xf32, #tpu.memory_space<vmem>>, vector<16x16x128xf32>,
    %c0_246 = arith.constant 0 : index
    %c0_247 = arith.constant 0 : index
    %c0_248 = arith.constant 0 : index
    %179 = vector.load %arg6[%c0_246, %c0_247, %c0_248] : memref<18x18x128xf32, #tpu.memory_space<vmem>>, vector<16x16x128xf32>
    %180 = vector.shape_cast %179 : vector<16x16x128xf32> to vector<256x128xf32>
    %c0_249 = arith.constant 0 : index
    %c0_250 = arith.constant 0 : index
    %181 = vector.load %arg8[%c0_249, %c0_250] : memref<256x1152xf32, #tpu.memory_space<vmem>>, vector<256x128xf32>
    tpu.vector_store %arg8[%c0_249, %c0_250], %180 {strides = array<i32>} : memref<256x1152xf32, #tpu.memory_space<vmem>>, vector<256x128xf32>,
    %c0_251 = arith.constant 0 : index
    %c1_252 = arith.constant 1 : index
    %c0_253 = arith.constant 0 : index
    %182 = vector.load %arg6[%c0_251, %c1_252, %c0_253] : memref<18x18x128xf32, #tpu.memory_space<vmem>>, vector<16x16x128xf32>
    %183 = vector.shape_cast %182 : vector<16x16x128xf32> to vector<256x128xf32>
    %c0_254 = arith.constant 0 : index
    %c128_255 = arith.constant 128 : index
    %184 = vector.load %arg8[%c0_254, %c128_255] : memref<256x1152xf32, #tpu.memory_space<vmem>>, vector<256x128xf32>
    tpu.vector_store %arg8[%c0_254, %c128_255], %183 {strides = array<i32>} : memref<256x1152xf32, #tpu.memory_space<vmem>>, vector<256x128xf32>,
    %c0_256 = arith.constant 0 : index
    %c2_257 = arith.constant 2 : index
    %c0_258 = arith.constant 0 : index
    %185 = vector.load %arg6[%c0_256, %c2_257, %c0_258] : memref<18x18x128xf32, #tpu.memory_space<vmem>>, vector<16x16x128xf32>
    %186 = vector.shape_cast %185 : vector<16x16x128xf32> to vector<256x128xf32>
    %c0_259 = arith.constant 0 : index
    %c256_260 = arith.constant 256 : index
    %187 = vector.load %arg8[%c0_259, %c256_260] : memref<256x1152xf32, #tpu.memory_space<vmem>>, vector<256x128xf32>
    tpu.vector_store %arg8[%c0_259, %c256_260], %186 {strides = array<i32>} : memref<256x1152xf32, #tpu.memory_space<vmem>>, vector<256x128xf32>,
    %c1_261 = arith.constant 1 : index
    %c0_262 = arith.constant 0 : index
    %c0_263 = arith.constant 0 : index
    %188 = vector.load %arg6[%c1_261, %c0_262, %c0_263] : memref<18x18x128xf32, #tpu.memory_space<vmem>>, vector<16x16x128xf32>
    %189 = vector.shape_cast %188 : vector<16x16x128xf32> to vector<256x128xf32>
    %c0_264 = arith.constant 0 : index
    %c384_265 = arith.constant 384 : index
    %190 = vector.load %arg8[%c0_264, %c384_265] : memref<256x1152xf32, #tpu.memory_space<vmem>>, vector<256x128xf32>
    tpu.vector_store %arg8[%c0_264, %c384_265], %189 {strides = array<i32>} : memref<256x1152xf32, #tpu.memory_space<vmem>>, vector<256x128xf32>,
    %c1_266 = arith.constant 1 : index
    %c1_267 = arith.constant 1 : index
    %c0_268 = arith.constant 0 : index
    %191 = vector.load %arg6[%c1_266, %c1_267, %c0_268] : memref<18x18x128xf32, #tpu.memory_space<vmem>>, vector<16x16x128xf32>
    %192 = vector.shape_cast %191 : vector<16x16x128xf32> to vector<256x128xf32>
    %c0_269 = arith.constant 0 : index
    %c512_270 = arith.constant 512 : index
    %193 = vector.load %arg8[%c0_269, %c512_270] : memref<256x1152xf32, #tpu.memory_space<vmem>>, vector<256x128xf32>
    tpu.vector_store %arg8[%c0_269, %c512_270], %192 {strides = array<i32>} : memref<256x1152xf32, #tpu.memory_space<vmem>>, vector<256x128xf32>,
    %c1_271 = arith.constant 1 : index
    %c2_272 = arith.constant 2 : index
    %c0_273 = arith.constant 0 : index
    %194 = vector.load %arg6[%c1_271, %c2_272, %c0_273] : memref<18x18x128xf32, #tpu.memory_space<vmem>>, vector<16x16x128xf32>
    %195 = vector.shape_cast %194 : vector<16x16x128xf32> to vector<256x128xf32>
    %c0_274 = arith.constant 0 : index
    %c640_275 = arith.constant 640 : index
    %196 = vector.load %arg8[%c0_274, %c640_275] : memref<256x1152xf32, #tpu.memory_space<vmem>>, vector<256x128xf32>
    tpu.vector_store %arg8[%c0_274, %c640_275], %195 {strides = array<i32>} : memref<256x1152xf32, #tpu.memory_space<vmem>>, vector<256x128xf32>,
    %c2_276 = arith.constant 2 : index
    %c0_277 = arith.constant 0 : index
    %c0_278 = arith.constant 0 : index
    %197 = vector.load %arg6[%c2_276, %c0_277, %c0_278] : memref<18x18x128xf32, #tpu.memory_space<vmem>>, vector<16x16x128xf32>
    %198 = vector.shape_cast %197 : vector<16x16x128xf32> to vector<256x128xf32>
    %c0_279 = arith.constant 0 : index
    %c768_280 = arith.constant 768 : index
    %199 = vector.load %arg8[%c0_279, %c768_280] : memref<256x1152xf32, #tpu.memory_space<vmem>>, vector<256x128xf32>
    tpu.vector_store %arg8[%c0_279, %c768_280], %198 {strides = array<i32>} : memref<256x1152xf32, #tpu.memory_space<vmem>>, vector<256x128xf32>,
    %c2_281 = arith.constant 2 : index
    %c1_282 = arith.constant 1 : index
    %c0_283 = arith.constant 0 : index
    %200 = vector.load %arg6[%c2_281, %c1_282, %c0_283] : memref<18x18x128xf32, #tpu.memory_space<vmem>>, vector<16x16x128xf32>
    %201 = vector.shape_cast %200 : vector<16x16x128xf32> to vector<256x128xf32>
    %c0_284 = arith.constant 0 : index
    %c896_285 = arith.constant 896 : index
    %202 = vector.load %arg8[%c0_284, %c896_285] : memref<256x1152xf32, #tpu.memory_space<vmem>>, vector<256x128xf32>
    tpu.vector_store %arg8[%c0_284, %c896_285], %201 {strides = array<i32>} : memref<256x1152xf32, #tpu.memory_space<vmem>>, vector<256x128xf32>,
    %c2_286 = arith.constant 2 : index
    %c2_287 = arith.constant 2 : index
    %c0_288 = arith.constant 0 : index
    %203 = vector.load %arg6[%c2_286, %c2_287, %c0_288] : memref<18x18x128xf32, #tpu.memory_space<vmem>>, vector<16x16x128xf32>
    %204 = vector.shape_cast %203 : vector<16x16x128xf32> to vector<256x128xf32>
    %c0_289 = arith.constant 0 : index
    %c1024_290 = arith.constant 1024 : index
    %205 = vector.load %arg8[%c0_289, %c1024_290] : memref<256x1152xf32, #tpu.memory_space<vmem>>, vector<256x128xf32>
    tpu.vector_store %arg8[%c0_289, %c1024_290], %204 {strides = array<i32>} : memref<256x1152xf32, #tpu.memory_space<vmem>>, vector<256x128xf32>,
    %c0_291 = arith.constant 0 : index
    %c0_292 = arith.constant 0 : index
    %206 = vector.load %arg8[%c0_291, %c0_292] : memref<256x1152xf32, #tpu.memory_space<vmem>>, vector<256x1152xf32>
    %c4 = arith.constant 4 : index
    %c0_293 = arith.constant 0 : index
    %c0_294 = arith.constant 0 : index
    %207 = vector.load %arg2[%c4, %c0_293, %c0_294] : memref<5x1152x128xf32, #tpu.memory_space<vmem>>, vector<1x1152x128xf32>
    %208 = vector.shape_cast %207 : vector<1x1152x128xf32> to vector<1152x128xf32>
    %cst_295 = arith.constant dense<0.000000e+00> : vector<256x128xf32>
    %209 = tpu.matmul %206, %208, %cst_295 {dimension_numbers = #tpu.dot_dimension_numbers<[1], [0], [0], [1], [0, 0, 1, 1], [], []>} : vector<256x1152xf32>, vector<1152x128xf32>, vector<256x128xf32> -> vector<256x128xf32>
    %c4_296 = arith.constant 4 : index
    %c0_297 = arith.constant 0 : index
    %c0_298 = arith.constant 0 : index
    %210 = vector.load %arg3[%c4_296, %c0_297, %c0_298] : memref<5x1x128xf32, #tpu.memory_space<vmem>>, vector<1x1x128xf32>
    %211 = vector.shape_cast %210 : vector<1x1x128xf32> to vector<1x128xf32>
    %212 = vector.broadcast %211 : vector<1x128xf32> to vector<256x128xf32>
    %213 = arith.mulf %209, %212 : vector<256x128xf32>
    %c4_299 = arith.constant 4 : index
    %c0_300 = arith.constant 0 : index
    %c0_301 = arith.constant 0 : index
    %214 = vector.load %arg4[%c4_299, %c0_300, %c0_301] : memref<5x1x128xf32, #tpu.memory_space<vmem>>, vector<1x1x128xf32>
    %215 = vector.shape_cast %214 : vector<1x1x128xf32> to vector<1x128xf32>
    %216 = vector.broadcast %215 : vector<1x128xf32> to vector<256x128xf32>
    %217 = arith.addf %213, %216 : vector<256x128xf32>
    %218 = arith.negf %217 : vector<256x128xf32>
    %219 = math.exp %218 : vector<256x128xf32>
    %cst_302 = arith.constant 1.000000e+00 : f32
    %220 = vector.broadcast %cst_302 : f32 to vector<256x128xf32>
    %221 = arith.addf %220, %219 : vector<256x128xf32>
    %222 = arith.divf %220, %221 : vector<256x128xf32>
    %c0_303 = arith.constant 0 : index
    %c0_304 = arith.constant 0 : index
    %c0_305 = arith.constant 0 : index
    %223 = vector.load %arg5[%c0_303, %c0_304, %c0_305] : memref<1x256x128xf32, #tpu.memory_space<vmem>>, vector<1x256x128xf32>
    %224 = vector.shape_cast %223 : vector<1x256x128xf32> to vector<256x128xf32>
    %225 = vector.shape_cast %222 : vector<256x128xf32> to vector<1x256x128xf32>
    tpu.vector_store %arg5[%c0_303, %c0_304, %c0_305], %225 {strides = array<i32>} : memref<1x256x128xf32, #tpu.memory_space<vmem>>, vector<1x256x128xf32>,
    return
  }
  func.func @transform_0(%arg0: i32) -> (i32, i32, i32, i32) {
    %c0_i32 = arith.constant 0 : i32
    %c0_i32_0 = arith.constant 0 : i32
    %c0_i32_1 = arith.constant 0 : i32
    %c0_i32_2 = arith.constant 0 : i32
    return %arg0, %c0_i32, %c0_i32_0, %c0_i32_1 : i32, i32, i32, i32
  }
  func.func @transform_1(%arg0: i32) -> (i32, i32, i32) {
    %c0_i32 = arith.constant 0 : i32
    %c0_i32_0 = arith.constant 0 : i32
    %c0_i32_1 = arith.constant 0 : i32
    %c0_i32_2 = arith.constant 0 : i32
    return %c0_i32, %c0_i32_0, %c0_i32_1 : i32, i32, i32
  }
  func.func @transform_2(%arg0: i32) -> (i32, i32, i32) {
    %c0_i32 = arith.constant 0 : i32
    %c0_i32_0 = arith.constant 0 : i32
    %c0_i32_1 = arith.constant 0 : i32
    %c0_i32_2 = arith.constant 0 : i32
    return %c0_i32, %c0_i32_0, %c0_i32_1 : i32, i32, i32
  }
  func.func @transform_3(%arg0: i32) -> (i32, i32, i32) {
    %c0_i32 = arith.constant 0 : i32
    %c0_i32_0 = arith.constant 0 : i32
    %c0_i32_1 = arith.constant 0 : i32
    %c0_i32_2 = arith.constant 0 : i32
    return %c0_i32, %c0_i32_0, %c0_i32_1 : i32, i32, i32
  }
  func.func @transform_4(%arg0: i32) -> (i32, i32, i32) {
    %c0_i32 = arith.constant 0 : i32
    %c0_i32_0 = arith.constant 0 : i32
    %c0_i32_1 = arith.constant 0 : i32
    return %arg0, %c0_i32, %c0_i32_0 : i32, i32, i32
  }
}

</mosaic_0001>

<bundles_post_ra>
// kernel: cls_head_forward.1
= control target key start
LH: loop header
LB: loop body
LE: loop exit
PB: predicated region body
PF: predicated region fallthrough
CT: control target
= control target key end

     0   :  { %9 = vsyncpa [#allocation6], 0  ;;  %s18638_s0 = inlined_call_operand.vmem [shape: f32[2,16,16,128], index: 0, kind: input, shape index: {}]   ;;  %s18639_s1 = inlined_call_operand.hbm [shape: f32[5,1152,128], index: 1, kind: input, shape index: {}]   ;;  %s18640_s2 = inlined_call_operand.hbm [shape: f32[5,1,128], index: 2, kind: input, shape index: {}]   ;;  %s18641_s3 = inlined_call_operand.hbm [shape: f32[5,1,128], index: 3, kind: input, shape index: {}]   ;;  %s18642_s4 = inlined_call_operand.vmem [shape: f32[2,256,128], index: 4, kind: output, shape index: {}]  }
   0x1   :  { %10 = vsyncpa [#allocation8], 0  ;;  %s15163_s15 = smov 0  }
   0x2 LB: > { %s15129_s16 = smov [#allocation7]   ;;  %s15169_s18 = sadd.s32 4294967295, %s15127_s15   ;;  %s15127_s15 = sphi %s15163_s15, %s16_s15  }
   0x3   : > { %s161_s17 = sshll.u32 %s15129_s16, 4  ;;  %p12053_p0 = scmp.ge.s32.totalorder %s15127_s15, 1  ;;  %s15178_s17 = int_to_ptr.vmem [resolvable:$true] %s161_s17 }
   0x4   : > { %p136_p1 = scmp.lt.s32.totalorder %s15127_s15, 3  ;;  %p18643_p2 = scmp.eq.s32.totalorder %s15169_s18, 0 }
   0x5   : > { %s15130_s20 = smov [#allocation5]   ;;  %s15131_s23 = smov [#allocation9]  }
   0x6   : > { %p15174_p3 = pnand %p12053_p0, %p136_p1  ;;  %s148_s21 = sshll.u32 %s15130_s20, 4  ;;  %s15182_s21 = int_to_ptr.vmem [resolvable:$true] %s148_s21 }
   0x7   : > { %s15190_s24 = sshll.u32 %s15131_s23, 4  ;;  %s15029_s27 = scalar_lea.hbm %s18640_s2, 80  ;;  %s175_s24 = int_to_ptr.vmem [resolvable:$true] %s15190_s24 }
   0x8   : > { %s18706_s19 = scalar_select %p15174_p3, 1, 0 }
   0x9   : > { %p14824_p4 = pneg %p15174_p3  ;;  %p15030_p6 = scmp.ne.s32.totalorder %s18640_s2, %s15029_s27 }
   0xa   : > { %p15036_p10 = scmp.lt.u32.totalorder %s15029_s27, %s18640_s2 }
   0xb   : > { %p15186_p5 = pnand %p18643_p2, %p14824_p4 }
   0xd   : > { %p15200_p7 = pneg %p15186_p5 }
   0xf   : > { %p15032_p8 = pnand %p15200_p7, %p15030_p6 }
  0x11   : > { %p15033_p9 = pneg %p15032_p8 }
  0x13   : > { %p15038_p11 = pnand %p15036_p10, %p15033_p9 }
  0x15   : > { %15041 = shalt.err (!%p15038_p11)
}
  0x16   : > { %s15042_s7 = scalar_lea.vmem %s15178_s17, 80  ;;  %s15049_s8 = scalar_lea.vmem %s15178_s17, 96 }
  0x17   : > { %p15043_p12 = scmp.ne.s32.totalorder %s15178_s17, %s15042_s7  ;;  %p15050_p1 = scmp.lt.s32.totalorder %s15178_s17, %s15178_s17 }
  0x18   : > { %p15051_p4 = scmp.lt.s32.totalorder %s15049_s8, %s15042_s7 }
  0x19   : > { %p15045_p13 = pnand %p15043_p12, %p15200_p7 }
  0x1a   : > { %p15052_p6 = por %p15051_p4, %p15050_p1 }
  0x1b   : > { %p15046_p0 = pneg %p15045_p13 }
  0x1d   : > { %p15053_p8 = pnand %p15052_p6, %p15046_p0 }
  0x1f   : > { %15056 = shalt.err (!%p15053_p8)
}
  0x20   : > { %s15132_s9 = smov 16   ;;  %s15133_s10 = smov 1  }
  0x21   : > { %14830 = dma.hbm_to_vmem [thread:$0]  (!%p15186_p5), %s18640_s2, 80, %s15178_s17, [#allocation8], %s15132_s9, %s15132_s9, %s15133_s10  }
  0x22   : > { %s15057_s16 = scalar_lea.hbm %s18639_s1, 92160 }
  0x23   : > { %p15058_p9 = scmp.ne.s32.totalorder %s18639_s1, %s15057_s16  ;;  %p15064_p12 = scmp.lt.u32.totalorder %s15057_s16, %s18639_s1 }
  0x25   : > { %p15060_p10 = pnand %p15058_p9, %p15200_p7 }
  0x27   : > { %p15061_p11 = pneg %p15060_p10 }
  0x29   : > { %p15066_p13 = pnand %p15064_p12, %p15061_p11 }
  0x2b   : > { %15069 = shalt.err (!%p15066_p13)
}
  0x2c   : > { %s15070_s17 = scalar_lea.vmem %s15182_s21, 92160  ;;  %p15078_p6 = scmp.lt.s32.totalorder %s15182_s21, %s15182_s21 }
  0x2d   : > { %p15071_p0 = scmp.ne.s32.totalorder %s15182_s21, %s15070_s17  ;;  %p15079_p8 = scmp.lt.s32.totalorder %s15070_s17, %s15070_s17 }
  0x2f   : > { %p15073_p1 = pnand %p15071_p0, %p15200_p7  ;;  %p15080_p9 = por %p15079_p8, %p15078_p6 }
  0x31   : > { %p15074_p4 = pneg %p15073_p1 }
  0x33   : > { %p15081_p10 = pnand %p15080_p9, %p15074_p4 }
  0x35   : > { %15084 = shalt.err (!%p15081_p10)
}
  0x36   : > { %s15134_s27 = smov 128   ;;  %s15135_s28 = smov 8  }
  0x37   : > { %14827 = dma.hbm_to_vmem [thread:$0]  (!%p15186_p5), %s18639_s1, 92160, %s15182_s21, [#allocation6], %s15134_s27, %s15134_s27, %s15135_s28  }
  0x38   : > { %s15085_s8 = scalar_lea.hbm %s18641_s3, 80 }
  0x39   : > { %p15086_p11 = scmp.ne.s32.totalorder %s18641_s3, %s15085_s8  ;;  %p15092_p0 = scmp.lt.u32.totalorder %s15085_s8, %s18641_s3 }
  0x3b   : > { %p15088_p12 = pnand %p15086_p11, %p15200_p7 }
  0x3d   : > { %p15089_p13 = pneg %p15088_p12 }
  0x3f   : > { %p15094_p1 = pnand %p15092_p0, %p15089_p13 }
  0x41   : > { %15097 = shalt.err (!%p15094_p1)
}
  0x42   : > { %s15098_s16 = scalar_lea.vmem %s175_s24, 80  ;;  %s15105_s21 = scalar_lea.vmem %s175_s24, 96 }
  0x43   : > { %p15099_p4 = scmp.ne.s32.totalorder %s175_s24, %s15098_s16  ;;  %p15106_p9 = scmp.lt.s32.totalorder %s175_s24, %s175_s24 }
  0x44   : > { %p15107_p10 = scmp.lt.s32.totalorder %s15105_s21, %s15098_s16 }
  0x45   : > { %p15101_p6 = pnand %p15099_p4, %p15200_p7 }
  0x46   : > { %p15108_p2 = por %p15107_p10, %p15106_p9 }
  0x47   : > { %p15102_p8 = pneg %p15101_p6 }
  0x49   : > { %p15109_p3 = pnand %p15108_p2, %p15102_p8 }
  0x4b   : > { %15112 = shalt.err (!%p15109_p3)
}
  0x4c   : > { %14833 = dma.hbm_to_vmem [thread:$0]  (!%p15186_p5), %s18641_s3, 80, %s175_s24, [#allocation8], %s15132_s9, %s15132_s9, %s15133_s10  }
  0x4d   : > { %p18709_p11 = scmp.ne.s32.totalorder %s18706_s19, 0 }
  0x4f   : > { %198 = sbr.rel (%p18709_p11) target bundleno = 3134 (0xc3e), region = 36 }
  0x56   : > { %p18710_p7 = scmp.eq.s32.totalorder %s15169_s18, 0 }
  0x58   : > { %15118 = dma.done.wait (%p18710_p7), [#allocation6], 92160   ;;  %p18711_p12 = pmov %p18710_p7 }
  0x59   : > { %p18712_p2 = pmov %p18710_p7 }
  0x5a   : > { %15120 = vsyncadd (%p18711_p12), [#allocation6], 4294875136 }
  0x5b   : > { %15122 = dma.done.wait (%p18712_p2), [#allocation8], 160   ;;  %p18713_p3 = pmov %p18712_p2 }
  0x5c   : > { %v18657_v0 = vmov 0.0|0.0   ;;  %v15137_v1 = vmov 0.0   ;;  %p232_p5 = scmp.lt.s32.totalorder %s15169_s18, 1  ;;  %v1280_v2 = vld [vmem:[#allocation5] sm:$0xff]  ;;  %v1281_v3 = vld [vmem:[#allocation5 + $0x8] sm:$0xff]  ;;  %v1282_v4 = vld [vmem:[#allocation5 + $0x10] sm:$0xff] }
  0x5d   : > { %15124 = vsyncadd (%p18713_p3), [#allocation8], 4294967136  ;;  %12752 = vmatprep.subr.bf16.mxu0 %v18657_v0  ;;  %242 = vst [vmem:[#allocation2] sm:$0xff] %v15137_v1  ;;  %v12753_v5 = vpack.c.bf16 %v1281_v3, %v1280_v2  ;;  %v1283_v6 = vld [vmem:[#allocation5 + $0x18] sm:$0xff]  ;;  %v1284_v8 = vld [vmem:[#allocation5 + $0x20] sm:$0xff] }
  0x5e   : > { %243 = vst [vmem:[#allocation2 + $0x8] sm:$0xff] %v15137_v1  ;;  %244 = vst [vmem:[#allocation2 + $0x10] sm:$0x3] %v15137_v1  ;;  %s18894_s18 = smov (!%p232_p5, %s15169_s18), 1  ;;  %v12756_v7 = vpack.c.bf16 %v1283_v6, %v1282_v4  ;;  %v1285_v9 = vld [vmem:[#allocation5 + $0x28] sm:$0xff]  ;;  %v1286_v11 = vld [vmem:[#allocation5 + $0x30] sm:$0xff] }
  0x5f   : > { %245 = vst [vmem:[#allocation2 + $0x18] sm:$0xff] %v15137_v1  ;;  %246 = vst [vmem:[#allocation2 + $0x20] sm:$0xff] %v15137_v1  ;;  %12754 = vmatpush1.bf16.msra.mxu0 %v12753_v5  ;;  %s12110_s19 = sshll.u32 %s18894_s18, 8  ;;  %v12759_v10 = vpack.c.bf16 %v1285_v9, %v1284_v8  ;;  %v1287_v12 = vld [vmem:[#allocation5 + $0x38] sm:$0xff]  ;;  %v1288_v15 = vld [vmem:[#allocation5 + $0x40] sm:$0xff] }
  0x60   : > { %247 = vst [vmem:[#allocation2 + $0x28] sm:$0x3] %v15137_v1  ;;  %248 = vst [vmem:[#allocation2 + $0x30] sm:$0xff] %v15137_v1  ;;  %12755 = vmatprep.subr.bf16.mxu0 %v18657_v0  ;;  %s15401_s30 = scalar_lea.vmem %s18638_s0, %s12110_s19  ;;  %v12762_v14 = vpack.c.bf16 %v1287_v12, %v1286_v11  ;;  %v1289_v16 = vld [vmem:[#allocation5 + $0x48] sm:$0xff]  ;;  %v1290_v24 = vld [vmem:[#allocation5 + $0x50] sm:$0xff]  ;;  %s18527_s25 = scalar_lea.vmem %s18642_s4, %s12110_s19 }
  0x61   : > { %249 = vst [vmem:[#allocation2 + $0x38] sm:$0xff] %v15137_v1  ;;  %250 = vst [vmem:[#allocation2 + $0x40] sm:$0x3] %v15137_v1  ;;  %v15405_v17 = vld [vmem:[%s15401_s30] sm:$0xff]  ;;  %v15409_v18 = vld [vmem:[%s15401_s30 + $0x8] sm:$0xff]  ;;  %v12765_v22 = vpack.c.bf16 %v1289_v16, %v1288_v15 }
  0x62   : > { %251 = vst [vmem:[#allocation2 + $0x48] sm:$0xff] %v15137_v1  ;;  %252 = vst [vmem:[#allocation2 + $0x50] sm:$0xff] %v15137_v1  ;;  %v15412_v19 = vld [vmem:[%s15401_s30 + $0x10] sm:$0xff]  ;;  %v15417_v20 = vld [vmem:[%s15401_s30 + $0x18] sm:$0xff] }
  0x63   : > { %253 = vst [vmem:[#allocation2 + $0x58] sm:$0x3] %v15137_v1  ;;  %254 = vst [vmem:[#allocation2 + $0x60] sm:$0xff] %v15137_v1  ;;  %12757 = vmatpush1.bf16.msra.mxu0 %v12756_v7  ;;  %v15420_v21 = vld [vmem:[%s15401_s30 + $0x20] sm:$0xff]  ;;  %v15425_v23 = vld [vmem:[%s15401_s30 + $0x28] sm:$0xff] }
  0x64   : > { %255 = vst [vmem:[#allocation2 + $0x68] sm:$0xff] %v15137_v1  ;;  %256 = vst [vmem:[#allocation2 + $0x70] sm:$0x3] %v15137_v1  ;;  %12758 = vmatprep.subr.bf16.mxu0 %v18657_v0  ;;  %v1291_v25 = vld [vmem:[#allocation5 + $0x58] sm:$0xff]  ;;  %v15430_v26 = vld [vmem:[%s15401_s30 + $0x30] sm:$0xff] }
  0x65   : > { %257 = vst [vmem:[#allocation2 + $0x78] sm:$0xff] %v15137_v1  ;;  %258 = vst [vmem:[#allocation2 + $0x80] sm:$0xff] %v15137_v1  ;;  %v479_v13 = vld [vmem:[#allocation2 + $0x1] sm:$0xff]  ;;  %v15434_v27 = vld [vmem:[%s15401_s30 + $0x38] sm:$0xff]  ;;  %v12768_v31 = vpack.c.bf16 %v1291_v25, %v1290_v24 }
  0x66   : > { %259 = vst [vmem:[#allocation2 + $0x88] sm:$0x3] %v15137_v1  ;;  %260 = vst [vmem:[#allocation2 + $0x90] sm:$0xff] %v15137_v1  ;;  %1488 = vmatprep.mubr.f32.mxu0 %v479_v13  ;;  %v15437_v28 = vld [vmem:[%s15401_s30 + $0x40] sm:$0xff]  ;;  %v15442_v29 = vld [vmem:[%s15401_s30 + $0x48] sm:$0xff] }
  0x67   : > { %261 = vst [vmem:[#allocation2 + $0x98] sm:$0xff] %v15137_v1  ;;  %262 = vst [vmem:[#allocation2 + $0xa0] sm:$0x3] %v15137_v1  ;;  %12760 = vmatpush1.bf16.msra.mxu0 %v12759_v10  ;;  %v15445_v30 = vld [vmem:[%s15401_s30 + $0x50] sm:$0xff]  ;;  %v15450_v32 = vld [vmem:[%s15401_s30 + $0x58] sm:$0xff] }
  0x68   : > { %263 = vst [vmem:[#allocation2 + $0xa8] sm:$0xff] %v15137_v1  ;;  %264 = vst [vmem:[#allocation2 + $0xb0] sm:$0xff] %v15137_v1  ;;  %12761 = vmatprep.subr.bf16.mxu0 %v18657_v0  ;;  %v1292_v33 = vld [vmem:[#allocation5 + $0x60] sm:$0xff]  ;;  %v1293_v34 = vld [vmem:[#allocation5 + $0x68] sm:$0xff] }
  0x69   : > { %265 = vst [vmem:[#allocation2 + $0xb8] sm:$0x3] %v15137_v1  ;;  %266 = vst [vmem:[#allocation2 + $0xc0] sm:$0xff] %v15137_v1  ;;  %v15455_v35 = vld [vmem:[%s15401_s30 + $0x60] sm:$0xff]  ;;  %v15459_v36 = vld [vmem:[%s15401_s30 + $0x68] sm:$0xff]  ;;  %v12771_v37 = vpack.c.bf16 %v1293_v34, %v1292_v33 }
  0x6a   : > { %267 = vst [vmem:[#allocation2 + $0xc8] sm:$0xff] %v15137_v1  ;;  %268 = vst [vmem:[#allocation2 + $0xd0] sm:$0x3] %v15137_v1  ;;  %v15463_v38 = vld [vmem:[%s15401_s30 + $0x70] sm:$0xff]  ;;  %v1295_v40 = vld [vmem:[#allocation5 + $0x78] sm:$0xff] }
  0x6b   : > { %269 = vst [vmem:[#allocation2 + $0xd8] sm:$0xff] %v15137_v1  ;;  %270 = vst [vmem:[#allocation2 + $0xe0] sm:$0xff] %v15137_v1  ;;  %12763 = vmatpush1.bf16.msra.mxu0 %v12762_v14  ;;  %v1294_v39 = vld [vmem:[#allocation5 + $0x70] sm:$0xff]  ;;  %v15468_v41 = vld [vmem:[%s15401_s30 + $0x78] sm:$0xff] }
  0x6c   : > { %271 = vst [vmem:[#allocation2 + $0xe8] sm:$0x3] %v15137_v1  ;;  %272 = vst [vmem:[#allocation2 + $0xf0] sm:$0xff] %v15137_v1  ;;  %12764 = vmatprep.subr.bf16.mxu0 %v18657_v0  ;;  %v15472_v42 = vld [vmem:[%s15401_s30 + $0x80] sm:$0xff]  ;;  %v12774_v43 = vpack.c.bf16 %v1295_v40, %v1294_v39  ;;  %v15476_v44 = vld [vmem:[%s15401_s30 + $0x88] sm:$0xff] }
  0x6d   : > { %273 = vst [vmem:[#allocation2 + $0xf8] sm:$0xff] %v15137_v1  ;;  %274 = vst [vmem:[#allocation2 + $0x100] sm:$0x3] %v15137_v1  ;;  %v1296_v45 = vld [vmem:[#allocation5 + $0x80] sm:$0xff]  ;;  %v1297_v46 = vld [vmem:[#allocation5 + $0x88] sm:$0xff] }
  0x6e   : > { %275 = vst [vmem:[#allocation2 + $0x108] sm:$0xff] %v15137_v1  ;;  %276 = vst [vmem:[#allocation2 + $0x110] sm:$0xff] %v15137_v1  ;;  %v15481_v47 = vld [vmem:[%s15401_s30 + $0x90] sm:$0xff]  ;;  %v15485_v48 = vld [vmem:[%s15401_s30 + $0x98] sm:$0xff]  ;;  %v12777_v50 = vpack.c.bf16 %v1297_v46, %v1296_v45 }
  0x6f   : > { %277 = vst [vmem:[#allocation2 + $0x118] sm:$0x3] %v15137_v1  ;;  %278 = vst [vmem:[#allocation2 + $0x120] sm:$0xff] %v15137_v1  ;;  %12766 = vmatpush1.bf16.msra.mxu0 %v12765_v22  ;;  %v15488_v49 = vld [vmem:[%s15401_s30 + $0xa0] sm:$0xff]  ;;  %v15493_v51 = vld [vmem:[%s15401_s30 + $0xa8] sm:$0xff] }
  0x70   : > { %279 = vst [vmem:[#allocation2 + $0x128] sm:$0xff] %v15137_v1  ;;  %280 = vst [vmem:[#allocation2 + $0x130] sm:$0x3] %v15137_v1  ;;  %12767 = vmatprep.subr.bf16.mxu0 %v18657_v0  ;;  %v15496_v52 = vld [vmem:[%s15401_s30 + $0xb0] sm:$0xff]  ;;  %v1299_v54 = vld [vmem:[#allocation5 + $0x98] sm:$0xff] }
  0x71   : > { %281 = vst [vmem:[#allocation2 + $0x138] sm:$0xff] %v15137_v1  ;;  %282 = vst [vmem:[#allocation2 + $0x140] sm:$0xff] %v15137_v1  ;;  %v1298_v53 = vld [vmem:[#allocation5 + $0x90] sm:$0xff]  ;;  %v15502_v55 = vld [vmem:[%s15401_s30 + $0xb8] sm:$0xff] }
  0x72   : > { %283 = vst [vmem:[#allocation2 + $0x148] sm:$0x3] %v15137_v1  ;;  %284 = vst [vmem:[#allocation2 + $0x150] sm:$0xff] %v15137_v1  ;;  %v15506_v56 = vld [vmem:[%s15401_s30 + $0xc0] sm:$0xff]  ;;  %v12780_v57 = vpack.c.bf16 %v1299_v54, %v1298_v53  ;;  %v1301_v59 = vld [vmem:[#allocation5 + $0xa8] sm:$0xff] }
  0x73   : > { %285 = vst [vmem:[#allocation2 + $0x158] sm:$0xff] %v15137_v1  ;;  %286 = vst [vmem:[#allocation2 + $0x160] sm:$0x3] %v15137_v1  ;;  %12769 = vmatpush1.bf16.msra.mxu0 %v12768_v31  ;;  %v1300_v58 = vld [vmem:[#allocation5 + $0xa0] sm:$0xff]  ;;  %v15511_v60 = vld [vmem:[%s15401_s30 + $0xc8] sm:$0xff] }
  0x74   : > { %287 = vst [vmem:[#allocation2 + $0x168] sm:$0xff] %v15137_v1  ;;  %288 = vst [vmem:[#allocation2 + $0x170] sm:$0xff] %v15137_v1  ;;  %12770 = vmatprep.subr.bf16.mxu0 %v18657_v0  ;;  %v12783_v61 = vpack.c.bf16 %v1301_v59, %v1300_v58  ;;  %v1302_v62 = vld [vmem:[#allocation5 + $0xb0] sm:$0xff]  ;;  %v1303_v63 = vld [vmem:[#allocation5 + $0xb8] sm:$0xff] }
  0x75   : > { %289 = vst [vmem:[#allocation2 + $0x178] sm:$0x3] %v15137_v1  ;;  %290 = vst [vmem:[#allocation2 + $0x180] sm:$0xff] %v15137_v1  ;;  %v15516_v2 = vld [vmem:[%s15401_s30 + $0xd0] sm:$0xff]  ;;  %v12786_v3 = vpack.c.bf16 %v1303_v63, %v1302_v62  ;;  %v1304_v4 = vld [vmem:[#allocation5 + $0xc0] sm:$0xff] }
  0x76   : > { %291 = vst [vmem:[#allocation2 + $0x188] sm:$0xff] %v15137_v1  ;;  %292 = vst [vmem:[#allocation2 + $0x190] sm:$0x3] %v15137_v1  ;;  %v1305_v5 = vld [vmem:[#allocation5 + $0xc8] sm:$0xff]  ;;  %v15521_v6 = vld [vmem:[%s15401_s30 + $0xd8] sm:$0xff] }
  0x77   : > { %293 = vst [vmem:[#allocation2 + $0x198] sm:$0xff] %v15137_v1  ;;  %294 = vst [vmem:[#allocation2 + $0x1a0] sm:$0xff] %v15137_v1  ;;  %12772 = vmatpush1.bf16.msra.mxu0 %v12771_v37  ;;  %v12789_v7 = vpack.c.bf16 %v1305_v5, %v1304_v4  ;;  %v1306_v8 = vld [vmem:[#allocation5 + $0xd0] sm:$0xff]  ;;  %v1307_v9 = vld [vmem:[#allocation5 + $0xd8] sm:$0xff] }
  0x78   : > { %295 = vst [vmem:[#allocation2 + $0x1a8] sm:$0x3] %v15137_v1  ;;  %296 = vst [vmem:[#allocation3] sm:$0xff] %v15137_v1  ;;  %12773 = vmatprep.subr.bf16.mxu0 %v18657_v0  ;;  %v15526_v10 = vld [vmem:[%s15401_s30 + $0xe0] sm:$0xff]  ;;  %v12792_v11 = vpack.c.bf16 %v1307_v9, %v1306_v8  ;;  %v1309_v13 = vld [vmem:[#allocation5 + $0xe8] sm:$0xff] }
  0x79   : > { %297 = vst [vmem:[#allocation3 + $0x8] sm:$0xff] %v15137_v1  ;;  %298 = vst [vmem:[#allocation3 + $0x10] sm:$0x3] %v15137_v1  ;;  %v1308_v12 = vld [vmem:[#allocation5 + $0xe0] sm:$0xff]  ;;  %v15531_v14 = vld [vmem:[%s15401_s30 + $0xe8] sm:$0xff] }
  0x7a   : > { %299 = vst [vmem:[#allocation3 + $0x18] sm:$0xff] %v15137_v1  ;;  %300 = vst [vmem:[#allocation3 + $0x20] sm:$0xff] %v15137_v1  ;;  %v12795_v15 = vpack.c.bf16 %v1309_v13, %v1308_v12  ;;  %v1310_v16 = vld [vmem:[#allocation5 + $0xf0] sm:$0xff]  ;;  %v1311_v22 = vld [vmem:[#allocation5 + $0xf8] sm:$0xff] }
  0x7b   : > { %301 = vst [vmem:[#allocation3 + $0x28] sm:$0x3] %v15137_v1  ;;  %302 = vst [vmem:[#allocation3 + $0x30] sm:$0xff] %v15137_v1  ;;  %12775 = vmatpush1.bf16.msra.mxu0 %v12774_v43  ;;  %v12798_v24 = vpack.c.bf16 %v1311_v22, %v1310_v16  ;;  %v1312_v25 = vld [vmem:[#allocation5 + $0x100] sm:$0xff]  ;;  %v1313_v31 = vld [vmem:[#allocation5 + $0x108] sm:$0xff] }
  0x7c   : > { %303 = vst [vmem:[#allocation3 + $0x38] sm:$0xff] %v15137_v1  ;;  %304 = vst [vmem:[#allocation3 + $0x40] sm:$0x3] %v15137_v1  ;;  %12776 = vmatprep.subr.bf16.mxu0 %v18657_v0  ;;  %v12801_v33 = vpack.c.bf16 %v1313_v31, %v1312_v25  ;;  %v480_v34 = vld [vmem:[#allocation2 + $0x9] sm:$0xff]  ;;  %v1315_v39 = vld [vmem:[#allocation5 + $0x118] sm:$0xff] }
  0x7d   : > { %305 = vst [vmem:[#allocation3 + $0x48] sm:$0xff] %v15137_v1  ;;  %306 = vst [vmem:[#allocation3 + $0x50] sm:$0xff] %v15137_v1  ;;  %v1314_v37 = vld [vmem:[#allocation5 + $0x110] sm:$0xff]  ;;  %v1316_v43 = vld [vmem:[#allocation5 + $0x120] sm:$0xff] }
  0x7e   : > { %307 = vst [vmem:[#allocation3 + $0x58] sm:$0x3] %v15137_v1  ;;  %308 = vst [vmem:[#allocation3 + $0x60] sm:$0xff] %v15137_v1  ;;  %v12804_v40 = vpack.c.bf16 %v1315_v39, %v1314_v37  ;;  %v1317_v45 = vld [vmem:[#allocation5 + $0x128] sm:$0xff]  ;;  %v1318_v53 = vld [vmem:[#allocation5 + $0x130] sm:$0xff] }
  0x7f   : > { %309 = vst [vmem:[#allocation3 + $0x68] sm:$0xff] %v15137_v1  ;;  %310 = vst [vmem:[#allocation3 + $0x70] sm:$0x3] %v15137_v1  ;;  %12778 = vmatpush1.bf16.msra.mxu0 %v12777_v50  ;;  %v12807_v50 = vpack.c.bf16 %v1317_v45, %v1316_v43  ;;  %v1319_v54 = vld [vmem:[#allocation5 + $0x138] sm:$0xff]  ;;  %v1324_v4 = vld [vmem:[#allocation5 + $0x160] sm:$0xff] }
  0x80   : > { %311 = vst [vmem:[#allocation3 + $0x78] sm:$0xff] %v15137_v1  ;;  %312 = vst [vmem:[#allocation3 + $0x80] sm:$0xff] %v15137_v1  ;;  %12779 = vmatprep.subr.bf16.mxu0 %v18657_v0  ;;  %v12810_v58 = vpack.c.bf16 %v1319_v54, %v1318_v53  ;;  %v1323_v63 = vld [vmem:[#allocation5 + $0x158] sm:$0xff]  ;;  %v1325_v5 = vld [vmem:[#allocation5 + $0x168] sm:$0xff] }
  0x81   : > { %313 = vst [vmem:[#allocation3 + $0x88] sm:$0x3] %v15137_v1  ;;  %314 = vst [vmem:[#allocation3 + $0x90] sm:$0xff] %v15137_v1  ;;  %v12819_v8 = vpack.c.bf16 %v1325_v5, %v1324_v4  ;;  %v1326_v9 = vld [vmem:[#allocation5 + $0x170] sm:$0xff]  ;;  %v1328_v13 = vld [vmem:[#allocation5 + $0x180] sm:$0xff] }
  0x82   : > { %315 = vst [vmem:[#allocation3 + $0x98] sm:$0xff] %v15137_v1  ;;  %316 = vst [vmem:[#allocation3 + $0xa0] sm:$0x3] %v15137_v1  ;;  %v1330_v22 = vld [vmem:[#allocation5 + $0x190] sm:$0xff]  ;;  %v1332_v31 = vld [vmem:[#allocation5 + $0x1a0] sm:$0xff] }
  0x83   : > { %317 = vst [vmem:[#allocation3 + $0xa8] sm:$0xff] %v15137_v1  ;;  %318 = vst [vmem:[#allocation3 + $0xb0] sm:$0xff] %v15137_v1  ;;  %12781 = vmatpush1.bf16.msra.mxu0 %v12780_v57  ;;  %v1334_v37 = vld [vmem:[#allocation5 + $0x1b0] sm:$0xff]  ;;  %v1336_v43 = vld [vmem:[#allocation5 + $0x1c0] sm:$0xff] }
  0x84   : > { %319 = vst [vmem:[#allocation3 + $0xb8] sm:$0x3] %v15137_v1  ;;  %320 = vst [vmem:[#allocation3 + $0xc0] sm:$0xff] %v15137_v1  ;;  %12782 = vmatprep.subr.bf16.mxu0 %v18657_v0  ;;  %v1338_v53 = vld [vmem:[#allocation5 + $0x1d0] sm:$0xff] }
  0x85   : > { %321 = vst [vmem:[#allocation3 + $0xc8] sm:$0xff] %v15137_v1  ;;  %322 = vst [vmem:[#allocation3 + $0xd0] sm:$0x3] %v15137_v1 }
  0x86   : > { %323 = vst [vmem:[#allocation3 + $0xd8] sm:$0xff] %v15137_v1  ;;  %324 = vst [vmem:[#allocation3 + $0xe0] sm:$0xff] %v15137_v1 }
  0x87   : > { %325 = vst [vmem:[#allocation3 + $0xe8] sm:$0x3] %v15137_v1  ;;  %326 = vst [vmem:[#allocation3 + $0xf0] sm:$0xff] %v15137_v1  ;;  %12784 = vmatpush1.bf16.msra.mxu0 %v12783_v61 }
  0x88   : > { %327 = vst [vmem:[#allocation3 + $0xf8] sm:$0xff] %v15137_v1  ;;  %328 = vst [vmem:[#allocation3 + $0x100] sm:$0x3] %v15137_v1  ;;  %12785 = vmatprep.subr.bf16.mxu0 %v18657_v0 }
  0x89   : > { %329 = vst [vmem:[#allocation3 + $0x108] sm:$0xff] %v15137_v1  ;;  %330 = vst [vmem:[#allocation3 + $0x110] sm:$0xff] %v15137_v1 }
  0x8a   : > { %331 = vst [vmem:[#allocation3 + $0x118] sm:$0x3] %v15137_v1  ;;  %332 = vst [vmem:[#allocation3 + $0x120] sm:$0xff] %v15137_v1 }
  0x8b   : > { %333 = vst [vmem:[#allocation3 + $0x128] sm:$0xff] %v15137_v1  ;;  %334 = vst [vmem:[#allocation3 + $0x130] sm:$0x3] %v15137_v1  ;;  %12787 = vmatpush1.bf16.msra.mxu0 %v12786_v3 }
  0x8c   : > { %335 = vst [vmem:[#allocation3 + $0x138] sm:$0xff] %v15137_v1  ;;  %336 = vst [vmem:[#allocation3 + $0x140] sm:$0xff] %v15137_v1  ;;  %12788 = vmatprep.subr.bf16.mxu0 %v18657_v0 }
  0x8d   : > { %337 = vst [vmem:[#allocation3 + $0x148] sm:$0x3] %v15137_v1  ;;  %338 = vst [vmem:[#allocation3 + $0x150] sm:$0xff] %v15137_v1 }
  0x8e   : > { %339 = vst [vmem:[#allocation3 + $0x158] sm:$0xff] %v15137_v1  ;;  %340 = vst [vmem:[#allocation3 + $0x160] sm:$0x3] %v15137_v1 }
  0x8f   : > { %341 = vst [vmem:[#allocation3 + $0x168] sm:$0xff] %v15137_v1  ;;  %342 = vst [vmem:[#allocation3 + $0x170] sm:$0xff] %v15137_v1  ;;  %12790 = vmatpush1.bf16.msra.mxu0 %v12789_v7 }
  0x90   : > { %343 = vst [vmem:[#allocation3 + $0x178] sm:$0x3] %v15137_v1  ;;  %344 = vst [vmem:[#allocation3 + $0x180] sm:$0xff] %v15137_v1  ;;  %12791 = vmatprep.subr.bf16.mxu0 %v18657_v0 }
  0x91   : > { %345 = vst [vmem:[#allocation3 + $0x188] sm:$0xff] %v15137_v1  ;;  %346 = vst [vmem:[#allocation3 + $0x190] sm:$0x3] %v15137_v1 }
  0x92   : > { %347 = vst [vmem:[#allocation3 + $0x198] sm:$0xff] %v15137_v1  ;;  %348 = vst [vmem:[#allocation3 + $0x1a0] sm:$0xff] %v15137_v1 }
  0x93   : > { %349 = vst [vmem:[#allocation3 + $0x1a8] sm:$0x3] %v15137_v1  ;;  %383 = vst [vmem:[#allocation2 + $0x19] sm:$0xff] %v15405_v17  ;;  %12793 = vmatpush1.bf16.msra.mxu0 %v12792_v11 }
  0x94   : > { %384 = vst [vmem:[#allocation2 + $0x21] sm:$0xff] %v15409_v18  ;;  %385 = vst [vmem:[#allocation2 + $0x31] sm:$0xff] %v15412_v19  ;;  %12794 = vmatprep.subr.bf16.mxu0 %v18657_v0 }
  0x95   : > { %386 = vst [vmem:[#allocation2 + $0x39] sm:$0xff] %v15417_v20  ;;  %387 = vst [vmem:[#allocation2 + $0x49] sm:$0xff] %v15420_v21 }
  0x96   : > { %388 = vst [vmem:[#allocation2 + $0x51] sm:$0xff] %v15425_v23  ;;  %389 = vst [vmem:[#allocation2 + $0x61] sm:$0xff] %v15430_v26 }
  0x97   : > { %390 = vst [vmem:[#allocation2 + $0x69] sm:$0xff] %v15434_v27  ;;  %391 = vst [vmem:[#allocation2 + $0x79] sm:$0xff] %v15437_v28  ;;  %12796 = vmatpush1.bf16.msra.mxu0 %v12795_v15 }
  0x98   : > { %392 = vst [vmem:[#allocation2 + $0x81] sm:$0xff] %v15442_v29  ;;  %393 = vst [vmem:[#allocation2 + $0x91] sm:$0xff] %v15445_v30  ;;  %12797 = vmatprep.subr.bf16.mxu0 %v18657_v0 }
  0x99   : > { %394 = vst [vmem:[#allocation2 + $0x99] sm:$0xff] %v15450_v32  ;;  %395 = vst [vmem:[#allocation2 + $0xa9] sm:$0xff] %v15455_v35 }
  0x9a   : > { %396 = vst [vmem:[#allocation2 + $0xb1] sm:$0xff] %v15459_v36  ;;  %397 = vst [vmem:[#allocation2 + $0xc1] sm:$0xff] %v15463_v38  ;;  %v15541_v46 = vld [vmem:[#allocation2 + $0x18] sm:$0xff] }
  0x9b   : > { %398 = vst [vmem:[#allocation2 + $0xc9] sm:$0xff] %v15468_v41  ;;  %399 = vst [vmem:[#allocation2 + $0xd9] sm:$0xff] %v15472_v42  ;;  %12799 = vmatpush1.bf16.msra.mxu0 %v12798_v24  ;;  %v15546_v57 = vld [vmem:[#allocation2 + $0x20] sm:$0xff]  ;;  %v15551_v59 = vld [vmem:[#allocation2 + $0x30] sm:$0xff] }
  0x9c   : > { %400 = vst [vmem:[#allocation2 + $0xe1] sm:$0xff] %v15476_v44  ;;  %401 = vst [vmem:[#allocation2 + $0xf1] sm:$0xff] %v15481_v47  ;;  %12800 = vmatprep.subr.bf16.mxu0 %v18657_v0  ;;  %v15553_v62 = vld [vmem:[#allocation2 + $0x32] sm:$0xff]  ;;  %v15564_v7 = vld [vmem:[#allocation2 + $0x48] sm:$0xff] }
  0x9d   : > { %402 = vst [vmem:[#allocation2 + $0xf9] sm:$0xff] %v15485_v48  ;;  %403 = vst [vmem:[#allocation2 + $0x109] sm:$0xff] %v15488_v49  ;;  %12384 = vmatprep.mubr.f32.mxu1 %v15553_v62  ;;  %v15559_v3 = vld [vmem:[#allocation2 + $0x38] sm:$0xff]  ;;  %v15569_v11 = vld [vmem:[#allocation2 + $0x50] sm:$0xff] }
  0x9e   : > { %404 = vst [vmem:[#allocation2 + $0x111] sm:$0xff] %v15493_v51  ;;  %405 = vst [vmem:[#allocation2 + $0x121] sm:$0xff] %v15496_v52  ;;  %1489 = vmatmul.mubr.f32.vlgmr.msra.gmra.mrb[0].mxu0 %v15137_v1  ;;  %v15574_v15 = vld [vmem:[#allocation2 + $0x60] sm:$0xff]  ;;  %v15579_v24 = vld [vmem:[#allocation2 + $0x68] sm:$0xff] }
  0x9f   : > { %406 = vst [vmem:[#allocation2 + $0x129] sm:$0xff] %v15502_v55  ;;  %407 = vst [vmem:[#allocation2 + $0x139] sm:$0xff] %v15506_v56  ;;  %12802 = vmatpush1.bf16.msra.mxu0 %v12801_v33  ;;  %1493 = vmatprep.mubr.f32.mxu0 %v480_v34  ;;  %v15584_v33 = vld [vmem:[#allocation2 + $0x78] sm:$0xff]  ;;  %v15589_v39 = vld [vmem:[#allocation2 + $0x80] sm:$0xff] }
  0xa0   : > { %408 = vst [vmem:[#allocation2 + $0x141] sm:$0xff] %v15511_v60  ;;  %409 = vst [vmem:[#allocation2 + $0x151] sm:$0xff] %v15516_v2  ;;  %12803 = vmatprep.subr.bf16.mxu0 %v18657_v0  ;;  %v15594_v45 = vld [vmem:[#allocation2 + $0x90] sm:$0xff]  ;;  %v15599_v54 = vld [vmem:[#allocation2 + $0x98] sm:$0xff] }
  0xa1   : > { %410 = vst [vmem:[#allocation2 + $0x159] sm:$0xff] %v15521_v6  ;;  %411 = vst [vmem:[#allocation2 + $0x169] sm:$0xff] %v15526_v10 }
  0xa2   : > { %412 = vst [vmem:[#allocation2 + $0x171] sm:$0xff] %v15531_v14  ;;  %1494 = vmatmul.mubr.f32.gmra.mrb[2].mxu0 %v15137_v1  ;;  %v1320_v1 = vld [vmem:[#allocation5 + $0x140] sm:$0xff]  ;;  %v15623_v4 = vld [vmem:[#allocation2 + $0xd8] sm:$0xff] }
  0xa3   : > { %1498 = vmatprep.mubr.f32.mxu0 %v15405_v17  ;;  %12805 = vmatpush1.bf16.msra.mxu0 %v12804_v40  ;;  %v1321_v17 = vld [vmem:[#allocation5 + $0x148] sm:$0xff]  ;;  %v15631_v5 = vld [vmem:[#allocation2 + $0xf0] sm:$0xff] }
  0xa4   : > { %12806 = vmatprep.subr.bf16.mxu0 %v18657_v0  ;;  %v12813_v61 = vpack.c.bf16 %v1321_v17, %v1320_v1  ;;  %v1340_v1 = vld [vmem:[#allocation5 + $0x1e0] sm:$0xff]  ;;  %v15604_v17 = vld [vmem:[#allocation2 + $0xa8] sm:$0xff] }
  0xa6   : > { %1499 = vmatmul.mubr.f32.gmra.mrb[4].mxu0 %v15541_v46 }
  0xa7   : > { %1503 = vmatprep.mubr.f32.mxu0 %v15409_v18  ;;  %12808 = vmatpush1.bf16.msra.mxu0 %v12807_v50  ;;  %v1322_v18 = vld [vmem:[#allocation5 + $0x150] sm:$0xff] }
  0xa8   : > { %12809 = vmatprep.subr.bf16.mxu0 %v18657_v0 }
  0xaa   : > { %1504 = vmatmul.mubr.f32.gmra.mrb[6].mxu0 %v15546_v57 }
  0xab   : > { %1508 = vmatprep.mubr.f32.mxu0 %v15412_v19  ;;  %12811 = vmatpush1.bf16.msra.mxu0 %v12810_v58  ;;  %v12816_v19 = vpack.c.bf16 %v1323_v63, %v1322_v18  ;;  %v1342_v18 = vld [vmem:[#allocation5 + $0x1f0] sm:$0xff] }
  0xac   : > { %12812 = vmatprep.subr.bf16.mxu0 %v18657_v0  ;;  %v15609_v63 = vld [vmem:[#allocation2 + $0xb0] sm:$0xff] }
  0xae   : > { %1509 = vmatmul.mubr.f32.gmra.mrb[8].mxu0 %v15551_v59 }
  0xaf   : > { %1513 = vmatprep.mubr.f32.mxu0 %v15417_v20  ;;  %12814 = vmatpush1.bf16.msra.mxu0 %v12813_v61  ;;  %v1327_v20 = vld [vmem:[#allocation5 + $0x178] sm:$0xff] }
  0xb0   : > { %12815 = vmatprep.subr.bf16.mxu0 %v18657_v0  ;;  %v12822_v12 = vpack.c.bf16 %v1327_v20, %v1326_v9  ;;  %v1344_v9 = vld [vmem:[#allocation5 + $0x200] sm:$0xff] }
  0xb1   : > { %v543_v20 = vld [vmem:[#allocation2 + $0x2] sm:$0xff] }
  0xb2   : > { %1514 = vmatmul.mubr.f32.gmra.mrb[10].mxu0 %v15559_v3 }
  0xb3   : > { %1518 = vmatprep.mubr.f32.mxu0 %v15420_v21  ;;  %12817 = vmatpush1.bf16.msra.mxu0 %v12816_v19  ;;  %v1329_v21 = vld [vmem:[#allocation5 + $0x188] sm:$0xff] }
  0xb4   : > { %12818 = vmatprep.subr.bf16.mxu0 %v18657_v0  ;;  %v12825_v16 = vpack.c.bf16 %v1329_v21, %v1328_v13  ;;  %v1346_v13 = vld [vmem:[#allocation5 + $0x210] sm:$0xff]  ;;  %v1347_v21 = vld [vmem:[#allocation5 + $0x218] sm:$0xff] }
  0xb6   : > { %1519 = vmatmul.mubr.f32.gmra.mrb[12].mxu0 %v15564_v7 }
  0xb7   : > { %1523 = vmatprep.mubr.f32.mxu0 %v15425_v23  ;;  %12820 = vmatpush1.bf16.msra.mxu0 %v12819_v8  ;;  %v1331_v23 = vld [vmem:[#allocation5 + $0x198] sm:$0xff] }
  0xb8   : > { %12821 = vmatprep.subr.bf16.mxu0 %v18657_v0  ;;  %v12828_v25 = vpack.c.bf16 %v1331_v23, %v1330_v22  ;;  %v15674_v8 = vld [vmem:[%s15401_s30 + $0xf8] sm:$0xff]  ;;  %v1349_v22 = vld [vmem:[#allocation5 + $0x228] sm:$0xff] }
  0xb9   : > { %414 = vst [vmem:[#allocation2 + $0x189] sm:$0xff] %v15674_v8  ;;  %v15690_v23 = vld [vmem:[#allocation2 + $0x1a] sm:$0xff] }
  0xba   : > { %1524 = vmatmul.mubr.f32.gmra.mrb[14].mxu0 %v15569_v11 }
  0xbb   : > { %1528 = vmatprep.mubr.f32.mxu0 %v15430_v26  ;;  %12823 = vmatpush1.bf16.msra.mxu0 %v12822_v12  ;;  %v1333_v26 = vld [vmem:[#allocation5 + $0x1a8] sm:$0xff] }
  0xbc   : > { %12824 = vmatprep.subr.bf16.mxu0 %v18657_v0  ;;  %v12831_v34 = vpack.c.bf16 %v1333_v26, %v1332_v31  ;;  %v1351_v31 = vld [vmem:[#allocation5 + $0x238] sm:$0xff] }
  0xbe   : > { %1529 = vmatmul.mubr.f32.gmra.mrb[16].mxu0 %v15574_v15 }
  0xbf   : > { %1533 = vmatprep.mubr.f32.mxu0 %v15434_v27  ;;  %12826 = vmatpush1.bf16.msra.mxu0 %v12825_v16  ;;  %v1335_v27 = vld [vmem:[#allocation5 + $0x1b8] sm:$0xff]  ;;  %v12852_v16 = vpack.c.bf16 %v1347_v21, %v1346_v13  ;;  %v1366_v13 = vld [vmem:[#allocation5 + $0x2b0] sm:$0xff]  ;;  %v15733_v21 = vld [vmem:[#allocation2 + $0x82] sm:$0xff] }
  0xc0   : > { %12827 = vmatprep.subr.bf16.mxu0 %v18657_v0  ;;  %v12834_v40 = vpack.c.bf16 %v1335_v27, %v1334_v37  ;;  %v1354_v27 = vld [vmem:[#allocation5 + $0x250] sm:$0xff] }
  0xc2   : > { %1534 = vmatmul.mubr.f32.gmra.mrb[18].mxu0 %v15579_v24 }
  0xc3   : > { %1538 = vmatprep.mubr.f32.mxu0 %v15437_v28  ;;  %12829 = vmatpush1.bf16.msra.mxu0 %v12828_v25  ;;  %v1337_v28 = vld [vmem:[#allocation5 + $0x1c8] sm:$0xff]  ;;  %v1350_v25 = vld [vmem:[#allocation5 + $0x230] sm:$0xff] }
  0xc4   : > { %12830 = vmatprep.subr.bf16.mxu0 %v18657_v0  ;;  %v12837_v50 = vpack.c.bf16 %v1337_v28, %v1336_v43  ;;  %v12858_v26 = vpack.c.bf16 %v1351_v31, %v1350_v25  ;;  %v1356_v28 = vld [vmem:[#allocation5 + $0x260] sm:$0xff] }
  0xc5   : > { %v15743_v25 = vld [vmem:[#allocation2 + $0x9a] sm:$0xff] }
  0xc6   : > { %1539 = vmatmul.mubr.f32.gmra.mrb[20].mxu0 %v15584_v33 }
  0xc7   : > { %1543 = vmatprep.mubr.f32.mxu0 %v15442_v29  ;;  %12832 = vmatpush1.bf16.msra.mxu0 %v12831_v34  ;;  %v1339_v29 = vld [vmem:[#allocation5 + $0x1d8] sm:$0xff]  ;;  %v1352_v34 = vld [vmem:[#allocation5 + $0x240] sm:$0xff] }
  0xc8   : > { %12833 = vmatprep.subr.bf16.mxu0 %v18657_v0  ;;  %v12840_v58 = vpack.c.bf16 %v1339_v29, %v1338_v53  ;;  %v1358_v29 = vld [vmem:[#allocation5 + $0x270] sm:$0xff] }
  0xca   : > { %1544 = vmatmul.mubr.f32.gmra.mrb[22].mxu0 %v15589_v39 }
  0xcb   : > { %1548 = vmatprep.mubr.f32.mxu0 %v15445_v30  ;;  %12835 = vmatpush1.bf16.msra.mxu0 %v12834_v40  ;;  %v1341_v30 = vld [vmem:[#allocation5 + $0x1e8] sm:$0xff]  ;;  %v1355_v40 = vld [vmem:[#allocation5 + $0x258] sm:$0xff] }
  0xcc   : > { %12836 = vmatprep.subr.bf16.mxu0 %v18657_v0  ;;  %v12843_v61 = vpack.c.bf16 %v1341_v30, %v1340_v1  ;;  %v12864_v43 = vpack.c.bf16 %v1355_v40, %v1354_v27  ;;  %v1360_v30 = vld [vmem:[#allocation5 + $0x280] sm:$0xff]  ;;  %v15753_v27 = vld [vmem:[#allocation2 + $0xb2] sm:$0xff] }
  0xce   : > { %1549 = vmatmul.mubr.f32.gmra.mrb[24].mxu0 %v15594_v45 }
  0xcf   : > { %1553 = vmatprep.mubr.f32.mxu0 %v15450_v32  ;;  %12838 = vmatpush1.bf16.msra.mxu0 %v12837_v50  ;;  %v1343_v32 = vld [vmem:[#allocation5 + $0x1f8] sm:$0xff]  ;;  %v1357_v50 = vld [vmem:[#allocation5 + $0x268] sm:$0xff] }
  0xd0   : > { %12839 = vmatprep.subr.bf16.mxu0 %v18657_v0  ;;  %v12846_v19 = vpack.c.bf16 %v1343_v32, %v1342_v18  ;;  %v12867_v53 = vpack.c.bf16 %v1357_v50, %v1356_v28  ;;  %v1362_v32 = vld [vmem:[#allocation5 + $0x290] sm:$0xff]  ;;  %v1409_v50 = vld [vmem:[#allocation5 + $0x408] sm:$0xff] }
  0xd1   : > { %v15775_v28 = vld [vmem:[#allocation2 + $0xf2] sm:$0xff] }
  0xd2   : > { %1554 = vmatmul.mubr.f32.gmra.mrb[26].mxu0 %v15599_v54 }
  0xd3   : > { %1558 = vmatprep.mubr.f32.mxu0 %v15455_v35  ;;  %12841 = vmatpush1.bf16.msra.mxu0 %v12840_v58  ;;  %v15614_v35 = vld [vmem:[#allocation2 + $0xc0] sm:$0xff]  ;;  %v15713_v58 = vld [vmem:[#allocation2 + $0x52] sm:$0xff] }
  0xd4   : > { %12842 = vmatprep.subr.bf16.mxu0 %v18657_v0 }
  0xd6   : > { %1559 = vmatmul.mubr.f32.gmra.mrb[28].mxu0 %v15604_v17 }
  0xd7   : > { %1563 = vmatprep.mubr.f32.mxu0 %v15459_v36  ;;  %12844 = vmatpush1.bf16.msra.mxu0 %v12843_v61  ;;  %v15619_v36 = vld [vmem:[#allocation2 + $0xc8] sm:$0xff] }
  0xd8   : > { %12845 = vmatprep.subr.bf16.mxu0 %v18657_v0  ;;  %v15718_v61 = vld [vmem:[#allocation2 + $0x62] sm:$0xff] }
  0xda   : > { %1564 = vmatmul.mubr.f32.gmra.mrb[30].mxu0 %v15609_v63 }
  0xdb   : > { %1568 = vmatprep.mubr.f32.mxu0 %v15463_v38  ;;  %12847 = vmatpush1.bf16.msra.mxu0 %v12846_v19  ;;  %v15627_v38 = vld [vmem:[#allocation2 + $0xe0] sm:$0xff]  ;;  %v15723_v19 = vld [vmem:[#allocation2 + $0x6a] sm:$0xff] }
  0xdc   : > { %12848 = vmatprep.subr.bf16.mxu0 %v18657_v0 }
  0xde   : > { %1569 = vmatmul.mubr.f32.gmra.mrb[32].mxu0 %v15614_v35 }
  0xdf   : > { %1573 = vmatprep.mubr.f32.mxu0 %v15468_v41  ;;  %v15635_v41 = vld [vmem:[#allocation2 + $0xf8] sm:$0xff] }
  0xe2   : > { %1574 = vmatmul.mubr.f32.gmra.mrb[34].mxu0 %v15619_v36 }
  0xe3   : > { %1578 = vmatprep.mubr.f32.mxu0 %v15472_v42  ;;  %v15639_v42 = vld [vmem:[#allocation2 + $0x108] sm:$0xff] }
  0xe6   : > { %1579 = vmatmul.mubr.f32.gmra.mrb[36].mxu0 %v15623_v4 }
  0xe7   : > { %1583 = vmatprep.mubr.f32.mxu0 %v15476_v44  ;;  %v15643_v44 = vld [vmem:[#allocation2 + $0x110] sm:$0xff] }
  0xea   : > { %1584 = vmatmul.mubr.f32.gmra.mrb[38].mxu0 %v15627_v38 }
  0xeb   : > { %1588 = vmatprep.mubr.f32.mxu0 %v15481_v47  ;;  %v15647_v47 = vld [vmem:[#allocation2 + $0x120] sm:$0xff] }
  0xee   : > { %1589 = vmatmul.mubr.f32.gmra.mrb[40].mxu0 %v15631_v5 }
  0xef   : > { %1593 = vmatprep.mubr.f32.mxu0 %v15485_v48  ;;  %v15651_v48 = vld [vmem:[#allocation2 + $0x128] sm:$0xff] }
  0xf2   : > { %1594 = vmatmul.mubr.f32.gmra.mrb[42].mxu0 %v15635_v41 }
  0xf3   : > { %1598 = vmatprep.mubr.f32.mxu0 %v15488_v49  ;;  %v15655_v49 = vld [vmem:[#allocation2 + $0x138] sm:$0xff] }
  0xf6   : > { %1599 = vmatmul.mubr.f32.gmra.mrb[44].mxu0 %v15639_v42 }
  0xf7   : > { %1603 = vmatprep.mubr.f32.mxu0 %v15493_v51  ;;  %v15659_v51 = vld [vmem:[#allocation2 + $0x140] sm:$0xff] }
  0xfa   : > { %1604 = vmatmul.mubr.f32.gmra.mrb[46].mxu0 %v15643_v44 }
  0xfb   : > { %1608 = vmatprep.mubr.f32.mxu0 %v15496_v52  ;;  %v15663_v52 = vld [vmem:[#allocation2 + $0x150] sm:$0xff] }
  0xfe   : > { %1609 = vmatmul.mubr.f32.gmra.mrb[48].mxu0 %v15647_v47 }
  0xff   : > { %1613 = vmatprep.mubr.f32.mxu0 %v15502_v55  ;;  %v15666_v55 = vld [vmem:[%s15401_s30 + $0xf0] sm:$0xff] }
 0x100   : > { %413 = vst [vmem:[#allocation2 + $0x181] sm:$0xff] %v15666_v55 }
 0x102   : > { %1614 = vmatmul.mubr.f32.gmra.mrb[50].mxu0 %v15651_v48 }
 0x103   : > { %1618 = vmatprep.mubr.f32.mxu0 %v15506_v56  ;;  %v15671_v56 = vld [vmem:[#allocation2 + $0x158] sm:$0xff] }
 0x106   : > { %1619 = vmatmul.mubr.f32.gmra.mrb[52].mxu0 %v15655_v49 }
 0x107   : > { %1623 = vmatprep.mubr.f32.mxu0 %v15511_v60  ;;  %v15679_v60 = vld [vmem:[#allocation2 + $0x168] sm:$0xff] }
 0x10a   : > { %1624 = vmatmul.mubr.f32.gmra.mrb[54].mxu0 %v15659_v51 }
 0x10b   : > { %1628 = vmatprep.mubr.f32.mxu0 %v15516_v2  ;;  %v15683_v2 = vld [vmem:[#allocation2 + $0x170] sm:$0xff] }
 0x10e   : > { %1629 = vmatmul.mubr.f32.gmra.mrb[56].mxu0 %v15663_v52 }
 0x10f   : > { %1633 = vmatprep.mubr.f32.mxu0 %v15521_v6  ;;  %v1345_v6 = vld [vmem:[#allocation5 + $0x208] sm:$0xff] }
 0x110   : > { %v12849_v12 = vpack.c.bf16 %v1345_v6, %v1344_v9  ;;  %v1364_v6 = vld [vmem:[#allocation5 + $0x2a0] sm:$0xff] }
 0x112   : > { %1634 = vmatmul.mubr.f32.gmra.mrb[58].mxu0 %v15671_v56 }
 0x113   : > { %1638 = vmatprep.mubr.f32.mxu0 %v15526_v10  ;;  %v544_v10 = vld [vmem:[#allocation2 + $0xa] sm:$0xff] }
 0x116   : > { %1639 = vmatmul.mubr.f32.gmra.mrb[60].mxu0 %v15679_v60 }
 0x117   : > { %1643 = vmatprep.mubr.f32.mxu0 %v15531_v14  ;;  %v1348_v14 = vld [vmem:[#allocation5 + $0x220] sm:$0xff] }
 0x11a   : > { %1644 = vmatmul.mubr.f32.gmra.mrb[62].mxu0 %v15683_v2 }
 0x11b   : > { %1713 = vmatprep.mubr.f32.mxu0 %v15541_v46  ;;  %v12855_v46 = vpack.c.bf16 %v1349_v22, %v1348_v14  ;;  %v15738_v14 = vld [vmem:[#allocation2 + $0x92] sm:$0xff] }
 0x11e   : > { %1714 = vmatmul.mubr.f32.vlgmr.msra.gmra.mrb[0].mxu0 %v543_v20  ;;  %v15728_v20 = vld [vmem:[#allocation2 + $0x7a] sm:$0xff] }
 0x11f   : > { %12850 = vmatpush1.bf16.msra.mxu0 %v12849_v12  ;;  %1718 = vmatprep.mubr.f32.mxu0 %v15546_v57  ;;  %v15695_v57 = vld [vmem:[#allocation2 + $0x22] sm:$0xff] }
 0x120   : > { %12851 = vmatprep.subr.bf16.mxu0 %v18657_v0 }
 0x122   : > { %1719 = vmatmul.mubr.f32.gmra.mrb[2].mxu0 %v544_v10 }
 0x123   : > { %1723 = vmatprep.mubr.f32.mxu0 %v15551_v59  ;;  %12853 = vmatpush1.bf16.msra.mxu0 %v12852_v16  ;;  %v1353_v59 = vld [vmem:[#allocation5 + $0x248] sm:$0xff]  ;;  %v1368_v16 = vld [vmem:[#allocation5 + $0x2c0] sm:$0xff] }
 0x124   : > { %12854 = vmatprep.subr.bf16.mxu0 %v18657_v0  ;;  %v12861_v37 = vpack.c.bf16 %v1353_v59, %v1352_v34  ;;  %v15748_v34 = vld [vmem:[#allocation2 + $0xaa] sm:$0xff] }
 0x126   : > { %1724 = vmatmul.mubr.f32.gmra.mrb[4].mxu0 %v15690_v23 }
 0x127   : > { %1728 = vmatprep.mubr.f32.mxu0 %v15559_v3  ;;  %12856 = vmatpush1.bf16.msra.mxu0 %v12855_v46  ;;  %v15703_v3 = vld [vmem:[#allocation2 + $0x3a] sm:$0xff]  ;;  %v1370_v46 = vld [vmem:[#allocation5 + $0x2d0] sm:$0xff] }
 0x128   : > { %12857 = vmatprep.subr.bf16.mxu0 %v18657_v0 }
 0x12a   : > { %1729 = vmatmul.mubr.f32.gmra.mrb[6].mxu0 %v15695_v57 }
 0x12b   : > { %1733 = vmatprep.mubr.f32.mxu0 %v15564_v7  ;;  %12859 = vmatpush1.bf16.msra.mxu0 %v12858_v26  ;;  %v15708_v7 = vld [vmem:[#allocation2 + $0x4a] sm:$0xff]  ;;  %v1372_v26 = vld [vmem:[#allocation5 + $0x2e0] sm:$0xff] }
 0x12c   : > { %12860 = vmatprep.subr.bf16.mxu0 %v18657_v0 }
 0x12e   : > { %1734 = vmatmul.mubr.f32.gmra.mrb[8].mxu0 %v15553_v62 }
 0x12f   : > { %1738 = vmatprep.mubr.f32.mxu0 %v15569_v11  ;;  %12862 = vmatpush1.bf16.msra.mxu0 %v12861_v37  ;;  %v1359_v11 = vld [vmem:[#allocation5 + $0x278] sm:$0xff]  ;;  %v1374_v37 = vld [vmem:[#allocation5 + $0x2f0] sm:$0xff] }
 0x130   : > { %12863 = vmatprep.subr.bf16.mxu0 %v18657_v0  ;;  %v12870_v1 = vpack.c.bf16 %v1359_v11, %v1358_v29  ;;  %v1411_v29 = vld [vmem:[#allocation5 + $0x418] sm:$0xff] }
 0x132   : > { %1739 = vmatmul.mubr.f32.gmra.mrb[10].mxu0 %v15703_v3 }
 0x133   : > { %1743 = vmatprep.mubr.f32.mxu0 %v15574_v15  ;;  %12865 = vmatpush1.bf16.msra.mxu0 %v12864_v43  ;;  %v1361_v15 = vld [vmem:[#allocation5 + $0x288] sm:$0xff]  ;;  %v15767_v43 = vld [vmem:[#allocation2 + $0xda] sm:$0xff] }
 0x134   : > { %12866 = vmatprep.subr.bf16.mxu0 %v18657_v0  ;;  %v12873_v18 = vpack.c.bf16 %v1361_v15, %v1360_v30  ;;  %v1413_v30 = vld [vmem:[#allocation5 + $0x428] sm:$0xff]  ;;  %v15799_v15 = vld [vmem:[#allocation2 + $0x13a] sm:$0xff] }
 0x136   : > { %1744 = vmatmul.mubr.f32.gmra.mrb[12].mxu0 %v15708_v7 }
 0x137   : > { %1748 = vmatprep.mubr.f32.mxu0 %v15579_v24  ;;  %12868 = vmatpush1.bf16.msra.mxu0 %v12867_v53  ;;  %v1363_v24 = vld [vmem:[#allocation5 + $0x298] sm:$0xff] }
 0x138   : > { %12869 = vmatprep.subr.bf16.mxu0 %v18657_v0  ;;  %v12876_v9 = vpack.c.bf16 %v1363_v24, %v1362_v32  ;;  %v1415_v32 = vld [vmem:[#allocation5 + $0x438] sm:$0xff]  ;;  %v15803_v24 = vld [vmem:[#allocation2 + $0x142] sm:$0xff] }
 0x13a   : > { %1749 = vmatmul.mubr.f32.gmra.mrb[14].mxu0 %v15713_v58 }
 0x13b   : > { %1753 = vmatprep.mubr.f32.mxu0 %v15584_v33  ;;  %12871 = vmatpush1.bf16.msra.mxu0 %v12870_v1  ;;  %v1365_v33 = vld [vmem:[#allocation5 + $0x2a8] sm:$0xff]  ;;  %v1412_v1 = vld [vmem:[#allocation5 + $0x420] sm:$0xff] }
 0x13c   : > { %12872 = vmatprep.subr.bf16.mxu0 %v18657_v0  ;;  %v12879_v12 = vpack.c.bf16 %v1365_v33, %v1364_v6  ;;  %v1417_v6 = vld [vmem:[#allocation5 + $0x448] sm:$0xff]  ;;  %v15807_v33 = vld [vmem:[#allocation2 + $0x152] sm:$0xff] }
 0x13e   : > { %1754 = vmatmul.mubr.f32.gmra.mrb[16].mxu0 %v15718_v61 }
 0x13f   : > { %1758 = vmatprep.mubr.f32.mxu0 %v15589_v39  ;;  %12874 = vmatpush1.bf16.msra.mxu0 %v12873_v18  ;;  %v1367_v39 = vld [vmem:[#allocation5 + $0x2b8] sm:$0xff]  ;;  %v1414_v18 = vld [vmem:[#allocation5 + $0x430] sm:$0xff] }
 0x140   : > { %12875 = vmatprep.subr.bf16.mxu0 %v18657_v0  ;;  %v12882_v10 = vpack.c.bf16 %v1367_v39, %v1366_v13  ;;  %v1419_v13 = vld [vmem:[#allocation5 + $0x458] sm:$0xff] }
 0x141   : > { %v15811_v39 = vld [vmem:[#allocation2 + $0x15a] sm:$0xff] }
 0x142   : > { %1759 = vmatmul.mubr.f32.gmra.mrb[18].mxu0 %v15723_v19 }
 0x143   : > { %1763 = vmatprep.mubr.f32.mxu0 %v15594_v45  ;;  %12877 = vmatpush1.bf16.msra.mxu0 %v12876_v9  ;;  %v1369_v45 = vld [vmem:[#allocation5 + $0x2c8] sm:$0xff]  ;;  %v1416_v9 = vld [vmem:[#allocation5 + $0x440] sm:$0xff] }
 0x144   : > { %12878 = vmatprep.subr.bf16.mxu0 %v18657_v0  ;;  %v12885_v22 = vpack.c.bf16 %v1369_v45, %v1368_v16  ;;  %v1420_v16 = vld [vmem:[#allocation5 + $0x460] sm:$0xff]  ;;  %v1421_v45 = vld [vmem:[#allocation5 + $0x468] sm:$0xff] }
 0x146   : > { %1764 = vmatmul.mubr.f32.gmra.mrb[20].mxu0 %v15728_v20 }
 0x147   : > { %1768 = vmatprep.mubr.f32.mxu0 %v15599_v54  ;;  %12880 = vmatpush1.bf16.msra.mxu0 %v12879_v12  ;;  %v1371_v54 = vld [vmem:[#allocation5 + $0x2d8] sm:$0xff]  ;;  %v1418_v12 = vld [vmem:[#allocation5 + $0x450] sm:$0xff] }
 0x148   : > { %12881 = vmatprep.subr.bf16.mxu0 %v18657_v0  ;;  %v12888_v31 = vpack.c.bf16 %v1371_v54, %v1370_v46  ;;  %v15819_v46 = vld [vmem:[#allocation2 + $0x188] sm:$0xff]  ;;  %v1423_v54 = vld [vmem:[#allocation5 + $0x478] sm:$0xff] }
 0x14a   : > { %1769 = vmatmul.mubr.f32.gmra.mrb[22].mxu0 %v15733_v21 }
 0x14b   : > { %1773 = vmatprep.mubr.f32.mxu0 %v15604_v17  ;;  %12883 = vmatpush1.bf16.msra.mxu0 %v12882_v10  ;;  %v1373_v17 = vld [vmem:[#allocation5 + $0x2e8] sm:$0xff]  ;;  %v15813_v10 = vld [vmem:[#allocation2 + $0x180] sm:$0xff] }
 0x14c   : > { %12884 = vmatprep.subr.bf16.mxu0 %v18657_v0  ;;  %v12891_v59 = vpack.c.bf16 %v1373_v17, %v1372_v26  ;;  %v15823_v26 = vld [vmem:[#allocation2 + $0x172] sm:$0xff]  ;;  %v1376_v17 = vld [vmem:[#allocation5 + $0x300] sm:$0xff] }
 0x14e   : > { %1774 = vmatmul.mubr.f32.gmra.mrb[24].mxu0 %v15738_v14 }
 0x14f   : > { %1778 = vmatprep.mubr.f32.mxu0 %v15609_v63  ;;  %12886 = vmatpush1.bf16.msra.mxu0 %v12885_v22  ;;  %v1375_v63 = vld [vmem:[#allocation5 + $0x2f8] sm:$0xff]  ;;  %v15817_v22 = vld [vmem:[#allocation2 + $0x16a] sm:$0xff] }
 0x150   : > { %12887 = vmatprep.subr.bf16.mxu0 %v18657_v0  ;;  %v12894_v40 = vpack.c.bf16 %v1375_v63, %v1374_v37  ;;  %v1378_v63 = vld [vmem:[#allocation5 + $0x310] sm:$0xff] }
 0x152   : > { %1779 = vmatmul.mubr.f32.gmra.mrb[26].mxu0 %v15743_v25 }
 0x153   : > { %1783 = vmatprep.mubr.f32.mxu0 %v15614_v35  ;;  %12889 = vmatpush1.bf16.msra.mxu0 %v12888_v31  ;;  %v15758_v35 = vld [vmem:[#allocation2 + $0xc2] sm:$0xff] }
 0x154   : > { %12890 = vmatprep.subr.bf16.mxu0 %v18657_v0 }
 0x156   : > { %1784 = vmatmul.mubr.f32.gmra.mrb[28].mxu0 %v15748_v34 }
 0x157   : > { %1788 = vmatprep.mubr.f32.mxu0 %v15619_v36  ;;  %12892 = vmatpush1.bf16.msra.mxu0 %v12891_v59  ;;  %v15763_v36 = vld [vmem:[#allocation2 + $0xca] sm:$0xff] }
 0x158   : > { %12893 = vmatprep.subr.bf16.mxu0 %v18657_v0  ;;  %v1377_v59 = vld [vmem:[#allocation5 + $0x308] sm:$0xff] }
 0x159   : > { %v12897_v37 = vpack.c.bf16 %v1377_v59, %v1376_v17  ;;  %v14993_v17 = vld [vmem:[#allocation2 + $0x79] sm:$0xff] }
 0x15a   : > { %1789 = vmatmul.mubr.f32.gmra.mrb[30].mxu0 %v15753_v27 }
 0x15b   : > { %1793 = vmatprep.mubr.f32.mxu0 %v15623_v4  ;;  %12895 = vmatpush1.bf16.msra.mxu0 %v12894_v40  ;;  %v15771_v4 = vld [vmem:[#allocation2 + $0xe2] sm:$0xff]  ;;  %v1379_v40 = vld [vmem:[#allocation5 + $0x318] sm:$0xff] }
 0x15c   : > { %12896 = vmatprep.subr.bf16.mxu0 %v18657_v0 }
 0x15e   : > { %1794 = vmatmul.mubr.f32.gmra.mrb[32].mxu0 %v15758_v35 }
 0x15f   : > { %1798 = vmatprep.mubr.f32.mxu0 %v15627_v38  ;;  %v15779_v38 = vld [vmem:[#allocation2 + $0xfa] sm:$0xff] }
 0x162   : > { %1799 = vmatmul.mubr.f32.gmra.mrb[34].mxu0 %v15763_v36 }
 0x163   : > { %1803 = vmatprep.mubr.f32.mxu0 %v15631_v5  ;;  %v15783_v5 = vld [vmem:[#allocation2 + $0x10a] sm:$0xff] }
 0x166   : > { %1804 = vmatmul.mubr.f32.gmra.mrb[36].mxu0 %v15767_v43 }
 0x167   : > { %1808 = vmatprep.mubr.f32.mxu0 %v15635_v41  ;;  %v15787_v41 = vld [vmem:[#allocation2 + $0x112] sm:$0xff] }
 0x16a   : > { %1809 = vmatmul.mubr.f32.gmra.mrb[38].mxu0 %v15771_v4 }
 0x16b   : > { %1813 = vmatprep.mubr.f32.mxu0 %v15639_v42  ;;  %v1408_v42 = vld [vmem:[#allocation5 + $0x400] sm:$0xff] }
 0x16c   : > { %v12944_v53 = vpack.c.bf16 %v1409_v50, %v1408_v42  ;;  %v14985_v42 = vld [vmem:[#allocation2 + $0x19] sm:$0xff]  ;;  %v12900_v50 = vpack.c.bf16 %v1379_v40, %v1378_v63  ;;  %v14994_v63 = vld [vmem:[#allocation2 + $0x81] sm:$0xff] }
 0x16e   : > { %1814 = vmatmul.mubr.f32.gmra.mrb[40].mxu0 %v15775_v28  ;;  %12945 = vmatprep.subr.bf16.mxu1 %v12944_v53 }
 0x16f   : > { %1818 = vmatprep.mubr.f32.mxu0 %v15643_v44  ;;  %v15791_v44 = vld [vmem:[#allocation2 + $0x122] sm:$0xff]  ;;  %12947 = vmatpush3.bf16.msra.mxu1 %v12944_v53 }
 0x170   : > { %v1380_v53 = vld [vmem:[#allocation5 + $0x320] sm:$0xff] }
 0x172   : > { %1819 = vmatmul.mubr.f32.gmra.mrb[42].mxu0 %v15779_v38 }
 0x173   : > { %1823 = vmatprep.mubr.f32.mxu0 %v15647_v47  ;;  %v1410_v47 = vld [vmem:[#allocation5 + $0x410] sm:$0xff] }
 0x174   : > { %v12948_v11 = vpack.c.bf16 %v1411_v29, %v1410_v47  ;;  %v1381_v47 = vld [vmem:[#allocation5 + $0x328] sm:$0xff] }
 0x175   : > { %v12903_v29 = vpack.c.bf16 %v1381_v47, %v1380_v53  ;;  %v1400_v47 = vld [vmem:[#allocation5 + $0x3c0] sm:$0xff] }
 0x176   : > { %1824 = vmatmul.mubr.f32.gmra.mrb[44].mxu0 %v15783_v5  ;;  %12949 = vmatprep.subr.bf16.mxu1 %v12948_v11 }
 0x177   : > { %1828 = vmatprep.mubr.f32.mxu0 %v15651_v48  ;;  %v15795_v48 = vld [vmem:[#allocation2 + $0x12a] sm:$0xff]  ;;  %12951 = vmatpush3.bf16.msra.mxu1 %v12948_v11 }
 0x178   : > { %v1382_v11 = vld [vmem:[#allocation5 + $0x330] sm:$0xff] }
 0x17a   : > { %1829 = vmatmul.mubr.f32.gmra.mrb[46].mxu0 %v15787_v41 }
 0x17b   : > { %1833 = vmatprep.mubr.f32.mxu0 %v15655_v49  ;;  %v12952_v49 = vpack.c.bf16 %v1413_v30, %v1412_v1  ;;  %v1383_v1 = vld [vmem:[#allocation5 + $0x338] sm:$0xff] }
 0x17c   : > { %v12906_v30 = vpack.c.bf16 %v1383_v1, %v1382_v11  ;;  %v1402_v11 = vld [vmem:[#allocation5 + $0x3d0] sm:$0xff] }
 0x17d   : > { %12953 = vmatprep.subr.bf16.mxu1 %v12952_v49  ;;  %v14997_v1 = vld [vmem:[#allocation2 + $0xa9] sm:$0xff] }
 0x17e   : > { %1834 = vmatmul.mubr.f32.gmra.mrb[48].mxu0 %v15791_v44  ;;  %12955 = vmatpush3.bf16.msra.mxu1 %v12952_v49  ;;  %v1384_v49 = vld [vmem:[#allocation5 + $0x340] sm:$0xff] }
 0x17f   : > { %1838 = vmatprep.mubr.f32.mxu0 %v15659_v51  ;;  %v12956_v51 = vpack.c.bf16 %v1415_v32, %v1414_v18  ;;  %v14988_v18 = vld [vmem:[#allocation2 + $0x39] sm:$0xff] }
 0x181   : > { %12957 = vmatprep.subr.bf16.mxu1 %v12956_v51 }
 0x182   : > { %1839 = vmatmul.mubr.f32.gmra.mrb[50].mxu0 %v15795_v48  ;;  %12959 = vmatpush3.bf16.msra.mxu1 %v12956_v51  ;;  %v1386_v51 = vld [vmem:[#allocation5 + $0x350] sm:$0xff] }
 0x183   : > { %1843 = vmatprep.mubr.f32.mxu0 %v15663_v52  ;;  %v12960_v52 = vpack.c.bf16 %v1417_v6, %v1416_v9  ;;  %v14989_v9 = vld [vmem:[#allocation2 + $0x49] sm:$0xff] }
 0x185   : > { %12961 = vmatprep.subr.bf16.mxu1 %v12960_v52 }
 0x186   : > { %1844 = vmatmul.mubr.f32.gmra.mrb[52].mxu0 %v15799_v15  ;;  %12963 = vmatpush3.bf16.msra.mxu1 %v12960_v52  ;;  %v1388_v52 = vld [vmem:[#allocation5 + $0x360] sm:$0xff] }
 0x187   : > { %1848 = vmatprep.mubr.f32.mxu0 %v15671_v56  ;;  %v12964_v56 = vpack.c.bf16 %v1419_v13, %v1418_v12  ;;  %v14990_v12 = vld [vmem:[#allocation2 + $0x51] sm:$0xff] }
 0x189   : > { %12965 = vmatprep.subr.bf16.mxu1 %v12964_v56 }
 0x18a   : > { %1849 = vmatmul.mubr.f32.gmra.mrb[54].mxu0 %v15803_v24  ;;  %12967 = vmatpush3.bf16.msra.mxu1 %v12964_v56  ;;  %v1390_v56 = vld [vmem:[#allocation5 + $0x370] sm:$0xff] }
 0x18b   : > { %1853 = vmatprep.mubr.f32.mxu0 %v15679_v60  ;;  %v12968_v60 = vpack.c.bf16 %v1421_v45, %v1420_v16  ;;  %v14991_v16 = vld [vmem:[#allocation2 + $0x61] sm:$0xff] }
 0x18d   : > { %12969 = vmatprep.subr.bf16.mxu1 %v12968_v60 }
 0x18e   : > { %1854 = vmatmul.mubr.f32.gmra.mrb[56].mxu0 %v15807_v33  ;;  %12971 = vmatpush3.bf16.msra.mxu1 %v12968_v60  ;;  %v1392_v60 = vld [vmem:[#allocation5 + $0x380] sm:$0xff] }
 0x18f   : > { %1858 = vmatprep.mubr.f32.mxu0 %v15683_v2  ;;  %v1422_v2 = vld [vmem:[#allocation5 + $0x470] sm:$0xff] }
 0x190   : > { %v12972_v31 = vpack.c.bf16 %v1423_v54, %v1422_v2  ;;  %v14992_v2 = vld [vmem:[#allocation2 + $0x69] sm:$0xff] }
 0x192   : > { %1859 = vmatmul.mubr.f32.gmra.mrb[58].mxu0 %v15811_v39  ;;  %12973 = vmatprep.subr.bf16.mxu1 %v12972_v31 }
 0x193   : > { %1863 = vmatprep.mubr.f32.mxu0 %v15813_v10  ;;  %12975 = vmatpush3.bf16.msra.mxu1 %v12972_v31  ;;  %v1394_v31 = vld [vmem:[#allocation5 + $0x390] sm:$0xff] }
 0x194   : > { %13024 = vmatprep.subr.bf16.mxu1 %v18657_v0 }
 0x196   : > { %1864 = vmatmul.mubr.f32.gmra.mrb[60].mxu0 %v15817_v22  ;;  %12385 = vmatmul.mubr.f32.vlgmr.msra.gmra.mrb[0].mxu1 %v15703_v3 }
 0x197   : > { %1868 = vmatprep.mubr.f32.mxu0 %v15819_v46  ;;  %12387 = vmatprep.mubr.f32.mxu1 %v15708_v7 }
 0x19a   : > { %1869 = vmatmul.mubr.f32.gmra.mrb[62].mxu0 %v15823_v26  ;;  %12388 = vmatmul.mubr.f32.gmra.mrb[2].mxu1 %v15713_v58 }
 0x19b   : > { %1938 = vmatprep.mubr.f32.mxu0 %v15690_v23  ;;  %12390 = vmatprep.mubr.f32.mxu1 %v15718_v61  ;;  %v14986_v23 = vld [vmem:[#allocation2 + $0x21] sm:$0xff] }
 0x19e   : > { %1939 = vmatmul.mubr.f32.vlgmr.msra.gmra.mrb[0].mxu0 %v14985_v42  ;;  %12391 = vmatmul.mubr.f32.gmra.mrb[4].mxu1 %v15723_v19  ;;  %v1398_v42 = vld [vmem:[#allocation5 + $0x3b0] sm:$0xff] }
 0x19f   : > { %12898 = vmatpush1.bf16.msra.mxu0 %v12897_v37  ;;  %1943 = vmatprep.mubr.f32.mxu0 %v15695_v57  ;;  %v14987_v57 = vld [vmem:[#allocation2 + $0x31] sm:$0xff]  ;;  %v1396_v37 = vld [vmem:[#allocation5 + $0x3a0] sm:$0xff] }
 0x1a0   : > { %12899 = vmatprep.subr.bf16.mxu0 %v18657_v0  ;;  %12393 = vmatprep.mubr.f32.mxu1 %v15728_v20 }
 0x1a2   : > { %1944 = vmatmul.mubr.f32.gmra.mrb[2].mxu0 %v14986_v23  ;;  %12394 = vmatmul.mubr.f32.gmra.mrb[6].mxu1 %v15733_v21  ;;  %v14996_v23 = vld [vmem:[#allocation2 + $0x99] sm:$0xff] }
 0x1a3   : > { %1948 = vmatprep.mubr.f32.mxu0 %v15553_v62  ;;  %12901 = vmatpush1.bf16.msra.mxu0 %v12900_v50  ;;  %v1385_v62 = vld [vmem:[#allocation5 + $0x348] sm:$0xff]  ;;  %v14995_v50 = vld [vmem:[#allocation2 + $0x91] sm:$0xff] }
 0x1a4   : > { %12902 = vmatprep.subr.bf16.mxu0 %v18657_v0  ;;  %12396 = vmatprep.mubr.f32.mxu1 %v15738_v14  ;;  %v12909_v32 = vpack.c.bf16 %v1385_v62, %v1384_v49  ;;  %v15880_v49 = vld [vmem:[#allocation2 + $0x182] sm:$0xff]  ;;  %v14998_v62 = vld [vmem:[#allocation2 + $0xb1] sm:$0xff] }
 0x1a6   : > { %1949 = vmatmul.mubr.f32.gmra.mrb[4].mxu0 %v14987_v57  ;;  %12397 = vmatmul.mubr.f32.gmra.mrb[8].mxu1 %v15743_v25 }
 0x1a7   : > { %1953 = vmatprep.mubr.f32.mxu0 %v15703_v3  ;;  %12904 = vmatpush1.bf16.msra.mxu0 %v12903_v29  ;;  %v1387_v3 = vld [vmem:[#allocation5 + $0x358] sm:$0xff] }
 0x1a8   : > { %12905 = vmatprep.subr.bf16.mxu0 %v18657_v0  ;;  %12399 = vmatprep.mubr.f32.mxu1 %v15748_v34  ;;  %v12912_v6 = vpack.c.bf16 %v1387_v3, %v1386_v51  ;;  %v1407_v51 = vld [vmem:[#allocation5 + $0x3f8] sm:$0xff]  ;;  %v14999_v3 = vld [vmem:[#allocation2 + $0xc1] sm:$0xff] }
 0x1aa   : > { %1954 = vmatmul.mubr.f32.gmra.mrb[6].mxu0 %v14988_v18  ;;  %12400 = vmatmul.mubr.f32.gmra.mrb[10].mxu1 %v15753_v27 }
 0x1ab   : > { %1958 = vmatprep.mubr.f32.mxu0 %v15708_v7  ;;  %12907 = vmatpush1.bf16.msra.mxu0 %v12906_v30  ;;  %v1389_v7 = vld [vmem:[#allocation5 + $0x368] sm:$0xff]  ;;  %v1404_v30 = vld [vmem:[#allocation5 + $0x3e0] sm:$0xff] }
 0x1ac   : > { %12908 = vmatprep.subr.bf16.mxu0 %v18657_v0  ;;  %12402 = vmatprep.mubr.f32.mxu1 %v15758_v35  ;;  %v12915_v13 = vpack.c.bf16 %v1389_v7, %v1388_v52  ;;  %v15002_v52 = vld [vmem:[#allocation2 + $0xe1] sm:$0xff]  ;;  %v15004_v7 = vld [vmem:[#allocation2 + $0xf9] sm:$0xff] }
 0x1ae   : > { %1959 = vmatmul.mubr.f32.gmra.mrb[8].mxu0 %v14989_v9  ;;  %12403 = vmatmul.mubr.f32.gmra.mrb[12].mxu1 %v15763_v36 }
 0x1af   : > { %1963 = vmatprep.mubr.f32.mxu0 %v15713_v58  ;;  %12910 = vmatpush1.bf16.msra.mxu0 %v12909_v32  ;;  %v1391_v58 = vld [vmem:[#allocation5 + $0x378] sm:$0xff]  ;;  %v766_v32 = vld [vmem:[#allocation2 + $0x18a] sm:$0xff] }
 0x1b0   : > { %12911 = vmatprep.subr.bf16.mxu0 %v18657_v0  ;;  %12405 = vmatprep.mubr.f32.mxu1 %v15767_v43  ;;  %v12918_v45 = vpack.c.bf16 %v1391_v58, %v1390_v56  ;;  %v800_v56 = vld [vmem:[#allocation2 + $0x30] sm:$0xff]  ;;  %v865_v58 = vld [vmem:[#allocation2 + $0x39] sm:$0xff] }
 0x1b2   : > { %1964 = vmatmul.mubr.f32.gmra.mrb[10].mxu0 %v14990_v12  ;;  %12406 = vmatmul.mubr.f32.gmra.mrb[14].mxu1 %v15771_v4  ;;  %v15006_v12 = vld [vmem:[#allocation2 + $0x111] sm:$0xff] }
 0x1b3   : > { %1968 = vmatprep.mubr.f32.mxu0 %v15718_v61  ;;  %12913 = vmatpush1.bf16.msra.mxu0 %v12912_v6  ;;  %v1393_v61 = vld [vmem:[#allocation5 + $0x388] sm:$0xff] }
 0x1b4   : > { %12914 = vmatprep.subr.bf16.mxu0 %v18657_v0  ;;  %12408 = vmatprep.mubr.f32.mxu1 %v15775_v28  ;;  %v12921_v54 = vpack.c.bf16 %v1393_v61, %v1392_v60  ;;  %v15000_v6 = vld [vmem:[#allocation2 + $0xc9] sm:$0xff]  ;;  %v3590_v60 = vld [vmem:[#allocation5 + $0x580] sm:$0xff] }
 0x1b5   : > { %v3591_v61 = vld [vmem:[#allocation5 + $0x588] sm:$0xff] }
 0x1b6   : > { %1969 = vmatmul.mubr.f32.gmra.mrb[12].mxu0 %v14991_v16  ;;  %12409 = vmatmul.mubr.f32.gmra.mrb[16].mxu1 %v15779_v38  ;;  %v3560_v16 = vld [vmem:[#allocation5 + $0x490] sm:$0xff] }
 0x1b7   : > { %1973 = vmatprep.mubr.f32.mxu0 %v15723_v19  ;;  %12916 = vmatpush1.bf16.msra.mxu0 %v12915_v13  ;;  %v1395_v19 = vld [vmem:[#allocation5 + $0x398] sm:$0xff] }
 0x1b8   : > { %12917 = vmatprep.subr.bf16.mxu0 %v18657_v0  ;;  %12411 = vmatprep.mubr.f32.mxu1 %v15783_v5  ;;  %v12924_v59 = vpack.c.bf16 %v1395_v19, %v1394_v31  ;;  %v958_v13 = vld [vmem:[#allocation2 + $0x19a] sm:$0xff] }
 0x1b9   : > { %v3593_v31 = vld [vmem:[#allocation5 + $0x598] sm:$0xff] }
 0x1ba   : > { %1974 = vmatmul.mubr.f32.gmra.mrb[14].mxu0 %v14992_v2  ;;  %12412 = vmatmul.mubr.f32.gmra.mrb[18].mxu1 %v15787_v41  ;;  %v13025_v2 = vpack.c.bf16 %v3591_v61, %v3590_v60  ;;  %v808_v60 = vld [vmem:[#allocation2 + $0x90] sm:$0xff] }
 0x1bb   : > { %1978 = vmatprep.mubr.f32.mxu0 %v15728_v20  ;;  %12919 = vmatpush1.bf16.msra.mxu0 %v12918_v45  ;;  %v1397_v20 = vld [vmem:[#allocation5 + $0x3a8] sm:$0xff]  ;;  %v3561_v45 = vld [vmem:[#allocation5 + $0x498] sm:$0xff] }
 0x1bc   : > { %12920 = vmatprep.subr.bf16.mxu0 %v18657_v0  ;;  %12414 = vmatprep.mubr.f32.mxu1 %v15791_v44  ;;  %v12927_v40 = vpack.c.bf16 %v1397_v20, %v1396_v37  ;;  %v12980_v19 = vpack.c.bf16 %v3561_v45, %v3560_v16  ;;  %v3594_v20 = vld [vmem:[#allocation5 + $0x5a0] sm:$0xff]  ;;  %v3607_v45 = vld [vmem:[#allocation5 + $0x608] sm:$0xff] }
 0x1bd   : > { %13026 = vmatpush1.bf16.msra.mxu1 %v13025_v2  ;;  %v3606_v16 = vld [vmem:[#allocation5 + $0x600] sm:$0xff] }
 0x1be   : > { %1979 = vmatmul.mubr.f32.gmra.mrb[16].mxu0 %v14993_v17  ;;  %12415 = vmatmul.mubr.f32.gmra.mrb[20].mxu1 %v15795_v48  ;;  %v866_v17 = vld [vmem:[#allocation2 + $0x49] sm:$0xff]  ;;  %v873_v2 = vld [vmem:[#allocation2 + $0x99] sm:$0xff] }
 0x1bf   : > { %1983 = vmatprep.mubr.f32.mxu0 %v15733_v21  ;;  %12922 = vmatpush1.bf16.msra.mxu0 %v12921_v54  ;;  %v1399_v21 = vld [vmem:[#allocation5 + $0x3b8] sm:$0xff]  ;;  %v3592_v54 = vld [vmem:[#allocation5 + $0x590] sm:$0xff] }
 0x1c0   : > { %12923 = vmatprep.subr.bf16.mxu0 %v18657_v0  ;;  %12417 = vmatprep.mubr.f32.mxu1 %v15799_v15  ;;  %v12930_v53 = vpack.c.bf16 %v1399_v21, %v1398_v42  ;;  %v13028_v37 = vpack.c.bf16 %v3593_v31, %v3592_v54  ;;  %v867_v21 = vld [vmem:[#allocation2 + $0x51] sm:$0xff] }
 0x1c1   : > { %13027 = vmatprep.subr.bf16.mxu1 %v18657_v0  ;;  %v3576_v54 = vld [vmem:[#allocation5 + $0x510] sm:$0xff]  ;;  %v3577_v31 = vld [vmem:[#allocation5 + $0x518] sm:$0xff] }
 0x1c2   : > { %1984 = vmatmul.mubr.f32.gmra.mrb[18].mxu0 %v14994_v63  ;;  %12418 = vmatmul.mubr.f32.gmra.mrb[22].mxu1 %v15803_v24  ;;  %v3595_v63 = vld [vmem:[#allocation5 + $0x5a8] sm:$0xff] }
 0x1c3   : > { %1988 = vmatprep.mubr.f32.mxu0 %v15738_v14  ;;  %12925 = vmatpush1.bf16.msra.mxu0 %v12924_v59  ;;  %v1401_v14 = vld [vmem:[#allocation5 + $0x3c8] sm:$0xff] }
 0x1c4   : > { %12926 = vmatprep.subr.bf16.mxu0 %v18657_v0  ;;  %12420 = vmatprep.mubr.f32.mxu1 %v15807_v33  ;;  %v12933_v29 = vpack.c.bf16 %v1401_v14, %v1400_v47  ;;  %v3563_v59 = vld [vmem:[#allocation5 + $0x4a8] sm:$0xff]  ;;  %v13031_v47 = vpack.c.bf16 %v3595_v63, %v3594_v20  ;;  %v3596_v14 = vld [vmem:[#allocation5 + $0x5b0] sm:$0xff]  ;;  %v3578_v20 = vld [vmem:[#allocation5 + $0x520] sm:$0xff] }
 0x1c5   : > { %13029 = vmatpush1.bf16.msra.mxu1 %v13028_v37  ;;  %v874_v37 = vld [vmem:[#allocation2 + $0xa9] sm:$0xff] }
 0x1c6   : > { %1989 = vmatmul.mubr.f32.gmra.mrb[20].mxu0 %v14995_v50  ;;  %12421 = vmatmul.mubr.f32.gmra.mrb[24].mxu1 %v15811_v39  ;;  %v3564_v50 = vld [vmem:[#allocation5 + $0x4b0] sm:$0xff]  ;;  %v3579_v63 = vld [vmem:[#allocation5 + $0x528] sm:$0xff] }
 0x1c7   : > { %1993 = vmatprep.mubr.f32.mxu0 %v15743_v25  ;;  %12928 = vmatpush1.bf16.msra.mxu0 %v12927_v40  ;;  %v1403_v25 = vld [vmem:[#allocation5 + $0x3d8] sm:$0xff]  ;;  %v802_v40 = vld [vmem:[#allocation2 + $0x48] sm:$0xff] }
 0x1c8   : > { %12929 = vmatprep.subr.bf16.mxu0 %v18657_v0  ;;  %12423 = vmatprep.mubr.f32.mxu1 %v15817_v22  ;;  %v12936_v57 = vpack.c.bf16 %v1403_v25, %v1402_v11  ;;  %v868_v25 = vld [vmem:[#allocation2 + $0x61] sm:$0xff] }
 0x1c9   : > { %13030 = vmatprep.subr.bf16.mxu1 %v18657_v0 }
 0x1ca   : > { %1994 = vmatmul.mubr.f32.gmra.mrb[22].mxu0 %v14996_v23  ;;  %12424 = vmatmul.mubr.f32.gmra.mrb[26].mxu1 %v15823_v26  ;;  %v3597_v23 = vld [vmem:[#allocation5 + $0x5b8] sm:$0xff] }
 0x1cb   : > { %1998 = vmatprep.mubr.f32.mxu0 %v15748_v34  ;;  %12931 = vmatpush1.bf16.msra.mxu0 %v12930_v53  ;;  %v1405_v34 = vld [vmem:[#allocation5 + $0x3e8] sm:$0xff]  ;;  %v3565_v53 = vld [vmem:[#allocation5 + $0x4b8] sm:$0xff] }
 0x1cc   : > { %12932 = vmatprep.subr.bf16.mxu0 %v18657_v0  ;;  %12426 = vmatprep.mubr.f32.mxu1 %v15880_v49  ;;  %v12939_v18 = vpack.c.bf16 %v1405_v34, %v1404_v30  ;;  %v12986_v11 = vpack.c.bf16 %v3565_v53, %v3564_v50  ;;  %v13034_v30 = vpack.c.bf16 %v3597_v23, %v3596_v14  ;;  %v3598_v34 = vld [vmem:[#allocation5 + $0x5c0] sm:$0xff]  ;;  %v810_v50 = vld [vmem:[#allocation2 + $0xa8] sm:$0xff]  ;;  %v3580_v14 = vld [vmem:[#allocation5 + $0x530] sm:$0xff] }
 0x1cd   : > { %13032 = vmatpush1.bf16.msra.mxu1 %v13031_v47  ;;  %v13007_v53 = vpack.c.bf16 %v3579_v63, %v3578_v20  ;;  %v875_v47 = vld [vmem:[#allocation2 + $0xb1] sm:$0xff] }
 0x1ce   : > { %1999 = vmatmul.mubr.f32.gmra.mrb[24].mxu0 %v14997_v1  ;;  %12427 = vmatmul.mubr.f32.gmra.mrb[28].mxu1 %v766_v32  ;;  %v3566_v1 = vld [vmem:[#allocation5 + $0x4c0] sm:$0xff]  ;;  %v3581_v23 = vld [vmem:[#allocation5 + $0x538] sm:$0xff] }
 0x1cf   : > { %2003 = vmatprep.mubr.f32.mxu0 %v15753_v27  ;;  %12934 = vmatpush1.bf16.msra.mxu0 %v12933_v29  ;;  %v1406_v27 = vld [vmem:[#allocation5 + $0x3f0] sm:$0xff] }
 0x1d0   : > { %12935 = vmatprep.subr.bf16.mxu0 %v18657_v0  ;;  %v12942_v9 = vpack.c.bf16 %v1407_v51, %v1406_v27  ;;  %12429 = vmatprep.mubr.f32.mxu1 %v958_v13  ;;  %v803_v29 = vld [vmem:[#allocation2 + $0x50] sm:$0xff]  ;;  %v3569_v51 = vld [vmem:[#allocation5 + $0x4d8] sm:$0xff] }
 0x1d1   : > { %13033 = vmatprep.subr.bf16.mxu1 %v18657_v0  ;;  %v3568_v27 = vld [vmem:[#allocation5 + $0x4d0] sm:$0xff] }
 0x1d2   : > { %2004 = vmatmul.mubr.f32.gmra.mrb[26].mxu0 %v14998_v62  ;;  %v804_v62 = vld [vmem:[#allocation2 + $0x60] sm:$0xff]  ;;  %13035 = vmatpush1.bf16.msra.mxu1 %v13034_v30  ;;  %v3604_v13 = vld [vmem:[#allocation5 + $0x5f0] sm:$0xff] }
 0x1d3   : > { %2008 = vmatprep.mubr.f32.mxu0 %v15758_v35  ;;  %12937 = vmatpush1.bf16.msra.mxu0 %v12936_v57  ;;  %v15001_v35 = vld [vmem:[#allocation2 + $0xd9] sm:$0xff]  ;;  %v3567_v57 = vld [vmem:[#allocation5 + $0x4c8] sm:$0xff]  ;;  %v888_v20 = vld [vmem:[#allocation2 + $0x151] sm:$0xff] }
 0x1d4   : > { %12938 = vmatprep.subr.bf16.mxu0 %v18657_v0  ;;  %13036 = vmatprep.subr.bf16.mxu1 %v18657_v0  ;;  %v876_v30 = vld [vmem:[#allocation2 + $0xc1] sm:$0xff] }
 0x1d6   : > { %2009 = vmatmul.mubr.f32.gmra.mrb[28].mxu0 %v14999_v3 }
 0x1d7   : > { %2013 = vmatprep.mubr.f32.mxu0 %v15763_v36  ;;  %12940 = vmatpush1.bf16.msra.mxu0 %v12939_v18  ;;  %v15003_v36 = vld [vmem:[#allocation2 + $0xf1] sm:$0xff]  ;;  %v12989_v18 = vpack.c.bf16 %v3567_v57, %v3566_v1  ;;  %v13010_v57 = vpack.c.bf16 %v3581_v23, %v3580_v14 }
 0x1d8   : > { %12941 = vmatprep.subr.bf16.mxu0 %v18657_v0  ;;  %v811_v1 = vld [vmem:[#allocation2 + $0xb0] sm:$0xff]  ;;  %v3621_v14 = vld [vmem:[#allocation5 + $0x678] sm:$0xff] }
 0x1da   : > { %2014 = vmatmul.mubr.f32.gmra.mrb[30].mxu0 %v15000_v6  ;;  %v3601_v6 = vld [vmem:[#allocation5 + $0x5d8] sm:$0xff] }
 0x1db   : > { %2018 = vmatprep.mubr.f32.mxu0 %v15767_v43  ;;  %12943 = vmatpush1.bf16.msra.mxu0 %v12942_v9  ;;  %v15005_v43 = vld [vmem:[#allocation2 + $0x109] sm:$0xff] }
 0x1dc   : > { %12976 = vmatprep.subr.bf16.mxu0 %v18657_v0  ;;  %v3600_v9 = vld [vmem:[#allocation5 + $0x5d0] sm:$0xff] }
 0x1de   : > { %2019 = vmatmul.mubr.f32.gmra.mrb[32].mxu0 %v15001_v35  ;;  %v805_v35 = vld [vmem:[#allocation2 + $0x68] sm:$0xff] }
 0x1df   : > { %2023 = vmatprep.mubr.f32.mxu0 %v15771_v4  ;;  %v15007_v4 = vld [vmem:[#allocation2 + $0x121] sm:$0xff] }
 0x1e2   : > { %2024 = vmatmul.mubr.f32.gmra.mrb[34].mxu0 %v15002_v52  ;;  %v12992_v52 = vpack.c.bf16 %v3569_v51, %v3568_v27  ;;  %v877_v27 = vld [vmem:[#allocation2 + $0xc9] sm:$0xff] }
 0x1e3   : > { %2028 = vmatprep.mubr.f32.mxu0 %v15775_v28  ;;  %v15008_v28 = vld [vmem:[#allocation2 + $0x129] sm:$0xff] }
 0x1e4   : > { %v3584_v51 = vld [vmem:[#allocation5 + $0x550] sm:$0xff] }
 0x1e6   : > { %2029 = vmatmul.mubr.f32.gmra.mrb[36].mxu0 %v15003_v36  ;;  %v870_v36 = vld [vmem:[#allocation2 + $0x79] sm:$0xff] }
 0x1e7   : > { %2033 = vmatprep.mubr.f32.mxu0 %v15779_v38  ;;  %v15009_v38 = vld [vmem:[#allocation2 + $0x139] sm:$0xff] }
 0x1ea   : > { %2034 = vmatmul.mubr.f32.gmra.mrb[38].mxu0 %v15004_v7  ;;  %v3570_v7 = vld [vmem:[#allocation5 + $0x4e0] sm:$0xff] }
 0x1eb   : > { %2038 = vmatprep.mubr.f32.mxu0 %v15783_v5  ;;  %v15010_v5 = vld [vmem:[#allocation2 + $0x141] sm:$0xff] }
 0x1ee   : > { %2039 = vmatmul.mubr.f32.gmra.mrb[40].mxu0 %v15005_v43  ;;  %v3571_v43 = vld [vmem:[#allocation5 + $0x4e8] sm:$0xff] }
 0x1ef   : > { %2043 = vmatprep.mubr.f32.mxu0 %v15787_v41  ;;  %v15011_v41 = vld [vmem:[#allocation2 + $0x151] sm:$0xff] }
 0x1f2   : > { %2044 = vmatmul.mubr.f32.gmra.mrb[42].mxu0 %v15006_v12  ;;  %v13040_v12 = vpack.c.bf16 %v3601_v6, %v3600_v9  ;;  %v813_v9 = vld [vmem:[#allocation2 + $0xc8] sm:$0xff] }
 0x1f3   : > { %2048 = vmatprep.mubr.f32.mxu0 %v15791_v44  ;;  %v15012_v44 = vld [vmem:[#allocation2 + $0x159] sm:$0xff] }
 0x1f6   : > { %2049 = vmatmul.mubr.f32.gmra.mrb[44].mxu0 %v15007_v4  ;;  %v3602_v4 = vld [vmem:[#allocation5 + $0x5e0] sm:$0xff] }
 0x1f7   : > { %2053 = vmatprep.mubr.f32.mxu0 %v15795_v48  ;;  %v15013_v48 = vld [vmem:[#allocation2 + $0x169] sm:$0xff] }
 0x1fa   : > { %2054 = vmatmul.mubr.f32.gmra.mrb[46].mxu0 %v15008_v28  ;;  %v3603_v28 = vld [vmem:[#allocation5 + $0x5e8] sm:$0xff] }
 0x1fb   : > { %2058 = vmatprep.mubr.f32.mxu0 %v15799_v15  ;;  %v15014_v15 = vld [vmem:[#allocation2 + $0x171] sm:$0xff] }
 0x1fe   : > { %2059 = vmatmul.mubr.f32.gmra.mrb[48].mxu0 %v15009_v38  ;;  %v806_v38 = vld [vmem:[#allocation2 + $0x78] sm:$0xff] }
 0x1ff   : > { %2063 = vmatprep.mubr.f32.mxu0 %v15803_v24  ;;  %v959_v24 = vld [vmem:[#allocation2 + $0x1a2] sm:$0xff] }
 0x200   : > { %12430 = vmatmul.mubr.f32.gmra.mrb[30].mxu1 %v959_v24  ;;  %v3605_v24 = vld [vmem:[#allocation5 + $0x5f8] sm:$0xff] }
 0x202   : > { %2064 = vmatmul.mubr.f32.gmra.mrb[50].mxu0 %v15010_v5  ;;  %v12995_v5 = vpack.c.bf16 %v3571_v43, %v3570_v7  ;;  %v815_v7 = vld [vmem:[#allocation2 + $0xe0] sm:$0xff]  ;;  %v880_v43 = vld [vmem:[#allocation2 + $0xf1] sm:$0xff] }
 0x203   : > { %2068 = vmatprep.mubr.f32.mxu0 %v15807_v33  ;;  %v864_v33 = vld [vmem:[#allocation2 + $0x31] sm:$0xff] }
 0x206   : > { %2069 = vmatmul.mubr.f32.gmra.mrb[52].mxu0 %v15011_v41  ;;  %v871_v41 = vld [vmem:[#allocation2 + $0x81] sm:$0xff] }
 0x207   : > { %2073 = vmatprep.mubr.f32.mxu0 %v15811_v39  ;;  %v3558_v39 = vld [vmem:[#allocation5 + $0x480] sm:$0xff] }
 0x20a   : > { %2074 = vmatmul.mubr.f32.gmra.mrb[54].mxu0 %v15012_v44  ;;  %v3572_v44 = vld [vmem:[#allocation5 + $0x4f0] sm:$0xff] }
 0x20b   : > { %2078 = vmatprep.mubr.f32.mxu0 %v15817_v22  ;;  %v3559_v22 = vld [vmem:[#allocation5 + $0x488] sm:$0xff] }
 0x20e   : > { %2079 = vmatmul.mubr.f32.gmra.mrb[56].mxu0 %v15013_v48  ;;  %v3573_v48 = vld [vmem:[#allocation5 + $0x4f8] sm:$0xff] }
 0x20f   : > { %2083 = vmatprep.mubr.f32.mxu0 %v15823_v26  ;;  %v12977_v26 = vpack.c.bf16 %v3559_v22, %v3558_v39  ;;  %v12998_v39 = vpack.c.bf16 %v3573_v48, %v3572_v44  ;;  %v872_v22 = vld [vmem:[#allocation2 + $0x91] sm:$0xff]  ;;  %v884_v48 = vld [vmem:[#allocation2 + $0x121] sm:$0xff] }
 0x210   : > { %v819_v44 = vld [vmem:[#allocation2 + $0x110] sm:$0xff] }
 0x212   : > { %2084 = vmatmul.mubr.f32.gmra.mrb[58].mxu0 %v15014_v15  ;;  %v13043_v15 = vpack.c.bf16 %v3603_v28, %v3602_v4  ;;  %v881_v4 = vld [vmem:[#allocation2 + $0xf9] sm:$0xff] }
 0x213   : > { %2088 = vmatprep.mubr.f32.mxu0 %v15880_v49  ;;  %v3599_v49 = vld [vmem:[#allocation5 + $0x5c8] sm:$0xff]  ;;  %v817_v28 = vld [vmem:[#allocation2 + $0xf8] sm:$0xff] }
 0x214   : > { %v13037_v3 = vpack.c.bf16 %v3599_v49, %v3598_v34  ;;  %v3582_v34 = vld [vmem:[#allocation5 + $0x540] sm:$0xff]  ;;  %v3583_v49 = vld [vmem:[#allocation5 + $0x548] sm:$0xff] }
 0x216   : > { %2089 = vmatmul.mubr.f32.gmra.mrb[60].mxu0 %v15666_v55  ;;  %v801_v55 = vld [vmem:[#allocation2 + $0x38] sm:$0xff]  ;;  %13038 = vmatpush1.bf16.msra.mxu1 %v13037_v3 }
 0x217   : > { %2093 = vmatprep.mubr.f32.mxu0 %v766_v32  ;;  %v869_v32 = vld [vmem:[#allocation2 + $0x69] sm:$0xff]  ;;  %13039 = vmatprep.subr.bf16.mxu1 %v18657_v0  ;;  %v3585_v3 = vld [vmem:[#allocation5 + $0x558] sm:$0xff] }
 0x218   : > { %v13016_v6 = vpack.c.bf16 %v3585_v3, %v3584_v51  ;;  %v894_v51 = vld [vmem:[#allocation2 + $0x199] sm:$0xff] }
 0x21a   : > { %2094 = vmatmul.mubr.f32.gmra.mrb[62].mxu0 %v15674_v8  ;;  %v3562_v8 = vld [vmem:[#allocation5 + $0x4a0] sm:$0xff]  ;;  %13041 = vmatpush1.bf16.msra.mxu1 %v13040_v12  ;;  %v816_v12 = vld [vmem:[#allocation2 + $0xf0] sm:$0xff] }
 0x21b   : > { %2163 = vmatprep.mubr.f32.mxu0 %v864_v33  ;;  %v12983_v42 = vpack.c.bf16 %v3563_v59, %v3562_v8  ;;  %13042 = vmatprep.subr.bf16.mxu1 %v18657_v0  ;;  %v807_v33 = vld [vmem:[#allocation2 + $0x80] sm:$0xff]  ;;  %v809_v8 = vld [vmem:[#allocation2 + $0x98] sm:$0xff]  ;;  %v13004_v59 = vpack.c.bf16 %v3577_v31, %v3576_v54 }
 0x21c   : > { %v822_v31 = vld [vmem:[#allocation2 + $0x138] sm:$0xff] }
 0x21e   : > { %2164 = vmatmul.mubr.f32.vlgmr.msra.gmra.mrb[0].mxu0 %v800_v56  ;;  %v3574_v56 = vld [vmem:[#allocation5 + $0x500] sm:$0xff]  ;;  %13044 = vmatpush1.bf16.msra.mxu1 %v13043_v15 }
 0x21f   : > { %2168 = vmatprep.mubr.f32.mxu0 %v865_v58  ;;  %12978 = vmatpush1.bf16.msra.mxu0 %v12977_v26  ;;  %v3575_v58 = vld [vmem:[#allocation5 + $0x508] sm:$0xff]  ;;  %v13046_v26 = vpack.c.bf16 %v3605_v24, %v3604_v13  ;;  %v820_v15 = vld [vmem:[#allocation2 + $0x120] sm:$0xff] }
 0x220   : > { %12979 = vmatprep.subr.bf16.mxu0 %v18657_v0  ;;  %13045 = vmatprep.subr.bf16.mxu1 %v18657_v0  ;;  %v13001_v61 = vpack.c.bf16 %v3575_v58, %v3574_v56  ;;  %v3586_v13 = vld [vmem:[#allocation5 + $0x560] sm:$0xff]  ;;  %v3587_v24 = vld [vmem:[#allocation5 + $0x568] sm:$0xff]  ;;  %v3588_v58 = vld [vmem:[#allocation5 + $0x570] sm:$0xff] }
 0x222   : > { %2169 = vmatmul.mubr.f32.gmra.mrb[2].mxu0 %v801_v55  ;;  %13047 = vmatpush1.bf16.msra.mxu1 %v13046_v26  ;;  %v13049_v55 = vpack.c.bf16 %v3607_v45, %v3606_v16  ;;  %v3589_v26 = vld [vmem:[#allocation5 + $0x578] sm:$0xff] }
 0x223   : > { %2173 = vmatprep.mubr.f32.mxu0 %v866_v17  ;;  %12981 = vmatpush1.bf16.msra.mxu0 %v12980_v19  ;;  %v3608_v19 = vld [vmem:[#allocation5 + $0x610] sm:$0xff]  ;;  %v3609_v17 = vld [vmem:[#allocation5 + $0x618] sm:$0xff] }
 0x224   : > { %12982 = vmatprep.subr.bf16.mxu0 %v18657_v0  ;;  %13048 = vmatprep.subr.bf16.mxu1 %v18657_v0  ;;  %v886_v16 = vld [vmem:[#allocation2 + $0x139] sm:$0xff] }
 0x226   : > { %2174 = vmatmul.mubr.f32.gmra.mrb[4].mxu0 %v802_v40  ;;  %13050 = vmatpush1.bf16.msra.mxu1 %v13049_v55  ;;  %v13052_v40 = vpack.c.bf16 %v3609_v17, %v3608_v19  ;;  %v887_v55 = vld [vmem:[#allocation2 + $0x141] sm:$0xff]  ;;  %v3616_v19 = vld [vmem:[#allocation5 + $0x650] sm:$0xff]  ;;  %v3617_v17 = vld [vmem:[#allocation5 + $0x658] sm:$0xff] }
 0x227   : > { %2178 = vmatprep.mubr.f32.mxu0 %v867_v21  ;;  %12984 = vmatpush1.bf16.msra.mxu0 %v12983_v42  ;;  %v3610_v42 = vld [vmem:[#allocation5 + $0x620] sm:$0xff]  ;;  %v3611_v21 = vld [vmem:[#allocation5 + $0x628] sm:$0xff] }
 0x228   : > { %12985 = vmatprep.subr.bf16.mxu0 %v18657_v0  ;;  %13051 = vmatprep.subr.bf16.mxu1 %v18657_v0 }
 0x22a   : > { %2179 = vmatmul.mubr.f32.gmra.mrb[6].mxu0 %v803_v29  ;;  %13053 = vmatpush1.bf16.msra.mxu1 %v13052_v40  ;;  %v13055_v29 = vpack.c.bf16 %v3611_v21, %v3610_v42  ;;  %v3618_v40 = vld [vmem:[#allocation5 + $0x660] sm:$0xff]  ;;  %v3619_v42 = vld [vmem:[#allocation5 + $0x668] sm:$0xff] }
 0x22b   : > { %2183 = vmatprep.mubr.f32.mxu0 %v868_v25  ;;  %12987 = vmatpush1.bf16.msra.mxu0 %v12986_v11  ;;  %v3612_v11 = vld [vmem:[#allocation5 + $0x630] sm:$0xff]  ;;  %v3613_v25 = vld [vmem:[#allocation5 + $0x638] sm:$0xff]  ;;  %v13067_v21 = vpack.c.bf16 %v3619_v42, %v3618_v40  ;;  %v3694_v40 = vld [vmem:[#allocation5 + $0x8c0] sm:$0xff] }
 0x22c   : > { %12988 = vmatprep.subr.bf16.mxu0 %v18657_v0  ;;  %13054 = vmatprep.subr.bf16.mxu1 %v18657_v0  ;;  %v3695_v42 = vld [vmem:[#allocation5 + $0x8c8] sm:$0xff] }
 0x22e   : > { %2184 = vmatmul.mubr.f32.gmra.mrb[8].mxu0 %v804_v62  ;;  %13056 = vmatpush1.bf16.msra.mxu1 %v13055_v29  ;;  %v13058_v62 = vpack.c.bf16 %v3613_v25, %v3612_v11  ;;  %v825_v29 = vld [vmem:[#allocation2 + $0x158] sm:$0xff]  ;;  %v890_v25 = vld [vmem:[#allocation2 + $0x169] sm:$0xff] }
 0x22f   : > { %2188 = vmatprep.mubr.f32.mxu0 %v869_v32  ;;  %12990 = vmatpush1.bf16.msra.mxu0 %v12989_v18  ;;  %v812_v18 = vld [vmem:[#allocation2 + $0xc0] sm:$0xff]  ;;  %v13013_v32 = vpack.c.bf16 %v3583_v49, %v3582_v34  ;;  %v827_v34 = vld [vmem:[#allocation2 + $0x170] sm:$0xff] }
 0x230   : > { %12991 = vmatprep.subr.bf16.mxu0 %v18657_v0  ;;  %13057 = vmatprep.subr.bf16.mxu1 %v18657_v0 }
 0x232   : > { %2189 = vmatmul.mubr.f32.gmra.mrb[10].mxu0 %v805_v35  ;;  %13059 = vmatpush1.bf16.msra.mxu1 %v13058_v62  ;;  %v878_v35 = vld [vmem:[#allocation2 + $0xd9] sm:$0xff] }
 0x233   : > { %2193 = vmatprep.mubr.f32.mxu0 %v870_v36  ;;  %12993 = vmatpush1.bf16.msra.mxu0 %v12992_v52  ;;  %v814_v52 = vld [vmem:[#allocation2 + $0xd8] sm:$0xff]  ;;  %v879_v36 = vld [vmem:[#allocation2 + $0xe1] sm:$0xff] }
 0x234   : > { %12994 = vmatprep.subr.bf16.mxu0 %v18657_v0  ;;  %13060 = vmatprep.subr.bf16.mxu1 %v18657_v0 }
 0x236   : > { %2194 = vmatmul.mubr.f32.gmra.mrb[12].mxu0 %v806_v38  ;;  %v882_v38 = vld [vmem:[#allocation2 + $0x109] sm:$0xff] }
 0x237   : > { %2198 = vmatprep.mubr.f32.mxu0 %v871_v41  ;;  %12996 = vmatpush1.bf16.msra.mxu0 %v12995_v5  ;;  %v818_v5 = vld [vmem:[#allocation2 + $0x108] sm:$0xff]  ;;  %v883_v41 = vld [vmem:[#allocation2 + $0x111] sm:$0xff] }
 0x238   : > { %12997 = vmatprep.subr.bf16.mxu0 %v18657_v0 }
 0x23a   : > { %2199 = vmatmul.mubr.f32.gmra.mrb[14].mxu0 %v807_v33  ;;  %v885_v33 = vld [vmem:[#allocation2 + $0x129] sm:$0xff] }
 0x23b   : > { %2203 = vmatprep.mubr.f32.mxu0 %v872_v22  ;;  %12999 = vmatpush1.bf16.msra.mxu0 %v12998_v39  ;;  %v13019_v39 = vpack.c.bf16 %v3587_v24, %v3586_v13  ;;  %v821_v22 = vld [vmem:[#allocation2 + $0x128] sm:$0xff] }
 0x23c   : > { %13000 = vmatprep.subr.bf16.mxu0 %v18657_v0 }
 0x23e   : > { %2204 = vmatmul.mubr.f32.gmra.mrb[16].mxu0 %v808_v60  ;;  %v13022_v60 = vpack.c.bf16 %v3589_v26, %v3588_v58 }
 0x23f   : > { %2208 = vmatprep.mubr.f32.mxu0 %v873_v2  ;;  %13002 = vmatpush1.bf16.msra.mxu0 %v13001_v61  ;;  %v3614_v61 = vld [vmem:[#allocation5 + $0x640] sm:$0xff]  ;;  %v3615_v2 = vld [vmem:[#allocation5 + $0x648] sm:$0xff] }
 0x240   : > { %13003 = vmatprep.subr.bf16.mxu0 %v18657_v0  ;;  %v13061_v54 = vpack.c.bf16 %v3615_v2, %v3614_v61 }
 0x242   : > { %2209 = vmatmul.mubr.f32.gmra.mrb[18].mxu0 %v809_v8  ;;  %13062 = vmatpush1.bf16.msra.mxu1 %v13061_v54  ;;  %v13064_v8 = vpack.c.bf16 %v3617_v17, %v3616_v19  ;;  %v3690_v54 = vld [vmem:[#allocation5 + $0x8a0] sm:$0xff]  ;;  %v3692_v17 = vld [vmem:[#allocation5 + $0x8b0] sm:$0xff] }
 0x243   : > { %2213 = vmatprep.mubr.f32.mxu0 %v874_v37  ;;  %13005 = vmatpush1.bf16.msra.mxu0 %v13004_v59  ;;  %v823_v59 = vld [vmem:[#allocation2 + $0x140] sm:$0xff] }
 0x244   : > { %13006 = vmatprep.subr.bf16.mxu0 %v18657_v0  ;;  %13063 = vmatprep.subr.bf16.mxu1 %v18657_v0 }
 0x246   : > { %2214 = vmatmul.mubr.f32.gmra.mrb[20].mxu0 %v810_v50  ;;  %13065 = vmatpush1.bf16.msra.mxu1 %v13064_v8  ;;  %v824_v50 = vld [vmem:[#allocation2 + $0x150] sm:$0xff]  ;;  %v3693_v8 = vld [vmem:[#allocation5 + $0x8b8] sm:$0xff] }
 0x247   : > { %2218 = vmatprep.mubr.f32.mxu0 %v875_v47  ;;  %13008 = vmatpush1.bf16.msra.mxu0 %v13007_v53  ;;  %v889_v53 = vld [vmem:[#allocation2 + $0x159] sm:$0xff]  ;;  %v3620_v47 = vld [vmem:[#allocation5 + $0x670] sm:$0xff] }
 0x248   : > { %13009 = vmatprep.subr.bf16.mxu0 %v18657_v0  ;;  %13066 = vmatprep.subr.bf16.mxu1 %v18657_v0  ;;  %v13070_v23 = vpack.c.bf16 %v3621_v14, %v3620_v47  ;;  %v3697_v47 = vld [vmem:[#allocation5 + $0x8d8] sm:$0xff] }
 0x24a   : > { %2219 = vmatmul.mubr.f32.gmra.mrb[22].mxu0 %v811_v1  ;;  %13068 = vmatpush1.bf16.msra.mxu1 %v13067_v21 }
 0x24b   : > { %2223 = vmatprep.mubr.f32.mxu0 %v876_v30  ;;  %13011 = vmatpush1.bf16.msra.mxu0 %v13010_v57  ;;  %v826_v57 = vld [vmem:[#allocation2 + $0x168] sm:$0xff]  ;;  %v891_v30 = vld [vmem:[#allocation2 + $0x171] sm:$0xff] }
 0x24c   : > { %13012 = vmatprep.subr.bf16.mxu0 %v18657_v0  ;;  %13069 = vmatprep.subr.bf16.mxu1 %v18657_v0 }
 0x24e   : > { %2224 = vmatmul.mubr.f32.gmra.mrb[24].mxu0 %v812_v18  ;;  %13071 = vmatpush1.bf16.msra.mxu1 %v13070_v23  ;;  %v15015_v18 = vld [vmem:[#allocation2 + $0x181] sm:$0xff] }
 0x24f   : > { %2228 = vmatprep.mubr.f32.mxu0 %v877_v27  ;;  %13014 = vmatpush1.bf16.msra.mxu0 %v13013_v32  ;;  %v15016_v32 = vld [vmem:[#allocation2 + $0x189] sm:$0xff]  ;;  %v3698_v23 = vld [vmem:[#allocation5 + $0x8e0] sm:$0xff] }
 0x250   : > { %13015 = vmatprep.subr.bf16.mxu0 %v18657_v0  ;;  %13072 = vmatprep.subr.bf16.mxu1 %v18657_v0 }
 0x252   : > { %2229 = vmatmul.mubr.f32.gmra.mrb[26].mxu0 %v813_v9  ;;  %v895_v9 = vld [vmem:[#allocation2 + $0x1a1] sm:$0xff] }
 0x253   : > { %2233 = vmatprep.mubr.f32.mxu0 %v878_v35  ;;  %13017 = vmatpush1.bf16.msra.mxu0 %v13016_v6  ;;  %v15017_v6 = vld [vmem:[#allocation2] sm:$0xff] }
 0x254   : > { %13018 = vmatprep.subr.bf16.mxu0 %v18657_v0 }
 0x256   : > { %2234 = vmatmul.mubr.f32.gmra.mrb[28].mxu0 %v814_v52  ;;  %v2756_v52 = vld [vmem:[#allocation3 + $0x1] sm:$0xff] }
 0x257   : > { %2238 = vmatprep.mubr.f32.mxu0 %v879_v36  ;;  %13020 = vmatpush1.bf16.msra.mxu0 %v13019_v39  ;;  %v3686_v39 = vld [vmem:[#allocation5 + $0x880] sm:$0xff] }
 0x258   : > { %13021 = vmatprep.subr.bf16.mxu0 %v18657_v0 }
 0x25a   : > { %2239 = vmatmul.mubr.f32.gmra.mrb[30].mxu0 %v815_v7 }
 0x25b   : > { %2243 = vmatprep.mubr.f32.mxu0 %v880_v43  ;;  %13023 = vmatpush1.bf16.msra.mxu0 %v13022_v60  ;;  %v3689_v60 = vld [vmem:[#allocation5 + $0x898] sm:$0xff] }
 0x25e   : > { %2244 = vmatmul.mubr.f32.gmra.mrb[32].mxu0 %v816_v12 }
 0x25f   : > { %2248 = vmatprep.mubr.f32.mxu0 %v881_v4 }
 0x262   : > { %2249 = vmatmul.mubr.f32.gmra.mrb[34].mxu0 %v817_v28 }
 0x263   : > { %2253 = vmatprep.mubr.f32.mxu0 %v882_v38 }
 0x266   : > { %2254 = vmatmul.mubr.f32.gmra.mrb[36].mxu0 %v818_v5 }
 0x267   : > { %2258 = vmatprep.mubr.f32.mxu0 %v883_v41 }
 0x269   : > { %v15932_v56 = vpop.f32.mrb[0].mxu1 }
 0x26a   : > { %2259 = vmatmul.mubr.f32.gmra.mrb[38].mxu0 %v819_v44  ;;  %v15934_v45 = vpop.f32.mrb[1].mxu1 }
 0x26b   : > { %2263 = vmatprep.mubr.f32.mxu0 %v884_v48 }
 0x26d   : > { %v15938_v37 = vpop.f32.mrb[2].mxu1 }
 0x26e   : > { %2264 = vmatmul.mubr.f32.gmra.mrb[40].mxu0 %v820_v15  ;;  %v15940_v63 = vpop.f32.mrb[3].mxu1 }
 0x26f   : > { %2268 = vmatprep.mubr.f32.mxu0 %v885_v33 }
 0x271   : > { %v15944_v11 = vpop.f32.mrb[4].mxu1 }
 0x272   : > { %2269 = vmatmul.mubr.f32.gmra.mrb[42].mxu0 %v821_v22  ;;  %v15946_v1 = vpop.f32.mrb[5].mxu1  ;;  %v3687_v22 = vld [vmem:[#allocation5 + $0x888] sm:$0xff] }
 0x273   : > { %2273 = vmatprep.mubr.f32.mxu0 %v886_v16  ;;  %v13168_v26 = vpack.c.bf16 %v3687_v22, %v3686_v39  ;;  %v3688_v16 = vld [vmem:[#allocation5 + $0x890] sm:$0xff] }
 0x274   : > { %v13172_v61 = vpack.c.bf16 %v3689_v60, %v3688_v16 }
 0x275   : > { %v15949_v49 = vpop.f32.mrb[6].mxu1  ;;  %13169 = vmatprep.subr.bf16.mxu0 %v13168_v26 }
 0x276   : > { %2274 = vmatmul.mubr.f32.gmra.mrb[44].mxu0 %v822_v31  ;;  %v15951_v62 = vpop.f32.mrb[7].mxu1  ;;  %v3691_v31 = vld [vmem:[#allocation5 + $0x8a8] sm:$0xff] }
 0x277   : > { %2278 = vmatprep.mubr.f32.mxu0 %v887_v55  ;;  %v13176_v19 = vpack.c.bf16 %v3691_v31, %v3690_v54 }
 0x279   : > { %v15954_v27 = vpop.f32.mrb[8].mxu1 }
 0x27a   : > { %2279 = vmatmul.mubr.f32.gmra.mrb[46].mxu0 %v823_v59  ;;  %v15956_v3 = vpop.f32.mrb[9].mxu1  ;;  %v13180_v59 = vpack.c.bf16 %v3693_v8, %v3692_v17  ;;  %v3622_v8 = vld [vmem:[#allocation5 + $0x680] sm:$0xff] }
 0x27b   : > { %2283 = vmatprep.mubr.f32.mxu0 %v888_v20 }
 0x27d   : > { %v15959_v35 = vpop.f32.mrb[10].mxu1 }
 0x27e   : > { %2284 = vmatmul.mubr.f32.gmra.mrb[48].mxu0 %v824_v50  ;;  %v15961_v36 = vpop.f32.mrb[11].mxu1  ;;  %v13184_v50 = vpack.c.bf16 %v3695_v42, %v3694_v40 }
 0x27f   : > { %2288 = vmatprep.mubr.f32.mxu0 %v889_v53  ;;  %v3696_v53 = vld [vmem:[#allocation5 + $0x8d0] sm:$0xff] }
 0x280   : > { %v13188_v14 = vpack.c.bf16 %v3697_v47, %v3696_v53 }
 0x281   : > { %v15963_v7 = vpop.f32.mrb[12].mxu1 }
 0x282   : > { %2289 = vmatmul.mubr.f32.gmra.mrb[50].mxu0 %v825_v29  ;;  %v15965_v43 = vpop.f32.mrb[13].mxu1  ;;  %v3699_v29 = vld [vmem:[#allocation5 + $0x8e8] sm:$0xff] }
 0x283   : > { %2293 = vmatprep.mubr.f32.mxu0 %v890_v25  ;;  %v13192_v25 = vpack.c.bf16 %v3699_v29, %v3698_v23 }
 0x286   : > { %2294 = vmatmul.mubr.f32.gmra.mrb[52].mxu0 %v826_v57 }
 0x287   : > { %2298 = vmatprep.mubr.f32.mxu0 %v891_v30  ;;  %v16003_v30 = vld [vmem:[#allocation7] ss:$0 sm:$0xff] }
 0x28a   : > { %2299 = vmatmul.mubr.f32.gmra.mrb[54].mxu0 %v827_v34 }
 0x28b   : > { %2303 = vmatprep.mubr.f32.mxu0 %v15015_v18 }
 0x28e   : > { %2304 = vmatmul.mubr.f32.gmra.mrb[56].mxu0 %v15813_v10  ;;  %v2757_v10 = vld [vmem:[#allocation3 + $0x9] sm:$0xff] }
 0x28f   : > { %2308 = vmatprep.mubr.f32.mxu0 %v15016_v32  ;;  %v16006_v32 = vld [vmem:[#allocation9] ss:$0 sm:$0xff] }
 0x292   : > { %2309 = vmatmul.mubr.f32.gmra.mrb[58].mxu0 %v15819_v46  ;;  %v15967_v46 = vpop.f32.mrb[14].mxu1 }
 0x293   : > { %2313 = vmatprep.mubr.f32.mxu0 %v894_v51  ;;  %v15969_v12 = vpop.f32.mrb[15].mxu1  ;;  %v3700_v51 = vld [vmem:[#allocation5 + $0x8f0] sm:$0xff] }
 0x294   : > { %v15971_v4 = vpop.f32.mrb[16].mxu1 }
 0x295   : > { %v15973_v28 = vpop.f32.mrb[17].mxu1 }
 0x296   : > { %2314 = vmatmul.mubr.f32.gmra.mrb[60].mxu0 %v15017_v6  ;;  %v15975_v38 = vpop.f32.mrb[18].mxu1 }
 0x297   : > { %2318 = vmatprep.mubr.f32.mxu0 %v895_v9  ;;  %v15977_v5 = vpop.f32.mrb[19].mxu1  ;;  %v3701_v9 = vld [vmem:[#allocation5 + $0x8f8] sm:$0xff] }
 0x298   : > { %v15979_v41 = vpop.f32.mrb[20].mxu1 }
 0x299   : > { %v15981_v44 = vpop.f32.mrb[21].mxu1 }
 0x29a   : > { %2319 = vmatmul.mubr.f32.gmra.mrb[62].mxu0 %v15017_v6  ;;  %v15983_v48 = vpop.f32.mrb[22].mxu1 }
 0x29b   : > { %3766 = vmatprep.mubr.f32.mxu0 %v2756_v52  ;;  %v15985_v15 = vpop.f32.mrb[23].mxu1  ;;  %v13196_v52 = vpack.c.bf16 %v3701_v9, %v3700_v51 }
 0x29c   : > { %v15987_v13 = vpop.f32.mrb[24].mxu1 }
 0x29d   : > { %v15989_v24 = vpop.f32.mrb[25].mxu1 }
 0x29e   : > { %3767 = vmatmul.mubr.f32.vlgmr.msra.gmra.mrb[64].mxu0 %v15017_v6  ;;  %v15991_v33 = vpop.f32.mrb[26].mxu1 }
 0x29f   : > { %3771 = vmatprep.mubr.f32.mxu0 %v2757_v10  ;;  %v15993_v58 = vpop.f32.mrb[27].mxu1  ;;  %13171 = vmatpush3.bf16.msra.mxu0 %v13168_v26 }
 0x2a0   : > { %13173 = vmatprep.subr.bf16.mxu0 %v13172_v61 }
 0x2a1   : > { %v15995_v2 = vpop.f32.mrb[28].mxu1 }
 0x2a2   : > { %3772 = vmatmul.mubr.f32.gmra.mrb[66].mxu0 %v15017_v6  ;;  %v15997_v55 = vpop.f32.mrb[29].mxu1 }
 0x2a3   : > { %13175 = vmatpush3.bf16.msra.mxu0 %v13172_v61 }
 0x2a4   : > { %13177 = vmatprep.subr.bf16.mxu0 %v13176_v19 }
 0x2a7   : > { %13179 = vmatpush3.bf16.msra.mxu0 %v13176_v19 }
 0x2a8   : > { %13181 = vmatprep.subr.bf16.mxu0 %v13180_v59 }
 0x2ab   : > { %13183 = vmatpush3.bf16.msra.mxu0 %v13180_v59  ;;  %v3623_v59 = vld [vmem:[#allocation5 + $0x688] sm:$0xff] }
 0x2ac   : > { %13185 = vmatprep.subr.bf16.mxu0 %v13184_v50  ;;  %v13073_v23 = vpack.c.bf16 %v3623_v59, %v3622_v8 }
 0x2af   : > { %13187 = vmatpush3.bf16.msra.mxu0 %v13184_v50 }
 0x2b0   : > { %13189 = vmatprep.subr.bf16.mxu0 %v13188_v14 }
 0x2b3   : > { %13191 = vmatpush3.bf16.msra.mxu0 %v13188_v14  ;;  %v2820_v14 = vld [vmem:[#allocation3 + $0x2] sm:$0xff] }
 0x2b4   : > { %13193 = vmatprep.subr.bf16.mxu0 %v13192_v25 }
 0x2b7   : > { %13195 = vmatpush3.bf16.msra.mxu0 %v13192_v25  ;;  %v3624_v25 = vld [vmem:[#allocation5 + $0x690] sm:$0xff] }
 0x2b8   : > { %13197 = vmatprep.subr.bf16.mxu0 %v13196_v52 }
 0x2bb   : > { %13199 = vmatpush3.bf16.msra.mxu0 %v13196_v52 }
 0x2bc   : > { %13344 = vmatprep.subr.bf16.mxu0 %v18657_v0 }
 0x2d3   : > { %v15999_v20 = vpop.f32.mrb[30].mxu1 }
 0x2d4   : > { %v16001_v21 = vpop.f32.mrb[31].mxu1 }
 0x2f1   : > { %v2165_v57 = vpop.f32.mrb[0].mxu0 }
 0x2f2   : > { %v2391_v34 = vadd.f32 %v15934_v45, %v2165_v57  ;;  %v2167_v18 = vpop.f32.mrb[1].mxu0  ;;  %v3625_v57 = vld [vmem:[#allocation5 + $0x698] sm:$0xff] }
 0x2f3   : > { %v13076_v52 = vpack.c.bf16 %v3625_v57, %v3624_v25 }
 0x2f4   : > { %v2556_v6 = vmul.f32 %v16003_v30, %v2391_v34 }
 0x2f5   : > { %v2170_v10 = vpop.f32.mrb[2].mxu0 }
 0x2f6   : > { %v2595_v39 = vadd.f32 %v16006_v32, %v2556_v6  ;;  %v2396_v22 = vadd.f32 %v15932_v56, %v2170_v10  ;;  %v2172_v26 = vpop.f32.mrb[3].mxu0  ;;  %v2821_v6 = vld [vmem:[#allocation3 + $0xa] sm:$0xff] }
 0x2f7   : > { %v3627_v26 = vld [vmem:[#allocation5 + $0x6a8] sm:$0xff] }
 0x2f8   : > { %v2627_v16 = vmax.f32 %v2595_v39, 0.0  ;;  %v2557_v45 = vmul.f32 %v16003_v30, %v2396_v22  ;;  %v3626_v22 = vld [vmem:[#allocation5 + $0x6a0] sm:$0xff] }
 0x2f9   : > { %v2175_v60 = vpop.f32.mrb[4].mxu0 }
 0x2fa   : > { %2660 = vst [vmem:[#allocation3 + $0x19] sm:$0xff] %v2627_v16  ;;  %v2596_v61 = vadd.f32 %v16006_v32, %v2557_v45  ;;  %v2401_v54 = vadd.f32 %v15940_v63, %v2175_v60  ;;  %v2177_v31 = vpop.f32.mrb[5].mxu0  ;;  %3776 = vmatprep.mubr.f32.mxu0 %v2627_v16 }
 0x2fc   : > { %v2628_v19 = vmax.f32 %v2596_v61, 0.0  ;;  %v2558_v17 = vmul.f32 %v16003_v30, %v2401_v54  ;;  %v13079_v54 = vpack.c.bf16 %v3627_v26, %v3626_v22 }
 0x2fd   : > { %v2180_v56 = vpop.f32.mrb[6].mxu0 }
 0x2fe   : > { %2661 = vst [vmem:[#allocation3 + $0x21] sm:$0xff] %v2628_v19  ;;  %v2597_v40 = vadd.f32 %v16006_v32, %v2558_v17  ;;  %v2406_v42 = vadd.f32 %v15938_v37, %v2180_v56  ;;  %v2182_v50 = vpop.f32.mrb[7].mxu0  ;;  %v3628_v17 = vld [vmem:[#allocation5 + $0x6b0] sm:$0xff]  ;;  %v3629_v56 = vld [vmem:[#allocation5 + $0x6b8] sm:$0xff] }
 0x300   : > { %v2629_v53 = vmax.f32 %v2597_v40, 0.0  ;;  %v2559_v47 = vmul.f32 %v16003_v30, %v2406_v42 }
 0x301   : > { %v2185_v63 = vpop.f32.mrb[8].mxu0  ;;  %v2884_v29 = vld [vmem:[#allocation3 + $0x18] sm:$0xff] }
 0x302   : > { %2662 = vst [vmem:[#allocation3 + $0x31] sm:$0xff] %v2629_v53  ;;  %v2598_v34 = vadd.f32 %v16006_v32, %v2559_v47  ;;  %v2411_v18 = vadd.f32 %v15946_v1, %v2185_v63  ;;  %v2187_v51 = vpop.f32.mrb[9].mxu0  ;;  %3991 = vmatprep.mubr.f32.mxu1 %v2884_v29  ;;  %3777 = vmatmul.mubr.f32.gmra.mrb[68].mxu0 %v2884_v29  ;;  %v3631_v63 = vld [vmem:[#allocation5 + $0x6c8] sm:$0xff] }
 0x303   : > { %3992 = vmatmul.mubr.f32.vlgmr.msra.gmra.mrb[32].mxu1 %v2820_v14  ;;  %3781 = vmatprep.mubr.f32.mxu0 %v2628_v19 }
 0x304   : > { %v2630_v37 = vmax.f32 %v2598_v34, 0.0  ;;  %v2560_v9 = vmul.f32 %v16003_v30, %v2411_v18  ;;  %13074 = vmatpush1.bf16.msra.mxu1 %v13073_v23  ;;  %v3630_v23 = vld [vmem:[#allocation5 + $0x6c0] sm:$0xff] }
 0x305   : > { %v2190_v10 = vpop.f32.mrb[10].mxu0  ;;  %v2885_v39 = vld [vmem:[#allocation3 + $0x20] sm:$0xff]  ;;  %13075 = vmatprep.subr.bf16.mxu1 %v18657_v0  ;;  %v13085_v51 = vpack.c.bf16 %v3631_v63, %v3630_v23 }
 0x306   : > { %2663 = vst [vmem:[#allocation3 + $0x39] sm:$0xff] %v2630_v37  ;;  %v2599_v1 = vadd.f32 %v16006_v32, %v2560_v9  ;;  %v2416_v16 = vadd.f32 %v15944_v11, %v2190_v10  ;;  %v2192_v45 = vpop.f32.mrb[11].mxu0  ;;  %3996 = vmatprep.mubr.f32.mxu1 %v2885_v39  ;;  %3782 = vmatmul.mubr.f32.gmra.mrb[70].mxu0 %v2885_v39  ;;  %v2822_v40 = vld [vmem:[#allocation3 + $0x1a] sm:$0xff]  ;;  %v2823_v57 = vld [vmem:[#allocation3 + $0x22] sm:$0xff] }
 0x307   : > { %3997 = vmatmul.mubr.f32.gmra.mrb[34].mxu1 %v2821_v6  ;;  %3786 = vmatprep.mubr.f32.mxu0 %v2629_v53  ;;  %v13082_v53 = vpack.c.bf16 %v3629_v56, %v3628_v17  ;;  %v3632_v6 = vld [vmem:[#allocation5 + $0x6d0] sm:$0xff] }
 0x308   : > { %v2631_v60 = vmax.f32 %v2599_v1, 0.0  ;;  %v2561_v61 = vmul.f32 %v16003_v30, %v2416_v16  ;;  %13077 = vmatpush1.bf16.msra.mxu1 %v13076_v52  ;;  %v3633_v52 = vld [vmem:[#allocation5 + $0x6d8] sm:$0xff] }
 0x309   : > { %v2195_v31 = vpop.f32.mrb[12].mxu0  ;;  %v2886_v19 = vld [vmem:[#allocation3 + $0x30] sm:$0xff]  ;;  %13078 = vmatprep.subr.bf16.mxu1 %v18657_v0  ;;  %v13088_v16 = vpack.c.bf16 %v3633_v52, %v3632_v6 }
 0x30a   : > { %2664 = vst [vmem:[#allocation3 + $0x49] sm:$0xff] %v2631_v60  ;;  %v2600_v8 = vadd.f32 %v16006_v32, %v2561_v61  ;;  %v2421_v11 = vadd.f32 %v15951_v62, %v2195_v31  ;;  %v2197_v59 = vpop.f32.mrb[13].mxu0  ;;  %4001 = vmatprep.mubr.f32.mxu1 %v2886_v19  ;;  %3787 = vmatmul.mubr.f32.gmra.mrb[72].mxu0 %v2886_v19  ;;  %v3634_v61 = vld [vmem:[#allocation5 + $0x6e0] sm:$0xff] }
 0x30b   : > { %4002 = vmatmul.mubr.f32.gmra.mrb[36].mxu1 %v2822_v40  ;;  %3791 = vmatprep.mubr.f32.mxu0 %v2630_v37 }
 0x30c   : > { %v2632_v42 = vmax.f32 %v2600_v8, 0.0  ;;  %v2562_v50 = vmul.f32 %v16003_v30, %v2421_v11  ;;  %13080 = vmatpush1.bf16.msra.mxu1 %v13079_v54  ;;  %v3635_v54 = vld [vmem:[#allocation5 + $0x6e8] sm:$0xff] }
 0x30d   : > { %v2200_v47 = vpop.f32.mrb[14].mxu0  ;;  %v2887_v14 = vld [vmem:[#allocation3 + $0x38] sm:$0xff]  ;;  %13081 = vmatprep.subr.bf16.mxu1 %v18657_v0  ;;  %v13091_v11 = vpack.c.bf16 %v3635_v54, %v3634_v61 }
 0x30e   : > { %2665 = vst [vmem:[#allocation3 + $0x51] sm:$0xff] %v2632_v42  ;;  %v2601_v62 = vadd.f32 %v16006_v32, %v2562_v50  ;;  %v2426_v29 = vadd.f32 %v15949_v49, %v2200_v47  ;;  %v2202_v25 = vpop.f32.mrb[15].mxu0  ;;  %4006 = vmatprep.mubr.f32.mxu1 %v2887_v14  ;;  %3792 = vmatmul.mubr.f32.gmra.mrb[74].mxu0 %v2887_v14  ;;  %v16037_v22 = vld [vmem:[#allocation3 + $0x32] sm:$0xff]  ;;  %v16044_v17 = vld [vmem:[#allocation3 + $0x3a] sm:$0xff]  ;;  %v3637_v50 = vld [vmem:[#allocation5 + $0x6f8] sm:$0xff] }
 0x30f   : > { %4007 = vmatmul.mubr.f32.gmra.mrb[38].mxu1 %v2823_v57  ;;  %3796 = vmatprep.mubr.f32.mxu0 %v2631_v60  ;;  %v3638_v57 = vld [vmem:[#allocation5 + $0x700] sm:$0xff] }
 0x310   : > { %v2633_v34 = vmax.f32 %v2601_v62, 0.0  ;;  %v2563_v18 = vmul.f32 %v16003_v30, %v2426_v29  ;;  %13083 = vmatpush1.bf16.msra.mxu1 %v13082_v53 }
 0x311   : > { %v2205_v37 = vpop.f32.mrb[16].mxu0  ;;  %v2888_v9 = vld [vmem:[#allocation3 + $0x48] sm:$0xff]  ;;  %13084 = vmatprep.subr.bf16.mxu1 %v18657_v0 }
 0x312   : > { %2666 = vst [vmem:[#allocation3 + $0x61] sm:$0xff] %v2633_v34  ;;  %v2602_v49 = vadd.f32 %v16006_v32, %v2563_v18  ;;  %v2431_v10 = vadd.f32 %v15956_v3, %v2205_v37  ;;  %v2207_v39 = vpop.f32.mrb[17].mxu0  ;;  %4011 = vmatprep.mubr.f32.mxu1 %v2888_v9  ;;  %3797 = vmatmul.mubr.f32.gmra.mrb[76].mxu0 %v2888_v9 }
 0x313   : > { %4012 = vmatmul.mubr.f32.gmra.mrb[40].mxu1 %v16037_v22  ;;  %3801 = vmatprep.mubr.f32.mxu0 %v2632_v42  ;;  %v3636_v42 = vld [vmem:[#allocation5 + $0x6f0] sm:$0xff] }
 0x314   : > { %v2634_v26 = vmax.f32 %v2602_v49, 0.0  ;;  %v2564_v1 = vmul.f32 %v16003_v30, %v2431_v10  ;;  %13086 = vmatpush1.bf16.msra.mxu1 %v13085_v51  ;;  %v13094_v62 = vpack.c.bf16 %v3637_v50, %v3636_v42  ;;  %v3640_v39 = vld [vmem:[#allocation5 + $0x710] sm:$0xff] }
 0x315   : > { %v2210_v45 = vpop.f32.mrb[18].mxu0  ;;  %v2889_v60 = vld [vmem:[#allocation3 + $0x50] sm:$0xff]  ;;  %13087 = vmatprep.subr.bf16.mxu1 %v18657_v0 }
 0x316   : > { %2667 = vst [vmem:[#allocation3 + $0x69] sm:$0xff] %v2634_v26  ;;  %v2603_v3 = vadd.f32 %v16006_v32, %v2564_v1  ;;  %v2436_v31 = vadd.f32 %v15954_v27, %v2210_v45  ;;  %v2212_v19 = vpop.f32.mrb[19].mxu0  ;;  %4016 = vmatprep.mubr.f32.mxu1 %v2889_v60  ;;  %3802 = vmatmul.mubr.f32.gmra.mrb[78].mxu0 %v2889_v60  ;;  %v16051_v14 = vld [vmem:[#allocation3 + $0x4a] sm:$0xff]  ;;  %v16058_v37 = vld [vmem:[#allocation3 + $0x52] sm:$0xff] }
 0x317   : > { %4017 = vmatmul.mubr.f32.gmra.mrb[42].mxu1 %v16044_v17  ;;  %3806 = vmatprep.mubr.f32.mxu0 %v2633_v34  ;;  %v3639_v34 = vld [vmem:[#allocation5 + $0x708] sm:$0xff]  ;;  %v3642_v19 = vld [vmem:[#allocation5 + $0x720] sm:$0xff] }
 0x318   : > { %v2635_v56 = vmax.f32 %v2603_v3, 0.0  ;;  %v2565_v8 = vmul.f32 %v16003_v30, %v2436_v31  ;;  %13089 = vmatpush1.bf16.msra.mxu1 %v13088_v16  ;;  %v13097_v52 = vpack.c.bf16 %v3639_v34, %v3638_v57 }
 0x319   : > { %v2215_v59 = vpop.f32.mrb[20].mxu0  ;;  %v2890_v40 = vld [vmem:[#allocation3 + $0x60] sm:$0xff]  ;;  %13090 = vmatprep.subr.bf16.mxu1 %v18657_v0 }
 0x31a   : > { %2668 = vst [vmem:[#allocation3 + $0x79] sm:$0xff] %v2635_v56  ;;  %v2604_v27 = vadd.f32 %v16006_v32, %v2565_v8  ;;  %v2441_v53 = vadd.f32 %v15961_v36, %v2215_v59  ;;  %v2217_v47 = vpop.f32.mrb[21].mxu0  ;;  %4021 = vmatprep.mubr.f32.mxu1 %v2890_v40  ;;  %3807 = vmatmul.mubr.f32.gmra.mrb[80].mxu0 %v2890_v40 }
 0x31b   : > { %4022 = vmatmul.mubr.f32.gmra.mrb[44].mxu1 %v16051_v14  ;;  %3811 = vmatprep.mubr.f32.mxu0 %v2634_v26  ;;  %v3641_v26 = vld [vmem:[#allocation5 + $0x718] sm:$0xff]  ;;  %v3644_v47 = vld [vmem:[#allocation5 + $0x730] sm:$0xff] }
 0x31c   : > { %v2636_v23 = vmax.f32 %v2604_v27, 0.0  ;;  %v2566_v63 = vmul.f32 %v16003_v30, %v2441_v53  ;;  %13092 = vmatpush1.bf16.msra.mxu1 %v13091_v11  ;;  %v13100_v54 = vpack.c.bf16 %v3641_v26, %v3640_v39 }
 0x31d   : > { %v2220_v29 = vpop.f32.mrb[22].mxu0  ;;  %v2891_v25 = vld [vmem:[#allocation3 + $0x68] sm:$0xff]  ;;  %13093 = vmatprep.subr.bf16.mxu1 %v18657_v0 }
 0x31e   : > { %2669 = vst [vmem:[#allocation3 + $0x81] sm:$0xff] %v2636_v23  ;;  %v2605_v36 = vadd.f32 %v16006_v32, %v2566_v63  ;;  %v2446_v18 = vadd.f32 %v15959_v35, %v2220_v29  ;;  %v2222_v51 = vpop.f32.mrb[23].mxu0  ;;  %4026 = vmatprep.mubr.f32.mxu1 %v2891_v25  ;;  %3812 = vmatmul.mubr.f32.gmra.mrb[82].mxu0 %v2891_v25  ;;  %v16065_v45 = vld [vmem:[#allocation3 + $0x62] sm:$0xff]  ;;  %v16072_v59 = vld [vmem:[#allocation3 + $0x6a] sm:$0xff] }
 0x31f   : > { %4027 = vmatmul.mubr.f32.gmra.mrb[46].mxu1 %v16058_v37  ;;  %3816 = vmatprep.mubr.f32.mxu0 %v2635_v56  ;;  %v3643_v56 = vld [vmem:[#allocation5 + $0x728] sm:$0xff]  ;;  %v3646_v51 = vld [vmem:[#allocation5 + $0x740] sm:$0xff] }
 0x320   : > { %v2637_v9 = vmax.f32 %v2605_v36, 0.0  ;;  %v2567_v6 = vmul.f32 %v16003_v30, %v2446_v18  ;;  %13095 = vmatpush1.bf16.msra.mxu1 %v13094_v62  ;;  %v13103_v50 = vpack.c.bf16 %v3643_v56, %v3642_v19 }
 0x321   : > { %v2225_v49 = vpop.f32.mrb[24].mxu0  ;;  %v2892_v10 = vld [vmem:[#allocation3 + $0x78] sm:$0xff]  ;;  %13096 = vmatprep.subr.bf16.mxu1 %v18657_v0 }
 0x322   : > { %2670 = vst [vmem:[#allocation3 + $0x91] sm:$0xff] %v2637_v9  ;;  %v2606_v35 = vadd.f32 %v16006_v32, %v2567_v6  ;;  %v2451_v1 = vadd.f32 %v15965_v43, %v2225_v49  ;;  %v2227_v16 = vpop.f32.mrb[25].mxu0  ;;  %4031 = vmatprep.mubr.f32.mxu1 %v2892_v10  ;;  %3817 = vmatmul.mubr.f32.gmra.mrb[84].mxu0 %v2892_v10 }
 0x323   : > { %4032 = vmatmul.mubr.f32.gmra.mrb[48].mxu1 %v16065_v45  ;;  %3821 = vmatprep.mubr.f32.mxu0 %v2636_v23  ;;  %v3645_v23 = vld [vmem:[#allocation5 + $0x738] sm:$0xff]  ;;  %v3648_v16 = vld [vmem:[#allocation5 + $0x750] sm:$0xff] }
 0x324   : > { %v2638_v60 = vmax.f32 %v2606_v35, 0.0  ;;  %v2568_v61 = vmul.f32 %v16003_v30, %v2451_v1  ;;  %13098 = vmatpush1.bf16.msra.mxu1 %v13097_v52  ;;  %v13106_v34 = vpack.c.bf16 %v3645_v23, %v3644_v47 }
 0x325   : > { %v2230_v3 = vpop.f32.mrb[26].mxu0  ;;  %v2893_v31 = vld [vmem:[#allocation3 + $0x80] sm:$0xff]  ;;  %13099 = vmatprep.subr.bf16.mxu1 %v18657_v0 }
 0x326   : > { %2671 = vst [vmem:[#allocation3 + $0x99] sm:$0xff] %v2638_v60  ;;  %v2607_v43 = vadd.f32 %v16006_v32, %v2568_v61  ;;  %v2456_v8 = vadd.f32 %v15963_v7, %v2230_v3  ;;  %v2232_v11 = vpop.f32.mrb[27].mxu0  ;;  %4036 = vmatprep.mubr.f32.mxu1 %v2893_v31  ;;  %3822 = vmatmul.mubr.f32.gmra.mrb[86].mxu0 %v2893_v31  ;;  %v16079_v29 = vld [vmem:[#allocation3 + $0x7a] sm:$0xff]  ;;  %v16086_v49 = vld [vmem:[#allocation3 + $0x82] sm:$0xff] }
 0x327   : > { %4037 = vmatmul.mubr.f32.gmra.mrb[50].mxu1 %v16072_v59  ;;  %3826 = vmatprep.mubr.f32.mxu0 %v2637_v9  ;;  %v3647_v9 = vld [vmem:[#allocation5 + $0x748] sm:$0xff]  ;;  %v3650_v11 = vld [vmem:[#allocation5 + $0x760] sm:$0xff] }
 0x328   : > { %v2639_v40 = vmax.f32 %v2607_v43, 0.0  ;;  %v2569_v42 = vmul.f32 %v16003_v30, %v2456_v8  ;;  %13101 = vmatpush1.bf16.msra.mxu1 %v13100_v54  ;;  %v13109_v26 = vpack.c.bf16 %v3647_v9, %v3646_v51 }
 0x329   : > { %v2235_v27 = vpop.f32.mrb[28].mxu0  ;;  %v2894_v53 = vld [vmem:[#allocation3 + $0x90] sm:$0xff]  ;;  %13102 = vmatprep.subr.bf16.mxu1 %v18657_v0 }
 0x32a   : > { %2672 = vst [vmem:[#allocation3 + $0xa9] sm:$0xff] %v2639_v40  ;;  %v2608_v7 = vadd.f32 %v16006_v32, %v2569_v42  ;;  %v2461_v63 = vadd.f32 %v15969_v12, %v2235_v27  ;;  %v2237_v62 = vpop.f32.mrb[29].mxu0  ;;  %4041 = vmatprep.mubr.f32.mxu1 %v2894_v53  ;;  %3827 = vmatmul.mubr.f32.gmra.mrb[88].mxu0 %v2894_v53 }
 0x32b   : > { %4042 = vmatmul.mubr.f32.gmra.mrb[52].mxu1 %v16079_v29  ;;  %3831 = vmatprep.mubr.f32.mxu0 %v2638_v60  ;;  %v3649_v60 = vld [vmem:[#allocation5 + $0x758] sm:$0xff]  ;;  %v3652_v62 = vld [vmem:[#allocation5 + $0x770] sm:$0xff] }
 0x32c   : > { %v2640_v25 = vmax.f32 %v2608_v7, 0.0  ;;  %v2570_v57 = vmul.f32 %v16003_v30, %v2461_v63  ;;  %13104 = vmatpush1.bf16.msra.mxu1 %v13103_v50  ;;  %v13112_v56 = vpack.c.bf16 %v3649_v60, %v3648_v16 }
 0x32d   : > { %v2240_v36 = vpop.f32.mrb[30].mxu0  ;;  %v2895_v18 = vld [vmem:[#allocation3 + $0x98] sm:$0xff]  ;;  %13105 = vmatprep.subr.bf16.mxu1 %v18657_v0 }
 0x32e   : > { %2673 = vst [vmem:[#allocation3 + $0xb1] sm:$0xff] %v2640_v25  ;;  %v2609_v12 = vadd.f32 %v16006_v32, %v2570_v57  ;;  %v2466_v6 = vadd.f32 %v15967_v46, %v2240_v36  ;;  %v2242_v52 = vpop.f32.mrb[31].mxu0  ;;  %4046 = vmatprep.mubr.f32.mxu1 %v2895_v18  ;;  %3832 = vmatmul.mubr.f32.gmra.mrb[90].mxu0 %v2895_v18  ;;  %v16093_v3 = vld [vmem:[#allocation3 + $0x92] sm:$0xff]  ;;  %v16100_v27 = vld [vmem:[#allocation3 + $0x9a] sm:$0xff] }
 0x32f   : > { %4047 = vmatmul.mubr.f32.gmra.mrb[54].mxu1 %v16086_v49  ;;  %3836 = vmatprep.mubr.f32.mxu0 %v2639_v40  ;;  %v3651_v40 = vld [vmem:[#allocation5 + $0x768] sm:$0xff] }
 0x330   : > { %v2641_v10 = vmax.f32 %v2609_v12, 0.0  ;;  %v2571_v39 = vmul.f32 %v16003_v30, %v2466_v6  ;;  %13107 = vmatpush1.bf16.msra.mxu1 %v13106_v34  ;;  %v13115_v23 = vpack.c.bf16 %v3651_v40, %v3650_v11 }
 0x331   : > { %v2245_v35 = vpop.f32.mrb[32].mxu0  ;;  %v2896_v1 = vld [vmem:[#allocation3 + $0xa8] sm:$0xff]  ;;  %13108 = vmatprep.subr.bf16.mxu1 %v18657_v0 }
 0x332   : > { %2674 = vst [vmem:[#allocation3 + $0xc1] sm:$0xff] %v2641_v10  ;;  %v2610_v46 = vadd.f32 %v16006_v32, %v2571_v39  ;;  %v2471_v61 = vadd.f32 %v15973_v28, %v2245_v35  ;;  %v2247_v54 = vpop.f32.mrb[33].mxu0  ;;  %4051 = vmatprep.mubr.f32.mxu1 %v2896_v1  ;;  %3837 = vmatmul.mubr.f32.gmra.mrb[92].mxu0 %v2896_v1 }
 0x333   : > { %4052 = vmatmul.mubr.f32.gmra.mrb[56].mxu1 %v16093_v3  ;;  %3841 = vmatprep.mubr.f32.mxu0 %v2640_v25  ;;  %v3653_v25 = vld [vmem:[#allocation5 + $0x778] sm:$0xff] }
 0x334   : > { %v2642_v31 = vmax.f32 %v2610_v46, 0.0  ;;  %v2572_v19 = vmul.f32 %v16003_v30, %v2471_v61  ;;  %13110 = vmatpush1.bf16.msra.mxu1 %v13109_v26  ;;  %v13118_v9 = vpack.c.bf16 %v3653_v25, %v3652_v62 }
 0x335   : > { %v2250_v43 = vpop.f32.mrb[34].mxu0  ;;  %v2897_v8 = vld [vmem:[#allocation3 + $0xb0] sm:$0xff]  ;;  %13111 = vmatprep.subr.bf16.mxu1 %v18657_v0 }
 0x336   : > { %2675 = vst [vmem:[#allocation3 + $0xc9] sm:$0xff] %v2642_v31  ;;  %v2611_v28 = vadd.f32 %v16006_v32, %v2572_v19  ;;  %v2476_v42 = vadd.f32 %v15971_v4, %v2250_v43  ;;  %v2252_v50 = vpop.f32.mrb[35].mxu0  ;;  %4056 = vmatprep.mubr.f32.mxu1 %v2897_v8  ;;  %3842 = vmatmul.mubr.f32.gmra.mrb[94].mxu0 %v2897_v8  ;;  %v16107_v36 = vld [vmem:[#allocation3 + $0xaa] sm:$0xff]  ;;  %v16114_v39 = vld [vmem:[#allocation3 + $0xb2] sm:$0xff] }
 0x337   : > { %4057 = vmatmul.mubr.f32.gmra.mrb[58].mxu1 %v16100_v27  ;;  %3846 = vmatprep.mubr.f32.mxu0 %v2641_v10 }
 0x338   : > { %v2643_v53 = vmax.f32 %v2611_v28, 0.0  ;;  %v2573_v47 = vmul.f32 %v16003_v30, %v2476_v42  ;;  %13113 = vmatpush1.bf16.msra.mxu1 %v13112_v56 }
 0x339   : > { %v2255_v7 = vpop.f32.mrb[36].mxu0  ;;  %v2898_v63 = vld [vmem:[#allocation3 + $0xc0] sm:$0xff]  ;;  %13114 = vmatprep.subr.bf16.mxu1 %v18657_v0 }
 0x33a   : > { %2676 = vst [vmem:[#allocation3 + $0xd9] sm:$0xff] %v2643_v53  ;;  %v2612_v4 = vadd.f32 %v16006_v32, %v2573_v47  ;;  %v2481_v57 = vadd.f32 %v15977_v5, %v2255_v7  ;;  %v2257_v34 = vpop.f32.mrb[37].mxu0  ;;  %4061 = vmatprep.mubr.f32.mxu1 %v2898_v63  ;;  %3847 = vmatmul.mubr.f32.gmra.mrb[96].mxu0 %v2898_v63 }
 0x33b   : > { %4062 = vmatmul.mubr.f32.gmra.mrb[60].mxu1 %v16107_v36  ;;  %3851 = vmatprep.mubr.f32.mxu0 %v2642_v31 }
 0x33c   : > { %v2644_v18 = vmax.f32 %v2612_v4, 0.0  ;;  %v2574_v51 = vmul.f32 %v16003_v30, %v2481_v57  ;;  %13116 = vmatpush1.bf16.msra.mxu1 %v13115_v23 }
 0x33d   : > { %v2260_v12 = vpop.f32.mrb[38].mxu0  ;;  %v2899_v6 = vld [vmem:[#allocation3 + $0xc8] sm:$0xff]  ;;  %13117 = vmatprep.subr.bf16.mxu1 %v18657_v0 }
 0x33e   : > { %2677 = vst [vmem:[#allocation3 + $0xe1] sm:$0xff] %v2644_v18  ;;  %v2613_v5 = vadd.f32 %v16006_v32, %v2574_v51  ;;  %v2486_v52 = vadd.f32 %v15975_v38, %v2260_v12  ;;  %v2262_v10 = vpop.f32.mrb[39].mxu0  ;;  %4066 = vmatprep.mubr.f32.mxu1 %v2899_v6  ;;  %3852 = vmatmul.mubr.f32.gmra.mrb[98].mxu0 %v2899_v6  ;;  %v16124_v61 = vld [vmem:[#allocation3 + $0xc2] sm:$0xff]  ;;  %v16133_v11 = vld [vmem:[#allocation3 + $0xca] sm:$0xff] }
 0x33f   : > { %4067 = vmatmul.mubr.f32.gmra.mrb[62].mxu1 %v16114_v39  ;;  %3856 = vmatprep.mubr.f32.mxu0 %v2643_v53 }
 0x340   : > { %v16117_v26 = vmax.f32 %v2613_v5, 0.0  ;;  %v2575_v35 = vmul.f32 %v16003_v30, %v2486_v52  ;;  %13119 = vmatpush1.bf16.msra.mxu1 %v13118_v9 }
 0x341   : > { %v2265_v1 = vpop.f32.mrb[40].mxu0  ;;  %v2900_v16 = vld [vmem:[#allocation3 + $0xd8] sm:$0xff]  ;;  %13120 = vmatprep.subr.bf16.mxu1 %v18657_v0 }
 0x342   : > { %2678 = vst [vmem:[#allocation3 + $0xf1] sm:$0xff] %v16117_v26  ;;  %v2614_v38 = vadd.f32 %v16006_v32, %v2575_v35  ;;  %v2491_v60 = vadd.f32 %v15981_v44, %v2265_v1  ;;  %v2267_v46 = vpop.f32.mrb[41].mxu0  ;;  %4071 = vmatprep.mubr.f32.mxu1 %v2900_v16  ;;  %3857 = vmatmul.mubr.f32.gmra.mrb[100].mxu0 %v2900_v16 }
 0x343   : > { %4072 = vmatmul.mubr.f32.gmra.mrb[64].mxu1 %v16124_v61  ;;  %3861 = vmatprep.mubr.f32.mxu0 %v2644_v18 }
 0x344   : > { %v16127_v54 = vmax.f32 %v2614_v38, 0.0  ;;  %v2576_v31 = vmul.f32 %v16003_v30, %v2491_v60 }
 0x345   : > { %v2270_v19 = vpop.f32.mrb[42].mxu0  ;;  %v2901_v56 = vld [vmem:[#allocation3 + $0xe0] sm:$0xff] }
 0x346   : > { %2679 = vst [vmem:[#allocation3 + $0xf9] sm:$0xff] %v16127_v54  ;;  %v2615_v43 = vadd.f32 %v16006_v32, %v2576_v31  ;;  %v2496_v44 = vadd.f32 %v15979_v41, %v2270_v19  ;;  %v2272_v8 = vpop.f32.mrb[43].mxu0  ;;  %4076 = vmatprep.mubr.f32.mxu1 %v2901_v56  ;;  %3862 = vmatmul.mubr.f32.gmra.mrb[102].mxu0 %v2901_v56  ;;  %v16143_v23 = vld [vmem:[#allocation3 + $0xda] sm:$0xff]  ;;  %v16153_v34 = vld [vmem:[#allocation3 + $0xe2] sm:$0xff] }
 0x347   : > { %4077 = vmatmul.mubr.f32.gmra.mrb[66].mxu1 %v16133_v11  ;;  %3866 = vmatprep.mubr.f32.mxu0 %v16117_v26 }
 0x348   : > { %v16137_v40 = vmax.f32 %v2615_v43, 0.0  ;;  %v2577_v28 = vmul.f32 %v16003_v30, %v2496_v44 }
 0x349   : > { %v2275_v42 = vpop.f32.mrb[44].mxu0  ;;  %v2902_v50 = vld [vmem:[#allocation3 + $0xf0] sm:$0xff] }
 0x34a   : > { %2680 = vst [vmem:[#allocation3 + $0x109] sm:$0xff] %v16137_v40  ;;  %v2616_v53 = vadd.f32 %v16006_v32, %v2577_v28  ;;  %v2501_v41 = vadd.f32 %v15985_v15, %v2275_v42  ;;  %v2277_v47 = vpop.f32.mrb[45].mxu0  ;;  %4081 = vmatprep.mubr.f32.mxu1 %v2902_v50  ;;  %3867 = vmatmul.mubr.f32.gmra.mrb[104].mxu0 %v2902_v50 }
 0x34b   : > { %4082 = vmatmul.mubr.f32.gmra.mrb[68].mxu1 %v16143_v23  ;;  %3871 = vmatprep.mubr.f32.mxu0 %v16127_v54 }
 0x34c   : > { %v16147_v7 = vmax.f32 %v2616_v53, 0.0  ;;  %v2578_v63 = vmul.f32 %v16003_v30, %v2501_v41 }
 0x34d   : > { %v2280_v62 = vpop.f32.mrb[46].mxu0  ;;  %v2903_v25 = vld [vmem:[#allocation3 + $0xf8] sm:$0xff] }
 0x34e   : > { %2681 = vst [vmem:[#allocation3 + $0x111] sm:$0xff] %v16147_v7  ;;  %v2617_v4 = vadd.f32 %v16006_v32, %v2578_v63  ;;  %v2506_v15 = vadd.f32 %v15983_v48, %v2280_v62  ;;  %v2282_v57 = vpop.f32.mrb[47].mxu0  ;;  %4086 = vmatprep.mubr.f32.mxu1 %v2903_v25  ;;  %3872 = vmatmul.mubr.f32.gmra.mrb[106].mxu0 %v2903_v25  ;;  %v16163_v52 = vld [vmem:[#allocation3 + $0xf2] sm:$0xff]  ;;  %v16173_v46 = vld [vmem:[#allocation3 + $0xfa] sm:$0xff] }
 0x34f   : > { %4087 = vmatmul.mubr.f32.gmra.mrb[70].mxu1 %v16153_v34  ;;  %3876 = vmatprep.mubr.f32.mxu0 %v16137_v40 }
 0x350   : > { %v16157_v18 = vmax.f32 %v2617_v4, 0.0  ;;  %v2579_v51 = vmul.f32 %v16003_v30, %v2506_v15 }
 0x351   : > { %v2285_v9 = vpop.f32.mrb[48].mxu0  ;;  %v2904_v12 = vld [vmem:[#allocation3 + $0x108] sm:$0xff] }
 0x352   : > { %2682 = vst [vmem:[#allocation3 + $0x121] sm:$0xff] %v16157_v18  ;;  %v2618_v6 = vadd.f32 %v16006_v32, %v2579_v51  ;;  %v2511_v48 = vadd.f32 %v15989_v24, %v2285_v9  ;;  %v2287_v5 = vpop.f32.mrb[49].mxu0  ;;  %4091 = vmatprep.mubr.f32.mxu1 %v2904_v12  ;;  %3877 = vmatmul.mubr.f32.gmra.mrb[108].mxu0 %v2904_v12 }
 0x353   : > { %4092 = vmatmul.mubr.f32.gmra.mrb[72].mxu1 %v16163_v52  ;;  %3881 = vmatprep.mubr.f32.mxu0 %v16147_v7 }
 0x354   : > { %v16167_v10 = vmax.f32 %v2618_v6, 0.0  ;;  %v2580_v35 = vmul.f32 %v16003_v30, %v2511_v48 }
 0x355   : > { %v2290_v1 = vpop.f32.mrb[50].mxu0  ;;  %v2905_v16 = vld [vmem:[#allocation3 + $0x110] sm:$0xff] }
 0x356   : > { %2683 = vst [vmem:[#allocation3 + $0x129] sm:$0xff] %v16167_v10  ;;  %v2619_v38 = vadd.f32 %v16006_v32, %v2580_v35  ;;  %v2516_v24 = vadd.f32 %v15987_v13, %v2290_v1  ;;  %v2292_v60 = vpop.f32.mrb[51].mxu0  ;;  %4096 = vmatprep.mubr.f32.mxu1 %v2905_v16  ;;  %3882 = vmatmul.mubr.f32.gmra.mrb[110].mxu0 %v2905_v16  ;;  %v16183_v28 = vld [vmem:[#allocation3 + $0x10a] sm:$0xff]  ;;  %v16193_v62 = vld [vmem:[#allocation3 + $0x112] sm:$0xff] }
 0x357   : > { %4097 = vmatmul.mubr.f32.gmra.mrb[74].mxu1 %v16173_v46  ;;  %3886 = vmatprep.mubr.f32.mxu0 %v16157_v18 }
 0x358   : > { %v16177_v31 = vmax.f32 %v2619_v38, 0.0  ;;  %v2581_v19 = vmul.f32 %v16003_v30, %v2516_v24 }
 0x359   : > { %v2295_v56 = vpop.f32.mrb[52].mxu0  ;;  %v2906_v43 = vld [vmem:[#allocation3 + $0x120] sm:$0xff] }
 0x35a   : > { %2684 = vst [vmem:[#allocation3 + $0x139] sm:$0xff] %v16177_v31  ;;  %v2620_v44 = vadd.f32 %v16006_v32, %v2581_v19  ;;  %v2521_v13 = vadd.f32 %v15993_v58, %v2295_v56  ;;  %v2297_v8 = vpop.f32.mrb[53].mxu0  ;;  %4101 = vmatprep.mubr.f32.mxu1 %v2906_v43  ;;  %3887 = vmatmul.mubr.f32.gmra.mrb[112].mxu0 %v2906_v43 }
 0x35b   : > { %4102 = vmatmul.mubr.f32.gmra.mrb[76].mxu1 %v16183_v28  ;;  %3891 = vmatprep.mubr.f32.mxu0 %v16167_v10 }
 0x35c   : > { %v16187_v42 = vmax.f32 %v2620_v44, 0.0  ;;  %v2582_v50 = vmul.f32 %v16003_v30, %v2521_v13 }
 0x35d   : > { %v2300_v53 = vpop.f32.mrb[54].mxu0  ;;  %v2907_v41 = vld [vmem:[#allocation3 + $0x128] sm:$0xff] }
 0x35e   : > { %2685 = vst [vmem:[#allocation3 + $0x141] sm:$0xff] %v16187_v42  ;;  %v2621_v47 = vadd.f32 %v16006_v32, %v2582_v50  ;;  %v2526_v58 = vadd.f32 %v15991_v33, %v2300_v53  ;;  %v2302_v63 = vpop.f32.mrb[55].mxu0  ;;  %4106 = vmatprep.mubr.f32.mxu1 %v2907_v41  ;;  %3892 = vmatmul.mubr.f32.gmra.mrb[114].mxu0 %v2907_v41  ;;  %v16203_v12 = vld [vmem:[#allocation3 + $0x122] sm:$0xff]  ;;  %v16213_v38 = vld [vmem:[#allocation3 + $0x12a] sm:$0xff] }
 0x35f   : > { %4107 = vmatmul.mubr.f32.gmra.mrb[78].mxu1 %v16193_v62  ;;  %3896 = vmatprep.mubr.f32.mxu0 %v16177_v31 }
 0x360   : > { %v16197_v25 = vmax.f32 %v2621_v47, 0.0  ;;  %v2583_v4 = vmul.f32 %v16003_v30, %v2526_v58 }
 0x361   : > { %v2305_v15 = vpop.f32.mrb[56].mxu0  ;;  %v2908_v57 = vld [vmem:[#allocation3 + $0x138] sm:$0xff] }
 0x362   : > { %2686 = vst [vmem:[#allocation3 + $0x151] sm:$0xff] %v16197_v25  ;;  %v2622_v51 = vadd.f32 %v16006_v32, %v2583_v4  ;;  %v2531_v33 = vadd.f32 %v15997_v55, %v2305_v15  ;;  %v2307_v9 = vpop.f32.mrb[57].mxu0  ;;  %4111 = vmatprep.mubr.f32.mxu1 %v2908_v57  ;;  %3897 = vmatmul.mubr.f32.gmra.mrb[116].mxu0 %v2908_v57 }
 0x363   : > { %4112 = vmatmul.mubr.f32.gmra.mrb[80].mxu1 %v16203_v12  ;;  %3901 = vmatprep.mubr.f32.mxu0 %v16187_v42 }
 0x364   : > { %v16207_v6 = vmax.f32 %v2622_v51, 0.0  ;;  %v2584_v48 = vmul.f32 %v16003_v30, %v2531_v33 }
 0x365   : > { %v2310_v5 = vpop.f32.mrb[58].mxu0  ;;  %v2909_v35 = vld [vmem:[#allocation3 + $0x140] sm:$0xff] }
 0x366   : > { %2687 = vst [vmem:[#allocation3 + $0x159] sm:$0xff] %v16207_v6  ;;  %v2623_v1 = vadd.f32 %v16006_v32, %v2584_v48  ;;  %v2536_v55 = vadd.f32 %v15995_v2, %v2310_v5  ;;  %v2312_v16 = vpop.f32.mrb[59].mxu0  ;;  %4116 = vmatprep.mubr.f32.mxu1 %v2909_v35  ;;  %3902 = vmatmul.mubr.f32.gmra.mrb[118].mxu0 %v2909_v35  ;;  %v16223_v13 = vld [vmem:[#allocation3 + $0x13a] sm:$0xff]  ;;  %v16235_v63 = vld [vmem:[#allocation3 + $0x142] sm:$0xff] }
 0x367   : > { %4117 = vmatmul.mubr.f32.gmra.mrb[82].mxu1 %v16213_v38  ;;  %3906 = vmatprep.mubr.f32.mxu0 %v16197_v25 }
 0x368   : > { %v16217_v24 = vmax.f32 %v2623_v1, 0.0  ;;  %v2585_v60 = vmul.f32 %v16003_v30, %v2536_v55 }
 0x369   : > { %v2315_v19 = vpop.f32.mrb[60].mxu0  ;;  %v2910_v56 = vld [vmem:[#allocation3 + $0x150] sm:$0xff] }
 0x36a   : > { %2688 = vst [vmem:[#allocation3 + $0x169] sm:$0xff] %v16217_v24  ;;  %v2624_v43 = vadd.f32 %v16006_v32, %v2585_v60  ;;  %v2541_v2 = vadd.f32 %v16001_v21, %v2315_v19  ;;  %v2317_v44 = vpop.f32.mrb[61].mxu0  ;;  %4121 = vmatprep.mubr.f32.mxu1 %v2910_v56  ;;  %3907 = vmatmul.mubr.f32.gmra.mrb[120].mxu0 %v2910_v56  ;;  %v3654_v60 = vld [vmem:[#allocation5 + $0x780] sm:$0xff]  ;;  %v3655_v19 = vld [vmem:[#allocation5 + $0x788] sm:$0xff] }
 0x36b   : > { %4122 = vmatmul.mubr.f32.gmra.mrb[84].mxu1 %v16223_v13  ;;  %3911 = vmatprep.mubr.f32.mxu0 %v16207_v6  ;;  %v2948_v44 = vld [vmem:[#allocation3 + $0x19] sm:$0xff] }
 0x36c   : > { %v16227_v8 = vmax.f32 %v2624_v43, 0.0  ;;  %v2586_v50 = vmul.f32 %v16003_v30, %v2541_v2  ;;  %v13121_v43 = vpack.c.bf16 %v3655_v19, %v3654_v60  ;;  %v3657_v2 = vld [vmem:[#allocation5 + $0x798] sm:$0xff]  ;;  %v3663_v60 = vld [vmem:[#allocation5 + $0x7c8] sm:$0xff] }
 0x36d   : > { %v2320_v53 = vpop.f32.mrb[62].mxu0  ;;  %v2911_v41 = vld [vmem:[#allocation3 + $0x158] sm:$0xff] }
 0x36e   : > { %2689 = vst [vmem:[#allocation3 + $0x171] sm:$0xff] %v16227_v8  ;;  %v16232_v47 = vadd.f32 %v16006_v32, %v2586_v50  ;;  %v2546_v21 = vadd.f32 %v15999_v20, %v2320_v53  ;;  %v2322_v58 = vpop.f32.mrb[63].mxu0  ;;  %4126 = vmatprep.mubr.f32.mxu1 %v2911_v41  ;;  %3912 = vmatmul.mubr.f32.gmra.mrb[122].mxu0 %v2911_v41  ;;  %v16248_v33 = vld [vmem:[#allocation3 + $0x152] sm:$0xff] }
 0x36f   : > { %4127 = vmatmul.mubr.f32.gmra.mrb[86].mxu1 %v16235_v63  ;;  %3916 = vmatprep.mubr.f32.mxu0 %v16217_v24  ;;  %v3658_v53 = vld [vmem:[#allocation5 + $0x7a0] sm:$0xff]  ;;  %v3659_v41 = vld [vmem:[#allocation5 + $0x7a8] sm:$0xff] }
 0x370   : > { %v2657_v4 = vmax.f32 %v16232_v47, 0.0  ;;  %v2587_v15 = vmul.f32 %v16003_v30, %v2546_v21  ;;  %v2949_v21 = vld [vmem:[#allocation3 + $0x21] sm:$0xff]  ;;  %v3014_v58 = vld [vmem:[#allocation3 + $0x32] sm:$0xff] }
 0x371   : > { %v2912_v57 = vld [vmem:[#allocation3 + $0x168] sm:$0xff]  ;;  %v16241_v51 = vpop.f32.mrb[64].mxu0  ;;  %v16283_v19 = vld [vmem:[#allocation3 + $0x39] sm:$0xff] }
 0x372   : > { %2690 = vst [vmem:[#allocation3 + $0x181] sm:$0xff] %v2657_v4  ;;  %v16246_v20 = vadd.f32 %v16006_v32, %v2587_v15  ;;  %4131 = vmatprep.mubr.f32.mxu1 %v2912_v57  ;;  %3917 = vmatmul.mubr.f32.gmra.mrb[124].mxu0 %v2912_v57  ;;  %v3770_v9 = vpop.f32.mrb[65].mxu0  ;;  %v16257_v32 = vld [vmem:[#allocation3 + $0x15a] sm:$0xff]  ;;  %v13127_v15 = vpack.c.bf16 %v3659_v41, %v3658_v53  ;;  %v16296_v41 = vld [vmem:[#allocation3 + $0x51] sm:$0xff] }
 0x373   : > { %4132 = vmatmul.mubr.f32.gmra.mrb[88].mxu1 %v16248_v33  ;;  %3921 = vmatprep.mubr.f32.mxu0 %v16227_v8  ;;  %v3660_v57 = vld [vmem:[#allocation5 + $0x7b0] sm:$0xff]  ;;  %v3661_v9 = vld [vmem:[#allocation5 + $0x7b8] sm:$0xff]  ;;  %v3667_v53 = vld [vmem:[#allocation5 + $0x7e8] sm:$0xff] }
 0x374   : > { %v2658_v30 = vmax.f32 %v16246_v20, 0.0  ;;  %v5838_v47 = vld [vmem:[#allocation5 + $0x910] sm:$0xff]  ;;  %v5840_v20 = vld [vmem:[#allocation5 + $0x920] sm:$0xff] }
 0x375   : > { %v2913_v48 = vld [vmem:[#allocation3 + $0x170] sm:$0xff]  ;;  %v16253_v5 = vpop.f32.mrb[66].mxu0 }
 0x376   : > { %2691 = vst [vmem:[#allocation3 + $0x189] sm:$0xff] %v2658_v30  ;;  %4136 = vmatprep.mubr.f32.mxu1 %v2913_v48  ;;  %3922 = vmatmul.mubr.f32.gmra.mrb[126].mxu0 %v2913_v48  ;;  %v3775_v35 = vpop.f32.mrb[67].mxu0  ;;  %v16261_v55 = vld [vmem:[#allocation3 + $0x16a] sm:$0xff]  ;;  %v16266_v56 = vld [vmem:[#allocation3 + $0x172] sm:$0xff] }
 0x377   : > { %4137 = vmatmul.mubr.f32.gmra.mrb[90].mxu1 %v16257_v32  ;;  %12464 = vmatprep.mubr.f32.mxu0 %v16037_v22  ;;  %v3012_v22 = vld [vmem:[#allocation3 + $0x1a] sm:$0xff]  ;;  %v16277_v48 = vld [vmem:[#allocation3 + $0x31] sm:$0xff] }
 0x378   : > { %v3015_v35 = vld [vmem:[#allocation3 + $0x3a] sm:$0xff] }
 0x379   : > { %v2914_v1 = vld [vmem:[#allocation3 + $0x180] sm:$0xff] }
 0x37a   : > { %4141 = vmatprep.mubr.f32.mxu1 %v2914_v1  ;;  %12465 = vmatmul.mubr.f32.vlgmr.msra.gmra.mrb[128].mxu0 %v16044_v17  ;;  %v3656_v17 = vld [vmem:[#allocation5 + $0x790] sm:$0xff]  ;;  %v13130_v1 = vpack.c.bf16 %v3661_v9, %v3660_v57  ;;  %v3671_v9 = vld [vmem:[#allocation5 + $0x808] sm:$0xff] }
 0x37b   : > { %4142 = vmatmul.mubr.f32.gmra.mrb[92].mxu1 %v16261_v55  ;;  %12467 = vmatprep.mubr.f32.mxu0 %v16051_v14  ;;  %v3013_v14 = vld [vmem:[#allocation3 + $0x22] sm:$0xff]  ;;  %v13124_v50 = vpack.c.bf16 %v3657_v2, %v3656_v17 }
 0x37c   : > { %v3664_v17 = vld [vmem:[#allocation5 + $0x7d0] sm:$0xff]  ;;  %v3665_v2 = vld [vmem:[#allocation5 + $0x7d8] sm:$0xff] }
 0x37d   : > { %v2915_v16 = vld [vmem:[#allocation3 + $0x188] sm:$0xff] }
 0x37e   : > { %4146 = vmatprep.mubr.f32.mxu1 %v2915_v16  ;;  %12468 = vmatmul.mubr.f32.gmra.mrb[130].mxu0 %v16058_v37  ;;  %v3662_v16 = vld [vmem:[#allocation5 + $0x7c0] sm:$0xff] }
 0x37f   : > { %4147 = vmatmul.mubr.f32.gmra.mrb[94].mxu1 %v16266_v56  ;;  %12470 = vmatprep.mubr.f32.mxu0 %v16065_v45 }
 0x380   : > { %4216 = vmatprep.mubr.f32.mxu1 %v3012_v22  ;;  %v3016_v22 = vld [vmem:[#allocation3 + $0x4a] sm:$0xff] }
 0x382   : > { %12471 = vmatmul.mubr.f32.gmra.mrb[132].mxu0 %v16072_v59 }
 0x383   : > { %4217 = vmatmul.mubr.f32.vlgmr.msra.gmra.mrb[32].mxu1 %v2948_v44  ;;  %12473 = vmatprep.mubr.f32.mxu0 %v16079_v29  ;;  %v16289_v44 = vld [vmem:[#allocation3 + $0x49] sm:$0xff] }
 0x384   : > { %4221 = vmatprep.mubr.f32.mxu1 %v3013_v14  ;;  %13122 = vmatpush1.bf16.msra.mxu1 %v13121_v43  ;;  %v13133_v43 = vpack.c.bf16 %v3663_v60, %v3662_v16  ;;  %v13136_v14 = vpack.c.bf16 %v3665_v2, %v3664_v17  ;;  %v3673_v16 = vld [vmem:[#allocation5 + $0x818] sm:$0xff]  ;;  %v16317_v60 = vld [vmem:[#allocation3 + $0x79] sm:$0xff] }
 0x385   : > { %13123 = vmatprep.subr.bf16.mxu1 %v18657_v0  ;;  %v16324_v17 = vld [vmem:[#allocation3 + $0x81] sm:$0xff] }
 0x386   : > { %12474 = vmatmul.mubr.f32.gmra.mrb[134].mxu0 %v16086_v49 }
 0x387   : > { %4222 = vmatmul.mubr.f32.gmra.mrb[34].mxu1 %v2949_v21  ;;  %12476 = vmatprep.mubr.f32.mxu0 %v16093_v3 }
 0x388   : > { %4226 = vmatprep.mubr.f32.mxu1 %v3014_v58  ;;  %13125 = vmatpush1.bf16.msra.mxu1 %v13124_v50  ;;  %v3666_v50 = vld [vmem:[#allocation5 + $0x7e0] sm:$0xff]  ;;  %v3669_v58 = vld [vmem:[#allocation5 + $0x7f8] sm:$0xff] }
 0x389   : > { %13126 = vmatprep.subr.bf16.mxu1 %v18657_v0  ;;  %v13139_v21 = vpack.c.bf16 %v3667_v53, %v3666_v50  ;;  %v16331_v50 = vld [vmem:[#allocation3 + $0x91] sm:$0xff] }
 0x38a   : > { %12477 = vmatmul.mubr.f32.gmra.mrb[136].mxu0 %v16100_v27 }
 0x38b   : > { %4227 = vmatmul.mubr.f32.gmra.mrb[36].mxu1 %v16277_v48  ;;  %12479 = vmatprep.mubr.f32.mxu0 %v16107_v36 }
 0x38c   : > { %4231 = vmatprep.mubr.f32.mxu1 %v3015_v35  ;;  %13128 = vmatpush1.bf16.msra.mxu1 %v13127_v15  ;;  %v16303_v15 = vld [vmem:[#allocation3 + $0x61] sm:$0xff]  ;;  %v16310_v35 = vld [vmem:[#allocation3 + $0x69] sm:$0xff] }
 0x38d   : > { %13129 = vmatprep.subr.bf16.mxu1 %v18657_v0 }
 0x38e   : > { %12480 = vmatmul.mubr.f32.gmra.mrb[138].mxu0 %v16114_v39 }
 0x38f   : > { %4232 = vmatmul.mubr.f32.gmra.mrb[38].mxu1 %v16283_v19  ;;  %12482 = vmatprep.mubr.f32.mxu0 %v16124_v61 }
 0x390   : > { %4236 = vmatprep.mubr.f32.mxu1 %v3016_v22  ;;  %13131 = vmatpush1.bf16.msra.mxu1 %v13130_v1 }
 0x391   : > { %13132 = vmatprep.subr.bf16.mxu1 %v18657_v0 }
 0x392   : > { %12483 = vmatmul.mubr.f32.gmra.mrb[140].mxu0 %v16133_v11 }
 0x393   : > { %4237 = vmatmul.mubr.f32.gmra.mrb[40].mxu1 %v16289_v44  ;;  %12485 = vmatprep.mubr.f32.mxu0 %v16143_v23 }
 0x394   : > { %4241 = vmatprep.mubr.f32.mxu1 %v16058_v37  ;;  %13134 = vmatpush1.bf16.msra.mxu1 %v13133_v43  ;;  %v3668_v37 = vld [vmem:[#allocation5 + $0x7f0] sm:$0xff]  ;;  %v3675_v43 = vld [vmem:[#allocation5 + $0x828] sm:$0xff] }
 0x395   : > { %13135 = vmatprep.subr.bf16.mxu1 %v18657_v0  ;;  %v13142_v57 = vpack.c.bf16 %v3669_v58, %v3668_v37  ;;  %v16338_v37 = vld [vmem:[#allocation3 + $0x99] sm:$0xff]  ;;  %v16341_v58 = vld [vmem:[#allocation3 + $0x182] sm:$0xff] }
 0x396   : > { %12486 = vmatmul.mubr.f32.gmra.mrb[142].mxu0 %v16153_v34 }
 0x397   : > { %4242 = vmatmul.mubr.f32.gmra.mrb[42].mxu1 %v16296_v41  ;;  %12488 = vmatprep.mubr.f32.mxu0 %v16163_v52 }
 0x398   : > { %4246 = vmatprep.mubr.f32.mxu1 %v16065_v45  ;;  %13137 = vmatpush1.bf16.msra.mxu1 %v13136_v14  ;;  %v3670_v45 = vld [vmem:[#allocation5 + $0x800] sm:$0xff]  ;;  %v3677_v14 = vld [vmem:[#allocation5 + $0x838] sm:$0xff] }
 0x399   : > { %13138 = vmatprep.subr.bf16.mxu1 %v18657_v0  ;;  %v13145_v1 = vpack.c.bf16 %v3671_v9, %v3670_v45  ;;  %v3680_v45 = vld [vmem:[#allocation5 + $0x850] sm:$0xff]  ;;  %v3681_v9 = vld [vmem:[#allocation5 + $0x858] sm:$0xff] }
 0x39a   : > { %12489 = vmatmul.mubr.f32.gmra.mrb[144].mxu0 %v16173_v46 }
 0x39b   : > { %4247 = vmatmul.mubr.f32.gmra.mrb[44].mxu1 %v16303_v15  ;;  %12491 = vmatprep.mubr.f32.mxu0 %v16183_v28 }
 0x39c   : > { %4251 = vmatprep.mubr.f32.mxu1 %v16072_v59  ;;  %13140 = vmatpush1.bf16.msra.mxu1 %v13139_v21  ;;  %v3672_v59 = vld [vmem:[#allocation5 + $0x810] sm:$0xff]  ;;  %v3679_v21 = vld [vmem:[#allocation5 + $0x848] sm:$0xff] }
 0x39d   : > { %13141 = vmatprep.subr.bf16.mxu1 %v18657_v0  ;;  %v13148_v22 = vpack.c.bf16 %v3673_v16, %v3672_v59  ;;  %v13160_v59 = vpack.c.bf16 %v3681_v9, %v3680_v45  ;;  %v3683_v16 = vld [vmem:[#allocation5 + $0x868] sm:$0xff] }
 0x39e   : > { %12492 = vmatmul.mubr.f32.gmra.mrb[146].mxu0 %v16193_v62 }
 0x39f   : > { %4252 = vmatmul.mubr.f32.gmra.mrb[46].mxu1 %v16310_v35  ;;  %12494 = vmatprep.mubr.f32.mxu0 %v16203_v12 }
 0x3a0   : > { %4256 = vmatprep.mubr.f32.mxu1 %v16079_v29  ;;  %13143 = vmatpush1.bf16.msra.mxu1 %v13142_v57  ;;  %v3674_v29 = vld [vmem:[#allocation5 + $0x820] sm:$0xff] }
 0x3a1   : > { %13144 = vmatprep.subr.bf16.mxu1 %v18657_v0  ;;  %v13151_v2 = vpack.c.bf16 %v3675_v43, %v3674_v29  ;;  %v16346_v57 = vld [vmem:[#allocation3 + $0x18a] sm:$0xff]  ;;  %v3684_v43 = vld [vmem:[#allocation5 + $0x870] sm:$0xff] }
 0x3a2   : > { %12495 = vmatmul.mubr.f32.gmra.mrb[148].mxu0 %v16213_v38 }
 0x3a3   : > { %4257 = vmatmul.mubr.f32.gmra.mrb[48].mxu1 %v16317_v60  ;;  %12497 = vmatprep.mubr.f32.mxu0 %v16223_v13 }
 0x3a4   : > { %4261 = vmatprep.mubr.f32.mxu1 %v16086_v49  ;;  %13146 = vmatpush1.bf16.msra.mxu1 %v13145_v1  ;;  %v3676_v49 = vld [vmem:[#allocation5 + $0x830] sm:$0xff]  ;;  %v16349_v1 = vld [vmem:[#allocation3 + $0xa9] sm:$0xff] }
 0x3a5   : > { %13147 = vmatprep.subr.bf16.mxu1 %v18657_v0  ;;  %v13154_v53 = vpack.c.bf16 %v3677_v14, %v3676_v49  ;;  %v16360_v49 = vld [vmem:[#allocation3 + $0xc1] sm:$0xff]  ;;  %v16365_v14 = vld [vmem:[#allocation3 + $0xc9] sm:$0xff] }
 0x3a6   : > { %12498 = vmatmul.mubr.f32.gmra.mrb[150].mxu0 %v16235_v63 }
 0x3a7   : > { %4262 = vmatmul.mubr.f32.gmra.mrb[50].mxu1 %v16324_v17  ;;  %12500 = vmatprep.mubr.f32.mxu0 %v16248_v33 }
 0x3a8   : > { %4266 = vmatprep.mubr.f32.mxu1 %v16093_v3  ;;  %13149 = vmatpush1.bf16.msra.mxu1 %v13148_v22  ;;  %v3678_v3 = vld [vmem:[#allocation5 + $0x840] sm:$0xff] }
 0x3a9   : > { %13150 = vmatprep.subr.bf16.mxu1 %v18657_v0  ;;  %v16355_v22 = vld [vmem:[#allocation3 + $0xb1] sm:$0xff] }
 0x3aa   : > { %12501 = vmatmul.mubr.f32.gmra.mrb[152].mxu0 %v16257_v32 }
 0x3ab   : > { %4267 = vmatmul.mubr.f32.gmra.mrb[52].mxu1 %v16331_v50  ;;  %12503 = vmatprep.mubr.f32.mxu0 %v16261_v55 }
 0x3ac   : > { %4271 = vmatprep.mubr.f32.mxu1 %v16100_v27  ;;  %13152 = vmatpush1.bf16.msra.mxu1 %v13151_v2  ;;  %v13157_v27 = vpack.c.bf16 %v3679_v21, %v3678_v3  ;;  %v3685_v2 = vld [vmem:[#allocation5 + $0x878] sm:$0xff] }
 0x3ad   : > { %13153 = vmatprep.subr.bf16.mxu1 %v18657_v0 }
 0x3ae   : > { %12504 = vmatmul.mubr.f32.gmra.mrb[154].mxu0 %v16266_v56 }
 0x3af   : > { %4272 = vmatmul.mubr.f32.gmra.mrb[54].mxu1 %v16338_v37  ;;  %12506 = vmatprep.mubr.f32.mxu0 %v16341_v58 }
 0x3b0   : > { %4276 = vmatprep.mubr.f32.mxu1 %v16107_v36  ;;  %13155 = vmatpush1.bf16.msra.mxu1 %v13154_v53  ;;  %v3682_v36 = vld [vmem:[#allocation5 + $0x860] sm:$0xff] }
 0x3b1   : > { %13156 = vmatprep.subr.bf16.mxu1 %v18657_v0  ;;  %v13163_v29 = vpack.c.bf16 %v3683_v16, %v3682_v36  ;;  %v3079_v36 = vld [vmem:[#allocation3 + $0x48] sm:$0xff] }
 0x3b2   : > { %12507 = vmatmul.mubr.f32.gmra.mrb[156].mxu0 %v16346_v57  ;;  %v5843_v16 = vld [vmem:[#allocation5 + $0x938] sm:$0xff] }
 0x3b3   : > { %4277 = vmatmul.mubr.f32.gmra.mrb[56].mxu1 %v16349_v1 }
 0x3b4   : > { %4281 = vmatprep.mubr.f32.mxu1 %v16114_v39  ;;  %13158 = vmatpush1.bf16.msra.mxu1 %v13157_v27  ;;  %v13166_v39 = vpack.c.bf16 %v3685_v2, %v3684_v43  ;;  %v5932_v43 = vld [vmem:[#allocation5 + $0xc00] sm:$0xff]  ;;  %v5933_v2 = vld [vmem:[#allocation5 + $0xc08] sm:$0xff] }
 0x3b5   : > { %13159 = vmatprep.subr.bf16.mxu1 %v18657_v0 }
 0x3b7   : > { %4282 = vmatmul.mubr.f32.gmra.mrb[58].mxu1 %v16355_v22 }
 0x3b8   : > { %4286 = vmatprep.mubr.f32.mxu1 %v16124_v61  ;;  %13161 = vmatpush1.bf16.msra.mxu1 %v13160_v59  ;;  %v16370_v61 = vld [vmem:[#allocation3 + $0xd9] sm:$0xff] }
 0x3b9   : > { %13162 = vmatprep.subr.bf16.mxu1 %v18657_v0 }
 0x3bb   : > { %4287 = vmatmul.mubr.f32.gmra.mrb[60].mxu1 %v16360_v49 }
 0x3bc   : > { %4291 = vmatprep.mubr.f32.mxu1 %v16133_v11  ;;  %13164 = vmatpush1.bf16.msra.mxu1 %v13163_v29  ;;  %v16374_v11 = vld [vmem:[#allocation3 + $0xe1] sm:$0xff] }
 0x3bd   : > { %13165 = vmatprep.subr.bf16.mxu1 %v18657_v0 }
 0x3bf   : > { %4292 = vmatmul.mubr.f32.gmra.mrb[62].mxu1 %v16365_v14 }
 0x3c0   : > { %4296 = vmatprep.mubr.f32.mxu1 %v16143_v23  ;;  %13167 = vmatpush1.bf16.msra.mxu1 %v13166_v39  ;;  %v5934_v39 = vld [vmem:[#allocation5 + $0xc10] sm:$0xff] }
 0x3c1   : > { %13200 = vmatprep.subr.bf16.mxu1 %v18657_v0 }
 0x3c3   : > { %4297 = vmatmul.mubr.f32.gmra.mrb[64].mxu1 %v16370_v61 }
 0x3c4   : > { %4301 = vmatprep.mubr.f32.mxu1 %v16153_v34 }
 0x3c7   : > { %4302 = vmatmul.mubr.f32.gmra.mrb[66].mxu1 %v16374_v11 }
 0x3c8   : > { %4306 = vmatprep.mubr.f32.mxu1 %v16163_v52 }
 0x3cb   : > { %4307 = vmatmul.mubr.f32.gmra.mrb[68].mxu1 %v16117_v26 }
 0x3cc   : > { %4311 = vmatprep.mubr.f32.mxu1 %v16173_v46 }
 0x3cf   : > { %4312 = vmatmul.mubr.f32.gmra.mrb[70].mxu1 %v16127_v54 }
 0x3d0   : > { %4316 = vmatprep.mubr.f32.mxu1 %v16183_v28 }
 0x3d3   : > { %4317 = vmatmul.mubr.f32.gmra.mrb[72].mxu1 %v16137_v40 }
 0x3d4   : > { %4321 = vmatprep.mubr.f32.mxu1 %v16193_v62 }
 0x3d5   : > { %v16384_v23 = vpop.f32.mrb[68].mxu0 }
 0x3d6   : > { %v3780_v34 = vpop.f32.mrb[69].mxu0 }
 0x3d7   : > { %4322 = vmatmul.mubr.f32.gmra.mrb[74].mxu1 %v16147_v7  ;;  %v16440_v34 = vpack.c.bf16 %v5933_v2, %v5932_v43  ;;  %v3083_v2 = vld [vmem:[#allocation3 + $0x78] sm:$0xff] }
 0x3d8   : > { %4326 = vmatprep.mubr.f32.mxu1 %v16203_v12 }
 0x3d9   : > { %v16388_v52 = vpop.f32.mrb[70].mxu0  ;;  %18714 = vst [vmem:[#allocation12_spill] sm:$0xff] %v16440_v34  ;;  %13346 = vmatpush1.bf16.msra.mxu0 %v16440_v34  ;;  %v5869_v34 = vld [vmem:[#allocation5 + $0xa08] sm:$0xff] }
 0x3da   : > { %v3785_v26 = vpop.f32.mrb[71].mxu0  ;;  %13347 = vmatprep.subr.bf16.mxu0 %v18657_v0 }
 0x3db   : > { %4327 = vmatmul.mubr.f32.gmra.mrb[76].mxu1 %v16157_v18  ;;  %v5935_v26 = vld [vmem:[#allocation5 + $0xc18] sm:$0xff] }
 0x3dc   : > { %4331 = vmatprep.mubr.f32.mxu1 %v16213_v38 }
 0x3dd   : > { %v16392_v54 = vpop.f32.mrb[72].mxu0 }
 0x3de   : > { %v3790_v46 = vpop.f32.mrb[73].mxu0 }
 0x3df   : > { %4332 = vmatmul.mubr.f32.gmra.mrb[78].mxu1 %v16167_v10 }
 0x3e0   : > { %4336 = vmatprep.mubr.f32.mxu1 %v16223_v13 }
 0x3e1   : > { %v16396_v40 = vpop.f32.mrb[74].mxu0 }
 0x3e2   : > { %v3795_v28 = vpop.f32.mrb[75].mxu0 }
 0x3e3   : > { %4337 = vmatmul.mubr.f32.gmra.mrb[80].mxu1 %v16177_v31  ;;  %v5844_v28 = vld [vmem:[#allocation5 + $0x940] sm:$0xff] }
 0x3e4   : > { %4341 = vmatprep.mubr.f32.mxu1 %v16235_v63 }
 0x3e5   : > { %v16400_v7 = vpop.f32.mrb[76].mxu0 }
 0x3e6   : > { %v3800_v62 = vpop.f32.mrb[77].mxu0 }
 0x3e7   : > { %4342 = vmatmul.mubr.f32.gmra.mrb[82].mxu1 %v16187_v42  ;;  %v5845_v62 = vld [vmem:[#allocation5 + $0x948] sm:$0xff] }
 0x3e8   : > { %4346 = vmatprep.mubr.f32.mxu1 %v16248_v33 }
 0x3e9   : > { %v16404_v18 = vpop.f32.mrb[78].mxu0 }
 0x3ea   : > { %v3805_v12 = vpop.f32.mrb[79].mxu0 }
 0x3eb   : > { %4347 = vmatmul.mubr.f32.gmra.mrb[84].mxu1 %v16197_v25  ;;  %v16447_v12 = vpack.c.bf16 %v5935_v26, %v5934_v39  ;;  %v5942_v39 = vld [vmem:[#allocation5 + $0xc50] sm:$0xff]  ;;  %v5943_v26 = vld [vmem:[#allocation5 + $0xc58] sm:$0xff] }
 0x3ec   : > { %4351 = vmatprep.mubr.f32.mxu1 %v16257_v32 }
 0x3ed   : > { %v16408_v10 = vpop.f32.mrb[80].mxu0  ;;  %18715 = vst [vmem:[#allocation13_spill] sm:$0xff] %v16447_v12  ;;  %13349 = vmatpush1.bf16.msra.mxu0 %v16447_v12 }
 0x3ee   : > { %v3810_v38 = vpop.f32.mrb[81].mxu0  ;;  %13350 = vmatprep.subr.bf16.mxu0 %v18657_v0 }
 0x3ef   : > { %4352 = vmatmul.mubr.f32.gmra.mrb[86].mxu1 %v16207_v6  ;;  %v3235_v6 = vld [vmem:[#allocation3 + $0x19a] sm:$0xff] }
 0x3f0   : > { %4356 = vmatprep.mubr.f32.mxu1 %v16261_v55  ;;  %12509 = vmatprep.mubr.f32.mxu0 %v3235_v6  ;;  %v5836_v55 = vld [vmem:[#allocation5 + $0x900] sm:$0xff] }
 0x3f1   : > { %v16412_v31 = vpop.f32.mrb[82].mxu0 }
 0x3f2   : > { %v3815_v13 = vpop.f32.mrb[83].mxu0 }
 0x3f3   : > { %4357 = vmatmul.mubr.f32.gmra.mrb[88].mxu1 %v16217_v24  ;;  %v3236_v24 = vld [vmem:[#allocation3 + $0x1a2] sm:$0xff]  ;;  %v3080_v13 = vld [vmem:[#allocation3 + $0x50] sm:$0xff] }
 0x3f4   : > { %4361 = vmatprep.mubr.f32.mxu1 %v16266_v56  ;;  %v5837_v56 = vld [vmem:[#allocation5 + $0x908] sm:$0xff]  ;;  %12510 = vmatmul.mubr.f32.gmra.mrb[158].mxu0 %v3236_v24  ;;  %v5846_v24 = vld [vmem:[#allocation5 + $0x950] sm:$0xff] }
 0x3f5   : > { %v16416_v42 = vpop.f32.mrb[84].mxu0 }
 0x3f6   : > { %v3820_v63 = vpop.f32.mrb[85].mxu0 }
 0x3f7   : > { %4362 = vmatmul.mubr.f32.gmra.mrb[90].mxu1 %v16227_v8  ;;  %v13201_v8 = vpack.c.bf16 %v5837_v56, %v5836_v55  ;;  %v5936_v63 = vld [vmem:[#allocation5 + $0xc20] sm:$0xff]  ;;  %v5847_v55 = vld [vmem:[#allocation5 + $0x958] sm:$0xff] }
 0x3f8   : > { %4366 = vmatprep.mubr.f32.mxu1 %v16341_v58  ;;  %v3077_v58 = vld [vmem:[#allocation3 + $0x30] sm:$0xff] }
 0x3f9   : > { %v16420_v25 = vpop.f32.mrb[86].mxu0 }
 0x3fa   : > { %v3825_v33 = vpop.f32.mrb[87].mxu0 }
 0x3fb   : > { %4367 = vmatmul.mubr.f32.gmra.mrb[92].mxu1 %v2657_v4  ;;  %v5839_v4 = vld [vmem:[#allocation5 + $0x918] sm:$0xff]  ;;  %v5937_v33 = vld [vmem:[#allocation5 + $0xc28] sm:$0xff] }
 0x3fc   : > { %4371 = vmatprep.mubr.f32.mxu1 %v16346_v57  ;;  %v13204_v27 = vpack.c.bf16 %v5839_v4, %v5838_v47  ;;  %v16455_v56 = vpack.c.bf16 %v5937_v33, %v5936_v63  ;;  %v5938_v47 = vld [vmem:[#allocation5 + $0xc30] sm:$0xff]  ;;  %v5939_v4 = vld [vmem:[#allocation5 + $0xc38] sm:$0xff]  ;;  %v5944_v33 = vld [vmem:[#allocation5 + $0xc60] sm:$0xff] }
 0x3fd   : > { %v16425_v32 = vpop.f32.mrb[88].mxu0  ;;  %v3084_v63 = vld [vmem:[#allocation3 + $0x80] sm:$0xff] }
 0x3fe   : > { %v3830_v53 = vpop.f32.mrb[89].mxu0  ;;  %18716 = vst [vmem:[#allocation14_spill] sm:$0xff] %v16455_v56  ;;  %13352 = vmatpush1.bf16.msra.mxu0 %v16455_v56 }
 0x3ff   : > { %4372 = vmatmul.mubr.f32.gmra.mrb[94].mxu1 %v2658_v30  ;;  %v5841_v30 = vld [vmem:[#allocation5 + $0x928] sm:$0xff]  ;;  %13353 = vmatprep.subr.bf16.mxu0 %v18657_v0 }
 0x400   : > { %4441 = vmatprep.mubr.f32.mxu1 %v16277_v48  ;;  %v3078_v48 = vld [vmem:[#allocation3 + $0x38] sm:$0xff]  ;;  %v13207_v9 = vpack.c.bf16 %v5841_v30, %v5840_v20  ;;  %v16463_v20 = vpack.c.bf16 %v5939_v4, %v5938_v47  ;;  %v3085_v4 = vld [vmem:[#allocation3 + $0x90] sm:$0xff] }
 0x401   : > { %v16430_v3 = vpop.f32.mrb[90].mxu0 }
 0x402   : > { %v3835_v21 = vpop.f32.mrb[91].mxu0  ;;  %18717 = vst [vmem:[#allocation15_spill] sm:$0xff] %v16463_v20  ;;  %13355 = vmatpush1.bf16.msra.mxu0 %v16463_v20 }
 0x403   : > { %4442 = vmatmul.mubr.f32.vlgmr.msra.gmra.mrb[32].mxu1 %v3077_v58  ;;  %v5848_v58 = vld [vmem:[#allocation5 + $0x960] sm:$0xff]  ;;  %13356 = vmatprep.subr.bf16.mxu0 %v18657_v0 }
 0x404   : > { %4446 = vmatprep.mubr.f32.mxu1 %v16283_v19  ;;  %13202 = vmatpush1.bf16.msra.mxu1 %v13201_v8  ;;  %v5842_v19 = vld [vmem:[#allocation5 + $0x930] sm:$0xff] }
 0x405   : > { %v16433_v57 = vpop.f32.mrb[92].mxu0  ;;  %13203 = vmatprep.subr.bf16.mxu1 %v18657_v0  ;;  %v3081_v8 = vld [vmem:[#allocation3 + $0x60] sm:$0xff] }
 0x406   : > { %v3840_v45 = vpop.f32.mrb[93].mxu0 }
 0x407   : > { %4447 = vmatmul.mubr.f32.gmra.mrb[34].mxu1 %v3078_v48  ;;  %v3082_v45 = vld [vmem:[#allocation3 + $0x68] sm:$0xff]  ;;  %v5940_v48 = vld [vmem:[#allocation5 + $0xc40] sm:$0xff] }
 0x408   : > { %4451 = vmatprep.mubr.f32.mxu1 %v16289_v44  ;;  %13205 = vmatpush1.bf16.msra.mxu1 %v13204_v27  ;;  %v13210_v44 = vpack.c.bf16 %v5843_v16, %v5842_v19  ;;  %v5849_v27 = vld [vmem:[#allocation5 + $0x968] sm:$0xff]  ;;  %v5850_v19 = vld [vmem:[#allocation5 + $0x970] sm:$0xff]  ;;  %v5851_v16 = vld [vmem:[#allocation5 + $0x978] sm:$0xff] }
 0x409   : > { %v16437_v59 = vpop.f32.mrb[94].mxu0  ;;  %13206 = vmatprep.subr.bf16.mxu1 %v18657_v0 }
 0x40a   : > { %v3845_v29 = vpop.f32.mrb[95].mxu0 }
 0x40b   : > { %4452 = vmatmul.mubr.f32.gmra.mrb[36].mxu1 %v3079_v36 }
 0x40c   : > { %4456 = vmatprep.mubr.f32.mxu1 %v16296_v41  ;;  %13208 = vmatpush1.bf16.msra.mxu1 %v13207_v9  ;;  %v13213_v41 = vpack.c.bf16 %v5845_v62, %v5844_v28  ;;  %v5941_v9 = vld [vmem:[#allocation5 + $0xc48] sm:$0xff]  ;;  %v5852_v28 = vld [vmem:[#allocation5 + $0x980] sm:$0xff] }
 0x40d   : > { %v16443_v46 = vpop.f32.mrb[96].mxu0  ;;  %13209 = vmatprep.subr.bf16.mxu1 %v18657_v0  ;;  %v16471_v29 = vpack.c.bf16 %v5941_v9, %v5940_v48  ;;  %v5853_v62 = vld [vmem:[#allocation5 + $0x988] sm:$0xff] }
 0x40e   : > { %v3850_v38 = vpop.f32.mrb[97].mxu0 }
 0x40f   : > { %4457 = vmatmul.mubr.f32.gmra.mrb[38].mxu1 %v3080_v13  ;;  %18718 = vst [vmem:[#allocation16_spill] sm:$0xff] %v16471_v29  ;;  %13358 = vmatpush1.bf16.msra.mxu0 %v16471_v29  ;;  %v16479_v38 = vpack.c.bf16 %v5943_v26, %v5942_v39  ;;  %v5859_v39 = vld [vmem:[#allocation5 + $0x9b8] sm:$0xff] }
 0x410   : > { %4461 = vmatprep.mubr.f32.mxu1 %v16303_v15  ;;  %13211 = vmatpush1.bf16.msra.mxu1 %v13210_v44  ;;  %v13216_v15 = vpack.c.bf16 %v5847_v55, %v5846_v24  ;;  %v5854_v55 = vld [vmem:[#allocation5 + $0x990] sm:$0xff] }
 0x411   : > { %v16451_v6 = vpop.f32.mrb[98].mxu0  ;;  %13212 = vmatprep.subr.bf16.mxu1 %v18657_v0  ;;  %18719 = vst [vmem:[#allocation17_spill] sm:$0xff] %v16479_v38  ;;  %13359 = vmatprep.subr.bf16.mxu0 %v18657_v0  ;;  %v3169_v29 = vld [vmem:[#allocation3 + $0x181] sm:$0xff] }
 0x412   : > { %v3855_v53 = vpop.f32.mrb[99].mxu0 }
 0x413   : > { %4462 = vmatmul.mubr.f32.gmra.mrb[40].mxu1 %v3081_v8  ;;  %v5855_v53 = vld [vmem:[#allocation5 + $0x998] sm:$0xff]  ;;  %13361 = vmatpush1.bf16.msra.mxu0 %v16479_v38  ;;  %v15020_v38 = vld [vmem:[#allocation3 + $0x170] sm:$0xff] }
 0x414   : > { %4466 = vmatprep.mubr.f32.mxu1 %v16310_v35  ;;  %13214 = vmatpush1.bf16.msra.mxu1 %v13213_v41  ;;  %v13219_v35 = vpack.c.bf16 %v5849_v27, %v5848_v58  ;;  %v5945_v41 = vld [vmem:[#allocation5 + $0xc68] sm:$0xff]  ;;  %v5947_v58 = vld [vmem:[#allocation5 + $0xc78] sm:$0xff] }
 0x415   : > { %v16459_v21 = vpop.f32.mrb[100].mxu0  ;;  %13215 = vmatprep.subr.bf16.mxu1 %v18657_v0  ;;  %v16487_v8 = vpack.c.bf16 %v5945_v41, %v5944_v33  ;;  %13362 = vmatprep.subr.bf16.mxu0 %v18657_v0  ;;  %v3088_v41 = vld [vmem:[#allocation3 + $0xb0] sm:$0xff] }
 0x416   : > { %v3860_v30 = vpop.f32.mrb[101].mxu0 }
 0x417   : > { %4467 = vmatmul.mubr.f32.gmra.mrb[42].mxu1 %v3082_v45  ;;  %18720 = vst [vmem:[#allocation18_spill] sm:$0xff] %v16487_v8  ;;  %v5856_v30 = vld [vmem:[#allocation5 + $0x9a0] sm:$0xff]  ;;  %v5857_v45 = vld [vmem:[#allocation5 + $0x9a8] sm:$0xff]  ;;  %13364 = vmatpush1.bf16.msra.mxu0 %v16487_v8  ;;  %v15019_v8 = vld [vmem:[#allocation3 + $0x168] sm:$0xff] }
 0x418   : > { %4471 = vmatprep.mubr.f32.mxu1 %v16317_v60  ;;  %13217 = vmatpush1.bf16.msra.mxu1 %v13216_v15  ;;  %v13222_v60 = vpack.c.bf16 %v5851_v16, %v5850_v19  ;;  %v5946_v15 = vld [vmem:[#allocation5 + $0xc70] sm:$0xff]  ;;  %v5948_v19 = vld [vmem:[#allocation5 + $0xc80] sm:$0xff]  ;;  %v5949_v16 = vld [vmem:[#allocation5 + $0xc88] sm:$0xff] }
 0x419   : > { %v16467_v36 = vpop.f32.mrb[102].mxu0  ;;  %13218 = vmatprep.subr.bf16.mxu1 %v18657_v0  ;;  %v16495_v48 = vpack.c.bf16 %v5947_v58, %v5946_v15  ;;  %13365 = vmatprep.subr.bf16.mxu0 %v18657_v0  ;;  %v16503_v26 = vpack.c.bf16 %v5949_v16, %v5948_v19  ;;  %v3091_v19 = vld [vmem:[#allocation3 + $0xd8] sm:$0xff] }
 0x41a   : > { %v3865_v43 = vpop.f32.mrb[103].mxu0 }
 0x41b   : > { %4472 = vmatmul.mubr.f32.gmra.mrb[44].mxu1 %v3083_v2  ;;  %18721 = vst [vmem:[#allocation19_spill] sm:$0xff] %v16495_v48  ;;  %v5858_v2 = vld [vmem:[#allocation5 + $0x9b0] sm:$0xff]  ;;  %13367 = vmatpush1.bf16.msra.mxu0 %v16495_v48  ;;  %18723 = vst [vmem:[#allocation21_spill] sm:$0xff] %v16503_v26  ;;  %v3167_v48 = vld [vmem:[#allocation3 + $0x169] sm:$0xff] }
 0x41c   : > { %4476 = vmatprep.mubr.f32.mxu1 %v16324_v17  ;;  %13220 = vmatpush1.bf16.msra.mxu1 %v13219_v35  ;;  %v13225_v17 = vpack.c.bf16 %v5853_v62, %v5852_v28  ;;  %v3086_v35 = vld [vmem:[#allocation3 + $0x98] sm:$0xff]  ;;  %v3087_v28 = vld [vmem:[#allocation3 + $0xa8] sm:$0xff] }
 0x41d   : > { %v16475_v44 = vpop.f32.mrb[104].mxu0  ;;  %13221 = vmatprep.subr.bf16.mxu1 %v18657_v0  ;;  %13368 = vmatprep.subr.bf16.mxu0 %v18657_v0 }
 0x41e   : > { %v3870_v13 = vpop.f32.mrb[105].mxu0 }
 0x41f   : > { %4477 = vmatmul.mubr.f32.gmra.mrb[46].mxu1 %v3084_v63  ;;  %v5860_v13 = vld [vmem:[#allocation5 + $0x9c0] sm:$0xff]  ;;  %v5861_v63 = vld [vmem:[#allocation5 + $0x9c8] sm:$0xff]  ;;  %13370 = vmatpush1.bf16.msra.mxu0 %v16503_v26 }
 0x420   : > { %4481 = vmatprep.mubr.f32.mxu1 %v16331_v50  ;;  %13223 = vmatpush1.bf16.msra.mxu1 %v13222_v60  ;;  %v13228_v50 = vpack.c.bf16 %v5855_v53, %v5854_v55  ;;  %v5862_v55 = vld [vmem:[#allocation5 + $0x9d0] sm:$0xff]  ;;  %v5863_v53 = vld [vmem:[#allocation5 + $0x9d8] sm:$0xff]  ;;  %v15018_v26 = vld [vmem:[#allocation3 + $0x158] sm:$0xff] }
 0x421   : > { %v16483_v24 = vpop.f32.mrb[106].mxu0  ;;  %13224 = vmatprep.subr.bf16.mxu1 %v18657_v0  ;;  %13371 = vmatprep.subr.bf16.mxu0 %v18657_v0  ;;  %v13240_v15 = vpack.c.bf16 %v5863_v53, %v5862_v55  ;;  %v3095_v55 = vld [vmem:[#allocation3 + $0x108] sm:$0xff]  ;;  %v3160_v53 = vld [vmem:[#allocation3 + $0x111] sm:$0xff] }
 0x422   : > { %v3875_v47 = vpop.f32.mrb[107].mxu0 }
 0x423   : > { %4482 = vmatmul.mubr.f32.gmra.mrb[48].mxu1 %v3085_v4  ;;  %v3089_v4 = vld [vmem:[#allocation3 + $0xc0] sm:$0xff] }
 0x424   : > { %4486 = vmatprep.mubr.f32.mxu1 %v16338_v37  ;;  %13226 = vmatpush1.bf16.msra.mxu1 %v13225_v17  ;;  %v13231_v37 = vpack.c.bf16 %v5857_v45, %v5856_v30  ;;  %v13237_v17 = vpack.c.bf16 %v5861_v63, %v5860_v13  ;;  %v3090_v45 = vld [vmem:[#allocation3 + $0xc8] sm:$0xff]  ;;  %v3094_v63 = vld [vmem:[#allocation3 + $0xf8] sm:$0xff] }
 0x425   : > { %v16491_v27 = vpop.f32.mrb[108].mxu0  ;;  %13227 = vmatprep.subr.bf16.mxu1 %v18657_v0 }
 0x426   : > { %v3880_v9 = vpop.f32.mrb[109].mxu0 }
 0x427   : > { %4487 = vmatmul.mubr.f32.gmra.mrb[50].mxu1 %v3086_v35 }
 0x428   : > { %4491 = vmatprep.mubr.f32.mxu1 %v16349_v1  ;;  %13229 = vmatpush1.bf16.msra.mxu1 %v13228_v50  ;;  %v13234_v1 = vpack.c.bf16 %v5859_v39, %v5858_v2  ;;  %v5865_v50 = vld [vmem:[#allocation5 + $0x9e8] sm:$0xff]  ;;  %v3092_v2 = vld [vmem:[#allocation3 + $0xe0] sm:$0xff] }
 0x429   : > { %v16499_v43 = vpop.f32.mrb[110].mxu0  ;;  %13230 = vmatprep.subr.bf16.mxu1 %v18657_v0 }
 0x42a   : > { %18722 = vst [vmem:[#allocation20_spill] sm:$0xff] %v16499_v43  ;;  %v3885_v60 = vpop.f32.mrb[111].mxu0 }
 0x42b   : > { %4492 = vmatmul.mubr.f32.gmra.mrb[52].mxu1 %v3087_v28  ;;  %v3093_v28 = vld [vmem:[#allocation3 + $0xf0] sm:$0xff] }
 0x42c   : > { %4496 = vmatprep.mubr.f32.mxu1 %v16355_v22  ;;  %13232 = vmatpush1.bf16.msra.mxu1 %v13231_v37 }
 0x42d   : > { %v16507_v62 = vpop.f32.mrb[112].mxu0  ;;  %13233 = vmatprep.subr.bf16.mxu1 %v18657_v0 }
 0x42e   : > { %18724 = vst [vmem:[#allocation22_spill] sm:$0xff] %v16507_v62  ;;  %v3890_v33 = vpop.f32.mrb[113].mxu0 }
 0x42f   : > { %4497 = vmatmul.mubr.f32.gmra.mrb[54].mxu1 %v3088_v41  ;;  %v3159_v33 = vld [vmem:[#allocation3 + $0x109] sm:$0xff] }
 0x430   : > { %4501 = vmatprep.mubr.f32.mxu1 %v16360_v49  ;;  %13235 = vmatpush1.bf16.msra.mxu1 %v13234_v1  ;;  %v5864_v49 = vld [vmem:[#allocation5 + $0x9e0] sm:$0xff]  ;;  %v3158_v1 = vld [vmem:[#allocation3 + $0xf9] sm:$0xff] }
 0x431   : > { %v16513_v22 = vpop.f32.mrb[114].mxu0  ;;  %13236 = vmatprep.subr.bf16.mxu1 %v18657_v0  ;;  %v13243_v9 = vpack.c.bf16 %v5865_v50, %v5864_v49  ;;  %v3161_v49 = vld [vmem:[#allocation3 + $0x121] sm:$0xff] }
 0x432   : > { %18725 = vst [vmem:[#allocation23_spill] sm:$0xff] %v16513_v22  ;;  %v3895_v47 = vpop.f32.mrb[115].mxu0  ;;  %v5872_v22 = vld [vmem:[#allocation5 + $0xa20] sm:$0xff] }
 0x433   : > { %4502 = vmatmul.mubr.f32.gmra.mrb[56].mxu1 %v3089_v4  ;;  %v3096_v4 = vld [vmem:[#allocation3 + $0x110] sm:$0xff] }
 0x434   : > { %4506 = vmatprep.mubr.f32.mxu1 %v16365_v14  ;;  %13238 = vmatpush1.bf16.msra.mxu1 %v13237_v17 }
 0x435   : > { %v16517_v58 = vpop.f32.mrb[116].mxu0  ;;  %13239 = vmatprep.subr.bf16.mxu1 %v18657_v0 }
 0x436   : > { %18726 = vst [vmem:[#allocation24_spill] sm:$0xff] %v16517_v58  ;;  %v3900_v30 = vpop.f32.mrb[117].mxu0 }
 0x437   : > { %4507 = vmatmul.mubr.f32.gmra.mrb[58].mxu1 %v3090_v45  ;;  %v3097_v30 = vld [vmem:[#allocation3 + $0x120] sm:$0xff] }
 0x438   : > { %4511 = vmatprep.mubr.f32.mxu1 %v16370_v61  ;;  %13241 = vmatpush1.bf16.msra.mxu1 %v13240_v15  ;;  %v3157_v61 = vld [vmem:[#allocation3 + $0xf1] sm:$0xff] }
 0x439   : > { %v16521_v35 = vpop.f32.mrb[118].mxu0  ;;  %13242 = vmatprep.subr.bf16.mxu1 %v18657_v0 }
 0x43a   : > { %18727 = vst [vmem:[#allocation25_spill] sm:$0xff] %v16521_v35  ;;  %v3905_v14 = vpop.f32.mrb[119].mxu0 }
 0x43b   : > { %4512 = vmatmul.mubr.f32.gmra.mrb[60].mxu1 %v3091_v19  ;;  %v5950_v19 = vld [vmem:[#allocation5 + $0xc90] sm:$0xff] }
 0x43c   : > { %4516 = vmatprep.mubr.f32.mxu1 %v16374_v11  ;;  %13244 = vmatpush1.bf16.msra.mxu1 %v13243_v9  ;;  %v3162_v9 = vld [vmem:[#allocation3 + $0x129] sm:$0xff] }
 0x43d   : > { %v16525_v16 = vpop.f32.mrb[120].mxu0  ;;  %13245 = vmatprep.subr.bf16.mxu1 %v18657_v0 }
 0x43e   : > { %18728 = vst [vmem:[#allocation26_spill] sm:$0xff] %v16525_v16  ;;  %v3910_v37 = vpop.f32.mrb[121].mxu0  ;;  %v5871_v16 = vld [vmem:[#allocation5 + $0xa18] sm:$0xff] }
 0x43f   : > { %4517 = vmatmul.mubr.f32.gmra.mrb[62].mxu1 %v3092_v2  ;;  %v5951_v37 = vld [vmem:[#allocation5 + $0xc98] sm:$0xff] }
 0x440   : > { %4521 = vmatprep.mubr.f32.mxu1 %v3157_v61  ;;  %v3098_v2 = vld [vmem:[#allocation3 + $0x128] sm:$0xff] }
 0x441   : > { %v16528_v39 = vpop.f32.mrb[122].mxu0 }
 0x442   : > { %18729 = vst [vmem:[#allocation27_spill] sm:$0xff] %v16528_v39  ;;  %v3915_v60 = vpop.f32.mrb[123].mxu0  ;;  %v5870_v39 = vld [vmem:[#allocation5 + $0xa10] sm:$0xff] }
 0x443   : > { %4522 = vmatmul.mubr.f32.gmra.mrb[64].mxu1 %v3093_v28  ;;  %v16546_v60 = vpack.c.bf16 %v5951_v37, %v5950_v19  ;;  %v3163_v28 = vld [vmem:[#allocation3 + $0x139] sm:$0xff]  ;;  %v5955_v37 = vld [vmem:[#allocation5 + $0xcb8] sm:$0xff] }
 0x444   : > { %4526 = vmatprep.mubr.f32.mxu1 %v3158_v1  ;;  %v5866_v1 = vld [vmem:[#allocation5 + $0x9f0] sm:$0xff] }
 0x445   : > { %v16530_v13 = vpop.f32.mrb[124].mxu0  ;;  %18732 = vst [vmem:[#allocation30_spill] sm:$0xff] %v16546_v60  ;;  %13373 = vmatpush1.bf16.msra.mxu0 %v16546_v60  ;;  %v5954_v19 = vld [vmem:[#allocation5 + $0xcb0] sm:$0xff] }
 0x446   : > { %18730 = vst [vmem:[#allocation28_spill] sm:$0xff] %v16530_v13  ;;  %v3920_v11 = vpop.f32.mrb[125].mxu0  ;;  %13374 = vmatprep.subr.bf16.mxu0 %v18657_v0  ;;  %v3166_v60 = vld [vmem:[#allocation3 + $0x159] sm:$0xff] }
 0x447   : > { %4527 = vmatmul.mubr.f32.gmra.mrb[66].mxu1 %v3094_v63  ;;  %v5867_v11 = vld [vmem:[#allocation5 + $0x9f8] sm:$0xff] }
 0x448   : > { %4531 = vmatprep.mubr.f32.mxu1 %v3159_v33  ;;  %v13246_v33 = vpack.c.bf16 %v5867_v11, %v5866_v1  ;;  %v16563_v1 = vpack.c.bf16 %v5955_v37, %v5954_v19  ;;  %v3165_v11 = vld [vmem:[#allocation3 + $0x151] sm:$0xff]  ;;  %v5958_v37 = vld [vmem:[#allocation5 + $0xcd0] sm:$0xff] }
 0x449   : > { %v16532_v41 = vpop.f32.mrb[126].mxu0 }
 0x44a   : > { %18731 = vst [vmem:[#allocation29_spill] sm:$0xff] %v16532_v41  ;;  %v3925_v17 = vpop.f32.mrb[127].mxu0  ;;  %13247 = vmatpush1.bf16.msra.mxu1 %v13246_v33  ;;  %18734 = vst [vmem:[#allocation32_spill] sm:$0xff] %v16563_v1  ;;  %v5956_v33 = vld [vmem:[#allocation5 + $0xcc0] sm:$0xff] }
 0x44b   : > { %4532 = vmatmul.mubr.f32.gmra.mrb[68].mxu1 %v3095_v55  ;;  %v5952_v17 = vld [vmem:[#allocation5 + $0xca0] sm:$0xff]  ;;  %v5953_v55 = vld [vmem:[#allocation5 + $0xca8] sm:$0xff]  ;;  %13248 = vmatprep.subr.bf16.mxu1 %v18657_v0 }
 0x44c   : > { %4536 = vmatprep.mubr.f32.mxu1 %v3160_v53  ;;  %v3099_v53 = vld [vmem:[#allocation3 + $0x138] sm:$0xff] }
 0x44d   : > { %v16534_v47 = vpop.f32.mrb[128].mxu0 }
 0x44e   : > { %v16536_v15 = vpop.f32.mrb[129].mxu0 }
 0x44f   : > { %4537 = vmatmul.mubr.f32.gmra.mrb[70].mxu1 %v3096_v4 }
 0x450   : > { %4541 = vmatprep.mubr.f32.mxu1 %v3161_v49  ;;  %v16554_v49 = vpack.c.bf16 %v5953_v55, %v5952_v17  ;;  %v5957_v55 = vld [vmem:[#allocation5 + $0xcc8] sm:$0xff] }
 0x451   : > { %v16538_v50 = vpop.f32.mrb[130].mxu0 }
 0x452   : > { %v16540_v45 = vpop.f32.mrb[131].mxu0  ;;  %18733 = vst [vmem:[#allocation31_spill] sm:$0xff] %v16554_v49  ;;  %13376 = vmatpush1.bf16.msra.mxu0 %v16554_v49  ;;  %v16571_v49 = vpack.c.bf16 %v5957_v55, %v5956_v33  ;;  %v5961_v55 = vld [vmem:[#allocation5 + $0xce8] sm:$0xff] }
 0x453   : > { %4542 = vmatmul.mubr.f32.gmra.mrb[72].mxu1 %v3097_v30  ;;  %v3164_v30 = vld [vmem:[#allocation3 + $0x141] sm:$0xff]  ;;  %13377 = vmatprep.subr.bf16.mxu0 %v18657_v0 }
 0x454   : > { %4546 = vmatprep.mubr.f32.mxu1 %v3162_v9  ;;  %18735 = vst [vmem:[#allocation33_spill] sm:$0xff] %v16571_v49 }
 0x455   : > { %v16542_v14 = vpop.f32.mrb[132].mxu0 }
 0x456   : > { %v16544_v61 = vpop.f32.mrb[133].mxu0  ;;  %13379 = vmatpush1.bf16.msra.mxu0 %v16563_v1 }
 0x457   : > { %4547 = vmatmul.mubr.f32.gmra.mrb[74].mxu1 %v3098_v2  ;;  %v3100_v2 = vld [vmem:[#allocation3 + $0x140] sm:$0xff]  ;;  %13380 = vmatprep.subr.bf16.mxu0 %v18657_v0 }
 0x458   : > { %4551 = vmatprep.mubr.f32.mxu1 %v3163_v28 }
 0x459   : > { %v16549_v63 = vpop.f32.mrb[134].mxu0 }
 0x45a   : > { %v16552_v4 = vpop.f32.mrb[135].mxu0  ;;  %13382 = vmatpush1.bf16.msra.mxu0 %v16571_v49 }
 0x45b   : > { %4552 = vmatmul.mubr.f32.gmra.mrb[76].mxu1 %v3099_v53  ;;  %v3101_v53 = vld [vmem:[#allocation3 + $0x150] sm:$0xff]  ;;  %13383 = vmatprep.subr.bf16.mxu0 %v18657_v0 }
 0x45c   : > { %4556 = vmatprep.mubr.f32.mxu1 %v3164_v30 }
 0x45d   : > { %v16556_v9 = vpop.f32.mrb[136].mxu0 }
 0x45e   : > { %v16560_v28 = vpop.f32.mrb[137].mxu0 }
 0x45f   : > { %4557 = vmatmul.mubr.f32.gmra.mrb[78].mxu1 %v3100_v2  ;;  %v5959_v2 = vld [vmem:[#allocation5 + $0xcd8] sm:$0xff] }
 0x460   : > { %4561 = vmatprep.mubr.f32.mxu1 %v3165_v11  ;;  %v16579_v1 = vpack.c.bf16 %v5959_v2, %v5958_v37  ;;  %v3168_v37 = vld [vmem:[#allocation3 + $0x171] sm:$0xff] }
 0x461   : > { %v16565_v17 = vpop.f32.mrb[138].mxu0 }
 0x462   : > { %v16568_v30 = vpop.f32.mrb[139].mxu0  ;;  %18736 = vst [vmem:[#allocation34_spill] sm:$0xff] %v16579_v1  ;;  %13385 = vmatpush1.bf16.msra.mxu0 %v16579_v1  ;;  %v5963_v1 = vld [vmem:[#allocation5 + $0xcf8] sm:$0xff] }
 0x463   : > { %4562 = vmatmul.mubr.f32.gmra.mrb[80].mxu1 %v3101_v53  ;;  %13386 = vmatprep.subr.bf16.mxu0 %v18657_v0 }
 0x464   : > { %4566 = vmatprep.mubr.f32.mxu1 %v3166_v60  ;;  %v5960_v60 = vld [vmem:[#allocation5 + $0xce0] sm:$0xff] }
 0x465   : > { %v16573_v19 = vpop.f32.mrb[140].mxu0  ;;  %v16587_v49 = vpack.c.bf16 %v5961_v55, %v5960_v60  ;;  %v15021_v55 = vld [vmem:[#allocation3 + $0x180] sm:$0xff] }
 0x466   : > { %v16576_v11 = vpop.f32.mrb[141].mxu0 }
 0x467   : > { %4567 = vmatmul.mubr.f32.gmra.mrb[82].mxu1 %v15018_v26  ;;  %18737 = vst [vmem:[#allocation35_spill] sm:$0xff] %v16587_v49  ;;  %13388 = vmatpush1.bf16.msra.mxu0 %v16587_v49 }
 0x468   : > { %4571 = vmatprep.mubr.f32.mxu1 %v3167_v48  ;;  %v5962_v48 = vld [vmem:[#allocation5 + $0xcf0] sm:$0xff]  ;;  %13389 = vmatprep.subr.bf16.mxu0 %v18657_v0 }
 0x469   : > { %v16581_v33 = vpop.f32.mrb[142].mxu0  ;;  %v16595_v20 = vpack.c.bf16 %v5963_v1, %v5962_v48  ;;  %v3171_v0 = vld [vmem:[#allocation3 + $0x199] sm:$0xff] }
 0x46a   : > { %v16584_v53 = vpop.f32.mrb[143].mxu0 }
 0x46b   : > { %4572 = vmatmul.mubr.f32.gmra.mrb[84].mxu1 %v15019_v8  ;;  %18738 = vst [vmem:[#allocation36_spill] sm:$0xff] %v16595_v20  ;;  %13391 = vmatpush1.bf16.msra.mxu0 %v16595_v20  ;;  %v15023_v20 = vld [vmem:[#allocation2] sm:$0xff] }
 0x46c   : > { %4576 = vmatprep.mubr.f32.mxu1 %v3168_v37  ;;  %v3170_v37 = vld [vmem:[#allocation3 + $0x189] sm:$0xff] }
 0x46d   : > { %v16589_v2 = vpop.f32.mrb[144].mxu0 }
 0x46e   : > { %v16592_v26 = vpop.f32.mrb[145].mxu0 }
 0x46f   : > { %4577 = vmatmul.mubr.f32.gmra.mrb[86].mxu1 %v15020_v38  ;;  %v15022_v38 = vld [vmem:[#allocation3 + $0x188] sm:$0xff] }
 0x470   : > { %4581 = vmatprep.mubr.f32.mxu1 %v3169_v29  ;;  %v3172_v29 = vld [vmem:[#allocation3 + $0x1a1] sm:$0xff] }
 0x471   : > { %v16597_v60 = vpop.f32.mrb[146].mxu0 }
 0x472   : > { %v16600_v8 = vpop.f32.mrb[147].mxu0 }
 0x473   : > { %4582 = vmatmul.mubr.f32.gmra.mrb[88].mxu1 %v15021_v55  ;;  %v5035_v55 = vld [vmem:[#allocation2 + $0x1] sm:$0xff] }
 0x474   : > { %4586 = vmatprep.mubr.f32.mxu1 %v3170_v37  ;;  %v5868_v37 = vld [vmem:[#allocation5 + $0xa00] sm:$0xff] }
 0x475   : > { %v16602_v49 = vpop.f32.mrb[148].mxu0  ;;  %v13249_v13 = vpack.c.bf16 %v5869_v34, %v5868_v37  ;;  %v5875_v37 = vld [vmem:[#allocation5 + $0xa38] sm:$0xff] }
 0x476   : > { %v16604_v56 = vpop.f32.mrb[149].mxu0 }
 0x477   : > { %4587 = vmatmul.mubr.f32.gmra.mrb[90].mxu1 %v15022_v38 }
 0x478   : > { %4591 = vmatprep.mubr.f32.mxu1 %v3171_v0  ;;  %v5036_v0 = vld [vmem:[#allocation2 + $0x9] sm:$0xff] }
 0x479   : > { %v16606_v1 = vpop.f32.mrb[150].mxu0 }
 0x47a   : > { %18739 = vst [vmem:[#allocation37_spill] sm:$0xff] %v16606_v1  ;;  %v16608_v48 = vpop.f32.mrb[151].mxu0 }
 0x47b   : > { %4592 = vmatmul.mubr.f32.gmra.mrb[92].mxu1 %v15023_v20 }
 0x47c   : > { %4596 = vmatprep.mubr.f32.mxu1 %v3172_v29  ;;  %v13252_v29 = vpack.c.bf16 %v5871_v16, %v5870_v39  ;;  %v5876_v16 = vld [vmem:[#allocation5 + $0xa40] sm:$0xff]  ;;  %v5877_v39 = vld [vmem:[#allocation5 + $0xa48] sm:$0xff] }
 0x47d   : > { %v16610_v12 = vpop.f32.mrb[152].mxu0 }
 0x47e   : > { %18740 = vst [vmem:[#allocation38_spill] sm:$0xff] %v16610_v12  ;;  %v16612_v41 = vpop.f32.mrb[153].mxu0  ;;  %v18745_v12 = vmov 0.0|0.0  }
 0x47f   : > { %18741 = vst [vmem:[#allocation39_spill] sm:$0xff] %v16612_v41  ;;  %4597 = vmatmul.mubr.f32.gmra.mrb[94].mxu1 %v15023_v20  ;;  %v5873_v41 = vld [vmem:[#allocation5 + $0xa28] sm:$0xff] }
 0x480   : > { %6044 = vmatprep.mubr.f32.mxu1 %v5035_v55  ;;  %v13255_v34 = vpack.c.bf16 %v5873_v41, %v5872_v22  ;;  %v5874_v55 = vld [vmem:[#allocation5 + $0xa30] sm:$0xff]  ;;  %v5880_v41 = vld [vmem:[#allocation5 + $0xa60] sm:$0xff] }
 0x481   : > { %v16614_v38 = vpop.f32.mrb[154].mxu0 }
 0x482   : > { %18742 = vst [vmem:[#allocation40_spill] sm:$0xff] %v16614_v38  ;;  %v16616_v35 = vpop.f32.mrb[155].mxu0  ;;  %v13258_v38 = vpack.c.bf16 %v5875_v37, %v5874_v55  ;;  %v5964_v55 = vld [vmem:[#allocation5 + $0xd00] sm:$0xff]  ;;  %v5965_v37 = vld [vmem:[#allocation5 + $0xd08] sm:$0xff] }
 0x483   : > { %18743 = vst [vmem:[#allocation41_spill] sm:$0xff] %v16616_v35  ;;  %6045 = vmatmul.mubr.f32.vlgmr.msra.gmra.mrb[96].mxu1 %v15023_v20 }
 0x484   : > { %13250 = vmatpush1.bf16.msra.mxu1 %v13249_v13  ;;  %6049 = vmatprep.mubr.f32.mxu1 %v5036_v0  ;;  %v13261_v13 = vpack.c.bf16 %v5877_v39, %v5876_v16  ;;  %v5879_v0 = vld [vmem:[#allocation5 + $0xa58] sm:$0xff]  ;;  %v5882_v16 = vld [vmem:[#allocation5 + $0xa70] sm:$0xff] }
 0x485   : > { %v16618_v58 = vpop.f32.mrb[156].mxu0  ;;  %13251 = vmatprep.subr.bf16.mxu1 %v18745_v12  ;;  %v5883_v39 = vld [vmem:[#allocation5 + $0xa78] sm:$0xff] }
 0x486   : > { %18744 = vst [vmem:[#allocation42_spill] sm:$0xff] %v16618_v58  ;;  %v16621_v62 = vpop.f32.mrb[157].mxu0 }
 0x487   : > { %18746 = vst [vmem:[#allocation43_spill] sm:$0xff] %v16621_v62  ;;  %6050 = vmatmul.mubr.f32.gmra.mrb[98].mxu1 %v15023_v20  ;;  %v5878_v20 = vld [vmem:[#allocation5 + $0xa50] sm:$0xff] }
 0x488   : > { %13253 = vmatpush1.bf16.msra.mxu1 %v13252_v29  ;;  %v13264_v22 = vpack.c.bf16 %v5879_v0, %v5878_v20  ;;  %v5881_v29 = vld [vmem:[#allocation5 + $0xa68] sm:$0xff]  ;;  %v5884_v20 = vld [vmem:[#allocation5 + $0xa80] sm:$0xff] }
 0x489   : > { %13254 = vmatprep.subr.bf16.mxu1 %v18745_v12  ;;  %v5885_v0 = vld [vmem:[#allocation5 + $0xa88] sm:$0xff] }
 0x48c   : > { %13256 = vmatpush1.bf16.msra.mxu1 %v13255_v34  ;;  %v13267_v34 = vpack.c.bf16 %v5881_v29, %v5880_v41  ;;  %v5886_v41 = vld [vmem:[#allocation5 + $0xa90] sm:$0xff]  ;;  %v5887_v29 = vld [vmem:[#allocation5 + $0xa98] sm:$0xff] }
 0x48d   : > { %13257 = vmatprep.subr.bf16.mxu1 %v18745_v12 }
 0x490   : > { %13259 = vmatpush1.bf16.msra.mxu1 %v13258_v38  ;;  %v16629_v38 = vpack.c.bf16 %v5965_v37, %v5964_v55  ;;  %v5888_v55 = vld [vmem:[#allocation5 + $0xaa0] sm:$0xff]  ;;  %v5889_v37 = vld [vmem:[#allocation5 + $0xaa8] sm:$0xff] }
 0x491   : > { %13260 = vmatprep.subr.bf16.mxu1 %v18745_v12  ;;  %v13279_v58 = vpack.c.bf16 %v5889_v37, %v5888_v55 }
 0x492   : > { %13393 = vmatprep.subr.bf16.mxu0 %v16629_v38 }
 0x494   : > { %13262 = vmatpush1.bf16.msra.mxu1 %v13261_v13  ;;  %v13270_v13 = vpack.c.bf16 %v5883_v39, %v5882_v16  ;;  %v5890_v16 = vld [vmem:[#allocation5 + $0xab0] sm:$0xff]  ;;  %v5891_v39 = vld [vmem:[#allocation5 + $0xab8] sm:$0xff] }
 0x495   : > { %13263 = vmatprep.subr.bf16.mxu1 %v18745_v12 }
 0x498   : > { %13265 = vmatpush1.bf16.msra.mxu1 %v13264_v22  ;;  %v13273_v22 = vpack.c.bf16 %v5885_v0, %v5884_v20  ;;  %v5892_v20 = vld [vmem:[#allocation5 + $0xac0] sm:$0xff]  ;;  %v5893_v0 = vld [vmem:[#allocation5 + $0xac8] sm:$0xff] }
 0x499   : > { %13266 = vmatprep.subr.bf16.mxu1 %v18745_v12 }
 0x49c   : > { %13268 = vmatpush1.bf16.msra.mxu1 %v13267_v34  ;;  %v13276_v34 = vpack.c.bf16 %v5887_v29, %v5886_v41 }
 0x49d   : > { %13269 = vmatprep.subr.bf16.mxu1 %v18745_v12 }
 0x4a0   : > { %13271 = vmatpush1.bf16.msra.mxu1 %v13270_v13  ;;  %v13282_v13 = vpack.c.bf16 %v5891_v39, %v5890_v16  ;;  %v16643_v39 = vld [vmem:[#allocation7 + $0x1] ss:$0 sm:$0xff] }
 0x4a1   : > { %13272 = vmatprep.subr.bf16.mxu1 %v18745_v12 }
 0x4a4   : > { %13274 = vmatpush1.bf16.msra.mxu1 %v13273_v22  ;;  %v13285_v22 = vpack.c.bf16 %v5893_v0, %v5892_v20  ;;  %v5896_v20 = vld [vmem:[#allocation5 + $0xae0] sm:$0xff]  ;;  %v5897_v0 = vld [vmem:[#allocation5 + $0xae8] sm:$0xff] }
 0x4a5   : > { %13275 = vmatprep.subr.bf16.mxu1 %v18745_v12 }
 0x4a8   : > { %13277 = vmatpush1.bf16.msra.mxu1 %v13276_v34  ;;  %v5894_v34 = vld [vmem:[#allocation5 + $0xad0] sm:$0xff] }
 0x4a9   : > { %13278 = vmatprep.subr.bf16.mxu1 %v18745_v12 }
 0x4ac   : > { %13280 = vmatpush1.bf16.msra.mxu1 %v13279_v58  ;;  %v5895_v58 = vld [vmem:[#allocation5 + $0xad8] sm:$0xff] }
 0x4ad   : > { %13281 = vmatprep.subr.bf16.mxu1 %v18745_v12  ;;  %v13288_v37 = vpack.c.bf16 %v5895_v58, %v5894_v34 }
 0x4b0   : > { %13283 = vmatpush1.bf16.msra.mxu1 %v13282_v13 }
 0x4b1   : > { %13284 = vmatprep.subr.bf16.mxu1 %v18745_v12 }
 0x4b4   : > { %13286 = vmatpush1.bf16.msra.mxu1 %v13285_v22  ;;  %v16647_v22 = vld [vmem:[#allocation9 + $0x1] ss:$0 sm:$0xff] }
 0x4b5   : > { %13287 = vmatprep.subr.bf16.mxu1 %v18745_v12 }
 0x4b8   : > { %13289 = vmatpush1.bf16.msra.mxu1 %v13288_v37 }
 0x4b9   : > { %13290 = vmatprep.subr.bf16.mxu1 %v18745_v12 }
 0x4c7   : > { %v16638_v41 = vpop.f32.mrb[158].mxu0 }
 0x4c8   : > { %18747 = vst [vmem:[#allocation44_spill] sm:$0xff] %v16638_v41  ;;  %v16640_v29 = vpop.f32.mrb[159].mxu0 }
 0x4c9   : > { %18748 = vst [vmem:[#allocation45_spill] sm:$0xff] %v16640_v29  ;;  %v13291_v29 = vpack.c.bf16 %v5897_v0, %v5896_v20 }
 0x4cb   : > { %13292 = vmatpush1.bf16.msra.mxu1 %v13291_v29 }
 0x4cc   : > { %13293 = vmatprep.subr.bf16.mxu1 %v18745_v12 }
 0x4d6   : > { %v4443_v55 = vpop.f32.mrb[32].mxu1 }
 0x4d7   : > { %v13904_v62 = vadd.f32 %v4443_v55, %v16241_v51  ;;  %v4445_v16 = vpop.f32.mrb[33].mxu1 }
 0x4d9   : > { %v4669_v13 = vadd.f32 %v13904_v62, %v16536_v15  ;;  %v5898_v62 = vld [vmem:[#allocation5 + $0xaf0] sm:$0xff]  ;;  %v5899_v15 = vld [vmem:[#allocation5 + $0xaf8] sm:$0xff] }
 0x4da   : > { %v4448_v41 = vpop.f32.mrb[34].mxu1  ;;  %v13294_v16 = vpack.c.bf16 %v5899_v15, %v5898_v62 }
 0x4db   : > { %v4835_v35 = vmul.f32 %v16643_v39, %v4669_v13  ;;  %v13905_v34 = vadd.f32 %v4448_v41, %v16253_v5  ;;  %v4450_v58 = vpop.f32.mrb[35].mxu1 }
 0x4dc   : > { %13295 = vmatpush1.bf16.msra.mxu1 %v13294_v16 }
 0x4dd   : > { %v4875_v51 = vadd.f32 %v16647_v22, %v4835_v35  ;;  %v4674_v55 = vadd.f32 %v13905_v34, %v16534_v47  ;;  %13296 = vmatprep.subr.bf16.mxu1 %v18745_v12 }
 0x4de   : > { %v4453_v37 = vpop.f32.mrb[36].mxu1 }
 0x4df   : > { %v4907_v1 = vmax.f32 %v4875_v51, 0.0  ;;  %v4836_v43 = vmul.f32 %v16643_v39, %v4674_v55  ;;  %v13906_v20 = vadd.f32 %v4453_v37, %v16384_v23  ;;  %v4455_v13 = vpop.f32.mrb[37].mxu1 }
 0x4e1   : > { %4939 = vst [vmem:[#allocation2 + $0x19] sm:$0xff] %v4907_v1  ;;  %v4876_v5 = vadd.f32 %v16647_v22, %v4836_v43  ;;  %v4679_v35 = vadd.f32 %v13906_v20, %v16540_v45  ;;  %6054 = vmatprep.mubr.f32.mxu1 %v4907_v1 }
 0x4e2   : > { %v4458_v47 = vpop.f32.mrb[38].mxu1 }
 0x4e3   : > { %v4908_v41 = vmax.f32 %v4876_v5, 0.0  ;;  %v4837_v29 = vmul.f32 %v16643_v39, %v4679_v35  ;;  %v13907_v0 = vadd.f32 %v4458_v47, %v16388_v52  ;;  %v4460_v34 = vpop.f32.mrb[39].mxu1  ;;  %v5966_v47 = vld [vmem:[#allocation5 + $0xd10] sm:$0xff] }
 0x4e5   : > { %4940 = vst [vmem:[#allocation2 + $0x21] sm:$0xff] %v4908_v41  ;;  %v4877_v23 = vadd.f32 %v16647_v22, %v4837_v29  ;;  %v4684_v58 = vadd.f32 %v13907_v0, %v16538_v50  ;;  %v5967_v29 = vld [vmem:[#allocation5 + $0xd18] sm:$0xff] }
 0x4e6   : > { %v4463_v51 = vpop.f32.mrb[40].mxu1 }
 0x4e7   : > { %v4909_v55 = vmax.f32 %v4877_v23, 0.0  ;;  %v4838_v43 = vmul.f32 %v16643_v39, %v4684_v58  ;;  %v13908_v45 = vadd.f32 %v4463_v51, %v16392_v54  ;;  %v4465_v1 = vpop.f32.mrb[41].mxu1 }
 0x4e8   : > { %v4973_v62 = vld [vmem:[#allocation2 + $0x18] sm:$0xff] }
 0x4e9   : > { %4941 = vst [vmem:[#allocation2 + $0x31] sm:$0xff] %v4909_v55  ;;  %v4878_v15 = vadd.f32 %v16647_v22, %v4838_v43  ;;  %v4689_v37 = vadd.f32 %v13908_v45, %v16544_v61  ;;  %6055 = vmatmul.mubr.f32.gmra.mrb[100].mxu1 %v4973_v62  ;;  %6719 = vmatprep.mubr.f32.mxu0 %v4909_v55  ;;  %v5969_v45 = vld [vmem:[#allocation5 + $0xd28] sm:$0xff] }
 0x4ea   : > { %v4468_v52 = vpop.f32.mrb[42].mxu1  ;;  %6059 = vmatprep.mubr.f32.mxu1 %v4908_v41 }
 0x4eb   : > { %v4910_v16 = vmax.f32 %v4878_v15, 0.0  ;;  %v4839_v50 = vmul.f32 %v16643_v39, %v4689_v37  ;;  %v13909_v20 = vadd.f32 %v4468_v52, %v16396_v40  ;;  %v4470_v13 = vpop.f32.mrb[43].mxu1  ;;  %v13396_v40 = vpack.c.bf16 %v5967_v29, %v5966_v47 }
 0x4ec   : > { %v4974_v5 = vld [vmem:[#allocation2 + $0x20] sm:$0xff] }
 0x4ed   : > { %4942 = vst [vmem:[#allocation2 + $0x39] sm:$0xff] %v4910_v16  ;;  %v4879_v54 = vadd.f32 %v16647_v22, %v4839_v50  ;;  %v4694_v35 = vadd.f32 %v13909_v20, %v16542_v14  ;;  %6060 = vmatmul.mubr.f32.gmra.mrb[102].mxu1 %v4974_v5  ;;  %v5968_v14 = vld [vmem:[#allocation5 + $0xd20] sm:$0xff]  ;;  %v5970_v20 = vld [vmem:[#allocation5 + $0xd30] sm:$0xff] }
 0x4ee   : > { %v4473_v61 = vpop.f32.mrb[44].mxu1  ;;  %6064 = vmatprep.mubr.f32.mxu1 %v4909_v55  ;;  %v13400_v52 = vpack.c.bf16 %v5969_v45, %v5968_v14  ;;  %v5974_v14 = vld [vmem:[#allocation5 + $0xd50] sm:$0xff]  ;;  %v5975_v45 = vld [vmem:[#allocation5 + $0xd58] sm:$0xff] }
 0x4ef   : > { %v4911_v0 = vmax.f32 %v4879_v54, 0.0  ;;  %v4840_v41 = vmul.f32 %v16643_v39, %v4694_v35  ;;  %v13910_v34 = vadd.f32 %v4473_v61, %v16400_v7  ;;  %v4475_v23 = vpop.f32.mrb[45].mxu1  ;;  %v5972_v61 = vld [vmem:[#allocation5 + $0xd40] sm:$0xff] }
 0x4f0   : > { %v4975_v58 = vld [vmem:[#allocation2 + $0x30] sm:$0xff] }
 0x4f1   : > { %4943 = vst [vmem:[#allocation2 + $0x49] sm:$0xff] %v4911_v0  ;;  %v4880_v51 = vadd.f32 %v16647_v22, %v4840_v41  ;;  %v4699_v43 = vadd.f32 %v13910_v34, %v16552_v4  ;;  %6065 = vmatmul.mubr.f32.gmra.mrb[104].mxu1 %v4975_v58  ;;  %6720 = vmatmul.mubr.f32.vlgmr.msra.gmra.mrb[160].mxu0 %v4975_v58  ;;  %v5973_v41 = vld [vmem:[#allocation5 + $0xd48] sm:$0xff] }
 0x4f2   : > { %v4478_v1 = vpop.f32.mrb[46].mxu1  ;;  %6069 = vmatprep.mubr.f32.mxu1 %v4910_v16  ;;  %6724 = vmatprep.mubr.f32.mxu0 %v4910_v16  ;;  %v5971_v16 = vld [vmem:[#allocation5 + $0xd38] sm:$0xff] }
 0x4f3   : > { %v4912_v55 = vmax.f32 %v4880_v51, 0.0  ;;  %v4841_v62 = vmul.f32 %v16643_v39, %v4699_v43  ;;  %v13911_v7 = vadd.f32 %v4478_v1, %v16404_v18  ;;  %v4480_v15 = vpop.f32.mrb[47].mxu1  ;;  %13395 = vmatpush3.bf16.msra.mxu0 %v16629_v38  ;;  %v13404_v47 = vpack.c.bf16 %v5971_v16, %v5970_v20 }
 0x4f4   : > { %v4976_v37 = vld [vmem:[#allocation2 + $0x38] sm:$0xff]  ;;  %13397 = vmatprep.subr.bf16.mxu0 %v13396_v40  ;;  %v13408_v51 = vpack.c.bf16 %v5973_v41, %v5972_v61 }
 0x4f5   : > { %4944 = vst [vmem:[#allocation2 + $0x51] sm:$0xff] %v4912_v55  ;;  %v4881_v4 = vadd.f32 %v16647_v22, %v4841_v62  ;;  %v4704_v50 = vadd.f32 %v13911_v7, %v16549_v63  ;;  %6070 = vmatmul.mubr.f32.gmra.mrb[106].mxu1 %v4976_v37  ;;  %6725 = vmatmul.mubr.f32.gmra.mrb[162].mxu0 %v4976_v37 }
 0x4f6   : > { %v4483_v13 = vpop.f32.mrb[48].mxu1  ;;  %6074 = vmatprep.mubr.f32.mxu1 %v4911_v0  ;;  %6729 = vmatprep.mubr.f32.mxu0 %v4911_v0  ;;  %v13412_v37 = vpack.c.bf16 %v5975_v45, %v5974_v14 }
 0x4f7   : > { %v4913_v5 = vmax.f32 %v4881_v4, 0.0  ;;  %v4842_v18 = vmul.f32 %v16643_v39, %v4704_v50  ;;  %v13912_v38 = vadd.f32 %v4483_v13, %v16408_v10  ;;  %v4485_v54 = vpop.f32.mrb[49].mxu1  ;;  %13399 = vmatpush3.bf16.msra.mxu0 %v13396_v40  ;;  %v5976_v4 = vld [vmem:[#allocation5 + $0xd60] sm:$0xff]  ;;  %v5977_v50 = vld [vmem:[#allocation5 + $0xd68] sm:$0xff] }
 0x4f8   : > { %v4977_v35 = vld [vmem:[#allocation2 + $0x48] sm:$0xff]  ;;  %13401 = vmatprep.subr.bf16.mxu0 %v13400_v52 }
 0x4f9   : > { %4945 = vst [vmem:[#allocation2 + $0x61] sm:$0xff] %v4913_v5  ;;  %v4882_v63 = vadd.f32 %v16647_v22, %v4842_v18  ;;  %v4709_v29 = vadd.f32 %v13912_v38, %v16560_v28  ;;  %6075 = vmatmul.mubr.f32.gmra.mrb[108].mxu1 %v4977_v35  ;;  %6730 = vmatmul.mubr.f32.gmra.mrb[164].mxu0 %v4977_v35  ;;  %v5978_v35 = vld [vmem:[#allocation5 + $0xd70] sm:$0xff] }
 0x4fa   : > { %v4488_v0 = vpop.f32.mrb[50].mxu1  ;;  %6079 = vmatprep.mubr.f32.mxu1 %v4912_v55  ;;  %6734 = vmatprep.mubr.f32.mxu0 %v4912_v55  ;;  %v13416_v38 = vpack.c.bf16 %v5977_v50, %v5976_v4 }
 0x4fb   : > { %v4914_v34 = vmax.f32 %v4882_v63, 0.0  ;;  %v4843_v10 = vmul.f32 %v16643_v39, %v4709_v29  ;;  %v13913_v23 = vadd.f32 %v4488_v0, %v16412_v31  ;;  %v4490_v58 = vpop.f32.mrb[51].mxu1  ;;  %13403 = vmatpush3.bf16.msra.mxu0 %v13400_v52 }
 0x4fc   : > { %v4978_v40 = vld [vmem:[#allocation2 + $0x50] sm:$0xff]  ;;  %13405 = vmatprep.subr.bf16.mxu0 %v13404_v47 }
 0x4fd   : > { %4946 = vst [vmem:[#allocation2 + $0x69] sm:$0xff] %v4914_v34  ;;  %v4883_v28 = vadd.f32 %v16647_v22, %v4843_v10  ;;  %v4714_v43 = vadd.f32 %v13913_v23, %v16556_v9  ;;  %6080 = vmatmul.mubr.f32.gmra.mrb[110].mxu1 %v4978_v40  ;;  %6735 = vmatmul.mubr.f32.gmra.mrb[166].mxu0 %v4978_v40 }
 0x4fe   : > { %v4493_v1 = vpop.f32.mrb[52].mxu1  ;;  %6084 = vmatprep.mubr.f32.mxu1 %v4913_v5  ;;  %6739 = vmatprep.mubr.f32.mxu0 %v4913_v5 }
 0x4ff   : > { %v4915_v55 = vmax.f32 %v4883_v28, 0.0  ;;  %v4844_v31 = vmul.f32 %v16643_v39, %v4714_v43  ;;  %v13914_v62 = vadd.f32 %v4493_v1, %v16416_v42  ;;  %v4495_v7 = vpop.f32.mrb[53].mxu1  ;;  %13407 = vmatpush3.bf16.msra.mxu0 %v13404_v47  ;;  %v5979_v47 = vld [vmem:[#allocation5 + $0xd78] sm:$0xff] }
 0x500   : > { %v4979_v15 = vld [vmem:[#allocation2 + $0x60] sm:$0xff]  ;;  %13409 = vmatprep.subr.bf16.mxu0 %v13408_v51 }
 0x501   : > { %4947 = vst [vmem:[#allocation2 + $0x79] sm:$0xff] %v4915_v55  ;;  %v4884_v9 = vadd.f32 %v16647_v22, %v4844_v31  ;;  %v4719_v52 = vadd.f32 %v13914_v62, %v16568_v30  ;;  %6085 = vmatmul.mubr.f32.gmra.mrb[112].mxu1 %v4979_v15  ;;  %6740 = vmatmul.mubr.f32.gmra.mrb[168].mxu0 %v4979_v15 }
 0x502   : > { %v4498_v20 = vpop.f32.mrb[54].mxu1  ;;  %6089 = vmatprep.mubr.f32.mxu1 %v4914_v34  ;;  %6744 = vmatprep.mubr.f32.mxu0 %v4914_v34 }
 0x503   : > { %v4916_v16 = vmax.f32 %v4884_v9, 0.0  ;;  %v4845_v42 = vmul.f32 %v16643_v39, %v4719_v52  ;;  %v13915_v13 = vadd.f32 %v4498_v20, %v16420_v25  ;;  %v4500_v5 = vpop.f32.mrb[55].mxu1  ;;  %13411 = vmatpush3.bf16.msra.mxu0 %v13408_v51 }
 0x504   : > { %v16694_v18 = vld [vmem:[#allocation2 + $0x68] sm:$0xff]  ;;  %13413 = vmatprep.subr.bf16.mxu0 %v13412_v37 }
 0x505   : > { %4948 = vst [vmem:[#allocation2 + $0x81] sm:$0xff] %v4916_v16  ;;  %v4885_v30 = vadd.f32 %v16647_v22, %v4845_v42  ;;  %v4724_v54 = vadd.f32 %v13915_v13, %v16565_v17  ;;  %6090 = vmatmul.mubr.f32.gmra.mrb[114].mxu1 %v16694_v18  ;;  %6745 = vmatmul.mubr.f32.gmra.mrb[170].mxu0 %v16694_v18 }
 0x506   : > { %v4503_v63 = vpop.f32.mrb[56].mxu1  ;;  %6094 = vmatprep.mubr.f32.mxu1 %v4915_v55  ;;  %6749 = vmatprep.mubr.f32.mxu0 %v4915_v55  ;;  %v13420_v17 = vpack.c.bf16 %v5979_v47, %v5978_v35 }
 0x507   : > { %v4917_v25 = vmax.f32 %v4885_v30, 0.0  ;;  %v4846_v29 = vmul.f32 %v16643_v39, %v4724_v54  ;;  %v13916_v61 = vadd.f32 %v4503_v63, %v16425_v32  ;;  %v4505_v41 = vpop.f32.mrb[57].mxu1  ;;  %13415 = vmatpush3.bf16.msra.mxu0 %v13412_v37 }
 0x508   : > { %v16702_v0 = vld [vmem:[#allocation2 + $0x78] sm:$0xff]  ;;  %13417 = vmatprep.subr.bf16.mxu0 %v13416_v38 }
 0x509   : > { %4949 = vst [vmem:[#allocation2 + $0x91] sm:$0xff] %v4917_v25  ;;  %v4886_v34 = vadd.f32 %v16647_v22, %v4846_v29  ;;  %v4729_v10 = vadd.f32 %v13916_v61, %v16576_v11  ;;  %6095 = vmatmul.mubr.f32.gmra.mrb[116].mxu1 %v16702_v0  ;;  %6750 = vmatmul.mubr.f32.gmra.mrb[172].mxu0 %v16702_v0 }
 0x50a   : > { %v4508_v23 = vpop.f32.mrb[58].mxu1  ;;  %6099 = vmatprep.mubr.f32.mxu1 %v4916_v16  ;;  %6754 = vmatprep.mubr.f32.mxu0 %v4916_v16 }
 0x50b   : > { %v4918_v58 = vmax.f32 %v4886_v34, 0.0  ;;  %v4847_v32 = vmul.f32 %v16643_v39, %v4729_v10  ;;  %v13917_v40 = vadd.f32 %v4508_v23, %v16430_v3  ;;  %v4510_v51 = vpop.f32.mrb[59].mxu1  ;;  %13419 = vmatpush3.bf16.msra.mxu0 %v13416_v38 }
 0x50c   : > { %v16710_v28 = vld [vmem:[#allocation2 + $0x80] sm:$0xff]  ;;  %13421 = vmatprep.subr.bf16.mxu0 %v13420_v17 }
 0x50d   : > { %4950 = vst [vmem:[#allocation2 + $0x99] sm:$0xff] %v4918_v58  ;;  %v4887_v11 = vadd.f32 %v16647_v22, %v4847_v32  ;;  %v4734_v43 = vadd.f32 %v13917_v40, %v16573_v19  ;;  %6100 = vmatmul.mubr.f32.gmra.mrb[118].mxu1 %v16710_v28  ;;  %6755 = vmatmul.mubr.f32.gmra.mrb[174].mxu0 %v16710_v28 }
 0x50e   : > { %v4513_v14 = vpop.f32.mrb[60].mxu1  ;;  %6104 = vmatprep.mubr.f32.mxu1 %v4917_v25  ;;  %6759 = vmatprep.mubr.f32.mxu0 %v4917_v25 }
 0x50f   : > { %v4919_v45 = vmax.f32 %v4887_v11, 0.0  ;;  %v4848_v3 = vmul.f32 %v16643_v39, %v4734_v43  ;;  %v13918_v1 = vadd.f32 %v4513_v14, %v16433_v57  ;;  %v4515_v55 = vpop.f32.mrb[61].mxu1  ;;  %13423 = vmatpush3.bf16.msra.mxu0 %v13420_v17 }
 0x510   : > { %v16718_v31 = vld [vmem:[#allocation2 + $0x90] sm:$0xff]  ;;  %13424 = vmatprep.subr.bf16.mxu0 %v18745_v12 }
 0x511   : > { %4951 = vst [vmem:[#allocation2 + $0xa9] sm:$0xff] %v4919_v45  ;;  %v4888_v19 = vadd.f32 %v16647_v22, %v4848_v3  ;;  %v4739_v62 = vadd.f32 %v13918_v1, %v16584_v53  ;;  %6105 = vmatmul.mubr.f32.gmra.mrb[120].mxu1 %v16718_v31  ;;  %6760 = vmatmul.mubr.f32.gmra.mrb[176].mxu0 %v16718_v31 }
 0x512   : > { %v4518_v7 = vpop.f32.mrb[62].mxu1  ;;  %6109 = vmatprep.mubr.f32.mxu1 %v4918_v58  ;;  %6764 = vmatprep.mubr.f32.mxu0 %v4918_v58 }
 0x513   : > { %v4920_v15 = vmax.f32 %v4888_v19, 0.0  ;;  %v4849_v57 = vmul.f32 %v16643_v39, %v4739_v62  ;;  %v13919_v37 = vadd.f32 %v4518_v7, %v16437_v59  ;;  %v4520_v9 = vpop.f32.mrb[63].mxu1 }
 0x514   : > { %v16727_v52 = vld [vmem:[#allocation2 + $0x98] sm:$0xff] }
 0x515   : > { %4952 = vst [vmem:[#allocation2 + $0xb1] sm:$0xff] %v4920_v15  ;;  %v4889_v4 = vadd.f32 %v16647_v22, %v4849_v57  ;;  %v4744_v53 = vadd.f32 %v13919_v37, %v16581_v33  ;;  %6110 = vmatmul.mubr.f32.gmra.mrb[122].mxu1 %v16727_v52  ;;  %6765 = vmatmul.mubr.f32.gmra.mrb[178].mxu0 %v16727_v52 }
 0x516   : > { %v4523_v50 = vpop.f32.mrb[64].mxu1  ;;  %6114 = vmatprep.mubr.f32.mxu1 %v4919_v45  ;;  %6769 = vmatprep.mubr.f32.mxu0 %v4919_v45 }
 0x517   : > { %v4921_v20 = vmax.f32 %v4889_v4, 0.0  ;;  %v4850_v16 = vmul.f32 %v16643_v39, %v4744_v53  ;;  %v13920_v59 = vadd.f32 %v4523_v50, %v16443_v46  ;;  %v4525_v42 = vpop.f32.mrb[65].mxu1 }
 0x518   : > { %v16735_v13 = vld [vmem:[#allocation2 + $0xa8] sm:$0xff] }
 0x519   : > { %4953 = vst [vmem:[#allocation2 + $0xc1] sm:$0xff] %v4921_v20  ;;  %v4890_v5 = vadd.f32 %v16647_v22, %v4850_v16  ;;  %v4749_v33 = vadd.f32 %v13920_v59, %v16592_v26  ;;  %6115 = vmatmul.mubr.f32.gmra.mrb[124].mxu1 %v16735_v13  ;;  %6770 = vmatmul.mubr.f32.gmra.mrb[180].mxu0 %v16735_v13 }
 0x51a   : > { %v4528_v38 = vpop.f32.mrb[66].mxu1  ;;  %6119 = vmatprep.mubr.f32.mxu1 %v4920_v15  ;;  %6774 = vmatprep.mubr.f32.mxu0 %v4920_v15 }
 0x51b   : > { %v4922_v30 = vmax.f32 %v4890_v5, 0.0  ;;  %v4851_v54 = vmul.f32 %v16643_v39, %v4749_v33  ;;  %v13921_v46 = vadd.f32 %v4528_v38, %v16451_v6  ;;  %v4530_v35 = vpop.f32.mrb[67].mxu1  ;;  %v18749_v5 = vld [vmem:[#allocation20_spill] sm:$0xff] }
 0x51c   : > { %v16743_v47 = vld [vmem:[#allocation2 + $0xb0] sm:$0xff] }
 0x51d   : > { %4954 = vst [vmem:[#allocation2 + $0xc9] sm:$0xff] %v4922_v30  ;;  %v4891_v63 = vadd.f32 %v16647_v22, %v4851_v54  ;;  %v4754_v26 = vadd.f32 %v13921_v46, %v16589_v2  ;;  %6120 = vmatmul.mubr.f32.gmra.mrb[126].mxu1 %v16743_v47  ;;  %6775 = vmatmul.mubr.f32.gmra.mrb[182].mxu0 %v16743_v47  ;;  %v18750_v54 = vld [vmem:[#allocation37_spill] sm:$0xff] }
 0x51e   : > { %v4533_v25 = vpop.f32.mrb[68].mxu1  ;;  %6124 = vmatprep.mubr.f32.mxu1 %v4921_v20  ;;  %6779 = vmatprep.mubr.f32.mxu0 %v4921_v20 }
 0x51f   : > { %v4923_v29 = vmax.f32 %v4891_v63, 0.0  ;;  %v4852_v61 = vmul.f32 %v16643_v39, %v4754_v26  ;;  %v13922_v6 = vadd.f32 %v4533_v25, %v16459_v21  ;;  %v4535_v41 = vpop.f32.mrb[69].mxu1  ;;  %v18751_v26 = vld [vmem:[#allocation22_spill] sm:$0xff] }
 0x520   : > { %v16751_v17 = vld [vmem:[#allocation2 + $0xc0] sm:$0xff] }
 0x521   : > { %4955 = vst [vmem:[#allocation2 + $0xd9] sm:$0xff] %v4923_v29  ;;  %v4892_v34 = vadd.f32 %v16647_v22, %v4852_v61  ;;  %v4759_v2 = vadd.f32 %v13922_v6, %v16600_v8  ;;  %6125 = vmatmul.mubr.f32.gmra.mrb[128].mxu1 %v16751_v17  ;;  %6780 = vmatmul.mubr.f32.gmra.mrb[184].mxu0 %v16751_v17  ;;  %v18752_v41 = vld [vmem:[#allocation39_spill] sm:$0xff] }
 0x522   : > { %v4538_v10 = vpop.f32.mrb[70].mxu1  ;;  %6129 = vmatprep.mubr.f32.mxu1 %v4922_v30  ;;  %6784 = vmatprep.mubr.f32.mxu0 %v4922_v30 }
 0x523   : > { %v4924_v23 = vmax.f32 %v4892_v34, 0.0  ;;  %v4853_v58 = vmul.f32 %v16643_v39, %v4759_v2  ;;  %v13923_v21 = vadd.f32 %v4538_v10, %v16467_v36  ;;  %v4540_v32 = vpop.f32.mrb[71].mxu1 }
 0x524   : > { %v16759_v40 = vld [vmem:[#allocation2 + $0xc8] sm:$0xff] }
 0x525   : > { %4956 = vst [vmem:[#allocation2 + $0xe1] sm:$0xff] %v4924_v23  ;;  %v4893_v51 = vadd.f32 %v16647_v22, %v4853_v58  ;;  %v4764_v8 = vadd.f32 %v13923_v21, %v16597_v60  ;;  %6130 = vmatmul.mubr.f32.gmra.mrb[130].mxu1 %v16759_v40  ;;  %6785 = vmatmul.mubr.f32.gmra.mrb[186].mxu0 %v16759_v40  ;;  %v18753_v58 = vld [vmem:[#allocation23_spill] sm:$0xff] }
 0x526   : > { %v4543_v11 = vpop.f32.mrb[72].mxu1  ;;  %6134 = vmatprep.mubr.f32.mxu1 %v4923_v29  ;;  %6789 = vmatprep.mubr.f32.mxu0 %v4923_v29 }
 0x527   : > { %v4925_v43 = vmax.f32 %v4893_v51, 0.0  ;;  %v4854_v14 = vmul.f32 %v16643_v39, %v4764_v8  ;;  %v13924_v36 = vadd.f32 %v4543_v11, %v16475_v44  ;;  %v4545_v45 = vpop.f32.mrb[73].mxu1  ;;  %v18754_v11 = vld [vmem:[#allocation38_spill] sm:$0xff] }
 0x528   : > { %v16767_v3 = vld [vmem:[#allocation2 + $0xd8] sm:$0xff] }
 0x529   : > { %4957 = vst [vmem:[#allocation2 + $0xf1] sm:$0xff] %v4925_v43  ;;  %v4894_v1 = vadd.f32 %v16647_v22, %v4854_v14  ;;  %v4769_v60 = vadd.f32 %v13924_v36, %v16604_v56  ;;  %6135 = vmatmul.mubr.f32.gmra.mrb[132].mxu1 %v16767_v3  ;;  %6790 = vmatmul.mubr.f32.gmra.mrb[188].mxu0 %v16767_v3  ;;  %v16813_v14 = vld [vmem:[#allocation2 + $0x32] sm:$0xff] }
 0x52a   : > { %v4548_v55 = vpop.f32.mrb[74].mxu1  ;;  %6139 = vmatprep.mubr.f32.mxu1 %v4924_v23  ;;  %6794 = vmatprep.mubr.f32.mxu0 %v4924_v23 }
 0x52b   : > { %v4926_v19 = vmax.f32 %v4894_v1, 0.0  ;;  %v4855_v62 = vmul.f32 %v16643_v39, %v4769_v60  ;;  %v13925_v44 = vadd.f32 %v4548_v55, %v16483_v24  ;;  %v4550_v7 = vpop.f32.mrb[75].mxu1  ;;  %v18755_v60 = vld [vmem:[#allocation24_spill] sm:$0xff] }
 0x52c   : > { %v16775_v15 = vld [vmem:[#allocation2 + $0xe0] sm:$0xff] }
 0x52d   : > { %4958 = vst [vmem:[#allocation2 + $0xf9] sm:$0xff] %v4926_v19  ;;  %v4895_v57 = vadd.f32 %v16647_v22, %v4855_v62  ;;  %v4774_v56 = vadd.f32 %v13925_v44, %v16602_v49  ;;  %6140 = vmatmul.mubr.f32.gmra.mrb[134].mxu1 %v16775_v15  ;;  %6795 = vmatmul.mubr.f32.gmra.mrb[190].mxu0 %v16775_v15  ;;  %v16820_v44 = vld [vmem:[#allocation2 + $0x3a] sm:$0xff] }
 0x52e   : > { %v4553_v37 = vpop.f32.mrb[76].mxu1  ;;  %6144 = vmatprep.mubr.f32.mxu1 %v4925_v43  ;;  %6799 = vmatprep.mubr.f32.mxu0 %v4925_v43 }
 0x52f   : > { %v4927_v9 = vmax.f32 %v4895_v57, 0.0  ;;  %v4856_v4 = vmul.f32 %v16643_v39, %v4774_v56  ;;  %v13926_v24 = vadd.f32 %v4553_v37, %v16491_v27  ;;  %v4555_v53 = vpop.f32.mrb[77].mxu1  ;;  %v18756_v57 = vld [vmem:[#allocation41_spill] sm:$0xff]  ;;  %v16826_v37 = vld [vmem:[#allocation2 + $0x4a] sm:$0xff] }
 0x530   : > { %v16783_v50 = vld [vmem:[#allocation2 + $0xf0] sm:$0xff] }
 0x531   : > { %4959 = vst [vmem:[#allocation2 + $0x109] sm:$0xff] %v4927_v9  ;;  %v4896_v20 = vadd.f32 %v16647_v22, %v4856_v4  ;;  %v4779_v49 = vadd.f32 %v13926_v24, %v16608_v48  ;;  %6145 = vmatmul.mubr.f32.gmra.mrb[136].mxu1 %v16783_v50  ;;  %6800 = vmatmul.mubr.f32.gmra.mrb[192].mxu0 %v16783_v50  ;;  %v18757_v53 = vld [vmem:[#allocation25_spill] sm:$0xff] }
 0x532   : > { %v4558_v16 = vpop.f32.mrb[78].mxu1  ;;  %6149 = vmatprep.mubr.f32.mxu1 %v4926_v19  ;;  %6804 = vmatprep.mubr.f32.mxu0 %v4926_v19 }
 0x533   : > { %v4928_v59 = vmax.f32 %v4896_v20, 0.0  ;;  %v4857_v42 = vmul.f32 %v16643_v39, %v4779_v49  ;;  %v13927_v27 = vadd.f32 %v4558_v16, %v18749_v5  ;;  %v4560_v33 = vpop.f32.mrb[79].mxu1  ;;  %v18758_v5 = vld [vmem:[#allocation40_spill] sm:$0xff] }
 0x534   : > { %v16791_v38 = vld [vmem:[#allocation2 + $0xf8] sm:$0xff]  ;;  %v16839_v33 = vld [vmem:[#allocation2 + $0x62] sm:$0xff] }
 0x535   : > { %4960 = vst [vmem:[#allocation2 + $0x111] sm:$0xff] %v4928_v59  ;;  %v4897_v30 = vadd.f32 %v16647_v22, %v4857_v42  ;;  %v4784_v48 = vadd.f32 %v13927_v27, %v18750_v54  ;;  %6150 = vmatmul.mubr.f32.gmra.mrb[138].mxu1 %v16791_v38  ;;  %6805 = vmatmul.mubr.f32.gmra.mrb[194].mxu0 %v16791_v38 }
 0x536   : > { %v4563_v46 = vpop.f32.mrb[80].mxu1  ;;  %6154 = vmatprep.mubr.f32.mxu1 %v4927_v9  ;;  %6809 = vmatprep.mubr.f32.mxu0 %v4927_v9 }
 0x537   : > { %v4929_v35 = vmax.f32 %v4897_v30, 0.0  ;;  %v4858_v63 = vmul.f32 %v16643_v39, %v4784_v48  ;;  %v13928_v25 = vadd.f32 %v4563_v46, %v18751_v26  ;;  %v4565_v29 = vpop.f32.mrb[81].mxu1  ;;  %v18759_v46 = vld [vmem:[#allocation26_spill] sm:$0xff] }
 0x538   : > { %v16799_v61 = vld [vmem:[#allocation2 + $0x108] sm:$0xff] }
 0x539   : > { %4961 = vst [vmem:[#allocation2 + $0x121] sm:$0xff] %v4929_v35  ;;  %v4898_v6 = vadd.f32 %v16647_v22, %v4858_v63  ;;  %v4789_v34 = vadd.f32 %v13928_v25, %v18752_v41  ;;  %6155 = vmatmul.mubr.f32.gmra.mrb[140].mxu1 %v16799_v61  ;;  %6810 = vmatmul.mubr.f32.gmra.mrb[196].mxu0 %v16799_v61  ;;  %v16846_v25 = vld [vmem:[#allocation2 + $0x6a] sm:$0xff] }
 0x53a   : > { %v4568_v2 = vpop.f32.mrb[82].mxu1  ;;  %6159 = vmatprep.mubr.f32.mxu1 %v4928_v59  ;;  %6814 = vmatprep.mubr.f32.mxu0 %v4928_v59  ;;  %v16833_v59 = vld [vmem:[#allocation2 + $0x52] sm:$0xff] }
 0x53b   : > { %v4930_v10 = vmax.f32 %v4898_v6, 0.0  ;;  %v4859_v23 = vmul.f32 %v16643_v39, %v4789_v34  ;;  %v13929_v21 = vadd.f32 %v4568_v2, %v18753_v58  ;;  %v4570_v32 = vpop.f32.mrb[83].mxu1  ;;  %v18760_v6 = vld [vmem:[#allocation43_spill] sm:$0xff]  ;;  %v16852_v34 = vld [vmem:[#allocation2 + $0x7a] sm:$0xff] }
 0x53c   : > { %v16807_v51 = vld [vmem:[#allocation2 + $0x110] sm:$0xff]  ;;  %v18761_v58 = vld [vmem:[#allocation27_spill] sm:$0xff] }
 0x53d   : > { %4962 = vst [vmem:[#allocation2 + $0x129] sm:$0xff] %v4930_v10  ;;  %v4899_v8 = vadd.f32 %v16647_v22, %v4859_v23  ;;  %v4794_v43 = vadd.f32 %v13929_v21, %v18754_v11  ;;  %6160 = vmatmul.mubr.f32.gmra.mrb[142].mxu1 %v16807_v51  ;;  %6815 = vmatmul.mubr.f32.gmra.mrb[198].mxu0 %v16807_v51  ;;  %v16859_v11 = vld [vmem:[#allocation2 + $0x82] sm:$0xff] }
 0x53e   : > { %v4573_v36 = vpop.f32.mrb[84].mxu1  ;;  %12544 = vmatprep.mubr.f32.mxu0 %v16813_v14  ;;  %6164 = vmatprep.mubr.f32.mxu1 %v4929_v35 }
 0x53f   : > { %v4931_v45 = vmax.f32 %v4899_v8, 0.0  ;;  %v4860_v1 = vmul.f32 %v16643_v39, %v4794_v43  ;;  %v13930_v55 = vadd.f32 %v4573_v36, %v18755_v60  ;;  %v4575_v19 = vpop.f32.mrb[85].mxu1  ;;  %v18762_v36 = vld [vmem:[#allocation42_spill] sm:$0xff] }
 0x540   : > { %v16818_v62 = vld [vmem:[#allocation2 + $0x120] sm:$0xff] }
 0x541   : > { %4963 = vst [vmem:[#allocation2 + $0x139] sm:$0xff] %v4931_v45  ;;  %v4900_v7 = vadd.f32 %v16647_v22, %v4860_v1  ;;  %v4799_v56 = vadd.f32 %v13930_v55, %v18756_v57  ;;  %6165 = vmatmul.mubr.f32.gmra.mrb[144].mxu1 %v16818_v62  ;;  %12545 = vmatmul.mubr.f32.vlgmr.msra.gmra.mrb[200].mxu0 %v16820_v44  ;;  %v16865_v1 = vld [vmem:[#allocation2 + $0x92] sm:$0xff] }
 0x542   : > { %v4578_v9 = vpop.f32.mrb[86].mxu1  ;;  %12547 = vmatprep.mubr.f32.mxu0 %v16826_v37  ;;  %6169 = vmatprep.mubr.f32.mxu1 %v4930_v10 }
 0x543   : > { %v4932_v4 = vmax.f32 %v4900_v7, 0.0  ;;  %v4861_v24 = vmul.f32 %v16643_v39, %v4799_v56  ;;  %v13931_v20 = vadd.f32 %v4578_v9, %v18757_v53  ;;  %v4580_v49 = vpop.f32.mrb[87].mxu1  ;;  %v18763_v7 = vld [vmem:[#allocation28_spill] sm:$0xff]  ;;  %v18764_v53 = vld [vmem:[#allocation45_spill] sm:$0xff] }
 0x544   : > { %v16831_v16 = vld [vmem:[#allocation2 + $0x128] sm:$0xff] }
 0x545   : > { %4964 = vst [vmem:[#allocation2 + $0x141] sm:$0xff] %v4932_v4  ;;  %v4901_v42 = vadd.f32 %v16647_v22, %v4861_v24  ;;  %v4804_v27 = vadd.f32 %v13931_v20, %v18758_v5  ;;  %6170 = vmatmul.mubr.f32.gmra.mrb[146].mxu1 %v16831_v16  ;;  %12548 = vmatmul.mubr.f32.gmra.mrb[202].mxu0 %v16833_v59  ;;  %v16878_v49 = vld [vmem:[#allocation2 + $0xaa] sm:$0xff] }
 0x546   : > { %v4583_v30 = vpop.f32.mrb[88].mxu1  ;;  %12550 = vmatprep.mubr.f32.mxu0 %v16839_v33  ;;  %6174 = vmatprep.mubr.f32.mxu1 %v4931_v45 }
 0x547   : > { %v4933_v54 = vmax.f32 %v4901_v42, 0.0  ;;  %v4862_v48 = vmul.f32 %v16643_v39, %v4804_v27  ;;  %v13932_v35 = vadd.f32 %v4583_v30, %v18759_v46  ;;  %v4585_v63 = vpop.f32.mrb[89].mxu1  ;;  %v18765_v30 = vld [vmem:[#allocation29_spill] sm:$0xff] }
 0x548   : > { %v16844_v26 = vld [vmem:[#allocation2 + $0x138] sm:$0xff] }
 0x549   : > { %4965 = vst [vmem:[#allocation2 + $0x151] sm:$0xff] %v4933_v54  ;;  %v4902_v29 = vadd.f32 %v16647_v22, %v4862_v48  ;;  %v4809_v41 = vadd.f32 %v13932_v35, %v18760_v6  ;;  %6175 = vmatmul.mubr.f32.gmra.mrb[148].mxu1 %v16844_v26  ;;  %12551 = vmatmul.mubr.f32.gmra.mrb[204].mxu0 %v16846_v25  ;;  %v16885_v35 = vld [vmem:[#allocation2 + $0xb2] sm:$0xff] }
 0x54a   : > { %v4588_v2 = vpop.f32.mrb[90].mxu1  ;;  %12553 = vmatprep.mubr.f32.mxu0 %v16852_v34  ;;  %6179 = vmatprep.mubr.f32.mxu1 %v4932_v4  ;;  %v16872_v4 = vld [vmem:[#allocation2 + $0x9a] sm:$0xff] }
 0x54b   : > { %v4934_v10 = vmax.f32 %v4902_v29, 0.0  ;;  %v4863_v23 = vmul.f32 %v16643_v39, %v4809_v41  ;;  %v13933_v21 = vadd.f32 %v4588_v2, %v18761_v58  ;;  %v4590_v32 = vpop.f32.mrb[91].mxu1  ;;  %v18767_v29 = vld [vmem:[#allocation44_spill] sm:$0xff]  ;;  %v16893_v41 = vld [vmem:[#allocation2 + $0xc2] sm:$0xff] }
 0x54c   : > { %v16857_v8 = vld [vmem:[#allocation2 + $0x140] sm:$0xff]  ;;  %v16900_v58 = vld [vmem:[#allocation2 + $0xca] sm:$0xff] }
 0x54d   : > { %4966 = vst [vmem:[#allocation2 + $0x159] sm:$0xff] %v4934_v10  ;;  %v4903_v43 = vadd.f32 %v16647_v22, %v4863_v23  ;;  %v4814_v45 = vadd.f32 %v13933_v21, %v18762_v36  ;;  %6180 = vmatmul.mubr.f32.gmra.mrb[150].mxu1 %v16857_v8  ;;  %12554 = vmatmul.mubr.f32.gmra.mrb[206].mxu0 %v16859_v11  ;;  %v16909_v32 = vld [vmem:[#allocation2 + $0xda] sm:$0xff]  ;;  %v5901_v36 = vld [vmem:[#allocation5 + $0xb08] sm:$0xff] }
 0x54e   : > { %v4593_v60 = vpop.f32.mrb[92].mxu1  ;;  %12556 = vmatprep.mubr.f32.mxu0 %v16865_v1  ;;  %6184 = vmatprep.mubr.f32.mxu1 %v4933_v54 }
 0x54f   : > { %v4935_v55 = vmax.f32 %v4903_v43, 0.0  ;;  %v4864_v19 = vmul.f32 %v16643_v39, %v4814_v45  ;;  %v13934_v57 = vadd.f32 %v4593_v60, %v18763_v7  ;;  %v4595_v56 = vpop.f32.mrb[93].mxu1  ;;  %v5900_v43 = vld [vmem:[#allocation5 + $0xb00] sm:$0xff] }
 0x550   : > { %v16870_v9 = vld [vmem:[#allocation2 + $0x150] sm:$0xff]  ;;  %v16915_v60 = vld [vmem:[#allocation2 + $0xe2] sm:$0xff]  ;;  %v13297_v7 = vpack.c.bf16 %v5901_v36, %v5900_v43 }
 0x551   : > { %4967 = vst [vmem:[#allocation2 + $0x169] sm:$0xff] %v4935_v55  ;;  %v4904_v24 = vadd.f32 %v16647_v22, %v4864_v19  ;;  %v4819_v20 = vadd.f32 %v13934_v57, %v18764_v53  ;;  %6185 = vmatmul.mubr.f32.gmra.mrb[152].mxu1 %v16870_v9  ;;  %12557 = vmatmul.mubr.f32.gmra.mrb[208].mxu0 %v16872_v4  ;;  %v5099_v19 = vld [vmem:[#allocation2 + $0x2] sm:$0xff]  ;;  %v16924_v57 = vld [vmem:[#allocation2 + $0xfa] sm:$0xff]  ;;  %v5902_v56 = vld [vmem:[#allocation5 + $0xb10] sm:$0xff] }
 0x552   : > { %v4598_v42 = vpop.f32.mrb[94].mxu1  ;;  %12559 = vmatprep.mubr.f32.mxu0 %v16878_v49  ;;  %6189 = vmatprep.mubr.f32.mxu1 %v4934_v10  ;;  %v5164_v53 = vld [vmem:[#allocation2 + $0x20] sm:$0xff]  ;;  %v16939_v43 = vld [vmem:[#allocation2 + $0x12a] sm:$0xff] }
 0x553   : > { %v4936_v5 = vmax.f32 %v4904_v24, 0.0  ;;  %v4865_v27 = vmul.f32 %v16643_v39, %v4819_v20  ;;  %v13935_v54 = vadd.f32 %v4598_v42, %v18765_v30  ;;  %v4600_v48 = vpop.f32.mrb[95].mxu1  ;;  %v5903_v24 = vld [vmem:[#allocation5 + $0xb18] sm:$0xff]  ;;  %v16927_v20 = vld [vmem:[#allocation2 + $0x10a] sm:$0xff]  ;;  %v5904_v30 = vld [vmem:[#allocation5 + $0xb20] sm:$0xff] }
 0x554   : > { %v16883_v46 = vld [vmem:[#allocation2 + $0x158] sm:$0xff]  ;;  %v5100_v42 = vld [vmem:[#allocation2 + $0xa] sm:$0xff] }
 0x555   : > { %4968 = vst [vmem:[#allocation2 + $0x171] sm:$0xff] %v4936_v5  ;;  %v16888_v63 = vadd.f32 %v16647_v22, %v4865_v27  ;;  %v4824_v6 = vadd.f32 %v13935_v54, %v18767_v29  ;;  %6190 = vmatmul.mubr.f32.gmra.mrb[154].mxu1 %v16883_v46  ;;  %12560 = vmatmul.mubr.f32.gmra.mrb[210].mxu0 %v16885_v35  ;;  %v16931_v27 = vld [vmem:[#allocation2 + $0x112] sm:$0xff]  ;;  %v5905_v54 = vld [vmem:[#allocation5 + $0xb28] sm:$0xff] }
 0x556   : > { %12562 = vmatprep.mubr.f32.mxu0 %v16893_v41  ;;  %6194 = vmatprep.mubr.f32.mxu1 %v4935_v55  ;;  %v16921_v55 = vld [vmem:[#allocation2 + $0xf2] sm:$0xff]  ;;  %v16934_v29 = vld [vmem:[#allocation2 + $0x122] sm:$0xff] }
 0x557   : > { %18766 = vst [vmem:[#allocation20_spill] sm:$0xff] %v16888_v63  ;;  %v18664_v2 = vmax.f32 %v16888_v63, 0.0  ;;  %v4866_v10 = vmul.f32 %v16643_v39, %v4824_v6  ;;  %v5165_v48 = vld [vmem:[#allocation2 + $0x30] sm:$0xff]  ;;  %v16937_v6 = vld [vmem:[#allocation2 + $0x1a] sm:$0xff] }
 0x558   : > { %v16898_v23 = vld [vmem:[#allocation2 + $0x168] sm:$0xff]  ;;  %v5906_v36 = vld [vmem:[#allocation5 + $0xb30] sm:$0xff] }
 0x559   : > { %4969 = vst [vmem:[#allocation2 + $0x181] sm:$0xff] %v18664_v2  ;;  %v16905_v21 = vadd.f32 %v16647_v22, %v4866_v10  ;;  %6195 = vmatmul.mubr.f32.gmra.mrb[156].mxu1 %v16898_v23  ;;  %12563 = vmatmul.mubr.f32.gmra.mrb[212].mxu0 %v16900_v58  ;;  %v5163_v22 = vld [vmem:[#allocation2 + $0x18] sm:$0xff]  ;;  %v13303_v10 = vpack.c.bf16 %v5905_v54, %v5904_v30  ;;  %v5167_v30 = vld [vmem:[#allocation2 + $0x48] sm:$0xff]  ;;  %v5169_v2 = vld [vmem:[#allocation2 + $0x60] sm:$0xff] }
 0x55a   : > { %12565 = vmatprep.mubr.f32.mxu0 %v16909_v32  ;;  %6199 = vmatprep.mubr.f32.mxu1 %v4936_v5  ;;  %v13300_v5 = vpack.c.bf16 %v5903_v24, %v5902_v56  ;;  %v16947_v56 = vld [vmem:[#allocation2 + $0x22] sm:$0xff]  ;;  %v16954_v54 = vld [vmem:[#allocation2 + $0x152] sm:$0xff] }
 0x55b   : > { %18768 = vst [vmem:[#allocation37_spill] sm:$0xff] %v16905_v21  ;;  %v18663_v39 = vmax.f32 %v16905_v21, 0.0 }
 0x55c   : > { %v16913_v45 = vld [vmem:[#allocation2 + $0x170] sm:$0xff] }
 0x55d   : > { %4970 = vst [vmem:[#allocation2 + $0x189] sm:$0xff] %v18663_v39  ;;  %6200 = vmatmul.mubr.f32.gmra.mrb[158].mxu1 %v16913_v45  ;;  %12566 = vmatmul.mubr.f32.gmra.mrb[214].mxu0 %v16915_v60  ;;  %v16962_v39 = vld [vmem:[#allocation2 + $0x16a] sm:$0xff] }
 0x55e   : > { %6269 = vmatprep.mubr.f32.mxu1 %v5163_v22  ;;  %12568 = vmatprep.mubr.f32.mxu0 %v16921_v55  ;;  %v5907_v22 = vld [vmem:[#allocation5 + $0xb38] sm:$0xff] }
 0x55f   : > { %v13306_v24 = vpack.c.bf16 %v5907_v22, %v5906_v36  ;;  %v5910_v36 = vld [vmem:[#allocation5 + $0xb50] sm:$0xff]  ;;  %v5911_v22 = vld [vmem:[#allocation5 + $0xb58] sm:$0xff] }
 0x561   : > { %6270 = vmatmul.mubr.f32.vlgmr.msra.gmra.mrb[96].mxu1 %v5099_v19  ;;  %12569 = vmatmul.mubr.f32.gmra.mrb[216].mxu0 %v16924_v57  ;;  %v5166_v19 = vld [vmem:[#allocation2 + $0x38] sm:$0xff] }
 0x562   : > { %6274 = vmatprep.mubr.f32.mxu1 %v5164_v53  ;;  %13298 = vmatpush1.bf16.msra.mxu1 %v13297_v7  ;;  %v16944_v7 = vld [vmem:[#allocation2 + $0x13a] sm:$0xff]  ;;  %v16949_v53 = vld [vmem:[#allocation2 + $0x142] sm:$0xff] }
 0x563   : > { %12571 = vmatprep.mubr.f32.mxu0 %v16927_v20  ;;  %13299 = vmatprep.subr.bf16.mxu1 %v18745_v12 }
 0x564   : > { %v16970_v21 = vld [vmem:[#allocation2 + $0x182] sm:$0xff] }
 0x565   : > { %6275 = vmatmul.mubr.f32.gmra.mrb[98].mxu1 %v5100_v42  ;;  %12572 = vmatmul.mubr.f32.gmra.mrb[218].mxu0 %v16931_v27  ;;  %v5908_v42 = vld [vmem:[#allocation5 + $0xb40] sm:$0xff]  ;;  %18769 = vst [vmem:[#allocation22_spill] sm:$0xff] %v16970_v21 }
 0x566   : > { %6279 = vmatprep.mubr.f32.mxu1 %v5165_v48  ;;  %12574 = vmatprep.mubr.f32.mxu0 %v16934_v29 }
 0x567   : > { %13301 = vmatpush1.bf16.msra.mxu1 %v13300_v5  ;;  %v5909_v5 = vld [vmem:[#allocation5 + $0xb48] sm:$0xff] }
 0x568   : > { %13302 = vmatprep.subr.bf16.mxu1 %v18745_v12  ;;  %v13309_v48 = vpack.c.bf16 %v5909_v5, %v5908_v42  ;;  %v5912_v42 = vld [vmem:[#allocation5 + $0xb60] sm:$0xff]  ;;  %v5913_v5 = vld [vmem:[#allocation5 + $0xb68] sm:$0xff] }
 0x569   : > { %6280 = vmatmul.mubr.f32.gmra.mrb[100].mxu1 %v16937_v6  ;;  %12575 = vmatmul.mubr.f32.gmra.mrb[220].mxu0 %v16939_v43 }
 0x56a   : > { %6284 = vmatprep.mubr.f32.mxu1 %v5166_v19  ;;  %12577 = vmatprep.mubr.f32.mxu0 %v16944_v7  ;;  %v5168_v19 = vld [vmem:[#allocation2 + $0x50] sm:$0xff] }
 0x56b   : > { %13304 = vmatpush1.bf16.msra.mxu1 %v13303_v10  ;;  %v16957_v10 = vld [vmem:[#allocation2 + $0x15a] sm:$0xff] }
 0x56c   : > { %13305 = vmatprep.subr.bf16.mxu1 %v18745_v12 }
 0x56d   : > { %6285 = vmatmul.mubr.f32.gmra.mrb[102].mxu1 %v16947_v56  ;;  %12578 = vmatmul.mubr.f32.gmra.mrb[222].mxu0 %v16949_v53 }
 0x56e   : > { %6289 = vmatprep.mubr.f32.mxu1 %v5167_v30  ;;  %12580 = vmatprep.mubr.f32.mxu0 %v16954_v54  ;;  %v13312_v30 = vpack.c.bf16 %v5911_v22, %v5910_v36  ;;  %v5914_v36 = vld [vmem:[#allocation5 + $0xb70] sm:$0xff]  ;;  %v5915_v22 = vld [vmem:[#allocation5 + $0xb78] sm:$0xff] }
 0x56f   : > { %13307 = vmatpush1.bf16.msra.mxu1 %v13306_v24  ;;  %v16965_v24 = vld [vmem:[#allocation2 + $0x172] sm:$0xff]  ;;  %v13318_v63 = vpack.c.bf16 %v5915_v22, %v5914_v36  ;;  %v5921_v36 = vld [vmem:[#allocation5 + $0xba8] sm:$0xff]  ;;  %v5924_v22 = vld [vmem:[#allocation5 + $0xbc0] sm:$0xff] }
 0x570   : > { %13308 = vmatprep.subr.bf16.mxu1 %v18745_v12 }
 0x571   : > { %6290 = vmatmul.mubr.f32.gmra.mrb[104].mxu1 %v16813_v14  ;;  %12581 = vmatmul.mubr.f32.gmra.mrb[224].mxu0 %v16957_v10 }
 0x572   : > { %6294 = vmatprep.mubr.f32.mxu1 %v5168_v19  ;;  %12583 = vmatprep.mubr.f32.mxu0 %v16962_v39  ;;  %v13315_v19 = vpack.c.bf16 %v5913_v5, %v5912_v42  ;;  %v5918_v42 = vld [vmem:[#allocation5 + $0xb90] sm:$0xff]  ;;  %v5919_v5 = vld [vmem:[#allocation5 + $0xb98] sm:$0xff] }
 0x573   : > { %13310 = vmatpush1.bf16.msra.mxu1 %v13309_v48  ;;  %v16973_v48 = vld [vmem:[#allocation2 + $0x18a] sm:$0xff] }
 0x574   : > { %13311 = vmatprep.subr.bf16.mxu1 %v18745_v12 }
 0x575   : > { %6295 = vmatmul.mubr.f32.gmra.mrb[106].mxu1 %v16820_v44  ;;  %12584 = vmatmul.mubr.f32.gmra.mrb[226].mxu0 %v16965_v24 }
 0x576   : > { %6299 = vmatprep.mubr.f32.mxu1 %v5169_v2  ;;  %12586 = vmatprep.mubr.f32.mxu0 %v16970_v21  ;;  %v5916_v2 = vld [vmem:[#allocation5 + $0xb80] sm:$0xff]  ;;  %v5917_v21 = vld [vmem:[#allocation5 + $0xb88] sm:$0xff] }
 0x577   : > { %13313 = vmatpush1.bf16.msra.mxu1 %v13312_v30  ;;  %v13321_v30 = vpack.c.bf16 %v5917_v21, %v5916_v2  ;;  %v5923_v21 = vld [vmem:[#allocation5 + $0xbb8] sm:$0xff]  ;;  %v5925_v2 = vld [vmem:[#allocation5 + $0xbc8] sm:$0xff] }
 0x578   : > { %13314 = vmatprep.subr.bf16.mxu1 %v18745_v12 }
 0x579   : > { %6300 = vmatmul.mubr.f32.gmra.mrb[108].mxu1 %v16826_v37  ;;  %12587 = vmatmul.mubr.f32.gmra.mrb[228].mxu0 %v16973_v48 }
 0x57a   : > { %6304 = vmatprep.mubr.f32.mxu1 %v16694_v18  ;;  %v13324_v18 = vpack.c.bf16 %v5919_v5, %v5918_v42  ;;  %v5927_v42 = vld [vmem:[#allocation5 + $0xbd8] sm:$0xff]  ;;  %v5928_v5 = vld [vmem:[#allocation5 + $0xbe0] sm:$0xff] }
 0x57b   : > { %13316 = vmatpush1.bf16.msra.mxu1 %v13315_v19  ;;  %v5920_v19 = vld [vmem:[#allocation5 + $0xba0] sm:$0xff] }
 0x57c   : > { %13317 = vmatprep.subr.bf16.mxu1 %v18745_v12 }
 0x57d   : > { %6305 = vmatmul.mubr.f32.gmra.mrb[110].mxu1 %v16833_v59 }
 0x57e   : > { %6309 = vmatprep.mubr.f32.mxu1 %v16702_v0  ;;  %v13327_v0 = vpack.c.bf16 %v5921_v36, %v5920_v19  ;;  %v5930_v19 = vld [vmem:[#allocation5 + $0xbf0] sm:$0xff]  ;;  %v5931_v36 = vld [vmem:[#allocation5 + $0xbf8] sm:$0xff] }
 0x57f   : > { %13319 = vmatpush1.bf16.msra.mxu1 %v13318_v63  ;;  %v5922_v63 = vld [vmem:[#allocation5 + $0xbb0] sm:$0xff] }
 0x580   : > { %13320 = vmatprep.subr.bf16.mxu1 %v18745_v12 }
 0x581   : > { %6310 = vmatmul.mubr.f32.gmra.mrb[112].mxu1 %v16839_v33 }
 0x582   : > { %6314 = vmatprep.mubr.f32.mxu1 %v16710_v28  ;;  %v13330_v28 = vpack.c.bf16 %v5923_v21, %v5922_v63  ;;  %v5227_v63 = vld [vmem:[#allocation2 + $0x19] sm:$0xff] }
 0x583   : > { %13322 = vmatpush1.bf16.msra.mxu1 %v13321_v30  ;;  %v5926_v30 = vld [vmem:[#allocation5 + $0xbd0] sm:$0xff] }
 0x584   : > { %13323 = vmatprep.subr.bf16.mxu1 %v18745_v12 }
 0x585   : > { %6315 = vmatmul.mubr.f32.gmra.mrb[114].mxu1 %v16846_v25 }
 0x586   : > { %6319 = vmatprep.mubr.f32.mxu1 %v16718_v31  ;;  %v13333_v31 = vpack.c.bf16 %v5925_v2, %v5924_v22  ;;  %v5228_v2 = vld [vmem:[#allocation2 + $0x21] sm:$0xff] }
 0x587   : > { %13325 = vmatpush1.bf16.msra.mxu1 %v13324_v18  ;;  %v5929_v18 = vld [vmem:[#allocation5 + $0xbe8] sm:$0xff] }
 0x588   : > { %13326 = vmatprep.subr.bf16.mxu1 %v18745_v12 }
 0x589   : > { %6320 = vmatmul.mubr.f32.gmra.mrb[116].mxu1 %v16852_v34 }
 0x58a   : > { %6324 = vmatprep.mubr.f32.mxu1 %v16727_v52  ;;  %v13336_v52 = vpack.c.bf16 %v5927_v42, %v5926_v30  ;;  %v18771_v30 = vld [vmem:[#allocation13_spill] sm:$0xff] }
 0x58b   : > { %13328 = vmatpush1.bf16.msra.mxu1 %v13327_v0  ;;  %v5229_v42 = vld [vmem:[#allocation2 + $0x31] sm:$0xff] }
 0x58c   : > { %13329 = vmatprep.subr.bf16.mxu1 %v18745_v12 }
 0x58d   : > { %6325 = vmatmul.mubr.f32.gmra.mrb[118].mxu1 %v16859_v11 }
 0x58e   : > { %6329 = vmatprep.mubr.f32.mxu1 %v16735_v13  ;;  %v13339_v13 = vpack.c.bf16 %v5929_v18, %v5928_v5  ;;  %v5230_v18 = vld [vmem:[#allocation2 + $0x39] sm:$0xff] }
 0x58f   : > { %13331 = vmatpush1.bf16.msra.mxu1 %v13330_v28  ;;  %v18770_v28 = vld [vmem:[#allocation12_spill] sm:$0xff] }
 0x590   : > { %13332 = vmatprep.subr.bf16.mxu1 %v18745_v12 }
 0x591   : > { %6330 = vmatmul.mubr.f32.gmra.mrb[120].mxu1 %v16865_v1 }
 0x592   : > { %6334 = vmatprep.mubr.f32.mxu1 %v16743_v47  ;;  %v13342_v47 = vpack.c.bf16 %v5931_v36, %v5930_v19  ;;  %v5231_v36 = vld [vmem:[#allocation2 + $0x49] sm:$0xff] }
 0x593   : > { %13334 = vmatpush1.bf16.msra.mxu1 %v13333_v31 }
 0x594   : > { %13335 = vmatprep.subr.bf16.mxu1 %v18745_v12 }
 0x595   : > { %6335 = vmatmul.mubr.f32.gmra.mrb[122].mxu1 %v16872_v4 }
 0x596   : > { %6339 = vmatprep.mubr.f32.mxu1 %v16751_v17 }
 0x597   : > { %13337 = vmatpush1.bf16.msra.mxu1 %v13336_v52  ;;  %v18772_v52 = vld [vmem:[#allocation14_spill] sm:$0xff] }
 0x598   : > { %13338 = vmatprep.subr.bf16.mxu1 %v18745_v12 }
 0x599   : > { %6340 = vmatmul.mubr.f32.gmra.mrb[124].mxu1 %v16878_v49 }
 0x59a   : > { %6344 = vmatprep.mubr.f32.mxu1 %v16759_v40 }
 0x59b   : > { %13340 = vmatpush1.bf16.msra.mxu1 %v13339_v13  ;;  %v18773_v13 = vld [vmem:[#allocation15_spill] sm:$0xff] }
 0x59c   : > { %13341 = vmatprep.subr.bf16.mxu1 %v18745_v12 }
 0x59d   : > { %6345 = vmatmul.mubr.f32.gmra.mrb[126].mxu1 %v16885_v35 }
 0x59e   : > { %6349 = vmatprep.mubr.f32.mxu1 %v16767_v3 }
 0x59f   : > { %13343 = vmatpush1.bf16.msra.mxu1 %v13342_v47  ;;  %v18774_v47 = vld [vmem:[#allocation16_spill] sm:$0xff] }
 0x5a0   : > { %13872 = vmatprep.subr.bf16.mxu1 %v18745_v12 }
 0x5a1   : > { %6350 = vmatmul.mubr.f32.gmra.mrb[128].mxu1 %v16893_v41 }
 0x5a2   : > { %6354 = vmatprep.mubr.f32.mxu1 %v16775_v15 }
 0x5a5   : > { %6355 = vmatmul.mubr.f32.gmra.mrb[130].mxu1 %v16900_v58 }
 0x5a6   : > { %6359 = vmatprep.mubr.f32.mxu1 %v16783_v50 }
 0x5a9   : > { %6360 = vmatmul.mubr.f32.gmra.mrb[132].mxu1 %v16909_v32 }
 0x5aa   : > { %6364 = vmatprep.mubr.f32.mxu1 %v16791_v38 }
 0x5ad   : > { %6365 = vmatmul.mubr.f32.gmra.mrb[134].mxu1 %v16915_v60 }
 0x5ae   : > { %6369 = vmatprep.mubr.f32.mxu1 %v16799_v61 }
 0x5b1   : > { %6370 = vmatmul.mubr.f32.gmra.mrb[136].mxu1 %v16921_v55 }
 0x5b2   : > { %6374 = vmatprep.mubr.f32.mxu1 %v16807_v51 }
 0x5b5   : > { %6375 = vmatmul.mubr.f32.gmra.mrb[138].mxu1 %v16924_v57 }
 0x5b6   : > { %6379 = vmatprep.mubr.f32.mxu1 %v16818_v62 }
 0x5b9   : > { %6380 = vmatmul.mubr.f32.gmra.mrb[140].mxu1 %v16927_v20 }
 0x5ba   : > { %6384 = vmatprep.mubr.f32.mxu1 %v16831_v16 }
 0x5bd   : > { %6385 = vmatmul.mubr.f32.gmra.mrb[142].mxu1 %v16931_v27 }
 0x5be   : > { %6389 = vmatprep.mubr.f32.mxu1 %v16844_v26  ;;  %v17044_v26 = vld [vmem:[#allocation2 + $0x180] sm:$0xff] }
 0x5c1   : > { %6390 = vmatmul.mubr.f32.gmra.mrb[144].mxu1 %v16934_v29 }
 0x5c2   : > { %6394 = vmatprep.mubr.f32.mxu1 %v16857_v8 }
 0x5c4   : > { %v17025_v17 = vpop.f32.mrb[160].mxu0 }
 0x5c5   : > { %6395 = vmatmul.mubr.f32.gmra.mrb[146].mxu1 %v16939_v43  ;;  %v6723_v40 = vpop.f32.mrb[161].mxu0 }
 0x5c6   : > { %6399 = vmatprep.mubr.f32.mxu1 %v16870_v9 }
 0x5c8   : > { %v17029_v3 = vpop.f32.mrb[162].mxu0 }
 0x5c9   : > { %6400 = vmatmul.mubr.f32.gmra.mrb[148].mxu1 %v16944_v7  ;;  %v6728_v15 = vpop.f32.mrb[163].mxu0 }
 0x5ca   : > { %6404 = vmatprep.mubr.f32.mxu1 %v16883_v46  ;;  %v17050_v46 = vld [vmem:[#allocation2 + $0x188] sm:$0xff]  ;;  %v5232_v15 = vld [vmem:[#allocation2 + $0x51] sm:$0xff] }
 0x5cc   : > { %v17033_v50 = vpop.f32.mrb[164].mxu0 }
 0x5cd   : > { %6405 = vmatmul.mubr.f32.gmra.mrb[150].mxu1 %v16949_v53  ;;  %v6733_v38 = vpop.f32.mrb[165].mxu0 }
 0x5ce   : > { %6409 = vmatprep.mubr.f32.mxu1 %v16898_v23  ;;  %v18775_v38 = vld [vmem:[#allocation17_spill] sm:$0xff] }
 0x5d0   : > { %v17037_v61 = vpop.f32.mrb[166].mxu0 }
 0x5d1   : > { %6410 = vmatmul.mubr.f32.gmra.mrb[152].mxu1 %v16954_v54  ;;  %v6738_v51 = vpop.f32.mrb[167].mxu0 }
 0x5d2   : > { %6414 = vmatprep.mubr.f32.mxu1 %v16913_v45 }
 0x5d4   : > { %v17041_v62 = vpop.f32.mrb[168].mxu0 }
 0x5d5   : > { %6415 = vmatmul.mubr.f32.gmra.mrb[154].mxu1 %v16957_v10  ;;  %v6743_v16 = vpop.f32.mrb[169].mxu0 }
 0x5d6   : > { %6419 = vmatprep.mubr.f32.mxu1 %v17044_v26  ;;  %v5233_v16 = vld [vmem:[#allocation2 + $0x61] sm:$0xff] }
 0x5d8   : > { %v17047_v8 = vpop.f32.mrb[170].mxu0 }
 0x5d9   : > { %6420 = vmatmul.mubr.f32.gmra.mrb[156].mxu1 %v16962_v39  ;;  %v6748_v9 = vpop.f32.mrb[171].mxu0 }
 0x5da   : > { %6424 = vmatprep.mubr.f32.mxu1 %v17050_v46  ;;  %v18776_v9 = vld [vmem:[#allocation18_spill] sm:$0xff] }
 0x5dc   : > { %v17053_v23 = vpop.f32.mrb[172].mxu0 }
 0x5dd   : > { %6425 = vmatmul.mubr.f32.gmra.mrb[158].mxu1 %v16965_v24  ;;  %v6753_v45 = vpop.f32.mrb[173].mxu0 }
 0x5de   : > { %6494 = vmatprep.mubr.f32.mxu1 %v16937_v6  ;;  %v8114_v45 = vld [vmem:[#allocation5 + $0xd80] sm:$0xff] }
 0x5e0   : > { %v17057_v0 = vpop.f32.mrb[174].mxu0 }
 0x5e1   : > { %6495 = vmatmul.mubr.f32.vlgmr.msra.gmra.mrb[96].mxu1 %v5227_v63  ;;  %v6758_v21 = vpop.f32.mrb[175].mxu0  ;;  %v8115_v63 = vld [vmem:[#allocation5 + $0xd88] sm:$0xff] }
 0x5e2   : > { %6499 = vmatprep.mubr.f32.mxu1 %v16947_v56  ;;  %13888 = vmatpush1.bf16.msra.mxu1 %v18770_v28  ;;  %v13425_v21 = vpack.c.bf16 %v8115_v63, %v8114_v45  ;;  %v5237_v63 = vld [vmem:[#allocation2 + $0x91] sm:$0xff] }
 0x5e3   : > { %13873 = vmatprep.subr.bf16.mxu1 %v18745_v12 }
 0x5e4   : > { %v17062_v22 = vpop.f32.mrb[176].mxu0  ;;  %13426 = vmatpush1.bf16.msra.mxu0 %v13425_v21 }
 0x5e5   : > { %6500 = vmatmul.mubr.f32.gmra.mrb[98].mxu1 %v5228_v2  ;;  %v6763_v31 = vpop.f32.mrb[177].mxu0  ;;  %13427 = vmatprep.subr.bf16.mxu0 %v18745_v12 }
 0x5e6   : > { %6504 = vmatprep.mubr.f32.mxu1 %v16813_v14  ;;  %13889 = vmatpush1.bf16.msra.mxu1 %v18771_v30  ;;  %v18777_v31 = vld [vmem:[#allocation19_spill] sm:$0xff]  ;;  %v8116_v30 = vld [vmem:[#allocation5 + $0xd90] sm:$0xff] }
 0x5e7   : > { %13874 = vmatprep.subr.bf16.mxu1 %v18745_v12 }
 0x5e8   : > { %v17067_v6 = vpop.f32.mrb[178].mxu0 }
 0x5e9   : > { %6505 = vmatmul.mubr.f32.gmra.mrb[100].mxu1 %v5229_v42  ;;  %v6768_v56 = vpop.f32.mrb[179].mxu0  ;;  %v8117_v42 = vld [vmem:[#allocation5 + $0xd98] sm:$0xff] }
 0x5ea   : > { %6509 = vmatprep.mubr.f32.mxu1 %v16820_v44  ;;  %13890 = vmatpush1.bf16.msra.mxu1 %v18772_v52  ;;  %v5235_v52 = vld [vmem:[#allocation2 + $0x79] sm:$0xff] }
 0x5eb   : > { %13875 = vmatprep.subr.bf16.mxu1 %v18745_v12 }
 0x5ec   : > { %v17072_v5 = vpop.f32.mrb[180].mxu0 }
 0x5ed   : > { %6510 = vmatmul.mubr.f32.gmra.mrb[102].mxu1 %v5230_v18  ;;  %v6773_v14 = vpop.f32.mrb[181].mxu0 }
 0x5ee   : > { %6514 = vmatprep.mubr.f32.mxu1 %v16826_v37  ;;  %13891 = vmatpush1.bf16.msra.mxu1 %v18773_v13  ;;  %v18778_v14 = vld [vmem:[#allocation21_spill] sm:$0xff]  ;;  %v8119_v13 = vld [vmem:[#allocation5 + $0xda8] sm:$0xff] }
 0x5ef   : > { %13876 = vmatprep.subr.bf16.mxu1 %v18745_v12 }
 0x5f0   : > { %v17077_v19 = vpop.f32.mrb[182].mxu0 }
 0x5f1   : > { %6515 = vmatmul.mubr.f32.gmra.mrb[104].mxu1 %v5231_v36  ;;  %v6778_v44 = vpop.f32.mrb[183].mxu0 }
 0x5f2   : > { %6519 = vmatprep.mubr.f32.mxu1 %v16833_v59  ;;  %13892 = vmatpush1.bf16.msra.mxu1 %v18774_v47  ;;  %v5236_v47 = vld [vmem:[#allocation2 + $0x81] sm:$0xff] }
 0x5f3   : > { %13877 = vmatprep.subr.bf16.mxu1 %v18745_v12 }
 0x5f4   : > { %v17082_v40 = vpop.f32.mrb[184].mxu0 }
 0x5f5   : > { %6520 = vmatmul.mubr.f32.gmra.mrb[106].mxu1 %v5232_v15  ;;  %v6783_v37 = vpop.f32.mrb[185].mxu0 }
 0x5f6   : > { %6524 = vmatprep.mubr.f32.mxu1 %v16839_v33  ;;  %13893 = vmatpush1.bf16.msra.mxu1 %v18775_v38  ;;  %v5234_v33 = vld [vmem:[#allocation2 + $0x69] sm:$0xff]  ;;  %v5513_v37 = vld [vmem:[#allocation2 + $0x19a] sm:$0xff] }
 0x5f7   : > { %13878 = vmatprep.subr.bf16.mxu1 %v18745_v12  ;;  %v18779_v38 = vld [vmem:[#allocation30_spill] sm:$0xff]  ;;  %12589 = vmatprep.mubr.f32.mxu0 %v5513_v37 }
 0x5f8   : > { %v17087_v51 = vpop.f32.mrb[186].mxu0 }
 0x5f9   : > { %6525 = vmatmul.mubr.f32.gmra.mrb[108].mxu1 %v5233_v16  ;;  %v6788_v59 = vpop.f32.mrb[187].mxu0  ;;  %v8120_v16 = vld [vmem:[#allocation5 + $0xdb0] sm:$0xff] }
 0x5fa   : > { %6529 = vmatprep.mubr.f32.mxu1 %v16846_v25  ;;  %13894 = vmatpush1.bf16.msra.mxu1 %v18776_v9  ;;  %v13428_v25 = vpack.c.bf16 %v8117_v42, %v8116_v30  ;;  %v8121_v59 = vld [vmem:[#allocation5 + $0xdb8] sm:$0xff] }
 0x5fb   : > { %13879 = vmatprep.subr.bf16.mxu1 %v18745_v12  ;;  %v13434_v9 = vpack.c.bf16 %v8121_v59, %v8120_v16  ;;  %v5238_v42 = vld [vmem:[#allocation2 + $0x99] sm:$0xff]  ;;  %v5240_v59 = vld [vmem:[#allocation2 + $0xb1] sm:$0xff] }
 0x5fc   : > { %v17092_v28 = vpop.f32.mrb[188].mxu0  ;;  %13429 = vmatpush1.bf16.msra.mxu0 %v13428_v25 }
 0x5fd   : > { %6530 = vmatmul.mubr.f32.gmra.mrb[110].mxu1 %v5234_v33  ;;  %v6793_v2 = vpop.f32.mrb[189].mxu0  ;;  %13430 = vmatprep.subr.bf16.mxu0 %v18745_v12  ;;  %v8122_v33 = vld [vmem:[#allocation5 + $0xdc0] sm:$0xff] }
 0x5fe   : > { %6534 = vmatprep.mubr.f32.mxu1 %v16852_v34  ;;  %13895 = vmatpush1.bf16.msra.mxu1 %v18777_v31  ;;  %v8118_v34 = vld [vmem:[#allocation5 + $0xda0] sm:$0xff]  ;;  %v8123_v2 = vld [vmem:[#allocation5 + $0xdc8] sm:$0xff] }
 0x5ff   : > { %13880 = vmatprep.subr.bf16.mxu1 %v18745_v12  ;;  %v13431_v36 = vpack.c.bf16 %v8119_v13, %v8118_v34  ;;  %v13437_v31 = vpack.c.bf16 %v8123_v2, %v8122_v33  ;;  %v8126_v34 = vld [vmem:[#allocation5 + $0xde0] sm:$0xff]  ;;  %v8127_v13 = vld [vmem:[#allocation5 + $0xde8] sm:$0xff] }
 0x600   : > { %v17098_v56 = vpop.f32.mrb[190].mxu0  ;;  %v13443_v37 = vpack.c.bf16 %v8127_v13, %v8126_v34  ;;  %v5241_v2 = vld [vmem:[#allocation2 + $0xc1] sm:$0xff]  ;;  %v18786_v13 = vld [vmem:[#allocation36_spill] sm:$0xff] }
 0x601   : > { %6535 = vmatmul.mubr.f32.gmra.mrb[112].mxu1 %v5235_v52  ;;  %v6798_v18 = vpop.f32.mrb[191].mxu0  ;;  %13432 = vmatpush1.bf16.msra.mxu0 %v13431_v36  ;;  %v8124_v52 = vld [vmem:[#allocation5 + $0xdd0] sm:$0xff] }
 0x602   : > { %6539 = vmatprep.mubr.f32.mxu1 %v16859_v11  ;;  %13896 = vmatpush1.bf16.msra.mxu1 %v18778_v14  ;;  %v5514_v11 = vld [vmem:[#allocation2 + $0x1a2] sm:$0xff]  ;;  %v8125_v18 = vld [vmem:[#allocation5 + $0xdd8] sm:$0xff] }
 0x603   : > { %13881 = vmatprep.subr.bf16.mxu1 %v18745_v12  ;;  %12590 = vmatmul.mubr.f32.gmra.mrb[230].mxu0 %v5514_v11  ;;  %v13440_v14 = vpack.c.bf16 %v8125_v18, %v8124_v52  ;;  %v8129_v11 = vld [vmem:[#allocation5 + $0xdf8] sm:$0xff] }
 0x604   : > { %v17104_v44 = vpop.f32.mrb[192].mxu0  ;;  %13433 = vmatprep.subr.bf16.mxu0 %v18745_v12  ;;  %v8133_v52 = vld [vmem:[#allocation5 + $0xe18] sm:$0xff] }
 0x605   : > { %6540 = vmatmul.mubr.f32.gmra.mrb[114].mxu1 %v5236_v47  ;;  %v6803_v15 = vpop.f32.mrb[193].mxu0  ;;  %13435 = vmatpush1.bf16.msra.mxu0 %v13434_v9  ;;  %v5239_v47 = vld [vmem:[#allocation2 + $0xa9] sm:$0xff] }
 0x606   : > { %6544 = vmatprep.mubr.f32.mxu1 %v16865_v1  ;;  %13897 = vmatpush1.bf16.msra.mxu1 %v18779_v38  ;;  %v18780_v1 = vld [vmem:[#allocation31_spill] sm:$0xff]  ;;  %v18783_v38 = vld [vmem:[#allocation33_spill] sm:$0xff] }
 0x607   : > { %13882 = vmatprep.subr.bf16.mxu1 %v18745_v12  ;;  %13436 = vmatprep.subr.bf16.mxu0 %v18745_v12 }
 0x608   : > { %v17109_v45 = vpop.f32.mrb[194].mxu0 }
 0x609   : > { %6545 = vmatmul.mubr.f32.gmra.mrb[116].mxu1 %v5237_v63  ;;  %v6808_v21 = vpop.f32.mrb[195].mxu0  ;;  %13438 = vmatpush1.bf16.msra.mxu0 %v13437_v31 }
 0x60a   : > { %6549 = vmatprep.mubr.f32.mxu1 %v16872_v4  ;;  %13898 = vmatpush1.bf16.msra.mxu1 %v18780_v1  ;;  %v18781_v4 = vld [vmem:[#allocation32_spill] sm:$0xff]  ;;  %v18784_v21 = vld [vmem:[#allocation34_spill] sm:$0xff] }
 0x60b   : > { %13883 = vmatprep.subr.bf16.mxu1 %v18745_v12  ;;  %13439 = vmatprep.subr.bf16.mxu0 %v18745_v12  ;;  %v8131_v1 = vld [vmem:[#allocation5 + $0xe08] sm:$0xff] }
 0x60c   : > { %v17116_v30 = vpop.f32.mrb[196].mxu0 }
 0x60d   : > { %6550 = vmatmul.mubr.f32.gmra.mrb[118].mxu1 %v5238_v42  ;;  %v6813_v25 = vpop.f32.mrb[197].mxu0  ;;  %13441 = vmatpush1.bf16.msra.mxu0 %v13440_v14 }
 0x60e   : > { %6554 = vmatprep.mubr.f32.mxu1 %v16878_v49  ;;  %13899 = vmatpush1.bf16.msra.mxu1 %v18781_v4  ;;  %v8128_v49 = vld [vmem:[#allocation5 + $0xdf0] sm:$0xff]  ;;  %v18785_v25 = vld [vmem:[#allocation35_spill] sm:$0xff] }
 0x60f   : > { %13884 = vmatprep.subr.bf16.mxu1 %v18745_v12  ;;  %13442 = vmatprep.subr.bf16.mxu0 %v18745_v12  ;;  %v13446_v63 = vpack.c.bf16 %v8129_v11, %v8128_v49  ;;  %v5242_v4 = vld [vmem:[#allocation2 + $0xc9] sm:$0xff] }
 0x610   : > { %v17122_v36 = vpop.f32.mrb[198].mxu0  ;;  %v8136_v11 = vld [vmem:[#allocation5 + $0xe30] sm:$0xff] }
 0x611   : > { %18782 = vst [vmem:[#allocation39_spill] sm:$0xff] %v17122_v36  ;;  %6555 = vmatmul.mubr.f32.gmra.mrb[120].mxu1 %v5239_v47  ;;  %v6818_v15 = vpop.f32.mrb[199].mxu0  ;;  %13444 = vmatpush1.bf16.msra.mxu0 %v13443_v37  ;;  %v8135_v47 = vld [vmem:[#allocation5 + $0xe28] sm:$0xff]  ;;  %v5243_v37 = vld [vmem:[#allocation2 + $0xd9] sm:$0xff] }
 0x612   : > { %6559 = vmatprep.mubr.f32.mxu1 %v16885_v35  ;;  %13900 = vmatpush1.bf16.msra.mxu1 %v18783_v38  ;;  %v8130_v35 = vld [vmem:[#allocation5 + $0xe00] sm:$0xff]  ;;  %v8247_v36 = vld [vmem:[#allocation5 + $0x11a8] sm:$0xff] }
 0x613   : > { %13885 = vmatprep.subr.bf16.mxu1 %v18745_v12  ;;  %13445 = vmatprep.subr.bf16.mxu0 %v18745_v12  ;;  %v13449_v42 = vpack.c.bf16 %v8131_v1, %v8130_v35  ;;  %v8138_v1 = vld [vmem:[#allocation5 + $0xe40] sm:$0xff] }
 0x614   : > { %v17128_v16 = vpop.f32.mrb[200].mxu0 }
 0x615   : > { %6560 = vmatmul.mubr.f32.gmra.mrb[122].mxu1 %v5240_v59  ;;  %v17130_v9 = vpop.f32.mrb[201].mxu0  ;;  %13447 = vmatpush1.bf16.msra.mxu0 %v13446_v63  ;;  %v5244_v63 = vld [vmem:[#allocation2 + $0xe1] sm:$0xff] }
 0x616   : > { %6564 = vmatprep.mubr.f32.mxu1 %v16893_v41  ;;  %13901 = vmatpush1.bf16.msra.mxu1 %v18784_v21  ;;  %v8132_v41 = vld [vmem:[#allocation5 + $0xe10] sm:$0xff] }
 0x617   : > { %13886 = vmatprep.subr.bf16.mxu1 %v18745_v12  ;;  %13448 = vmatprep.subr.bf16.mxu0 %v18745_v12  ;;  %v13452_v34 = vpack.c.bf16 %v8133_v52, %v8132_v41 }
 0x618   : > { %v17136_v33 = vpop.f32.mrb[202].mxu0 }
 0x619   : > { %6565 = vmatmul.mubr.f32.gmra.mrb[124].mxu1 %v5241_v2  ;;  %v17138_v31 = vpop.f32.mrb[203].mxu0  ;;  %13450 = vmatpush1.bf16.msra.mxu0 %v13449_v42  ;;  %v8139_v2 = vld [vmem:[#allocation5 + $0xe48] sm:$0xff] }
 0x61a   : > { %6569 = vmatprep.mubr.f32.mxu1 %v16900_v58  ;;  %13902 = vmatpush1.bf16.msra.mxu1 %v18785_v25  ;;  %v8134_v58 = vld [vmem:[#allocation5 + $0xe20] sm:$0xff]  ;;  %v13461_v41 = vpack.c.bf16 %v8139_v2, %v8138_v1  ;;  %v5248_v1 = vld [vmem:[#allocation2 + $0x111] sm:$0xff] }
 0x61b   : > { %13887 = vmatprep.subr.bf16.mxu1 %v18745_v12  ;;  %13451 = vmatprep.subr.bf16.mxu0 %v18745_v12  ;;  %v13455_v49 = vpack.c.bf16 %v8135_v47, %v8134_v58 }
 0x61c   : > { %v17144_v18 = vpop.f32.mrb[204].mxu0 }
 0x61d   : > { %6570 = vmatmul.mubr.f32.gmra.mrb[126].mxu1 %v5242_v4  ;;  %v17146_v14 = vpop.f32.mrb[205].mxu0  ;;  %13453 = vmatpush1.bf16.msra.mxu0 %v13452_v34  ;;  %v5246_v4 = vld [vmem:[#allocation2 + $0xf9] sm:$0xff]  ;;  %v8140_v34 = vld [vmem:[#allocation5 + $0xe50] sm:$0xff] }
 0x61e   : > { %6574 = vmatprep.mubr.f32.mxu1 %v16909_v32  ;;  %13903 = vmatpush1.bf16.msra.mxu1 %v18786_v13  ;;  %v8137_v32 = vld [vmem:[#allocation5 + $0xe38] sm:$0xff] }
 0x61f   : > { %13454 = vmatprep.subr.bf16.mxu0 %v18745_v12  ;;  %v13458_v35 = vpack.c.bf16 %v8137_v32, %v8136_v11  ;;  %v8141_v13 = vld [vmem:[#allocation5 + $0xe58] sm:$0xff]  ;;  %v8143_v11 = vld [vmem:[#allocation5 + $0xe68] sm:$0xff]  ;;  %v8242_v32 = vld [vmem:[#allocation5 + $0x1180] sm:$0xff] }
 0x620   : > { %v17151_v15 = vpop.f32.mrb[206].mxu0  ;;  %v13464_v58 = vpack.c.bf16 %v8141_v13, %v8140_v34  ;;  %v5249_v13 = vld [vmem:[#allocation2 + $0x121] sm:$0xff] }
 0x621   : > { %6575 = vmatmul.mubr.f32.gmra.mrb[128].mxu1 %v5243_v37  ;;  %v17153_v38 = vpop.f32.mrb[207].mxu0  ;;  %13456 = vmatpush1.bf16.msra.mxu0 %v13455_v49  ;;  %v5247_v37 = vld [vmem:[#allocation2 + $0x109] sm:$0xff]  ;;  %v8142_v49 = vld [vmem:[#allocation5 + $0xe60] sm:$0xff] }
 0x622   : > { %6579 = vmatprep.mubr.f32.mxu1 %v16915_v60  ;;  %13457 = vmatprep.subr.bf16.mxu0 %v18745_v12  ;;  %v5245_v60 = vld [vmem:[#allocation2 + $0xf1] sm:$0xff] }
 0x624   : > { %v17157_v59 = vpop.f32.mrb[208].mxu0 }
 0x625   : > { %6580 = vmatmul.mubr.f32.gmra.mrb[130].mxu1 %v5244_v63  ;;  %v17159_v21 = vpop.f32.mrb[209].mxu0  ;;  %13459 = vmatpush1.bf16.msra.mxu0 %v13458_v35  ;;  %v13467_v63 = vpack.c.bf16 %v8143_v11, %v8142_v49  ;;  %v5250_v49 = vld [vmem:[#allocation2 + $0x129] sm:$0xff]  ;;  %v17198_v11 = vld [vmem:[#allocation2] sm:$0xff] }
 0x626   : > { %6584 = vmatprep.mubr.f32.mxu1 %v16921_v55  ;;  %13460 = vmatprep.subr.bf16.mxu0 %v18745_v12 }
 0x628   : > { %v17163_v42 = vpop.f32.mrb[210].mxu0 }
 0x629   : > { %6585 = vmatmul.mubr.f32.gmra.mrb[132].mxu1 %v5245_v60  ;;  %v17165_v25 = vpop.f32.mrb[211].mxu0  ;;  %13462 = vmatpush1.bf16.msra.mxu0 %v13461_v41  ;;  %v8145_v41 = vld [vmem:[#allocation5 + $0xe78] sm:$0xff] }
 0x62a   : > { %6589 = vmatprep.mubr.f32.mxu1 %v16924_v57  ;;  %13463 = vmatprep.subr.bf16.mxu0 %v18745_v12 }
 0x62c   : > { %v17169_v52 = vpop.f32.mrb[212].mxu0 }
 0x62d   : > { %6590 = vmatmul.mubr.f32.gmra.mrb[134].mxu1 %v5246_v4  ;;  %v17171_v55 = vpop.f32.mrb[213].mxu0  ;;  %13465 = vmatpush1.bf16.msra.mxu0 %v13464_v58 }
 0x62e   : > { %6594 = vmatprep.mubr.f32.mxu1 %v16927_v20  ;;  %13466 = vmatprep.subr.bf16.mxu0 %v18745_v12  ;;  %v8243_v20 = vld [vmem:[#allocation5 + $0x1188] sm:$0xff] }
 0x62f   : > { %v17183_v2 = vpack.c.bf16 %v8243_v20, %v8242_v32  ;;  %v7314_v20 = vld [vmem:[#allocation3 + $0x9] sm:$0xff] }
 0x630   : > { %v17175_v47 = vpop.f32.mrb[214].mxu0 }
 0x631   : > { %6595 = vmatmul.mubr.f32.gmra.mrb[136].mxu1 %v5247_v37  ;;  %v17177_v57 = vpop.f32.mrb[215].mxu0  ;;  %13468 = vmatpush1.bf16.msra.mxu0 %v13467_v63  ;;  %v7313_v37 = vld [vmem:[#allocation3 + $0x1] sm:$0xff] }
 0x632   : > { %6599 = vmatprep.mubr.f32.mxu1 %v16931_v27  ;;  %13617 = vmatprep.subr.bf16.mxu1 %v17183_v2  ;;  %v8144_v27 = vld [vmem:[#allocation5 + $0xe70] sm:$0xff] }
 0x633   : > { %13469 = vmatprep.subr.bf16.mxu0 %v18745_v12  ;;  %v13470_v4 = vpack.c.bf16 %v8145_v41, %v8144_v27  ;;  %8322 = vmatprep.mubr.f32.mxu0 %v7313_v37  ;;  %v5252_v41 = vld [vmem:[#allocation2 + $0x141] sm:$0xff]  ;;  %v5253_v37 = vld [vmem:[#allocation2 + $0x151] sm:$0xff] }
 0x634   : > { %v17181_v35 = vpop.f32.mrb[216].mxu0 }
 0x635   : > { %6600 = vmatmul.mubr.f32.gmra.mrb[138].mxu1 %v5248_v1  ;;  %v17185_v60 = vpop.f32.mrb[217].mxu0  ;;  %13471 = vmatpush1.bf16.msra.mxu0 %v13470_v4 }
 0x636   : > { %6604 = vmatprep.mubr.f32.mxu1 %v16934_v29  ;;  %13472 = vmatprep.subr.bf16.mxu0 %v18745_v12 }
 0x638   : > { %v17190_v34 = vpop.f32.mrb[218].mxu0  ;;  %8323 = vmatmul.mubr.f32.vlgmr.msra.gmra.mrb[232].mxu0 %v17198_v11 }
 0x639   : > { %18787 = vst [vmem:[#allocation23_spill] sm:$0xff] %v17190_v34  ;;  %6605 = vmatmul.mubr.f32.gmra.mrb[140].mxu1 %v5249_v13  ;;  %v17192_v58 = vpop.f32.mrb[219].mxu0  ;;  %8327 = vmatprep.mubr.f32.mxu0 %v7314_v20  ;;  %v8246_v34 = vld [vmem:[#allocation5 + $0x11a0] sm:$0xff] }
 0x63a   : > { %6609 = vmatprep.mubr.f32.mxu1 %v16939_v43  ;;  %v5251_v43 = vld [vmem:[#allocation2 + $0x139] sm:$0xff] }
 0x63c   : > { %v17196_v29 = vpop.f32.mrb[220].mxu0  ;;  %8328 = vmatmul.mubr.f32.gmra.mrb[234].mxu0 %v17198_v11 }
 0x63d   : > { %18788 = vst [vmem:[#allocation38_spill] sm:$0xff] %v17196_v29  ;;  %6610 = vmatmul.mubr.f32.gmra.mrb[142].mxu1 %v5250_v49  ;;  %v17201_v32 = vpop.f32.mrb[221].mxu0  ;;  %v18801_v29 = vld [vmem:[#allocation37_spill] sm:$0xff] }
 0x63e   : > { %18789 = vst [vmem:[#allocation24_spill] sm:$0xff] %v17201_v32  ;;  %6614 = vmatprep.mubr.f32.mxu1 %v16944_v7  ;;  %v18802_v32 = vmax.f32 %v18801_v29, 0.0  ;;  %v5377_v29 = vld [vmem:[#allocation2 + $0x138] sm:$0xff] }
 0x640   : > { %v17204_v63 = vpop.f32.mrb[222].mxu0 }
 0x641   : > { %18790 = vst [vmem:[#allocation41_spill] sm:$0xff] %v17204_v63  ;;  %6615 = vmatmul.mubr.f32.gmra.mrb[144].mxu1 %v5251_v43  ;;  %v17207_v1 = vpop.f32.mrb[223].mxu0 }
 0x642   : > { %18791 = vst [vmem:[#allocation25_spill] sm:$0xff] %v17207_v1  ;;  %6619 = vmatprep.mubr.f32.mxu1 %v16949_v53  ;;  %v5254_v1 = vld [vmem:[#allocation2 + $0x159] sm:$0xff] }
 0x644   : > { %v17210_v27 = vpop.f32.mrb[224].mxu0 }
 0x645   : > { %18792 = vst [vmem:[#allocation40_spill] sm:$0xff] %v17210_v27  ;;  %6620 = vmatmul.mubr.f32.gmra.mrb[146].mxu1 %v5252_v41  ;;  %v17212_v4 = vpop.f32.mrb[225].mxu0  ;;  %v5255_v27 = vld [vmem:[#allocation2 + $0x169] sm:$0xff] }
 0x646   : > { %18793 = vst [vmem:[#allocation26_spill] sm:$0xff] %v17212_v4  ;;  %6624 = vmatprep.mubr.f32.mxu1 %v16954_v54  ;;  %v5256_v54 = vld [vmem:[#allocation2 + $0x171] sm:$0xff] }
 0x647   : > { %v18799_v4 = vld [vmem:[#allocation20_spill] sm:$0xff] }
 0x648   : > { %v17215_v7 = vpop.f32.mrb[226].mxu0 }
 0x649   : > { %18794 = vst [vmem:[#allocation43_spill] sm:$0xff] %v17215_v7  ;;  %6625 = vmatmul.mubr.f32.gmra.mrb[148].mxu1 %v5253_v37  ;;  %v17217_v20 = vpop.f32.mrb[227].mxu0  ;;  %v18798_v7 = vld [vmem:[#allocation22_spill] sm:$0xff] }
 0x64a   : > { %18795 = vst [vmem:[#allocation27_spill] sm:$0xff] %v17217_v20  ;;  %6629 = vmatprep.mubr.f32.mxu1 %v16957_v10  ;;  %v18800_v20 = vmax.f32 %v18799_v4, 0.0  ;;  %v8244_v10 = vld [vmem:[#allocation5 + $0x1190] sm:$0xff]  ;;  %v5376_v4 = vld [vmem:[#allocation2 + $0x128] sm:$0xff] }
 0x64c   : > { %v17220_v63 = vpop.f32.mrb[228].mxu0 }
 0x64d   : > { %18796 = vst [vmem:[#allocation42_spill] sm:$0xff] %v17220_v63  ;;  %6630 = vmatmul.mubr.f32.gmra.mrb[150].mxu1 %v5254_v1  ;;  %v17222_v53 = vpop.f32.mrb[229].mxu0  ;;  %v8245_v63 = vld [vmem:[#allocation5 + $0x1198] sm:$0xff] }
 0x64e   : > { %18797 = vst [vmem:[#allocation28_spill] sm:$0xff] %v17222_v53  ;;  %6634 = vmatprep.mubr.f32.mxu1 %v16962_v39  ;;  %v13620_v39 = vpack.c.bf16 %v8245_v63, %v8244_v10  ;;  %v5375_v53 = vld [vmem:[#allocation2 + $0x120] sm:$0xff]  ;;  %v8255_v10 = vld [vmem:[#allocation5 + $0x11e8] sm:$0xff] }
 0x64f   : > { %v5378_v63 = vld [vmem:[#allocation2 + $0x140] sm:$0xff] }
 0x651   : > { %6635 = vmatmul.mubr.f32.gmra.mrb[152].mxu1 %v5255_v27 }
 0x652   : > { %6639 = vmatprep.mubr.f32.mxu1 %v16965_v24  ;;  %v13624_v24 = vpack.c.bf16 %v8247_v36, %v8246_v34  ;;  %v5379_v34 = vld [vmem:[#allocation2 + $0x150] sm:$0xff] }
 0x655   : > { %6640 = vmatmul.mubr.f32.gmra.mrb[154].mxu1 %v5256_v54 }
 0x656   : > { %6644 = vmatprep.mubr.f32.mxu1 %v18798_v7  ;;  %v8248_v7 = vld [vmem:[#allocation5 + $0x11b0] sm:$0xff] }
 0x659   : > { %6645 = vmatmul.mubr.f32.gmra.mrb[156].mxu1 %v18800_v20  ;;  %v8249_v20 = vld [vmem:[#allocation5 + $0x11b8] sm:$0xff] }
 0x65a   : > { %6649 = vmatprep.mubr.f32.mxu1 %v16973_v48  ;;  %v13628_v48 = vpack.c.bf16 %v8249_v20, %v8248_v7  ;;  %v8147_v20 = vld [vmem:[#allocation5 + $0xe88] sm:$0xff] }
 0x65d   : > { %6650 = vmatmul.mubr.f32.gmra.mrb[158].mxu1 %v18802_v32  ;;  %v8251_v32 = vld [vmem:[#allocation5 + $0x11c8] sm:$0xff] }
 0x65e   : > { %6819 = vmatprep.mubr.f32.mxu1 %v5249_v13  ;;  %v8250_v13 = vld [vmem:[#allocation5 + $0x11c0] sm:$0xff] }
 0x661   : > { %6820 = vmatmul.mubr.f32.vlgmr.msra.gmra.mrb[136].mxu1 %v5375_v53  ;;  %v8253_v53 = vld [vmem:[#allocation5 + $0x11d8] sm:$0xff] }
 0x662   : > { %6824 = vmatprep.mubr.f32.mxu1 %v5250_v49  ;;  %13619 = vmatpush3.bf16.msra.mxu1 %v17183_v2  ;;  %v13632_v49 = vpack.c.bf16 %v8251_v32, %v8250_v13  ;;  %v8252_v2 = vld [vmem:[#allocation5 + $0x11d0] sm:$0xff]  ;;  %v5447_v13 = vld [vmem:[#allocation2 + $0x181] sm:$0xff]  ;;  %v8149_v32 = vld [vmem:[#allocation5 + $0xe98] sm:$0xff] }
 0x663   : > { %13621 = vmatprep.subr.bf16.mxu1 %v13620_v39  ;;  %v13636_v36 = vpack.c.bf16 %v8253_v53, %v8252_v2  ;;  %v5450_v2 = vld [vmem:[#allocation2 + $0x1a1] sm:$0xff] }
 0x664   : > { %v8150_v53 = vld [vmem:[#allocation5 + $0xea0] sm:$0xff] }
 0x665   : > { %6825 = vmatmul.mubr.f32.gmra.mrb[138].mxu1 %v5376_v4  ;;  %v8257_v4 = vld [vmem:[#allocation5 + $0x11f8] sm:$0xff] }
 0x666   : > { %6829 = vmatprep.mubr.f32.mxu1 %v5251_v43  ;;  %13623 = vmatpush3.bf16.msra.mxu1 %v13620_v39  ;;  %v8254_v43 = vld [vmem:[#allocation5 + $0x11e0] sm:$0xff] }
 0x667   : > { %13625 = vmatprep.subr.bf16.mxu1 %v13624_v24  ;;  %v13640_v39 = vpack.c.bf16 %v8255_v10, %v8254_v43  ;;  %v8153_v43 = vld [vmem:[#allocation5 + $0xeb8] sm:$0xff] }
 0x669   : > { %6830 = vmatmul.mubr.f32.gmra.mrb[140].mxu1 %v5377_v29  ;;  %v15025_v29 = vld [vmem:[#allocation2 + $0x168] sm:$0xff] }
 0x66a   : > { %6834 = vmatprep.mubr.f32.mxu1 %v5252_v41  ;;  %13627 = vmatpush3.bf16.msra.mxu1 %v13624_v24  ;;  %v5380_v41 = vld [vmem:[#allocation2 + $0x158] sm:$0xff]  ;;  %v8256_v24 = vld [vmem:[#allocation5 + $0x11f0] sm:$0xff] }
 0x66b   : > { %13629 = vmatprep.subr.bf16.mxu1 %v13628_v48  ;;  %v13644_v7 = vpack.c.bf16 %v8257_v4, %v8256_v24  ;;  %v8156_v24 = vld [vmem:[#allocation5 + $0xed0] sm:$0xff]  ;;  %v8157_v4 = vld [vmem:[#allocation5 + $0xed8] sm:$0xff] }
 0x66d   : > { %6835 = vmatmul.mubr.f32.gmra.mrb[142].mxu1 %v5378_v63  ;;  %v5448_v63 = vld [vmem:[#allocation2 + $0x189] sm:$0xff] }
 0x66e   : > { %6839 = vmatprep.mubr.f32.mxu1 %v5253_v37  ;;  %13631 = vmatpush3.bf16.msra.mxu1 %v13628_v48  ;;  %v8146_v37 = vld [vmem:[#allocation5 + $0xe80] sm:$0xff] }
 0x66f   : > { %13633 = vmatprep.subr.bf16.mxu1 %v13632_v49  ;;  %v13473_v48 = vpack.c.bf16 %v8147_v20, %v8146_v37  ;;  %v13488_v37 = vpack.c.bf16 %v8157_v4, %v8156_v24  ;;  %v8159_v20 = vld [vmem:[#allocation5 + $0xee8] sm:$0xff] }
 0x671   : > { %6840 = vmatmul.mubr.f32.gmra.mrb[144].mxu1 %v5379_v34  ;;  %13474 = vmatpush1.bf16.msra.mxu0 %v13473_v48 }
 0x672   : > { %6844 = vmatprep.mubr.f32.mxu1 %v5254_v1  ;;  %13635 = vmatpush3.bf16.msra.mxu1 %v13632_v49  ;;  %v15026_v1 = vld [vmem:[#allocation2 + $0x170] sm:$0xff] }
 0x673   : > { %13637 = vmatprep.subr.bf16.mxu1 %v13636_v36  ;;  %13475 = vmatprep.subr.bf16.mxu0 %v18745_v12 }
 0x675   : > { %6845 = vmatmul.mubr.f32.gmra.mrb[146].mxu1 %v5380_v41  ;;  %v8155_v41 = vld [vmem:[#allocation5 + $0xec8] sm:$0xff] }
 0x676   : > { %6849 = vmatprep.mubr.f32.mxu1 %v5255_v27  ;;  %13639 = vmatpush3.bf16.msra.mxu1 %v13636_v36  ;;  %v8148_v27 = vld [vmem:[#allocation5 + $0xe90] sm:$0xff]  ;;  %v8151_v36 = vld [vmem:[#allocation5 + $0xea8] sm:$0xff] }
 0x677   : > { %13641 = vmatprep.subr.bf16.mxu1 %v13640_v39  ;;  %v13476_v49 = vpack.c.bf16 %v8149_v32, %v8148_v27  ;;  %v13479_v34 = vpack.c.bf16 %v8151_v36, %v8150_v53  ;;  %v8163_v27 = vld [vmem:[#allocation5 + $0xf08] sm:$0xff] }
 0x678   : > { %v17251_v36 = vld [vmem:[#allocation9 + $0x2] ss:$0 sm:$0xff] }
 0x679   : > { %6850 = vmatmul.mubr.f32.gmra.mrb[148].mxu1 %v15025_v29  ;;  %13477 = vmatpush1.bf16.msra.mxu0 %v13476_v49  ;;  %v8160_v29 = vld [vmem:[#allocation5 + $0xef0] sm:$0xff] }
 0x67a   : > { %6854 = vmatprep.mubr.f32.mxu1 %v5256_v54  ;;  %13643 = vmatpush3.bf16.msra.mxu1 %v13640_v39  ;;  %v5449_v54 = vld [vmem:[#allocation2 + $0x199] sm:$0xff] }
 0x67b   : > { %13645 = vmatprep.subr.bf16.mxu1 %v13644_v7  ;;  %13478 = vmatprep.subr.bf16.mxu0 %v18745_v12  ;;  %v8154_v39 = vld [vmem:[#allocation5 + $0xec0] sm:$0xff] }
 0x67d   : > { %6855 = vmatmul.mubr.f32.gmra.mrb[150].mxu1 %v15026_v1  ;;  %13480 = vmatpush1.bf16.msra.mxu0 %v13479_v34  ;;  %v8161_v1 = vld [vmem:[#allocation5 + $0xef8] sm:$0xff] }
 0x67e   : > { %6859 = vmatprep.mubr.f32.mxu1 %v5447_v13  ;;  %13647 = vmatpush3.bf16.msra.mxu1 %v13644_v7  ;;  %v8158_v7 = vld [vmem:[#allocation5 + $0xee0] sm:$0xff] }
 0x67f   : > { %13648 = vmatprep.subr.bf16.mxu1 %v18745_v12  ;;  %13481 = vmatprep.subr.bf16.mxu0 %v18745_v12  ;;  %v13491_v48 = vpack.c.bf16 %v8159_v20, %v8158_v7  ;;  %v8162_v13 = vld [vmem:[#allocation5 + $0xf00] sm:$0xff] }
 0x680   : > { %v13497_v32 = vpack.c.bf16 %v8163_v27, %v8162_v13 }
 0x681   : > { %6860 = vmatmul.mubr.f32.gmra.mrb[152].mxu1 %v17044_v26  ;;  %v8152_v26 = vld [vmem:[#allocation5 + $0xeb0] sm:$0xff] }
 0x682   : > { %6864 = vmatprep.mubr.f32.mxu1 %v5448_v63  ;;  %v13482_v10 = vpack.c.bf16 %v8153_v43, %v8152_v26 }
 0x684   : > { %13483 = vmatpush1.bf16.msra.mxu0 %v13482_v10 }
 0x685   : > { %6865 = vmatmul.mubr.f32.gmra.mrb[154].mxu1 %v17050_v46  ;;  %v13485_v46 = vpack.c.bf16 %v8155_v41, %v8154_v39  ;;  %13484 = vmatprep.subr.bf16.mxu0 %v18745_v12 }
 0x686   : > { %6869 = vmatprep.mubr.f32.mxu1 %v5449_v54 }
 0x688   : > { %13486 = vmatpush1.bf16.msra.mxu0 %v13485_v46 }
 0x689   : > { %6870 = vmatmul.mubr.f32.gmra.mrb[156].mxu1 %v17198_v11  ;;  %13487 = vmatprep.subr.bf16.mxu0 %v18745_v12 }
 0x68a   : > { %6874 = vmatprep.mubr.f32.mxu1 %v5450_v2  ;;  %v17248_v2 = vld [vmem:[#allocation7 + $0x2] ss:$0 sm:$0xff] }
 0x68c   : > { %13489 = vmatpush1.bf16.msra.mxu0 %v13488_v37  ;;  %v8165_v37 = vld [vmem:[#allocation5 + $0xf18] sm:$0xff] }
 0x68d   : > { %6875 = vmatmul.mubr.f32.gmra.mrb[158].mxu1 %v17198_v11  ;;  %13490 = vmatprep.subr.bf16.mxu0 %v18745_v12  ;;  %v13494_v11 = vpack.c.bf16 %v8161_v1, %v8160_v29 }
 0x690   : > { %13492 = vmatpush1.bf16.msra.mxu0 %v13491_v48 }
 0x691   : > { %13493 = vmatprep.subr.bf16.mxu0 %v18745_v12 }
 0x694   : > { %13495 = vmatpush1.bf16.msra.mxu0 %v13494_v11 }
 0x695   : > { %13496 = vmatprep.subr.bf16.mxu0 %v18745_v12 }
 0x698   : > { %13498 = vmatpush1.bf16.msra.mxu0 %v13497_v32 }
 0x699   : > { %13499 = vmatprep.subr.bf16.mxu0 %v18745_v12 }
 0x6b4   : > { %v6496_v49 = vpop.f32.mrb[96].mxu1 }
 0x6b5   : > { %v13936_v63 = vadd.f32 %v17025_v17, %v6496_v49  ;;  %v6498_v54 = vpop.f32.mrb[97].mxu1 }
 0x6b7   : > { %v6947_v53 = vadd.f32 %v13936_v63, %v17130_v9  ;;  %v8164_v9 = vld [vmem:[#allocation5 + $0xf10] sm:$0xff] }
 0x6b8   : > { %v6501_v34 = vpop.f32.mrb[98].mxu1  ;;  %v13500_v20 = vpack.c.bf16 %v8165_v37, %v8164_v9 }
 0x6b9   : > { %v7113_v26 = vmul.f32 %v17248_v2, %v6947_v53  ;;  %v13937_v43 = vadd.f32 %v17029_v3, %v6501_v34  ;;  %v6503_v10 = vpop.f32.mrb[99].mxu1  ;;  %v8166_v53 = vld [vmem:[#allocation5 + $0xf20] sm:$0xff]  ;;  %v8167_v34 = vld [vmem:[#allocation5 + $0xf28] sm:$0xff] }
 0x6ba   : > { %13501 = vmatpush1.bf16.msra.mxu0 %v13500_v20  ;;  %v8168_v20 = vld [vmem:[#allocation5 + $0xf30] sm:$0xff] }
 0x6bb   : > { %v7153_v39 = vadd.f32 %v17251_v36, %v7113_v26  ;;  %v6952_v41 = vadd.f32 %v13937_v43, %v17128_v16  ;;  %13502 = vmatprep.subr.bf16.mxu0 %v18745_v12 }
 0x6bc   : > { %v6506_v46 = vpop.f32.mrb[100].mxu1 }
 0x6bd   : > { %v7185_v24 = vmax.f32 %v7153_v39, 0.0  ;;  %v7114_v17 = vmul.f32 %v17248_v2, %v6952_v41  ;;  %v13938_v4 = vadd.f32 %v17033_v50, %v6506_v46  ;;  %v6508_v7 = vpop.f32.mrb[101].mxu1 }
 0x6bf   : > { %7217 = vst [vmem:[#allocation3 + $0x19] sm:$0xff] %v7185_v24  ;;  %v7154_v48 = vadd.f32 %v17251_v36, %v7114_v17  ;;  %v6957_v3 = vadd.f32 %v13938_v4, %v17138_v31  ;;  %8332 = vmatprep.mubr.f32.mxu0 %v7185_v24 }
 0x6c0   : > { %v6511_v29 = vpop.f32.mrb[102].mxu1 }
 0x6c1   : > { %v7186_v1 = vmax.f32 %v7154_v48, 0.0  ;;  %v7115_v16 = vmul.f32 %v17248_v2, %v6957_v3  ;;  %v13939_v11 = vadd.f32 %v17037_v61, %v6511_v29  ;;  %v6513_v13 = vpop.f32.mrb[103].mxu1  ;;  %v13503_v61 = vpack.c.bf16 %v8167_v34, %v8166_v53  ;;  %v8169_v48 = vld [vmem:[#allocation5 + $0xf38] sm:$0xff] }
 0x6c2   : > { %v13506_v29 = vpack.c.bf16 %v8169_v48, %v8168_v20 }
 0x6c3   : > { %7218 = vst [vmem:[#allocation3 + $0x21] sm:$0xff] %v7186_v1  ;;  %v7155_v50 = vadd.f32 %v17251_v36, %v7115_v16  ;;  %v6962_v27 = vadd.f32 %v13939_v11, %v17136_v33  ;;  %13504 = vmatpush1.bf16.msra.mxu0 %v13503_v61  ;;  %v8170_v61 = vld [vmem:[#allocation5 + $0xf40] sm:$0xff] }
 0x6c4   : > { %v6516_v32 = vpop.f32.mrb[104].mxu1  ;;  %13505 = vmatprep.subr.bf16.mxu0 %v18745_v12 }
 0x6c5   : > { %v7187_v49 = vmax.f32 %v7155_v50, 0.0  ;;  %v7116_v31 = vmul.f32 %v17248_v2, %v6962_v27  ;;  %v13940_v63 = vadd.f32 %v17041_v62, %v6516_v32  ;;  %v6518_v54 = vpop.f32.mrb[105].mxu1 }
 0x6c6   : > { %v17268_v26 = vld [vmem:[#allocation3 + $0x18] sm:$0xff] }
 0x6c7   : > { %7219 = vst [vmem:[#allocation3 + $0x31] sm:$0xff] %v7187_v49  ;;  %v7156_v43 = vadd.f32 %v17251_v36, %v7116_v31  ;;  %v6967_v10 = vadd.f32 %v13940_v63, %v17146_v14  ;;  %8333 = vmatmul.mubr.f32.gmra.mrb[236].mxu0 %v17268_v26 }
 0x6c8   : > { %v6521_v33 = vpop.f32.mrb[106].mxu1  ;;  %8337 = vmatprep.mubr.f32.mxu0 %v7186_v1  ;;  %13507 = vmatpush1.bf16.msra.mxu0 %v13506_v29  ;;  %v8172_v29 = vld [vmem:[#allocation5 + $0xf50] sm:$0xff] }
 0x6c9   : > { %v7188_v39 = vmax.f32 %v7156_v43, 0.0  ;;  %v7117_v41 = vmul.f32 %v17248_v2, %v6967_v10  ;;  %v13941_v62 = vadd.f32 %v17047_v8, %v6521_v33  ;;  %v6523_v46 = vpop.f32.mrb[107].mxu1  ;;  %13508 = vmatprep.subr.bf16.mxu0 %v18745_v12  ;;  %v8171_v43 = vld [vmem:[#allocation5 + $0xf48] sm:$0xff] }
 0x6ca   : > { %v17276_v24 = vld [vmem:[#allocation3 + $0x20] sm:$0xff]  ;;  %v13509_v33 = vpack.c.bf16 %v8171_v43, %v8170_v61 }
 0x6cb   : > { %7220 = vst [vmem:[#allocation3 + $0x39] sm:$0xff] %v7188_v39  ;;  %v7157_v17 = vadd.f32 %v17251_v36, %v7117_v41  ;;  %v6972_v14 = vadd.f32 %v13941_v62, %v17144_v18  ;;  %8338 = vmatmul.mubr.f32.gmra.mrb[238].mxu0 %v17276_v24 }
 0x6cc   : > { %v6526_v4 = vpop.f32.mrb[108].mxu1  ;;  %8342 = vmatprep.mubr.f32.mxu0 %v7187_v49  ;;  %13510 = vmatpush1.bf16.msra.mxu0 %v13509_v33 }
 0x6cd   : > { %v7189_v7 = vmax.f32 %v7157_v17, 0.0  ;;  %v7118_v9 = vmul.f32 %v17248_v2, %v6972_v14  ;;  %v13942_v37 = vadd.f32 %v17053_v23, %v6526_v4  ;;  %v6528_v8 = vpop.f32.mrb[109].mxu1  ;;  %13511 = vmatprep.subr.bf16.mxu0 %v18745_v12 }
 0x6ce   : > { %v17283_v3 = vld [vmem:[#allocation3 + $0x30] sm:$0xff] }
 0x6cf   : > { %7221 = vst [vmem:[#allocation3 + $0x49] sm:$0xff] %v7189_v7  ;;  %v7158_v1 = vadd.f32 %v17251_v36, %v7118_v9  ;;  %v6977_v18 = vadd.f32 %v13942_v37, %v17153_v38  ;;  %8343 = vmatmul.mubr.f32.gmra.mrb[240].mxu0 %v17283_v3 }
 0x6d0   : > { %v6531_v16 = vpop.f32.mrb[110].mxu1  ;;  %8347 = vmatprep.mubr.f32.mxu0 %v7188_v39 }
 0x6d1   : > { %v7190_v11 = vmax.f32 %v7158_v1, 0.0  ;;  %v7119_v13 = vmul.f32 %v17248_v2, %v6977_v18  ;;  %v13943_v23 = vadd.f32 %v17057_v0, %v6531_v16  ;;  %v6533_v50 = vpop.f32.mrb[111].mxu1  ;;  %v8173_v1 = vld [vmem:[#allocation5 + $0xf58] sm:$0xff] }
 0x6d2   : > { %v17291_v27 = vld [vmem:[#allocation3 + $0x32] sm:$0xff]  ;;  %v17295_v49 = vld [vmem:[#allocation3 + $0x3a] sm:$0xff] }
 0x6d3   : > { %v17293_v32 = vld [vmem:[#allocation3 + $0x38] sm:$0xff]  ;;  %7222 = vst [vmem:[#allocation3 + $0x51] sm:$0xff] %v7190_v11  ;;  %v7159_v38 = vadd.f32 %v17251_v36, %v7119_v13  ;;  %v6982_v31 = vadd.f32 %v13943_v23, %v17151_v15  ;;  %12624 = vmatprep.mubr.f32.mxu1 %v17291_v27 }
 0x6d4   : > { %8348 = vmatmul.mubr.f32.gmra.mrb[242].mxu0 %v17293_v32  ;;  %v6536_v63 = vpop.f32.mrb[112].mxu1  ;;  %12625 = vmatmul.mubr.f32.vlgmr.msra.gmra.mrb[160].mxu1 %v17295_v49 }
 0x6d5   : > { %8352 = vmatprep.mubr.f32.mxu0 %v7189_v7  ;;  %v7191_v0 = vmax.f32 %v7159_v38, 0.0  ;;  %v7120_v54 = vmul.f32 %v17248_v2, %v6982_v31  ;;  %v13944_v53 = vadd.f32 %v17062_v22, %v6536_v63  ;;  %v6538_v34 = vpop.f32.mrb[113].mxu1 }
 0x6d6   : > { %v17304_v10 = vld [vmem:[#allocation3 + $0x48] sm:$0xff]  ;;  %v17325_v18 = vpop.f32.mrb[230].mxu0 }
 0x6d7   : > { %7223 = vst [vmem:[#allocation3 + $0x61] sm:$0xff] %v7191_v0  ;;  %v7160_v15 = vadd.f32 %v17251_v36, %v7120_v54  ;;  %v6987_v39 = vadd.f32 %v13944_v53, %v17159_v21 }
 0x6d8   : > { %8353 = vmatmul.mubr.f32.gmra.mrb[244].mxu0 %v17304_v10  ;;  %v6541_v41 = vpop.f32.mrb[114].mxu1 }
 0x6d9   : > { %8357 = vmatprep.mubr.f32.mxu0 %v7190_v11  ;;  %v7192_v62 = vmax.f32 %v7160_v15, 0.0  ;;  %v7121_v46 = vmul.f32 %v17248_v2, %v6987_v39  ;;  %v13945_v22 = vadd.f32 %v17067_v6, %v6541_v41  ;;  %v6543_v17 = vpop.f32.mrb[115].mxu1  ;;  %v17329_v11 = vpop.f32.mrb[231].mxu0  ;;  %v8174_v39 = vld [vmem:[#allocation5 + $0xf60] sm:$0xff]  ;;  %v8175_v41 = vld [vmem:[#allocation5 + $0xf68] sm:$0xff] }
 0x6da   : > { %v17312_v14 = vld [vmem:[#allocation3 + $0x4a] sm:$0xff]  ;;  %v17316_v7 = vld [vmem:[#allocation3 + $0x52] sm:$0xff] }
 0x6db   : > { %v17314_v4 = vld [vmem:[#allocation3 + $0x50] sm:$0xff]  ;;  %7224 = vst [vmem:[#allocation3 + $0x69] sm:$0xff] %v7192_v62  ;;  %v7161_v21 = vadd.f32 %v17251_v36, %v7121_v46  ;;  %v6992_v9 = vadd.f32 %v13945_v22, %v17157_v59  ;;  %12627 = vmatprep.mubr.f32.mxu1 %v17312_v14  ;;  %v13512_v59 = vpack.c.bf16 %v8173_v1, %v8172_v29 }
 0x6dc   : > { %8358 = vmatmul.mubr.f32.gmra.mrb[246].mxu0 %v17314_v4  ;;  %v6546_v37 = vpop.f32.mrb[116].mxu1  ;;  %12628 = vmatmul.mubr.f32.gmra.mrb[162].mxu1 %v17316_v7  ;;  %v13515_v46 = vpack.c.bf16 %v8175_v41, %v8174_v39 }
 0x6dd   : > { %8362 = vmatprep.mubr.f32.mxu0 %v7191_v0  ;;  %v7193_v6 = vmax.f32 %v7161_v21, 0.0  ;;  %v7122_v8 = vmul.f32 %v17248_v2, %v6992_v9  ;;  %v13946_v20 = vadd.f32 %v17072_v5, %v6546_v37  ;;  %v6548_v48 = vpop.f32.mrb[117].mxu1  ;;  %13513 = vmatpush1.bf16.msra.mxu0 %v13512_v59 }
 0x6de   : > { %v17327_v16 = vld [vmem:[#allocation3 + $0x60] sm:$0xff]  ;;  %13514 = vmatprep.subr.bf16.mxu0 %v18745_v12 }
 0x6df   : > { %7225 = vst [vmem:[#allocation3 + $0x79] sm:$0xff] %v7193_v6  ;;  %v7162_v13 = vadd.f32 %v17251_v36, %v7122_v8  ;;  %v6997_v23 = vadd.f32 %v13946_v20, %v17165_v25  ;;  %v8177_v8 = vld [vmem:[#allocation5 + $0xf78] sm:$0xff] }
 0x6e0   : > { %8363 = vmatmul.mubr.f32.gmra.mrb[248].mxu0 %v17327_v16  ;;  %v6551_v50 = vpop.f32.mrb[118].mxu1 }
 0x6e1   : > { %8367 = vmatprep.mubr.f32.mxu0 %v7192_v62  ;;  %v7194_v5 = vmax.f32 %v7162_v13, 0.0  ;;  %v7123_v38 = vmul.f32 %v17248_v2, %v6997_v23  ;;  %v13947_v31 = vadd.f32 %v17077_v19, %v6551_v50  ;;  %v6553_v63 = vpop.f32.mrb[119].mxu1  ;;  %13516 = vmatpush1.bf16.msra.mxu0 %v13515_v46 }
 0x6e2   : > { %v17337_v0 = vld [vmem:[#allocation3 + $0x62] sm:$0xff]  ;;  %v17341_v53 = vld [vmem:[#allocation3 + $0x6a] sm:$0xff]  ;;  %13517 = vmatprep.subr.bf16.mxu0 %v18745_v12 }
 0x6e3   : > { %v17339_v54 = vld [vmem:[#allocation3 + $0x68] sm:$0xff]  ;;  %7226 = vst [vmem:[#allocation3 + $0x81] sm:$0xff] %v7194_v5  ;;  %v7163_v25 = vadd.f32 %v17251_v36, %v7123_v38  ;;  %v7002_v34 = vadd.f32 %v13947_v31, %v17163_v42  ;;  %12630 = vmatprep.mubr.f32.mxu1 %v17337_v0 }
 0x6e4   : > { %8368 = vmatmul.mubr.f32.gmra.mrb[250].mxu0 %v17339_v54  ;;  %v6556_v61 = vpop.f32.mrb[120].mxu1  ;;  %12631 = vmatmul.mubr.f32.gmra.mrb[164].mxu1 %v17341_v53 }
 0x6e5   : > { %8372 = vmatprep.mubr.f32.mxu0 %v7193_v6  ;;  %v7195_v19 = vmax.f32 %v7163_v25, 0.0  ;;  %v7124_v43 = vmul.f32 %v17248_v2, %v7002_v34  ;;  %v13948_v33 = vadd.f32 %v17082_v40, %v6556_v61  ;;  %v6558_v15 = vpop.f32.mrb[121].mxu1  ;;  %v8176_v6 = vld [vmem:[#allocation5 + $0xf70] sm:$0xff] }
 0x6e6   : > { %v17350_v62 = vld [vmem:[#allocation3 + $0x78] sm:$0xff]  ;;  %v13518_v29 = vpack.c.bf16 %v8177_v8, %v8176_v6 }
 0x6e7   : > { %7227 = vst [vmem:[#allocation3 + $0x91] sm:$0xff] %v7195_v19  ;;  %v7164_v42 = vadd.f32 %v17251_v36, %v7124_v43  ;;  %v7007_v22 = vadd.f32 %v13948_v33, %v17171_v55 }
 0x6e8   : > { %8373 = vmatmul.mubr.f32.gmra.mrb[252].mxu0 %v17350_v62  ;;  %v6561_v17 = vpop.f32.mrb[122].mxu1 }
 0x6e9   : > { %8377 = vmatprep.mubr.f32.mxu0 %v7194_v5  ;;  %v7196_v21 = vmax.f32 %v7164_v42, 0.0  ;;  %v7125_v9 = vmul.f32 %v17248_v2, %v7007_v22  ;;  %v13949_v40 = vadd.f32 %v17087_v51, %v6561_v17  ;;  %v6563_v37 = vpop.f32.mrb[123].mxu1  ;;  %13519 = vmatpush1.bf16.msra.mxu0 %v13518_v29 }
 0x6ea   : > { %v17358_v20 = vld [vmem:[#allocation3 + $0x7a] sm:$0xff]  ;;  %v17362_v55 = vld [vmem:[#allocation3 + $0x82] sm:$0xff]  ;;  %13520 = vmatprep.subr.bf16.mxu0 %v18745_v12 }
 0x6eb   : > { %v17360_v48 = vld [vmem:[#allocation3 + $0x80] sm:$0xff]  ;;  %7228 = vst [vmem:[#allocation3 + $0x99] sm:$0xff] %v7196_v21  ;;  %v7165_v1 = vadd.f32 %v17251_v36, %v7125_v9  ;;  %v7012_v59 = vadd.f32 %v13949_v40, %v17169_v52  ;;  %12633 = vmatprep.mubr.f32.mxu1 %v17358_v20 }
 0x6ec   : > { %8378 = vmatmul.mubr.f32.gmra.mrb[254].mxu0 %v17360_v48  ;;  %v6566_v51 = vpop.f32.mrb[124].mxu1  ;;  %12634 = vmatmul.mubr.f32.gmra.mrb[166].mxu1 %v17362_v55 }
 0x6ed   : > { %8382 = vmatprep.mubr.f32.mxu0 %v7195_v19  ;;  %v7197_v13 = vmax.f32 %v7165_v1, 0.0  ;;  %v7126_v23 = vmul.f32 %v17248_v2, %v7012_v59  ;;  %v13950_v50 = vadd.f32 %v17092_v28, %v6566_v51  ;;  %v6568_v5 = vpop.f32.mrb[125].mxu1 }
 0x6ee   : > { %v17371_v38 = vld [vmem:[#allocation3 + $0x90] sm:$0xff] }
 0x6ef   : > { %7229 = vst [vmem:[#allocation3 + $0xa9] sm:$0xff] %v7197_v13  ;;  %v7166_v52 = vadd.f32 %v17251_v36, %v7126_v23  ;;  %v7017_v31 = vadd.f32 %v13950_v50, %v17177_v57 }
 0x6f0   : > { %8383 = vmatmul.mubr.f32.gmra.mrb[0].mxu0 %v17371_v38  ;;  %v6571_v63 = vpop.f32.mrb[126].mxu1 }
 0x6f1   : > { %8387 = vmatprep.mubr.f32.mxu0 %v7196_v21  ;;  %v7198_v25 = vmax.f32 %v7166_v52, 0.0  ;;  %v7127_v34 = vmul.f32 %v17248_v2, %v7017_v31  ;;  %v13951_v28 = vadd.f32 %v17098_v56, %v6571_v63  ;;  %v6573_v61 = vpop.f32.mrb[127].mxu1 }
 0x6f2   : > { %v17379_v19 = vld [vmem:[#allocation3 + $0x92] sm:$0xff]  ;;  %v17383_v33 = vld [vmem:[#allocation3 + $0x9a] sm:$0xff] }
 0x6f3   : > { %v17381_v43 = vld [vmem:[#allocation3 + $0x98] sm:$0xff]  ;;  %7230 = vst [vmem:[#allocation3 + $0xb1] sm:$0xff] %v7198_v25  ;;  %v7167_v15 = vadd.f32 %v17251_v36, %v7127_v34  ;;  %v7022_v57 = vadd.f32 %v13951_v28, %v17175_v47  ;;  %12636 = vmatprep.mubr.f32.mxu1 %v17379_v19 }
 0x6f4   : > { %8388 = vmatmul.mubr.f32.gmra.mrb[2].mxu0 %v17381_v43  ;;  %v6576_v39 = vpop.f32.mrb[128].mxu1  ;;  %12637 = vmatmul.mubr.f32.gmra.mrb[168].mxu1 %v17383_v33 }
 0x6f5   : > { %8392 = vmatprep.mubr.f32.mxu0 %v7197_v13  ;;  %v7199_v56 = vmax.f32 %v7167_v15, 0.0  ;;  %v7128_v41 = vmul.f32 %v17248_v2, %v7022_v57  ;;  %v13952_v46 = vadd.f32 %v17104_v44, %v6576_v39  ;;  %v6578_v42 = vpop.f32.mrb[129].mxu1 }
 0x6f6   : > { %v17392_v22 = vld [vmem:[#allocation3 + $0xa8] sm:$0xff] }
 0x6f7   : > { %7231 = vst [vmem:[#allocation3 + $0xc1] sm:$0xff] %v7199_v56  ;;  %v7168_v17 = vadd.f32 %v17251_v36, %v7128_v41  ;;  %v7027_v47 = vadd.f32 %v13952_v46, %v17185_v60 }
 0x6f8   : > { %8393 = vmatmul.mubr.f32.gmra.mrb[4].mxu0 %v17392_v22  ;;  %v6581_v21 = vpop.f32.mrb[130].mxu1 }
 0x6f9   : > { %8397 = vmatprep.mubr.f32.mxu0 %v7198_v25  ;;  %v7200_v9 = vmax.f32 %v7168_v17, 0.0  ;;  %v7129_v40 = vmul.f32 %v17248_v2, %v7027_v47  ;;  %v13953_v37 = vadd.f32 %v17109_v45, %v6581_v21  ;;  %v6583_v6 = vpop.f32.mrb[131].mxu1  ;;  %v18803_v25 = vld [vmem:[#allocation39_spill] sm:$0xff] }
 0x6fa   : > { %v17399_v8 = vld [vmem:[#allocation3 + $0xaa] sm:$0xff]  ;;  %v17403_v29 = vld [vmem:[#allocation3 + $0xb2] sm:$0xff] }
 0x6fb   : > { %v17401_v44 = vld [vmem:[#allocation3 + $0xb0] sm:$0xff]  ;;  %7232 = vst [vmem:[#allocation3 + $0xc9] sm:$0xff] %v7200_v9  ;;  %v7169_v1 = vadd.f32 %v17251_v36, %v7129_v40  ;;  %v7032_v60 = vadd.f32 %v13953_v37, %v17181_v35  ;;  %12639 = vmatprep.mubr.f32.mxu1 %v17399_v8 }
 0x6fc   : > { %8398 = vmatmul.mubr.f32.gmra.mrb[6].mxu0 %v17401_v44  ;;  %v6586_v59 = vpop.f32.mrb[132].mxu1  ;;  %12640 = vmatmul.mubr.f32.gmra.mrb[170].mxu1 %v17403_v29 }
 0x6fd   : > { %8402 = vmatprep.mubr.f32.mxu0 %v7199_v56  ;;  %v7201_v45 = vmax.f32 %v7169_v1, 0.0  ;;  %v7130_v51 = vmul.f32 %v17248_v2, %v7032_v60  ;;  %v13954_v13 = vadd.f32 %v17116_v30, %v6586_v59  ;;  %v6588_v23 = vpop.f32.mrb[133].mxu1  ;;  %v18805_v59 = vld [vmem:[#allocation24_spill] sm:$0xff] }
 0x6fe   : > { %v17412_v50 = vld [vmem:[#allocation3 + $0xc0] sm:$0xff] }
 0x6ff   : > { %7233 = vst [vmem:[#allocation3 + $0xd9] sm:$0xff] %v7201_v45  ;;  %v7170_v5 = vadd.f32 %v17251_v36, %v7130_v51  ;;  %v7037_v35 = vadd.f32 %v13954_v13, %v17192_v58  ;;  %v18804_v58 = vld [vmem:[#allocation23_spill] sm:$0xff] }
 0x700   : > { %8403 = vmatmul.mubr.f32.gmra.mrb[8].mxu0 %v17412_v50  ;;  %v6591_v52 = vpop.f32.mrb[134].mxu1 }
 0x701   : > { %8407 = vmatprep.mubr.f32.mxu0 %v7200_v9  ;;  %v7202_v31 = vmax.f32 %v7170_v5, 0.0  ;;  %v7131_v63 = vmul.f32 %v17248_v2, %v7037_v35  ;;  %v13955_v34 = vadd.f32 %v18803_v25, %v6591_v52  ;;  %v6593_v28 = vpop.f32.mrb[135].mxu1  ;;  %v18806_v35 = vld [vmem:[#allocation38_spill] sm:$0xff] }
 0x702   : > { %v17419_v61 = vld [vmem:[#allocation3 + $0xc2] sm:$0xff]  ;;  %v17423_v15 = vld [vmem:[#allocation3 + $0xca] sm:$0xff] }
 0x703   : > { %v17421_v30 = vld [vmem:[#allocation3 + $0xc8] sm:$0xff]  ;;  %7234 = vst [vmem:[#allocation3 + $0xe1] sm:$0xff] %v7202_v31  ;;  %v7171_v57 = vadd.f32 %v17251_v36, %v7131_v63  ;;  %v7042_v39 = vadd.f32 %v13955_v34, %v18804_v58  ;;  %12642 = vmatprep.mubr.f32.mxu1 %v17419_v61 }
 0x704   : > { %8408 = vmatmul.mubr.f32.gmra.mrb[10].mxu0 %v17421_v30  ;;  %12643 = vmatmul.mubr.f32.gmra.mrb[172].mxu1 %v17423_v15 }
 0x705   : > { %8412 = vmatprep.mubr.f32.mxu0 %v7201_v45  ;;  %v7203_v56 = vmax.f32 %v7171_v57, 0.0  ;;  %v7132_v41 = vmul.f32 %v17248_v2, %v7042_v39  ;;  %v18807_v57 = vld [vmem:[#allocation25_spill] sm:$0xff] }
 0x706   : > { %v17431_v46 = vld [vmem:[#allocation3 + $0xd8] sm:$0xff] }
 0x707   : > { %7235 = vst [vmem:[#allocation3 + $0xf1] sm:$0xff] %v7203_v56  ;;  %v7172_v42 = vadd.f32 %v17251_v36, %v7132_v41 }
 0x708   : > { %8413 = vmatmul.mubr.f32.gmra.mrb[12].mxu0 %v17431_v46 }
 0x709   : > { %8417 = vmatprep.mubr.f32.mxu0 %v7202_v31  ;;  %v7204_v17 = vmax.f32 %v7172_v42, 0.0 }
 0x70a   : > { %v17435_v47 = vld [vmem:[#allocation3 + $0xda] sm:$0xff]  ;;  %v17439_v9 = vld [vmem:[#allocation3 + $0xe2] sm:$0xff] }
 0x70b   : > { %v17437_v21 = vld [vmem:[#allocation3 + $0xe0] sm:$0xff]  ;;  %7236 = vst [vmem:[#allocation3 + $0xf9] sm:$0xff] %v7204_v17  ;;  %12645 = vmatprep.mubr.f32.mxu1 %v17435_v47 }
 0x70c   : > { %8418 = vmatmul.mubr.f32.gmra.mrb[14].mxu0 %v17437_v21  ;;  %12646 = vmatmul.mubr.f32.gmra.mrb[174].mxu1 %v17439_v9 }
 0x70d   : > { %8422 = vmatprep.mubr.f32.mxu0 %v7203_v56 }
 0x70e   : > { %v17444_v40 = vld [vmem:[#allocation3 + $0xf0] sm:$0xff] }
 0x710   : > { %8423 = vmatmul.mubr.f32.gmra.mrb[16].mxu0 %v17444_v40 }
 0x711   : > { %8427 = vmatprep.mubr.f32.mxu0 %v7204_v17 }
 0x712   : > { %v17447_v37 = vld [vmem:[#allocation3 + $0xf2] sm:$0xff]  ;;  %v17451_v1 = vld [vmem:[#allocation3 + $0xfa] sm:$0xff] }
 0x713   : > { %v17449_v6 = vld [vmem:[#allocation3 + $0xf8] sm:$0xff]  ;;  %12648 = vmatprep.mubr.f32.mxu1 %v17447_v37 }
 0x714   : > { %8428 = vmatmul.mubr.f32.gmra.mrb[18].mxu0 %v17449_v6  ;;  %12649 = vmatmul.mubr.f32.gmra.mrb[176].mxu1 %v17451_v1 }
 0x734   : > { %v6821_v60 = vpop.f32.mrb[136].mxu1 }
 0x735   : > { %v7047_v45 = vadd.f32 %v18805_v59, %v6821_v60  ;;  %v6823_v51 = vpop.f32.mrb[137].mxu1  ;;  %v18808_v60 = vld [vmem:[#allocation41_spill] sm:$0xff] }
 0x737   : > { %v7133_v13 = vmul.f32 %v17248_v2, %v7047_v45 }
 0x738   : > { %v6826_v23 = vpop.f32.mrb[138].mxu1 }
 0x739   : > { %v7173_v5 = vadd.f32 %v17251_v36, %v7133_v13  ;;  %v7052_v52 = vadd.f32 %v18806_v35, %v6826_v23  ;;  %v6828_v31 = vpop.f32.mrb[139].mxu1 }
 0x73b   : > { %v7205_v63 = vmax.f32 %v7173_v5, 0.0  ;;  %v7134_v25 = vmul.f32 %v17248_v2, %v7052_v52  ;;  %v18809_v52 = vld [vmem:[#allocation26_spill] sm:$0xff] }
 0x73c   : > { %v6831_v34 = vpop.f32.mrb[140].mxu1 }
 0x73d   : > { %7237 = vst [vmem:[#allocation3 + $0x109] sm:$0xff] %v7205_v63  ;;  %v7174_v28 = vadd.f32 %v17251_v36, %v7134_v25  ;;  %v7057_v58 = vadd.f32 %v18807_v57, %v6831_v34  ;;  %v6833_v39 = vpop.f32.mrb[141].mxu1  ;;  %8432 = vmatprep.mubr.f32.mxu0 %v7205_v63 }
 0x73f   : > { %v7206_v56 = vmax.f32 %v7174_v28, 0.0  ;;  %v7135_v41 = vmul.f32 %v17248_v2, %v7057_v58 }
 0x740   : > { %v6836_v42 = vpop.f32.mrb[142].mxu1 }
 0x741   : > { %7238 = vst [vmem:[#allocation3 + $0x111] sm:$0xff] %v7206_v56  ;;  %v7175_v17 = vadd.f32 %v17251_v36, %v7135_v41  ;;  %v7062_v59 = vadd.f32 %v18808_v60, %v6836_v42  ;;  %v6838_v45 = vpop.f32.mrb[143].mxu1  ;;  %v18811_v42 = vld [vmem:[#allocation40_spill] sm:$0xff] }
 0x743   : > { %v7207_v51 = vmax.f32 %v7175_v17, 0.0  ;;  %v7136_v13 = vmul.f32 %v17248_v2, %v7062_v59 }
 0x744   : > { %v6841_v23 = vpop.f32.mrb[144].mxu1  ;;  %v17467_v5 = vld [vmem:[#allocation3 + $0x108] sm:$0xff] }
 0x745   : > { %7239 = vst [vmem:[#allocation3 + $0x121] sm:$0xff] %v7207_v51  ;;  %v7176_v35 = vadd.f32 %v17251_v36, %v7136_v13  ;;  %v7067_v31 = vadd.f32 %v18809_v52, %v6841_v23  ;;  %v6843_v63 = vpop.f32.mrb[145].mxu1  ;;  %8433 = vmatmul.mubr.f32.gmra.mrb[20].mxu0 %v17467_v5 }
 0x746   : > { %8437 = vmatprep.mubr.f32.mxu0 %v7206_v56 }
 0x747   : > { %v7208_v25 = vmax.f32 %v7176_v35, 0.0  ;;  %v7137_v34 = vmul.f32 %v17248_v2, %v7067_v31  ;;  %v18812_v35 = vld [vmem:[#allocation27_spill] sm:$0xff] }
 0x748   : > { %v6846_v28 = vpop.f32.mrb[146].mxu1  ;;  %v17473_v57 = vld [vmem:[#allocation3 + $0x10a] sm:$0xff]  ;;  %v17477_v39 = vld [vmem:[#allocation3 + $0x112] sm:$0xff] }
 0x749   : > { %v17475_v58 = vld [vmem:[#allocation3 + $0x110] sm:$0xff]  ;;  %18810 = vst [vmem:[#allocation45_spill] sm:$0xff] %v17477_v39  ;;  %7240 = vst [vmem:[#allocation3 + $0x129] sm:$0xff] %v7208_v25  ;;  %v7177_v41 = vadd.f32 %v17251_v36, %v7137_v34  ;;  %v7072_v17 = vadd.f32 %v18811_v42, %v6846_v28  ;;  %v6848_v60 = vpop.f32.mrb[147].mxu1  ;;  %12651 = vmatprep.mubr.f32.mxu1 %v17473_v57 }
 0x74a   : > { %8438 = vmatmul.mubr.f32.gmra.mrb[22].mxu0 %v17475_v58  ;;  %12652 = vmatmul.mubr.f32.gmra.mrb[178].mxu1 %v17477_v39  ;;  %v18816_v60 = vld [vmem:[#allocation43_spill] sm:$0xff] }
 0x74b   : > { %8442 = vmatprep.mubr.f32.mxu0 %v7207_v51  ;;  %v7209_v56 = vmax.f32 %v7177_v41, 0.0  ;;  %v7138_v59 = vmul.f32 %v17248_v2, %v7072_v17 }
 0x74c   : > { %v6851_v45 = vpop.f32.mrb[148].mxu1  ;;  %v17485_v13 = vld [vmem:[#allocation3 + $0x120] sm:$0xff] }
 0x74d   : > { %7241 = vst [vmem:[#allocation3 + $0x139] sm:$0xff] %v7209_v56  ;;  %v7178_v23 = vadd.f32 %v17251_v36, %v7138_v59  ;;  %v7077_v52 = vadd.f32 %v18812_v35, %v6851_v45  ;;  %v6853_v31 = vpop.f32.mrb[149].mxu1 }
 0x74e   : > { %8443 = vmatmul.mubr.f32.gmra.mrb[24].mxu0 %v17485_v13 }
 0x74f   : > { %8447 = vmatprep.mubr.f32.mxu0 %v7208_v25  ;;  %v7210_v63 = vmax.f32 %v7178_v23, 0.0  ;;  %v7139_v34 = vmul.f32 %v17248_v2, %v7077_v52 }
 0x750   : > { %v6856_v28 = vpop.f32.mrb[150].mxu1  ;;  %v17491_v51 = vld [vmem:[#allocation3 + $0x122] sm:$0xff]  ;;  %v17495_v42 = vld [vmem:[#allocation3 + $0x12a] sm:$0xff] }
 0x751   : > { %18813 = vst [vmem:[#allocation29_spill] sm:$0xff] %v17491_v51  ;;  %v17493_v41 = vld [vmem:[#allocation3 + $0x128] sm:$0xff]  ;;  %18815 = vst [vmem:[#allocation12_spill] sm:$0xff] %v17495_v42  ;;  %v7179_v17 = vadd.f32 %v17251_v36, %v7139_v34  ;;  %v7082_v59 = vadd.f32 %v18816_v60, %v6856_v28  ;;  %v6858_v45 = vpop.f32.mrb[151].mxu1  ;;  %12654 = vmatprep.mubr.f32.mxu1 %v17491_v51  ;;  %v18817_v34 = vld [vmem:[#allocation28_spill] sm:$0xff] }
 0x752   : > { %18814 = vst [vmem:[#allocation44_spill] sm:$0xff] %v17493_v41  ;;  %7242 = vst [vmem:[#allocation3 + $0x141] sm:$0xff] %v7210_v63  ;;  %8448 = vmatmul.mubr.f32.gmra.mrb[26].mxu0 %v17493_v41  ;;  %12655 = vmatmul.mubr.f32.gmra.mrb[180].mxu1 %v17495_v42 }
 0x753   : > { %8452 = vmatprep.mubr.f32.mxu0 %v7209_v56  ;;  %v7211_v25 = vmax.f32 %v7179_v17, 0.0  ;;  %v7140_v23 = vmul.f32 %v17248_v2, %v7082_v59 }
 0x754   : > { %v6861_v35 = vpop.f32.mrb[152].mxu1  ;;  %v17503_v52 = vld [vmem:[#allocation3 + $0x138] sm:$0xff] }
 0x755   : > { %7243 = vst [vmem:[#allocation3 + $0x151] sm:$0xff] %v7211_v25  ;;  %v7180_v31 = vadd.f32 %v17251_v36, %v7140_v23  ;;  %v7087_v39 = vadd.f32 %v18817_v34, %v6861_v35  ;;  %v6863_v28 = vpop.f32.mrb[153].mxu1  ;;  %v18819_v23 = vld [vmem:[#allocation42_spill] sm:$0xff] }
 0x756   : > { %8453 = vmatmul.mubr.f32.gmra.mrb[28].mxu0 %v17503_v52 }
 0x757   : > { %8457 = vmatprep.mubr.f32.mxu0 %v7210_v63  ;;  %v7212_v60 = vmax.f32 %v7180_v31, 0.0  ;;  %v7141_v45 = vmul.f32 %v17248_v2, %v7087_v39 }
 0x758   : > { %v6866_v42 = vpop.f32.mrb[154].mxu1 }
 0x759   : > { %v17509_v56 = vld [vmem:[#allocation3 + $0x13a] sm:$0xff]  ;;  %v17513_v59 = vld [vmem:[#allocation3 + $0x142] sm:$0xff]  ;;  %7244 = vst [vmem:[#allocation3 + $0x159] sm:$0xff] %v7212_v60  ;;  %v7181_v51 = vadd.f32 %v17251_v36, %v7141_v45  ;;  %v7092_v41 = vadd.f32 %v18819_v23, %v6866_v42  ;;  %v6868_v35 = vpop.f32.mrb[155].mxu1 }
 0x75a   : > { %v17511_v17 = vld [vmem:[#allocation3 + $0x140] sm:$0xff]  ;;  %18818 = vst [vmem:[#allocation13_spill] sm:$0xff] %v17513_v59  ;;  %12657 = vmatprep.mubr.f32.mxu1 %v17509_v56 }
 0x75b   : > { %8458 = vmatmul.mubr.f32.gmra.mrb[30].mxu0 %v17511_v17  ;;  %12658 = vmatmul.mubr.f32.gmra.mrb[182].mxu1 %v17513_v59  ;;  %v17520_v39 = vmax.f32 %v7181_v51, 0.0  ;;  %v7142_v63 = vmul.f32 %v17248_v2, %v7092_v41 }
 0x75c   : > { %8462 = vmatprep.mubr.f32.mxu0 %v7211_v25  ;;  %v6871_v31 = vpop.f32.mrb[156].mxu1  ;;  %v17523_v34 = vld [vmem:[#allocation3 + $0x150] sm:$0xff] }
 0x75d   : > { %18820 = vst [vmem:[#allocation14_spill] sm:$0xff] %v17520_v39  ;;  %7245 = vst [vmem:[#allocation3 + $0x169] sm:$0xff] %v17520_v39  ;;  %v7182_v28 = vadd.f32 %v17251_v36, %v7142_v63  ;;  %v7097_v42 = vadd.f32 %v17329_v11, %v6871_v31  ;;  %v6873_v45 = vpop.f32.mrb[157].mxu1 }
 0x75f   : > { %8463 = vmatmul.mubr.f32.gmra.mrb[32].mxu0 %v17523_v34  ;;  %v17529_v23 = vmax.f32 %v7182_v28, 0.0  ;;  %v7143_v51 = vmul.f32 %v17248_v2, %v7097_v42 }
 0x760   : > { %8467 = vmatprep.mubr.f32.mxu0 %v7212_v60  ;;  %v6876_v25 = vpop.f32.mrb[158].mxu1  ;;  %v17532_v35 = vld [vmem:[#allocation3 + $0x152] sm:$0xff]  ;;  %v17536_v59 = vld [vmem:[#allocation3 + $0x15a] sm:$0xff] }
 0x761   : > { %18821 = vst [vmem:[#allocation15_spill] sm:$0xff] %v17529_v23  ;;  %v17534_v41 = vld [vmem:[#allocation3 + $0x158] sm:$0xff]  ;;  %7246 = vst [vmem:[#allocation3 + $0x171] sm:$0xff] %v17529_v23  ;;  %v17540_v63 = vadd.f32 %v17251_v36, %v7143_v51  ;;  %v7102_v11 = vadd.f32 %v17325_v18, %v6876_v25  ;;  %v6878_v31 = vpop.f32.mrb[159].mxu1  ;;  %12660 = vmatprep.mubr.f32.mxu1 %v17532_v35  ;;  %v8178_v51 = vld [vmem:[#allocation5 + $0xf80] sm:$0xff] }
 0x762   : > { %12661 = vmatmul.mubr.f32.gmra.mrb[184].mxu1 %v17536_v59  ;;  %v8179_v25 = vld [vmem:[#allocation5 + $0xf88] sm:$0xff] }
 0x763   : > { %18822 = vst [vmem:[#allocation16_spill] sm:$0xff] %v17540_v63  ;;  %8468 = vmatmul.mubr.f32.gmra.mrb[34].mxu0 %v17534_v41  ;;  %v18678_v60 = vmax.f32 %v17540_v63, 0.0  ;;  %v7144_v28 = vmul.f32 %v17248_v2, %v7102_v11  ;;  %v13521_v11 = vpack.c.bf16 %v8179_v25, %v8178_v51  ;;  %v7378_v63 = vld [vmem:[#allocation3 + $0xa] sm:$0xff] }
 0x764   : > { %8472 = vmatprep.mubr.f32.mxu0 %v17520_v39  ;;  %v17549_v42 = vld [vmem:[#allocation3 + $0x168] sm:$0xff] }
 0x765   : > { %7247 = vst [vmem:[#allocation3 + $0x181] sm:$0xff] %v18678_v60  ;;  %v17554_v18 = vadd.f32 %v17251_v36, %v7144_v28  ;;  %v7377_v36 = vld [vmem:[#allocation3 + $0x2] sm:$0xff] }
 0x766   : > { %v8180_v28 = vld [vmem:[#allocation5 + $0xf90] sm:$0xff]  ;;  %v8181_v60 = vld [vmem:[#allocation5 + $0xf98] sm:$0xff] }
 0x767   : > { %18823 = vst [vmem:[#allocation17_spill] sm:$0xff] %v17554_v18  ;;  %8473 = vmatmul.mubr.f32.gmra.mrb[36].mxu0 %v17549_v42  ;;  %v18680_v45 = vmax.f32 %v17554_v18, 0.0  ;;  %v8182_v18 = vld [vmem:[#allocation5 + $0xfa0] sm:$0xff]  ;;  %v8185_v51 = vld [vmem:[#allocation5 + $0xfb8] sm:$0xff] }
 0x768   : > { %8477 = vmatprep.mubr.f32.mxu0 %v17529_v23  ;;  %v17559_v31 = vld [vmem:[#allocation3 + $0x16a] sm:$0xff]  ;;  %v17563_v2 = vld [vmem:[#allocation3 + $0x172] sm:$0xff] }
 0x769   : > { %18824 = vst [vmem:[#allocation18_spill] sm:$0xff] %v17559_v31  ;;  %v17561_v39 = vld [vmem:[#allocation3 + $0x170] sm:$0xff]  ;;  %18825 = vst [vmem:[#allocation19_spill] sm:$0xff] %v17563_v2  ;;  %12663 = vmatprep.mubr.f32.mxu1 %v17559_v31 }
 0x76a   : > { %7248 = vst [vmem:[#allocation3 + $0x189] sm:$0xff] %v18680_v45  ;;  %12664 = vmatmul.mubr.f32.gmra.mrb[186].mxu1 %v17563_v2  ;;  %v13524_v45 = vpack.c.bf16 %v8181_v60, %v8180_v28  ;;  %v8183_v2 = vld [vmem:[#allocation5 + $0xfa8] sm:$0xff]  ;;  %v8184_v60 = vld [vmem:[#allocation5 + $0xfb0] sm:$0xff] }
 0x76b   : > { %8478 = vmatmul.mubr.f32.gmra.mrb[38].mxu0 %v17561_v39  ;;  %v13530_v25 = vpack.c.bf16 %v8185_v51, %v8184_v60  ;;  %v8191_v28 = vld [vmem:[#allocation5 + $0xfe8] sm:$0xff]  ;;  %v8193_v60 = vld [vmem:[#allocation5 + $0xff8] sm:$0xff] }
 0x76c   : > { %8547 = vmatprep.mubr.f32.mxu0 %v17268_v26  ;;  %v13527_v26 = vpack.c.bf16 %v8183_v2, %v8182_v18  ;;  %v8189_v2 = vld [vmem:[#allocation5 + $0xfd8] sm:$0xff]  ;;  %v8195_v51 = vld [vmem:[#allocation5 + $0x1008] sm:$0xff] }
 0x76f   : > { %8548 = vmatmul.mubr.f32.vlgmr.msra.gmra.mrb[232].mxu0 %v7377_v36  ;;  %v17585_v36 = vld [vmem:[#allocation3 + $0x22] sm:$0xff] }
 0x770   : > { %8552 = vmatprep.mubr.f32.mxu0 %v17276_v24  ;;  %13522 = vmatpush1.bf16.msra.mxu0 %v13521_v11  ;;  %v17580_v24 = vld [vmem:[#allocation3 + $0x1a] sm:$0xff]  ;;  %v8190_v11 = vld [vmem:[#allocation5 + $0xfe0] sm:$0xff] }
 0x771   : > { %13523 = vmatprep.subr.bf16.mxu0 %v18745_v12  ;;  %v17573_v23 = vld [vmem:[#allocation3 + $0x182] sm:$0xff]  ;;  %v17575_v31 = vld [vmem:[#allocation3 + $0x18a] sm:$0xff] }
 0x772   : > { %12666 = vmatprep.mubr.f32.mxu1 %v17573_v23 }
 0x773   : > { %8553 = vmatmul.mubr.f32.gmra.mrb[234].mxu0 %v7378_v63  ;;  %12667 = vmatmul.mubr.f32.gmra.mrb[188].mxu1 %v17575_v31  ;;  %v8186_v63 = vld [vmem:[#allocation5 + $0xfc0] sm:$0xff] }
 0x774   : > { %8557 = vmatprep.mubr.f32.mxu0 %v17283_v3  ;;  %13525 = vmatpush1.bf16.msra.mxu0 %v13524_v45  ;;  %v8187_v3 = vld [vmem:[#allocation5 + $0xfc8] sm:$0xff]  ;;  %v8188_v45 = vld [vmem:[#allocation5 + $0xfd0] sm:$0xff] }
 0x775   : > { %13526 = vmatprep.subr.bf16.mxu0 %v18745_v12  ;;  %v13533_v18 = vpack.c.bf16 %v8187_v3, %v8186_v63  ;;  %v8199_v63 = vld [vmem:[#allocation5 + $0x1028] sm:$0xff]  ;;  %v8201_v3 = vld [vmem:[#allocation5 + $0x1038] sm:$0xff] }
 0x777   : > { %8558 = vmatmul.mubr.f32.gmra.mrb[236].mxu0 %v17580_v24 }
 0x778   : > { %8562 = vmatprep.mubr.f32.mxu0 %v17293_v32  ;;  %13528 = vmatpush1.bf16.msra.mxu0 %v13527_v26  ;;  %v13536_v32 = vpack.c.bf16 %v8189_v2, %v8188_v45  ;;  %v8192_v26 = vld [vmem:[#allocation5 + $0xff0] sm:$0xff]  ;;  %v8205_v45 = vld [vmem:[#allocation5 + $0x1058] sm:$0xff]  ;;  %v8207_v2 = vld [vmem:[#allocation5 + $0x1068] sm:$0xff] }
 0x779   : > { %13529 = vmatprep.subr.bf16.mxu0 %v18745_v12 }
 0x77b   : > { %8563 = vmatmul.mubr.f32.gmra.mrb[238].mxu0 %v17585_v36 }
 0x77c   : > { %8567 = vmatprep.mubr.f32.mxu0 %v17304_v10  ;;  %13531 = vmatpush1.bf16.msra.mxu0 %v13530_v25  ;;  %v13539_v10 = vpack.c.bf16 %v8191_v28, %v8190_v11  ;;  %v8197_v25 = vld [vmem:[#allocation5 + $0x1018] sm:$0xff]  ;;  %v8210_v28 = vld [vmem:[#allocation5 + $0x1080] sm:$0xff] }
 0x77d   : > { %13532 = vmatprep.subr.bf16.mxu0 %v18745_v12 }
 0x77f   : > { %8568 = vmatmul.mubr.f32.gmra.mrb[240].mxu0 %v17291_v27  ;;  %v13542_v27 = vpack.c.bf16 %v8193_v60, %v8192_v26  ;;  %v18832_v26 = vld [vmem:[#allocation19_spill] sm:$0xff] }
 0x780   : > { %8572 = vmatprep.mubr.f32.mxu0 %v17314_v4  ;;  %13534 = vmatpush1.bf16.msra.mxu0 %v13533_v18  ;;  %v8194_v4 = vld [vmem:[#allocation5 + $0x1000] sm:$0xff]  ;;  %v8203_v18 = vld [vmem:[#allocation5 + $0x1048] sm:$0xff] }
 0x781   : > { %13535 = vmatprep.subr.bf16.mxu0 %v18745_v12 }
 0x783   : > { %8573 = vmatmul.mubr.f32.gmra.mrb[242].mxu0 %v17295_v49  ;;  %v13545_v49 = vpack.c.bf16 %v8195_v51, %v8194_v4  ;;  %v8213_v4 = vld [vmem:[#allocation5 + $0x1098] sm:$0xff]  ;;  %v7505_v51 = vld [vmem:[#allocation3 + $0x19] sm:$0xff] }
 0x784   : > { %8577 = vmatprep.mubr.f32.mxu0 %v17327_v16  ;;  %13537 = vmatpush1.bf16.msra.mxu0 %v13536_v32  ;;  %v8196_v16 = vld [vmem:[#allocation5 + $0x1010] sm:$0xff]  ;;  %v8209_v32 = vld [vmem:[#allocation5 + $0x1078] sm:$0xff] }
 0x785   : > { %13538 = vmatprep.subr.bf16.mxu0 %v18745_v12 }
 0x787   : > { %8578 = vmatmul.mubr.f32.gmra.mrb[244].mxu0 %v17312_v14  ;;  %v13548_v14 = vpack.c.bf16 %v8197_v25, %v8196_v16  ;;  %v8214_v16 = vld [vmem:[#allocation5 + $0x10a0] sm:$0xff]  ;;  %v8215_v25 = vld [vmem:[#allocation5 + $0x10a8] sm:$0xff] }
 0x788   : > { %8582 = vmatprep.mubr.f32.mxu0 %v17339_v54  ;;  %13540 = vmatpush1.bf16.msra.mxu0 %v13539_v10  ;;  %v8198_v54 = vld [vmem:[#allocation5 + $0x1020] sm:$0xff] }
 0x789   : > { %13541 = vmatprep.subr.bf16.mxu0 %v18745_v12 }
 0x78b   : > { %8583 = vmatmul.mubr.f32.gmra.mrb[246].mxu0 %v17316_v7  ;;  %v13551_v7 = vpack.c.bf16 %v8199_v63, %v8198_v54  ;;  %v7571_v54 = vld [vmem:[#allocation3 + $0x32] sm:$0xff]  ;;  %v13575_v63 = vpack.c.bf16 %v8215_v25, %v8214_v16  ;;  %v17722_v25 = vld [vmem:[#allocation3 + $0x69] sm:$0xff] }
 0x78c   : > { %8587 = vmatprep.mubr.f32.mxu0 %v17350_v62  ;;  %13543 = vmatpush1.bf16.msra.mxu0 %v13542_v27  ;;  %v8200_v62 = vld [vmem:[#allocation5 + $0x1030] sm:$0xff]  ;;  %v8227_v16 = vld [vmem:[#allocation5 + $0x1108] sm:$0xff] }
 0x78d   : > { %13544 = vmatprep.subr.bf16.mxu0 %v18745_v12  ;;  %v8212_v27 = vld [vmem:[#allocation5 + $0x1090] sm:$0xff] }
 0x78f   : > { %8588 = vmatmul.mubr.f32.gmra.mrb[248].mxu0 %v17337_v0  ;;  %v13554_v0 = vpack.c.bf16 %v8201_v3, %v8200_v62  ;;  %v17702_v62 = vld [vmem:[#allocation3 + $0x31] sm:$0xff] }
 0x790   : > { %8592 = vmatprep.mubr.f32.mxu0 %v17360_v48  ;;  %13546 = vmatpush1.bf16.msra.mxu0 %v13545_v49  ;;  %v8202_v48 = vld [vmem:[#allocation5 + $0x1040] sm:$0xff]  ;;  %v13572_v49 = vpack.c.bf16 %v8213_v4, %v8212_v27  ;;  %v17718_v27 = vld [vmem:[#allocation3 + $0x61] sm:$0xff] }
 0x791   : > { %13547 = vmatprep.subr.bf16.mxu0 %v18745_v12  ;;  %v7576_v4 = vld [vmem:[#allocation3 + $0x6a] sm:$0xff] }
 0x793   : > { %8593 = vmatmul.mubr.f32.gmra.mrb[250].mxu0 %v17341_v53  ;;  %v13557_v53 = vpack.c.bf16 %v8203_v18, %v8202_v48  ;;  %v8219_v48 = vld [vmem:[#allocation5 + $0x10c8] sm:$0xff] }
 0x794   : > { %8597 = vmatprep.mubr.f32.mxu0 %v17371_v38  ;;  %13549 = vmatpush1.bf16.msra.mxu0 %v13548_v14  ;;  %v8204_v38 = vld [vmem:[#allocation5 + $0x1050] sm:$0xff] }
 0x795   : > { %13550 = vmatprep.subr.bf16.mxu0 %v18745_v12  ;;  %v7506_v14 = vld [vmem:[#allocation3 + $0x21] sm:$0xff]  ;;  %v17706_v18 = vld [vmem:[#allocation3 + $0x39] sm:$0xff] }
 0x797   : > { %8598 = vmatmul.mubr.f32.gmra.mrb[252].mxu0 %v17358_v20  ;;  %v13560_v20 = vpack.c.bf16 %v8205_v45, %v8204_v38  ;;  %v8220_v45 = vld [vmem:[#allocation5 + $0x10d0] sm:$0xff] }
 0x798   : > { %8602 = vmatprep.mubr.f32.mxu0 %v17381_v43  ;;  %13552 = vmatpush1.bf16.msra.mxu0 %v13551_v7  ;;  %v8206_v43 = vld [vmem:[#allocation5 + $0x1060] sm:$0xff]  ;;  %v8217_v7 = vld [vmem:[#allocation5 + $0x10b8] sm:$0xff] }
 0x799   : > { %13553 = vmatprep.subr.bf16.mxu0 %v18745_v12 }
 0x79b   : > { %8603 = vmatmul.mubr.f32.gmra.mrb[254].mxu0 %v17362_v55  ;;  %v13563_v55 = vpack.c.bf16 %v8207_v2, %v8206_v43  ;;  %v17710_v43 = vld [vmem:[#allocation3 + $0x49] sm:$0xff]  ;;  %v7574_v2 = vld [vmem:[#allocation3 + $0x52] sm:$0xff] }
 0x79c   : > { %8607 = vmatprep.mubr.f32.mxu0 %v17392_v22  ;;  %13555 = vmatpush1.bf16.msra.mxu0 %v13554_v0  ;;  %v8208_v22 = vld [vmem:[#allocation5 + $0x1070] sm:$0xff]  ;;  %v8218_v0 = vld [vmem:[#allocation5 + $0x10c0] sm:$0xff] }
 0x79d   : > { %13556 = vmatprep.subr.bf16.mxu0 %v18745_v12  ;;  %v13581_v38 = vpack.c.bf16 %v8219_v48, %v8218_v0  ;;  %v8230_v0 = vld [vmem:[#allocation5 + $0x1120] sm:$0xff]  ;;  %v8231_v48 = vld [vmem:[#allocation5 + $0x1128] sm:$0xff] }
 0x79f   : > { %8608 = vmatmul.mubr.f32.gmra.mrb[0].mxu0 %v17379_v19 }
 0x7a0   : > { %8612 = vmatprep.mubr.f32.mxu0 %v17401_v44  ;;  %13558 = vmatpush1.bf16.msra.mxu0 %v13557_v53  ;;  %v13566_v44 = vpack.c.bf16 %v8209_v32, %v8208_v22  ;;  %v7573_v53 = vld [vmem:[#allocation3 + $0x4a] sm:$0xff]  ;;  %v8223_v32 = vld [vmem:[#allocation5 + $0x10e8] sm:$0xff] }
 0x7a1   : > { %13559 = vmatprep.subr.bf16.mxu0 %v18745_v12  ;;  %v8222_v22 = vld [vmem:[#allocation5 + $0x10e0] sm:$0xff] }
 0x7a3   : > { %8613 = vmatmul.mubr.f32.gmra.mrb[2].mxu0 %v17383_v33 }
 0x7a4   : > { %8617 = vmatprep.mubr.f32.mxu0 %v17412_v50  ;;  %13561 = vmatpush1.bf16.msra.mxu0 %v13560_v20  ;;  %v8221_v20 = vld [vmem:[#allocation5 + $0x10d8] sm:$0xff] }
 0x7a5   : > { %13562 = vmatprep.subr.bf16.mxu0 %v18745_v12 }
 0x7a7   : > { %8618 = vmatmul.mubr.f32.gmra.mrb[4].mxu0 %v17399_v8  ;;  %v17623_v19 = vpop.f32.mrb[160].mxu1 }
 0x7a8   : > { %8622 = vmatprep.mubr.f32.mxu0 %v17421_v30  ;;  %13564 = vmatpush1.bf16.msra.mxu0 %v13563_v55  ;;  %v17625_v11 = vpop.f32.mrb[161].mxu1  ;;  %v13584_v55 = vpack.c.bf16 %v8221_v20, %v8220_v45  ;;  %v13599_v45 = vpack.c.bf16 %v8231_v48, %v8230_v0  ;;  %v8232_v20 = vld [vmem:[#allocation5 + $0x1130] sm:$0xff]  ;;  %v17750_v0 = vld [vmem:[#allocation3 + $0xb1] sm:$0xff] }
 0x7a9   : > { %13565 = vmatprep.subr.bf16.mxu0 %v18745_v12  ;;  %v7583_v48 = vld [vmem:[#allocation3 + $0xc2] sm:$0xff] }
 0x7ab   : > { %8623 = vmatmul.mubr.f32.gmra.mrb[6].mxu0 %v17403_v29 }
 0x7ac   : > { %8627 = vmatprep.mubr.f32.mxu0 %v17431_v46  ;;  %13567 = vmatpush1.bf16.msra.mxu0 %v13566_v44  ;;  %v17714_v44 = vld [vmem:[#allocation3 + $0x51] sm:$0xff] }
 0x7ad   : > { %13568 = vmatprep.subr.bf16.mxu0 %v18745_v12 }
 0x7af   : > { %8628 = vmatmul.mubr.f32.gmra.mrb[8].mxu0 %v17419_v61  ;;  %v17633_v33 = vpop.f32.mrb[162].mxu1 }
 0x7b0   : > { %8632 = vmatprep.mubr.f32.mxu0 %v17437_v21  ;;  %v17635_v8 = vpop.f32.mrb[163].mxu1  ;;  %v18827_v21 = vld [vmem:[#allocation45_spill] sm:$0xff] }
 0x7b3   : > { %8633 = vmatmul.mubr.f32.gmra.mrb[10].mxu0 %v17423_v15  ;;  %v18826_v15 = vld [vmem:[#allocation44_spill] sm:$0xff] }
 0x7b4   : > { %8637 = vmatprep.mubr.f32.mxu0 %v17444_v40 }
 0x7b7   : > { %8638 = vmatmul.mubr.f32.gmra.mrb[12].mxu0 %v17435_v47  ;;  %v17641_v29 = vpop.f32.mrb[164].mxu1 }
 0x7b8   : > { %8642 = vmatprep.mubr.f32.mxu0 %v17449_v6  ;;  %v17643_v50 = vpop.f32.mrb[165].mxu1  ;;  %v18829_v6 = vld [vmem:[#allocation12_spill] sm:$0xff] }
 0x7bb   : > { %8643 = vmatmul.mubr.f32.gmra.mrb[14].mxu0 %v17439_v9  ;;  %v18828_v9 = vld [vmem:[#allocation29_spill] sm:$0xff] }
 0x7bc   : > { %8647 = vmatprep.mubr.f32.mxu0 %v17467_v5 }
 0x7bf   : > { %8648 = vmatmul.mubr.f32.gmra.mrb[16].mxu0 %v17447_v37  ;;  %v17649_v61 = vpop.f32.mrb[166].mxu1 }
 0x7c0   : > { %8652 = vmatprep.mubr.f32.mxu0 %v17475_v58  ;;  %v17651_v30 = vpop.f32.mrb[167].mxu1  ;;  %v18830_v58 = vld [vmem:[#allocation13_spill] sm:$0xff] }
 0x7c3   : > { %8653 = vmatmul.mubr.f32.gmra.mrb[18].mxu0 %v17451_v1 }
 0x7c4   : > { %8657 = vmatprep.mubr.f32.mxu0 %v17485_v13 }
 0x7c7   : > { %8658 = vmatmul.mubr.f32.gmra.mrb[20].mxu0 %v17473_v57  ;;  %v17657_v46 = vpop.f32.mrb[168].mxu1 }
 0x7c8   : > { %8662 = vmatprep.mubr.f32.mxu0 %v18826_v15  ;;  %v17659_v47 = vpop.f32.mrb[169].mxu1  ;;  %v7575_v15 = vld [vmem:[#allocation3 + $0x62] sm:$0xff] }
 0x7cb   : > { %8663 = vmatmul.mubr.f32.gmra.mrb[22].mxu0 %v18827_v21 }
 0x7cc   : > { %8667 = vmatprep.mubr.f32.mxu0 %v17503_v52 }
 0x7cf   : > { %8668 = vmatmul.mubr.f32.gmra.mrb[24].mxu0 %v18828_v9  ;;  %v17665_v40 = vpop.f32.mrb[170].mxu1 }
 0x7d0   : > { %8672 = vmatprep.mubr.f32.mxu0 %v17511_v17  ;;  %v17667_v37 = vpop.f32.mrb[171].mxu1  ;;  %v17686_v17 = vld [vmem:[#allocation3 + $0x180] sm:$0xff] }
 0x7d3   : > { %8673 = vmatmul.mubr.f32.gmra.mrb[26].mxu0 %v18829_v6 }
 0x7d4   : > { %8677 = vmatprep.mubr.f32.mxu0 %v17523_v34  ;;  %v18831_v34 = vld [vmem:[#allocation18_spill] sm:$0xff] }
 0x7d7   : > { %8678 = vmatmul.mubr.f32.gmra.mrb[28].mxu0 %v17509_v56  ;;  %v17673_v1 = vpop.f32.mrb[172].mxu1 }
 0x7d8   : > { %8682 = vmatprep.mubr.f32.mxu0 %v17534_v41  ;;  %v17675_v5 = vpop.f32.mrb[173].mxu1  ;;  %v17690_v41 = vld [vmem:[#allocation3 + $0x188] sm:$0xff] }
 0x7db   : > { %8683 = vmatmul.mubr.f32.gmra.mrb[30].mxu0 %v18830_v58 }
 0x7dc   : > { %8687 = vmatprep.mubr.f32.mxu0 %v17549_v42 }
 0x7df   : > { %8688 = vmatmul.mubr.f32.gmra.mrb[32].mxu0 %v17532_v35  ;;  %v17681_v13 = vpop.f32.mrb[174].mxu1 }
 0x7e0   : > { %8692 = vmatprep.mubr.f32.mxu0 %v17561_v39  ;;  %v17683_v52 = vpop.f32.mrb[175].mxu1  ;;  %v8211_v39 = vld [vmem:[#allocation5 + $0x1088] sm:$0xff] }
 0x7e1   : > { %v13569_v60 = vpack.c.bf16 %v8211_v39, %v8210_v28  ;;  %v13587_v28 = vpack.c.bf16 %v8223_v32, %v8222_v22  ;;  %v8224_v39 = vld [vmem:[#allocation5 + $0x10f0] sm:$0xff] }
 0x7e2   : > { %v7580_v22 = vld [vmem:[#allocation3 + $0x9a] sm:$0xff] }
 0x7e3   : > { %8693 = vmatmul.mubr.f32.gmra.mrb[34].mxu0 %v17536_v59 }
 0x7e4   : > { %8697 = vmatprep.mubr.f32.mxu0 %v17686_v17 }
 0x7e7   : > { %8698 = vmatmul.mubr.f32.gmra.mrb[36].mxu0 %v18831_v34  ;;  %v17693_v42 = vpop.f32.mrb[176].mxu1 }
 0x7e8   : > { %8702 = vmatprep.mubr.f32.mxu0 %v17690_v41  ;;  %v17695_v10 = vpop.f32.mrb[177].mxu1 }
 0x7eb   : > { %8703 = vmatmul.mubr.f32.gmra.mrb[38].mxu0 %v18832_v26 }
 0x7ec   : > { %8772 = vmatprep.mubr.f32.mxu0 %v17580_v24  ;;  %v8216_v24 = vld [vmem:[#allocation5 + $0x10b0] sm:$0xff] }
 0x7ed   : > { %v13578_v3 = vpack.c.bf16 %v8217_v7, %v8216_v24  ;;  %v8229_v24 = vld [vmem:[#allocation5 + $0x1118] sm:$0xff]  ;;  %v17726_v7 = vld [vmem:[#allocation3 + $0x79] sm:$0xff] }
 0x7ef   : > { %8773 = vmatmul.mubr.f32.vlgmr.msra.gmra.mrb[232].mxu0 %v7505_v51 }
 0x7f0   : > { %8777 = vmatprep.mubr.f32.mxu0 %v17585_v36  ;;  %13570 = vmatpush1.bf16.msra.mxu0 %v13569_v60  ;;  %v7572_v36 = vld [vmem:[#allocation3 + $0x3a] sm:$0xff]  ;;  %v8225_v60 = vld [vmem:[#allocation5 + $0x10f8] sm:$0xff] }
 0x7f1   : > { %13571 = vmatprep.subr.bf16.mxu0 %v18745_v12  ;;  %v13590_v51 = vpack.c.bf16 %v8225_v60, %v8224_v39  ;;  %v17738_v39 = vld [vmem:[#allocation3 + $0x99] sm:$0xff]  ;;  %v7581_v60 = vld [vmem:[#allocation3 + $0xaa] sm:$0xff] }
 0x7f3   : > { %8778 = vmatmul.mubr.f32.gmra.mrb[234].mxu0 %v7506_v14  ;;  %v7577_v14 = vld [vmem:[#allocation3 + $0x7a] sm:$0xff] }
 0x7f4   : > { %8782 = vmatprep.mubr.f32.mxu0 %v7571_v54  ;;  %13573 = vmatpush1.bf16.msra.mxu0 %v13572_v49  ;;  %v8226_v49 = vld [vmem:[#allocation5 + $0x1100] sm:$0xff] }
 0x7f5   : > { %13574 = vmatprep.subr.bf16.mxu0 %v18745_v12  ;;  %v13593_v54 = vpack.c.bf16 %v8227_v16, %v8226_v49  ;;  %v8237_v49 = vld [vmem:[#allocation5 + $0x1158] sm:$0xff] }
 0x7f6   : > { %v17742_v16 = vld [vmem:[#allocation3 + $0xa9] sm:$0xff] }
 0x7f7   : > { %8783 = vmatmul.mubr.f32.gmra.mrb[236].mxu0 %v17702_v62 }
 0x7f8   : > { %8787 = vmatprep.mubr.f32.mxu0 %v7572_v36  ;;  %13576 = vmatpush1.bf16.msra.mxu0 %v13575_v63  ;;  %v8228_v63 = vld [vmem:[#allocation5 + $0x1110] sm:$0xff] }
 0x7f9   : > { %13577 = vmatprep.subr.bf16.mxu0 %v18745_v12  ;;  %v7578_v36 = vld [vmem:[#allocation3 + $0x82] sm:$0xff] }
 0x7fb   : > { %8788 = vmatmul.mubr.f32.gmra.mrb[238].mxu0 %v17706_v18 }
 0x7fc   : > { %8792 = vmatprep.mubr.f32.mxu0 %v7573_v53  ;;  %13579 = vmatpush1.bf16.msra.mxu0 %v13578_v3  ;;  %v13596_v3 = vpack.c.bf16 %v8229_v24, %v8228_v63  ;;  %v17730_v53 = vld [vmem:[#allocation3 + $0x81] sm:$0xff] }
 0x7fd   : > { %13580 = vmatprep.subr.bf16.mxu0 %v18745_v12 }
 0x7ff   : > { %8793 = vmatmul.mubr.f32.gmra.mrb[240].mxu0 %v17710_v43 }
 0x800   : > { %8797 = vmatprep.mubr.f32.mxu0 %v7574_v2  ;;  %13582 = vmatpush1.bf16.msra.mxu0 %v13581_v38  ;;  %v7579_v38 = vld [vmem:[#allocation3 + $0x92] sm:$0xff]  ;;  %v8233_v2 = vld [vmem:[#allocation5 + $0x1138] sm:$0xff] }
 0x801   : > { %13583 = vmatprep.subr.bf16.mxu0 %v18745_v12  ;;  %v13602_v32 = vpack.c.bf16 %v8233_v2, %v8232_v20  ;;  %v8241_v20 = vld [vmem:[#allocation5 + $0x1178] sm:$0xff] }
 0x802   : > { %v17754_v2 = vld [vmem:[#allocation3 + $0xc1] sm:$0xff] }
 0x803   : > { %8798 = vmatmul.mubr.f32.gmra.mrb[242].mxu0 %v17714_v44 }
 0x804   : > { %8802 = vmatprep.mubr.f32.mxu0 %v7575_v15  ;;  %13585 = vmatpush1.bf16.msra.mxu0 %v13584_v55  ;;  %v17734_v55 = vld [vmem:[#allocation3 + $0x91] sm:$0xff] }
 0x805   : > { %13586 = vmatprep.subr.bf16.mxu0 %v18745_v12  ;;  %v8234_v15 = vld [vmem:[#allocation5 + $0x1140] sm:$0xff] }
 0x807   : > { %8803 = vmatmul.mubr.f32.gmra.mrb[244].mxu0 %v17718_v27 }
 0x808   : > { %8807 = vmatprep.mubr.f32.mxu0 %v7576_v4  ;;  %13588 = vmatpush1.bf16.msra.mxu0 %v13587_v28  ;;  %v8235_v28 = vld [vmem:[#allocation5 + $0x1148] sm:$0xff] }
 0x809   : > { %13589 = vmatprep.subr.bf16.mxu0 %v18745_v12  ;;  %v13605_v4 = vpack.c.bf16 %v8235_v28, %v8234_v15 }
 0x80b   : > { %8808 = vmatmul.mubr.f32.gmra.mrb[246].mxu0 %v17722_v25 }
 0x80c   : > { %8812 = vmatprep.mubr.f32.mxu0 %v7577_v14  ;;  %13591 = vmatpush1.bf16.msra.mxu0 %v13590_v51  ;;  %v8236_v51 = vld [vmem:[#allocation5 + $0x1150] sm:$0xff] }
 0x80d   : > { %13592 = vmatprep.subr.bf16.mxu0 %v18745_v12  ;;  %v13608_v24 = vpack.c.bf16 %v8237_v49, %v8236_v51  ;;  %v17765_v51 = vld [vmem:[#allocation3 + $0xd9] sm:$0xff] }
 0x80f   : > { %8813 = vmatmul.mubr.f32.gmra.mrb[248].mxu0 %v17726_v7 }
 0x810   : > { %8817 = vmatprep.mubr.f32.mxu0 %v7578_v36  ;;  %13594 = vmatpush1.bf16.msra.mxu0 %v13593_v54  ;;  %v7582_v54 = vld [vmem:[#allocation3 + $0xb2] sm:$0xff] }
 0x811   : > { %13595 = vmatprep.subr.bf16.mxu0 %v18745_v12  ;;  %v8238_v36 = vld [vmem:[#allocation5 + $0x1160] sm:$0xff] }
 0x813   : > { %8818 = vmatmul.mubr.f32.gmra.mrb[250].mxu0 %v17730_v53 }
 0x814   : > { %8822 = vmatprep.mubr.f32.mxu0 %v7579_v38  ;;  %13597 = vmatpush1.bf16.msra.mxu0 %v13596_v3  ;;  %v8239_v3 = vld [vmem:[#allocation5 + $0x1168] sm:$0xff] }
 0x815   : > { %13598 = vmatprep.subr.bf16.mxu0 %v18745_v12  ;;  %v13611_v38 = vpack.c.bf16 %v8239_v3, %v8238_v36  ;;  %v17772_v36 = vld [vmem:[#allocation3 + $0xe1] sm:$0xff]  ;;  %v7587_v3 = vld [vmem:[#allocation3 + $0xf2] sm:$0xff] }
 0x817   : > { %8823 = vmatmul.mubr.f32.gmra.mrb[252].mxu0 %v17734_v55 }
 0x818   : > { %8827 = vmatprep.mubr.f32.mxu0 %v7580_v22  ;;  %13600 = vmatpush1.bf16.msra.mxu0 %v13599_v45  ;;  %v8240_v45 = vld [vmem:[#allocation5 + $0x1170] sm:$0xff] }
 0x819   : > { %13601 = vmatprep.subr.bf16.mxu0 %v18745_v12  ;;  %v13614_v28 = vpack.c.bf16 %v8241_v20, %v8240_v45  ;;  %v7588_v45 = vld [vmem:[#allocation3 + $0xfa] sm:$0xff] }
 0x81b   : > { %8828 = vmatmul.mubr.f32.gmra.mrb[254].mxu0 %v17738_v39 }
 0x81c   : > { %8832 = vmatprep.mubr.f32.mxu0 %v7581_v60  ;;  %13603 = vmatpush1.bf16.msra.mxu0 %v13602_v32  ;;  %v7584_v32 = vld [vmem:[#allocation3 + $0xca] sm:$0xff] }
 0x81d   : > { %13604 = vmatprep.subr.bf16.mxu0 %v18745_v12  ;;  %v17744_v14 = vpop.f32.mrb[178].mxu1  ;;  %v17762_v60 = vld [vmem:[#allocation3 + $0xc9] sm:$0xff] }
 0x81e   : > { %v17747_v63 = vpop.f32.mrb[179].mxu1 }
 0x81f   : > { %8833 = vmatmul.mubr.f32.gmra.mrb[0].mxu0 %v17742_v16 }
 0x820   : > { %8837 = vmatprep.mubr.f32.mxu0 %v7582_v54  ;;  %13606 = vmatpush1.bf16.msra.mxu0 %v13605_v4  ;;  %v7585_v4 = vld [vmem:[#allocation3 + $0xda] sm:$0xff]  ;;  %v7586_v54 = vld [vmem:[#allocation3 + $0xe2] sm:$0xff] }
 0x821   : > { %13607 = vmatprep.subr.bf16.mxu0 %v18745_v12 }
 0x823   : > { %8838 = vmatmul.mubr.f32.gmra.mrb[2].mxu0 %v17750_v0 }
 0x824   : > { %8842 = vmatprep.mubr.f32.mxu0 %v7583_v48  ;;  %13609 = vmatpush1.bf16.msra.mxu0 %v13608_v24  ;;  %v17775_v48 = vld [vmem:[#allocation3 + $0xf1] sm:$0xff] }
 0x825   : > { %13610 = vmatprep.subr.bf16.mxu0 %v18745_v12  ;;  %v17756_v22 = vpop.f32.mrb[180].mxu1 }
 0x826   : > { %18833 = vst [vmem:[#allocation21_spill] sm:$0xff] %v17756_v22  ;;  %v17759_v15 = vpop.f32.mrb[181].mxu1  ;;  %v7633_v22 = vld [vmem:[#allocation3 + $0x30] sm:$0xff] }
 0x827   : > { %8843 = vmatmul.mubr.f32.gmra.mrb[4].mxu0 %v17754_v2 }
 0x828   : > { %8847 = vmatprep.mubr.f32.mxu0 %v7584_v32  ;;  %13612 = vmatpush1.bf16.msra.mxu0 %v13611_v38  ;;  %v17782_v32 = vld [vmem:[#allocation3 + $0xf9] sm:$0xff] }
 0x829   : > { %13613 = vmatprep.subr.bf16.mxu0 %v18745_v12 }
 0x82b   : > { %8848 = vmatmul.mubr.f32.gmra.mrb[6].mxu0 %v17762_v60 }
 0x82c   : > { %8852 = vmatprep.mubr.f32.mxu0 %v7585_v4  ;;  %13615 = vmatpush1.bf16.msra.mxu0 %v13614_v28  ;;  %v17786_v28 = vld [vmem:[#allocation3 + $0x109] sm:$0xff] }
 0x82e   : > { %v17767_v49 = vpop.f32.mrb[182].mxu1 }
 0x82f   : > { %18834 = vst [vmem:[#allocation30_spill] sm:$0xff] %v17767_v49  ;;  %8853 = vmatmul.mubr.f32.gmra.mrb[8].mxu0 %v17765_v51  ;;  %v17770_v24 = vpop.f32.mrb[183].mxu1 }
 0x830   : > { %18835 = vst [vmem:[#allocation31_spill] sm:$0xff] %v17770_v24  ;;  %8857 = vmatprep.mubr.f32.mxu0 %v7586_v54  ;;  %v10394_v24 = vld [vmem:[#allocation5 + $0x1210] sm:$0xff] }
 0x833   : > { %8858 = vmatmul.mubr.f32.gmra.mrb[10].mxu0 %v17772_v36 }
 0x834   : > { %8862 = vmatprep.mubr.f32.mxu0 %v7587_v3  ;;  %v17794_v3 = vld [vmem:[#allocation3 + $0x111] sm:$0xff] }
 0x835   : > { %v17777_v38 = vpop.f32.mrb[184].mxu1 }
 0x836   : > { %18836 = vst [vmem:[#allocation32_spill] sm:$0xff] %v17777_v38  ;;  %v17780_v20 = vpop.f32.mrb[185].mxu1 }
 0x837   : > { %8863 = vmatmul.mubr.f32.gmra.mrb[12].mxu0 %v17775_v48  ;;  %18837 = vst [vmem:[#allocation33_spill] sm:$0xff] %v17780_v20  ;;  %v18846_v20 = vld [vmem:[#allocation17_spill] sm:$0xff] }
 0x838   : > { %8867 = vmatprep.mubr.f32.mxu0 %v7588_v45  ;;  %v17798_v45 = vld [vmem:[#allocation3 + $0x121] sm:$0xff]  ;;  %v18847_v49 = vmax.f32 %v18846_v20, 0.0 }
 0x839   : > { %v10398_v20 = vld [vmem:[#allocation5 + $0x1230] sm:$0xff] }
 0x83b   : > { %8868 = vmatmul.mubr.f32.gmra.mrb[14].mxu0 %v17782_v32 }
 0x83c   : > { %8872 = vmatprep.mubr.f32.mxu0 %v17473_v57 }
 0x83d   : > { %v17788_v4 = vpop.f32.mrb[186].mxu1 }
 0x83e   : > { %18838 = vst [vmem:[#allocation34_spill] sm:$0xff] %v17788_v4  ;;  %v17791_v54 = vpop.f32.mrb[187].mxu1  ;;  %v17806_v4 = vld [vmem:[#allocation3 + $0x129] sm:$0xff] }
 0x83f   : > { %8873 = vmatmul.mubr.f32.gmra.mrb[16].mxu0 %v17786_v28  ;;  %18839 = vst [vmem:[#allocation35_spill] sm:$0xff] %v17791_v54  ;;  %v18844_v54 = vld [vmem:[#allocation16_spill] sm:$0xff] }
 0x840   : > { %8877 = vmatprep.mubr.f32.mxu0 %v18827_v21  ;;  %v17810_v21 = vld [vmem:[#allocation3 + $0x139] sm:$0xff] }
 0x843   : > { %8878 = vmatmul.mubr.f32.gmra.mrb[18].mxu0 %v17794_v3 }
 0x844   : > { %8882 = vmatprep.mubr.f32.mxu0 %v18828_v9  ;;  %v17814_v9 = vld [vmem:[#allocation3 + $0x141] sm:$0xff] }
 0x846   : > { %v17800_v38 = vpop.f32.mrb[188].mxu1 }
 0x847   : > { %18840 = vst [vmem:[#allocation36_spill] sm:$0xff] %v17800_v38  ;;  %8883 = vmatmul.mubr.f32.gmra.mrb[20].mxu0 %v17798_v45  ;;  %v17803_v57 = vpop.f32.mrb[189].mxu1  ;;  %v17818_v38 = vld [vmem:[#allocation3 + $0x151] sm:$0xff] }
 0x848   : > { %18841 = vst [vmem:[#allocation22_spill] sm:$0xff] %v17803_v57  ;;  %8887 = vmatprep.mubr.f32.mxu0 %v18829_v6  ;;  %v17822_v6 = vld [vmem:[#allocation3 + $0x159] sm:$0xff] }
 0x849   : > { %v7791_v57 = vld [vmem:[#allocation3 + $0x19a] sm:$0xff] }
 0x84a   : > { %12669 = vmatprep.mubr.f32.mxu1 %v7791_v57  ;;  %v10397_v57 = vld [vmem:[#allocation5 + $0x1228] sm:$0xff] }
 0x84b   : > { %8888 = vmatmul.mubr.f32.gmra.mrb[22].mxu0 %v17806_v4 }
 0x84c   : > { %8892 = vmatprep.mubr.f32.mxu0 %v17509_v56  ;;  %v18842_v56 = vld [vmem:[#allocation14_spill] sm:$0xff] }
 0x84f   : > { %8893 = vmatmul.mubr.f32.gmra.mrb[24].mxu0 %v17810_v21 }
 0x850   : > { %8897 = vmatprep.mubr.f32.mxu0 %v18830_v58  ;;  %v18843_v58 = vld [vmem:[#allocation15_spill] sm:$0xff] }
 0x853   : > { %8898 = vmatmul.mubr.f32.gmra.mrb[26].mxu0 %v17814_v9 }
 0x854   : > { %8902 = vmatprep.mubr.f32.mxu0 %v17532_v35  ;;  %v7792_v35 = vld [vmem:[#allocation3 + $0x1a2] sm:$0xff] }
 0x855   : > { %12670 = vmatmul.mubr.f32.gmra.mrb[190].mxu1 %v7792_v35  ;;  %v10520_v35 = vld [vmem:[#allocation5 + $0x1600] sm:$0xff] }
 0x857   : > { %8903 = vmatmul.mubr.f32.gmra.mrb[28].mxu0 %v17818_v38 }
 0x858   : > { %8907 = vmatprep.mubr.f32.mxu0 %v17536_v59  ;;  %v18845_v59 = vmax.f32 %v18844_v54, 0.0  ;;  %v10396_v54 = vld [vmem:[#allocation5 + $0x1220] sm:$0xff] }
 0x85b   : > { %8908 = vmatmul.mubr.f32.gmra.mrb[30].mxu0 %v17822_v6 }
 0x85c   : > { %8912 = vmatprep.mubr.f32.mxu0 %v18831_v34  ;;  %v10392_v34 = vld [vmem:[#allocation5 + $0x1200] sm:$0xff] }
 0x85f   : > { %8913 = vmatmul.mubr.f32.gmra.mrb[32].mxu0 %v18842_v56  ;;  %v10393_v56 = vld [vmem:[#allocation5 + $0x1208] sm:$0xff] }
 0x860   : > { %8917 = vmatprep.mubr.f32.mxu0 %v18832_v26  ;;  %v13649_v26 = vpack.c.bf16 %v10393_v56, %v10392_v34  ;;  %v10401_v56 = vld [vmem:[#allocation5 + $0x1248] sm:$0xff] }
 0x862   : > { %13650 = vmatpush1.bf16.msra.mxu1 %v13649_v26  ;;  %v7636_v26 = vld [vmem:[#allocation3 + $0x50] sm:$0xff] }
 0x863   : > { %8918 = vmatmul.mubr.f32.gmra.mrb[34].mxu0 %v18843_v58  ;;  %v10395_v58 = vld [vmem:[#allocation5 + $0x1218] sm:$0xff]  ;;  %13651 = vmatprep.subr.bf16.mxu1 %v18745_v12 }
 0x864   : > { %8922 = vmatprep.mubr.f32.mxu0 %v17573_v23  ;;  %v13652_v23 = vpack.c.bf16 %v10395_v58, %v10394_v24 }
 0x866   : > { %13653 = vmatpush1.bf16.msra.mxu1 %v13652_v23  ;;  %v10403_v23 = vld [vmem:[#allocation5 + $0x1258] sm:$0xff] }
 0x867   : > { %8923 = vmatmul.mubr.f32.gmra.mrb[36].mxu0 %v18845_v59  ;;  %13654 = vmatprep.subr.bf16.mxu1 %v18745_v12  ;;  %v10521_v59 = vld [vmem:[#allocation5 + $0x1608] sm:$0xff] }
 0x868   : > { %8927 = vmatprep.mubr.f32.mxu0 %v17575_v31  ;;  %v7634_v31 = vld [vmem:[#allocation3 + $0x38] sm:$0xff]  ;;  %v13840_v24 = vpack.c.bf16 %v10521_v59, %v10520_v35  ;;  %v10407_v35 = vld [vmem:[#allocation5 + $0x1278] sm:$0xff] }
 0x86a   : > { %13841 = vmatprep.subr.bf16.mxu0 %v13840_v24 }
 0x86b   : > { %8928 = vmatmul.mubr.f32.gmra.mrb[38].mxu0 %v18847_v49  ;;  %v13655_v49 = vpack.c.bf16 %v10397_v57, %v10396_v54  ;;  %v7637_v54 = vld [vmem:[#allocation3 + $0x60] sm:$0xff] }
 0x86c   : > { %8997 = vmatprep.mubr.f32.mxu0 %v17702_v62  ;;  %v10399_v62 = vld [vmem:[#allocation5 + $0x1238] sm:$0xff] }
 0x86d   : > { %13656 = vmatpush1.bf16.msra.mxu1 %v13655_v49  ;;  %v13658_v34 = vpack.c.bf16 %v10399_v62, %v10398_v20  ;;  %v7638_v49 = vld [vmem:[#allocation3 + $0x68] sm:$0xff]  ;;  %v10406_v62 = vld [vmem:[#allocation5 + $0x1270] sm:$0xff] }
 0x86e   : > { %13657 = vmatprep.subr.bf16.mxu1 %v18745_v12  ;;  %v13670_v59 = vpack.c.bf16 %v10407_v35, %v10406_v62  ;;  %v10418_v62 = vld [vmem:[#allocation5 + $0x12d0] sm:$0xff]  ;;  %v10419_v35 = vld [vmem:[#allocation5 + $0x12d8] sm:$0xff] }
 0x86f   : > { %8998 = vmatmul.mubr.f32.vlgmr.msra.gmra.mrb[232].mxu0 %v7633_v22  ;;  %v7635_v22 = vld [vmem:[#allocation3 + $0x48] sm:$0xff] }
 0x870   : > { %9002 = vmatprep.mubr.f32.mxu0 %v17706_v18  ;;  %v10400_v18 = vld [vmem:[#allocation5 + $0x1240] sm:$0xff]  ;;  %13843 = vmatpush3.bf16.msra.mxu0 %v13840_v24 }
 0x871   : > { %13659 = vmatpush1.bf16.msra.mxu1 %v13658_v34  ;;  %v13661_v58 = vpack.c.bf16 %v10401_v56, %v10400_v18  ;;  %v10408_v24 = vld [vmem:[#allocation5 + $0x1280] sm:$0xff]  ;;  %v10410_v18 = vld [vmem:[#allocation5 + $0x1290] sm:$0xff]  ;;  %v10411_v56 = vld [vmem:[#allocation5 + $0x1298] sm:$0xff] }
 0x872   : > { %13660 = vmatprep.subr.bf16.mxu1 %v18745_v12 }
 0x873   : > { %9003 = vmatmul.mubr.f32.gmra.mrb[234].mxu0 %v7634_v31  ;;  %v10404_v31 = vld [vmem:[#allocation5 + $0x1260] sm:$0xff] }
 0x874   : > { %9007 = vmatprep.mubr.f32.mxu0 %v17710_v43  ;;  %v10402_v43 = vld [vmem:[#allocation5 + $0x1250] sm:$0xff] }
 0x875   : > { %13662 = vmatpush1.bf16.msra.mxu1 %v13661_v58  ;;  %v13664_v57 = vpack.c.bf16 %v10403_v23, %v10402_v43  ;;  %v10412_v58 = vld [vmem:[#allocation5 + $0x12a0] sm:$0xff]  ;;  %v10413_v43 = vld [vmem:[#allocation5 + $0x12a8] sm:$0xff] }
 0x876   : > { %13663 = vmatprep.subr.bf16.mxu1 %v18745_v12  ;;  %v13679_v23 = vpack.c.bf16 %v10413_v43, %v10412_v58  ;;  %v9591_v58 = vld [vmem:[#allocation2 + $0x1] sm:$0xff] }
 0x877   : > { %9008 = vmatmul.mubr.f32.gmra.mrb[236].mxu0 %v7635_v22  ;;  %v10409_v22 = vld [vmem:[#allocation5 + $0x1288] sm:$0xff]  ;;  %10600 = vmatprep.mubr.f32.mxu1 %v9591_v58  ;;  %v7728_v58 = vld [vmem:[#allocation3 + $0x1a1] sm:$0xff] }
 0x878   : > { %9012 = vmatprep.mubr.f32.mxu0 %v17714_v44  ;;  %v10405_v44 = vld [vmem:[#allocation5 + $0x1268] sm:$0xff]  ;;  %v13673_v34 = vpack.c.bf16 %v10409_v22, %v10408_v24  ;;  %v7649_v24 = vld [vmem:[#allocation3 + $0xf0] sm:$0xff]  ;;  %v7651_v22 = vld [vmem:[#allocation3 + $0x108] sm:$0xff] }
 0x879   : > { %13665 = vmatpush1.bf16.msra.mxu1 %v13664_v57  ;;  %v13667_v20 = vpack.c.bf16 %v10405_v44, %v10404_v31  ;;  %v10415_v57 = vld [vmem:[#allocation5 + $0x12b8] sm:$0xff]  ;;  %v10416_v44 = vld [vmem:[#allocation5 + $0x12c0] sm:$0xff]  ;;  %v10525_v43 = vld [vmem:[#allocation5 + $0x1628] sm:$0xff] }
 0x87a   : > { %13666 = vmatprep.subr.bf16.mxu1 %v18745_v12 }
 0x87b   : > { %9013 = vmatmul.mubr.f32.gmra.mrb[238].mxu0 %v7636_v26  ;;  %v13676_v26 = vpack.c.bf16 %v10411_v56, %v10410_v18  ;;  %v10423_v18 = vld [vmem:[#allocation5 + $0x12f8] sm:$0xff]  ;;  %v10522_v56 = vld [vmem:[#allocation5 + $0x1610] sm:$0xff] }
 0x87c   : > { %9017 = vmatprep.mubr.f32.mxu0 %v17718_v27  ;;  %v7639_v27 = vld [vmem:[#allocation3 + $0x78] sm:$0xff] }
 0x87d   : > { %13668 = vmatpush1.bf16.msra.mxu1 %v13667_v20 }
 0x87e   : > { %13669 = vmatprep.subr.bf16.mxu1 %v18745_v12 }
 0x87f   : > { %9018 = vmatmul.mubr.f32.gmra.mrb[240].mxu0 %v7637_v54  ;;  %v10414_v54 = vld [vmem:[#allocation5 + $0x12b0] sm:$0xff] }
 0x880   : > { %9022 = vmatprep.mubr.f32.mxu0 %v17722_v25  ;;  %v7640_v25 = vld [vmem:[#allocation3 + $0x80] sm:$0xff]  ;;  %v13682_v31 = vpack.c.bf16 %v10415_v57, %v10414_v54 }
 0x881   : > { %13671 = vmatpush1.bf16.msra.mxu1 %v13670_v59  ;;  %v7646_v59 = vld [vmem:[#allocation3 + $0xc8] sm:$0xff]  ;;  %v9592_v54 = vld [vmem:[#allocation2 + $0x9] sm:$0xff] }
 0x882   : > { %13672 = vmatprep.subr.bf16.mxu1 %v18745_v12  ;;  %v10526_v57 = vld [vmem:[#allocation5 + $0x1630] sm:$0xff] }
 0x883   : > { %9023 = vmatmul.mubr.f32.gmra.mrb[242].mxu0 %v7638_v49  ;;  %v10417_v49 = vld [vmem:[#allocation5 + $0x12c8] sm:$0xff] }
 0x884   : > { %9027 = vmatprep.mubr.f32.mxu0 %v17726_v7  ;;  %v7641_v7 = vld [vmem:[#allocation3 + $0x90] sm:$0xff]  ;;  %v13685_v20 = vpack.c.bf16 %v10417_v49, %v10416_v44  ;;  %v10529_v49 = vld [vmem:[#allocation5 + $0x1648] sm:$0xff] }
 0x885   : > { %13674 = vmatpush1.bf16.msra.mxu1 %v13673_v34  ;;  %v10421_v34 = vld [vmem:[#allocation5 + $0x12e8] sm:$0xff]  ;;  %v10528_v44 = vld [vmem:[#allocation5 + $0x1640] sm:$0xff] }
 0x886   : > { %13675 = vmatprep.subr.bf16.mxu1 %v18745_v12 }
 0x887   : > { %9028 = vmatmul.mubr.f32.gmra.mrb[244].mxu0 %v7639_v27  ;;  %v13688_v27 = vpack.c.bf16 %v10419_v35, %v10418_v62  ;;  %v7723_v62 = vld [vmem:[#allocation3 + $0x169] sm:$0xff] }
 0x888   : > { %9032 = vmatprep.mubr.f32.mxu0 %v17730_v53  ;;  %v7642_v53 = vld [vmem:[#allocation3 + $0x98] sm:$0xff]  ;;  %v10424_v35 = vld [vmem:[#allocation5 + $0x1300] sm:$0xff] }
 0x889   : > { %13677 = vmatpush1.bf16.msra.mxu1 %v13676_v26  ;;  %v7655_v26 = vld [vmem:[#allocation3 + $0x138] sm:$0xff] }
 0x88a   : > { %13678 = vmatprep.subr.bf16.mxu1 %v18745_v12 }
 0x88b   : > { %9033 = vmatmul.mubr.f32.gmra.mrb[246].mxu0 %v7640_v25  ;;  %v10420_v25 = vld [vmem:[#allocation5 + $0x12e0] sm:$0xff] }
 0x88c   : > { %9037 = vmatprep.mubr.f32.mxu0 %v17734_v55  ;;  %v7643_v55 = vld [vmem:[#allocation3 + $0xa8] sm:$0xff] }
 0x88d   : > { %13680 = vmatpush1.bf16.msra.mxu1 %v13679_v23  ;;  %v17875_v23 = vld [vmem:[#allocation2] sm:$0xff] }
 0x88e   : > { %13681 = vmatprep.subr.bf16.mxu1 %v18745_v12 }
 0x88f   : > { %9038 = vmatmul.mubr.f32.gmra.mrb[248].mxu0 %v7641_v7 }
 0x890   : > { %9042 = vmatprep.mubr.f32.mxu0 %v17738_v39  ;;  %v7644_v39 = vld [vmem:[#allocation3 + $0xb0] sm:$0xff] }
 0x891   : > { %13683 = vmatpush1.bf16.msra.mxu1 %v13682_v31 }
 0x892   : > { %13684 = vmatprep.subr.bf16.mxu1 %v18745_v12 }
 0x893   : > { %9043 = vmatmul.mubr.f32.gmra.mrb[250].mxu0 %v7642_v53 }
 0x894   : > { %9047 = vmatprep.mubr.f32.mxu0 %v17742_v16  ;;  %v7645_v16 = vld [vmem:[#allocation3 + $0xc0] sm:$0xff] }
 0x895   : > { %13686 = vmatpush1.bf16.msra.mxu1 %v13685_v20  ;;  %v7658_v20 = vld [vmem:[#allocation3 + $0x158] sm:$0xff] }
 0x896   : > { %13687 = vmatprep.subr.bf16.mxu1 %v18745_v12 }
 0x897   : > { %9048 = vmatmul.mubr.f32.gmra.mrb[252].mxu0 %v7643_v55  ;;  %v10527_v55 = vld [vmem:[#allocation5 + $0x1638] sm:$0xff] }
 0x898   : > { %9052 = vmatprep.mubr.f32.mxu0 %v17750_v0  ;;  %v7647_v0 = vld [vmem:[#allocation3 + $0xd8] sm:$0xff]  ;;  %v13852_v31 = vpack.c.bf16 %v10527_v55, %v10526_v57  ;;  %v10435_v57 = vld [vmem:[#allocation5 + $0x1358] sm:$0xff] }
 0x899   : > { %13689 = vmatpush1.bf16.msra.mxu1 %v13688_v27 }
 0x89a   : > { %13690 = vmatprep.subr.bf16.mxu1 %v18745_v12 }
 0x89b   : > { %9053 = vmatmul.mubr.f32.gmra.mrb[254].mxu0 %v7644_v39  ;;  %v13856_v39 = vpack.c.bf16 %v10529_v49, %v10528_v44  ;;  %v10438_v44 = vld [vmem:[#allocation5 + $0x1370] sm:$0xff]  ;;  %v10439_v49 = vld [vmem:[#allocation5 + $0x1378] sm:$0xff] }
 0x89c   : > { %9057 = vmatprep.mubr.f32.mxu0 %v17754_v2  ;;  %v7648_v2 = vld [vmem:[#allocation3 + $0xe0] sm:$0xff] }
 0x89f   : > { %9058 = vmatmul.mubr.f32.gmra.mrb[0].mxu0 %v7645_v16  ;;  %v10425_v16 = vld [vmem:[#allocation5 + $0x1308] sm:$0xff] }
 0x8a0   : > { %9062 = vmatprep.mubr.f32.mxu0 %v17762_v60  ;;  %v7650_v60 = vld [vmem:[#allocation3 + $0xf8] sm:$0xff]  ;;  %v13697_v27 = vpack.c.bf16 %v10425_v16, %v10424_v35  ;;  %v10442_v16 = vld [vmem:[#allocation5 + $0x1390] sm:$0xff] }
 0x8a3   : > { %9063 = vmatmul.mubr.f32.gmra.mrb[2].mxu0 %v7646_v59  ;;  %v10531_v59 = vld [vmem:[#allocation5 + $0x1658] sm:$0xff] }
 0x8a4   : > { %9067 = vmatprep.mubr.f32.mxu0 %v17765_v51  ;;  %v7652_v51 = vld [vmem:[#allocation3 + $0x110] sm:$0xff] }
 0x8a7   : > { %9068 = vmatmul.mubr.f32.gmra.mrb[4].mxu0 %v7647_v0 }
 0x8a8   : > { %9072 = vmatprep.mubr.f32.mxu0 %v17772_v36  ;;  %v7653_v36 = vld [vmem:[#allocation3 + $0x120] sm:$0xff] }
 0x8ab   : > { %9073 = vmatmul.mubr.f32.gmra.mrb[6].mxu0 %v7648_v2  ;;  %v7659_v2 = vld [vmem:[#allocation3 + $0x168] sm:$0xff] }
 0x8ac   : > { %9077 = vmatprep.mubr.f32.mxu0 %v17775_v48  ;;  %v13691_v48 = vpack.c.bf16 %v10421_v34, %v10420_v25  ;;  %v10426_v25 = vld [vmem:[#allocation5 + $0x1310] sm:$0xff]  ;;  %v10427_v34 = vld [vmem:[#allocation5 + $0x1318] sm:$0xff] }
 0x8ae   : > { %13692 = vmatpush1.bf16.msra.mxu1 %v13691_v48  ;;  %v10534_v48 = vld [vmem:[#allocation5 + $0x1670] sm:$0xff] }
 0x8af   : > { %9078 = vmatmul.mubr.f32.gmra.mrb[8].mxu0 %v7649_v24  ;;  %13693 = vmatprep.subr.bf16.mxu1 %v18745_v12  ;;  %v7724_v24 = vld [vmem:[#allocation3 + $0x171] sm:$0xff] }
 0x8b0   : > { %9082 = vmatprep.mubr.f32.mxu0 %v17782_v32  ;;  %v7654_v32 = vld [vmem:[#allocation3 + $0x128] sm:$0xff] }
 0x8b3   : > { %9083 = vmatmul.mubr.f32.gmra.mrb[10].mxu0 %v7650_v60  ;;  %v10533_v60 = vld [vmem:[#allocation5 + $0x1668] sm:$0xff] }
 0x8b4   : > { %9087 = vmatprep.mubr.f32.mxu0 %v17786_v28  ;;  %v10422_v28 = vld [vmem:[#allocation5 + $0x12f0] sm:$0xff] }
 0x8b5   : > { %v13694_v7 = vpack.c.bf16 %v10423_v18, %v10422_v28  ;;  %v10535_v28 = vld [vmem:[#allocation5 + $0x1678] sm:$0xff] }
 0x8b6   : > { %v13868_v18 = vpack.c.bf16 %v10535_v28, %v10534_v48 }
 0x8b7   : > { %9088 = vmatmul.mubr.f32.gmra.mrb[12].mxu0 %v7651_v22  ;;  %13695 = vmatpush1.bf16.msra.mxu1 %v13694_v7  ;;  %v10428_v7 = vld [vmem:[#allocation5 + $0x1320] sm:$0xff] }
 0x8b8   : > { %9092 = vmatprep.mubr.f32.mxu0 %v17794_v3  ;;  %v10523_v3 = vld [vmem:[#allocation5 + $0x1618] sm:$0xff]  ;;  %13696 = vmatprep.subr.bf16.mxu1 %v18745_v12 }
 0x8ba   : > { %10601 = vmatmul.mubr.f32.vlgmr.msra.gmra.mrb[192].mxu1 %v17875_v23 }
 0x8bb   : > { %9093 = vmatmul.mubr.f32.gmra.mrb[14].mxu0 %v7652_v51  ;;  %10605 = vmatprep.mubr.f32.mxu1 %v9592_v54  ;;  %v7660_v51 = vld [vmem:[#allocation3 + $0x170] sm:$0xff]  ;;  %v10434_v54 = vld [vmem:[#allocation5 + $0x1350] sm:$0xff] }
 0x8bc   : > { %9097 = vmatprep.mubr.f32.mxu0 %v17798_v45  ;;  %v13844_v45 = vpack.c.bf16 %v10523_v3, %v10522_v56  ;;  %13698 = vmatpush1.bf16.msra.mxu1 %v13697_v27  ;;  %v7726_v56 = vld [vmem:[#allocation3 + $0x189] sm:$0xff]  ;;  %v7727_v3 = vld [vmem:[#allocation3 + $0x199] sm:$0xff]  ;;  %v13712_v55 = vpack.c.bf16 %v10435_v57, %v10434_v54 }
 0x8bd   : > { %13699 = vmatprep.subr.bf16.mxu1 %v18745_v12  ;;  %v10454_v54 = vld [vmem:[#allocation5 + $0x13f0] sm:$0xff]  ;;  %v10455_v57 = vld [vmem:[#allocation5 + $0x13f8] sm:$0xff] }
 0x8be   : > { %13845 = vmatprep.subr.bf16.mxu0 %v13844_v45  ;;  %10606 = vmatmul.mubr.f32.gmra.mrb[194].mxu1 %v17875_v23 }
 0x8bf   : > { %9098 = vmatmul.mubr.f32.gmra.mrb[16].mxu0 %v7653_v36  ;;  %v7725_v36 = vld [vmem:[#allocation3 + $0x181] sm:$0xff] }
 0x8c0   : > { %9102 = vmatprep.mubr.f32.mxu0 %v17806_v4  ;;  %v10524_v4 = vld [vmem:[#allocation5 + $0x1620] sm:$0xff]  ;;  %13847 = vmatpush3.bf16.msra.mxu0 %v13844_v45  ;;  %v10429_v45 = vld [vmem:[#allocation5 + $0x1328] sm:$0xff] }
 0x8c1   : > { %v13848_v53 = vpack.c.bf16 %v10525_v43, %v10524_v4  ;;  %v10431_v4 = vld [vmem:[#allocation5 + $0x1338] sm:$0xff] }
 0x8c3   : > { %9103 = vmatmul.mubr.f32.gmra.mrb[18].mxu0 %v7654_v32  ;;  %13849 = vmatprep.subr.bf16.mxu0 %v13848_v53  ;;  %v13700_v32 = vpack.c.bf16 %v10427_v34, %v10426_v25  ;;  %v10450_v25 = vld [vmem:[#allocation5 + $0x13d0] sm:$0xff]  ;;  %v10451_v34 = vld [vmem:[#allocation5 + $0x13d8] sm:$0xff] }
 0x8c4   : > { %9107 = vmatprep.mubr.f32.mxu0 %v17810_v21  ;;  %v7656_v21 = vld [vmem:[#allocation3 + $0x140] sm:$0xff]  ;;  %13851 = vmatpush3.bf16.msra.mxu0 %v13848_v53  ;;  %v10433_v53 = vld [vmem:[#allocation5 + $0x1348] sm:$0xff] }
 0x8c5   : > { %13853 = vmatprep.subr.bf16.mxu0 %v13852_v31  ;;  %13701 = vmatpush1.bf16.msra.mxu1 %v13700_v32  ;;  %v13736_v32 = vpack.c.bf16 %v10451_v34, %v10450_v25 }
 0x8c6   : > { %13702 = vmatprep.subr.bf16.mxu1 %v18745_v12 }
 0x8c7   : > { %9108 = vmatmul.mubr.f32.gmra.mrb[20].mxu0 %v7655_v26  ;;  %v13703_v26 = vpack.c.bf16 %v10429_v45, %v10428_v7  ;;  %v10452_v45 = vld [vmem:[#allocation5 + $0x13e0] sm:$0xff] }
 0x8c8   : > { %9112 = vmatprep.mubr.f32.mxu0 %v17814_v9  ;;  %v7657_v9 = vld [vmem:[#allocation3 + $0x150] sm:$0xff]  ;;  %13855 = vmatpush3.bf16.msra.mxu0 %v13852_v31 }
 0x8c9   : > { %13857 = vmatprep.subr.bf16.mxu0 %v13856_v39  ;;  %13704 = vmatpush1.bf16.msra.mxu1 %v13703_v26  ;;  %v10436_v31 = vld [vmem:[#allocation5 + $0x1360] sm:$0xff]  ;;  %v10453_v26 = vld [vmem:[#allocation5 + $0x13e8] sm:$0xff] }
 0x8ca   : > { %13705 = vmatprep.subr.bf16.mxu1 %v18745_v12 }
 0x8cb   : > { %9113 = vmatmul.mubr.f32.gmra.mrb[22].mxu0 %v7656_v21 }
 0x8cc   : > { %9117 = vmatprep.mubr.f32.mxu0 %v17818_v38  ;;  %v10530_v38 = vld [vmem:[#allocation5 + $0x1650] sm:$0xff]  ;;  %13859 = vmatpush3.bf16.msra.mxu0 %v13856_v39  ;;  %v13718_v39 = vpack.c.bf16 %v10439_v49, %v10438_v44 }
 0x8cd   : > { %v13860_v0 = vpack.c.bf16 %v10531_v59, %v10530_v38  ;;  %v10443_v38 = vld [vmem:[#allocation5 + $0x1398] sm:$0xff]  ;;  %v10444_v59 = vld [vmem:[#allocation5 + $0x13a0] sm:$0xff] }
 0x8ce   : > { %v13724_v27 = vpack.c.bf16 %v10443_v38, %v10442_v16 }
 0x8cf   : > { %9118 = vmatmul.mubr.f32.gmra.mrb[24].mxu0 %v7657_v9  ;;  %13861 = vmatprep.subr.bf16.mxu0 %v13860_v0 }
 0x8d0   : > { %9122 = vmatprep.mubr.f32.mxu0 %v17822_v6  ;;  %v10532_v6 = vld [vmem:[#allocation5 + $0x1660] sm:$0xff]  ;;  %13863 = vmatpush3.bf16.msra.mxu0 %v13860_v0  ;;  %v10445_v0 = vld [vmem:[#allocation5 + $0x13a8] sm:$0xff] }
 0x8d1   : > { %v13864_v22 = vpack.c.bf16 %v10533_v60, %v10532_v6  ;;  %v10447_v6 = vld [vmem:[#allocation5 + $0x13b8] sm:$0xff] }
 0x8d3   : > { %9123 = vmatmul.mubr.f32.gmra.mrb[26].mxu0 %v7658_v20  ;;  %13865 = vmatprep.subr.bf16.mxu0 %v13864_v22  ;;  %v10440_v20 = vld [vmem:[#allocation5 + $0x1380] sm:$0xff] }
 0x8d4   : > { %9127 = vmatprep.mubr.f32.mxu0 %v7723_v62  ;;  %13867 = vmatpush3.bf16.msra.mxu0 %v13864_v22  ;;  %v10441_v62 = vld [vmem:[#allocation5 + $0x1388] sm:$0xff]  ;;  %v10448_v22 = vld [vmem:[#allocation5 + $0x13c0] sm:$0xff] }
 0x8d5   : > { %13869 = vmatprep.subr.bf16.mxu0 %v13868_v18  ;;  %v13721_v35 = vpack.c.bf16 %v10441_v62, %v10440_v20 }
 0x8d7   : > { %9128 = vmatmul.mubr.f32.gmra.mrb[28].mxu0 %v7659_v2  ;;  %v13727_v2 = vpack.c.bf16 %v10445_v0, %v10444_v59 }
 0x8d8   : > { %9132 = vmatprep.mubr.f32.mxu0 %v7724_v24  ;;  %13871 = vmatpush3.bf16.msra.mxu0 %v13868_v18  ;;  %v10446_v24 = vld [vmem:[#allocation5 + $0x13b0] sm:$0xff] }
 0x8d9   : > { %v13730_v60 = vpack.c.bf16 %v10447_v6, %v10446_v24 }
 0x8db   : > { %9133 = vmatmul.mubr.f32.gmra.mrb[30].mxu0 %v7660_v51  ;;  %v10449_v51 = vld [vmem:[#allocation5 + $0x13c8] sm:$0xff] }
 0x8dc   : > { %9137 = vmatprep.mubr.f32.mxu0 %v7725_v36  ;;  %v13733_v36 = vpack.c.bf16 %v10449_v51, %v10448_v22 }
 0x8df   : > { %9138 = vmatmul.mubr.f32.gmra.mrb[32].mxu0 %v17686_v17  ;;  %v10430_v17 = vld [vmem:[#allocation5 + $0x1330] sm:$0xff] }
 0x8e0   : > { %9142 = vmatprep.mubr.f32.mxu0 %v7726_v56  ;;  %v13706_v43 = vpack.c.bf16 %v10431_v4, %v10430_v17  ;;  %v17903_v56 = vld [vmem:[#allocation7 + $0x3] ss:$0 sm:$0xff]  ;;  %v13739_v17 = vpack.c.bf16 %v10453_v26, %v10452_v45 }
 0x8e2   : > { %13707 = vmatpush1.bf16.msra.mxu1 %v13706_v43 }
 0x8e3   : > { %9143 = vmatmul.mubr.f32.gmra.mrb[34].mxu0 %v17690_v41  ;;  %13708 = vmatprep.subr.bf16.mxu1 %v18745_v12  ;;  %v10432_v41 = vld [vmem:[#allocation5 + $0x1340] sm:$0xff] }
 0x8e4   : > { %9147 = vmatprep.mubr.f32.mxu0 %v7727_v3  ;;  %v13709_v21 = vpack.c.bf16 %v10433_v53, %v10432_v41 }
 0x8e6   : > { %13710 = vmatpush1.bf16.msra.mxu1 %v13709_v21 }
 0x8e7   : > { %9148 = vmatmul.mubr.f32.gmra.mrb[36].mxu0 %v17875_v23  ;;  %13711 = vmatprep.subr.bf16.mxu1 %v18745_v12 }
 0x8e8   : > { %9152 = vmatprep.mubr.f32.mxu0 %v7728_v58  ;;  %v17906_v58 = vld [vmem:[#allocation9 + $0x3] ss:$0 sm:$0xff] }
 0x8ea   : > { %13713 = vmatpush1.bf16.msra.mxu1 %v13712_v55 }
 0x8eb   : > { %9153 = vmatmul.mubr.f32.gmra.mrb[38].mxu0 %v17875_v23  ;;  %13714 = vmatprep.subr.bf16.mxu1 %v18745_v12  ;;  %v10437_v23 = vld [vmem:[#allocation5 + $0x1368] sm:$0xff] }
 0x8ec   : > { %v13715_v9 = vpack.c.bf16 %v10437_v23, %v10436_v31 }
 0x8ee   : > { %13716 = vmatpush1.bf16.msra.mxu1 %v13715_v9 }
 0x8ef   : > { %13717 = vmatprep.subr.bf16.mxu1 %v18745_v12 }
 0x8f2   : > { %13719 = vmatpush1.bf16.msra.mxu1 %v13718_v39 }
 0x8f3   : > { %13720 = vmatprep.subr.bf16.mxu1 %v18745_v12 }
 0x8f6   : > { %13722 = vmatpush1.bf16.msra.mxu1 %v13721_v35 }
 0x8f7   : > { %13723 = vmatprep.subr.bf16.mxu1 %v18745_v12 }
 0x8fa   : > { %13725 = vmatpush1.bf16.msra.mxu1 %v13724_v27 }
 0x8fb   : > { %13726 = vmatprep.subr.bf16.mxu1 %v18745_v12 }
 0x8fe   : > { %13728 = vmatpush1.bf16.msra.mxu1 %v13727_v2 }
 0x8ff   : > { %13729 = vmatprep.subr.bf16.mxu1 %v18745_v12 }
 0x902   : > { %13731 = vmatpush1.bf16.msra.mxu1 %v13730_v60 }
 0x903   : > { %13732 = vmatprep.subr.bf16.mxu1 %v18745_v12 }
 0x906   : > { %13734 = vmatpush1.bf16.msra.mxu1 %v13733_v36 }
 0x907   : > { %13735 = vmatprep.subr.bf16.mxu1 %v18745_v12 }
 0x90a   : > { %13737 = vmatpush1.bf16.msra.mxu1 %v13736_v32 }
 0x90b   : > { %13738 = vmatprep.subr.bf16.mxu1 %v18745_v12 }
 0x90e   : > { %13740 = vmatpush1.bf16.msra.mxu1 %v13739_v17 }
 0x90f   : > { %13741 = vmatprep.subr.bf16.mxu1 %v18745_v12 }
 0x928   : > { %v17898_v48 = vpop.f32.mrb[190].mxu1 }
 0x929   : > { %v17900_v28 = vpop.f32.mrb[191].mxu1 }
 0x942   : > { %v8999_v18 = vpop.f32.mrb[232].mxu0 }
 0x943   : > { %v9225_v3 = vadd.f32 %v17625_v11, %v8999_v18  ;;  %v9001_v7 = vpop.f32.mrb[233].mxu0  ;;  %v13742_v11 = vpack.c.bf16 %v10455_v57, %v10454_v54 }
 0x945   : > { %v9391_v4 = vmul.f32 %v17903_v56, %v9225_v3  ;;  %13743 = vmatpush1.bf16.msra.mxu1 %v13742_v11 }
 0x946   : > { %v9004_v43 = vpop.f32.mrb[234].mxu0  ;;  %13744 = vmatprep.subr.bf16.mxu1 %v18745_v12 }
 0x947   : > { %v9431_v41 = vadd.f32 %v17906_v58, %v9391_v4  ;;  %v9230_v53 = vadd.f32 %v17623_v19, %v9004_v43  ;;  %v9006_v21 = vpop.f32.mrb[235].mxu0 }
 0x949   : > { %v9463_v55 = vmax.f32 %v9431_v41, 0.0  ;;  %v9392_v31 = vmul.f32 %v17903_v56, %v9230_v53 }
 0x94a   : > { %v9009_v23 = vpop.f32.mrb[236].mxu0 }
 0x94b   : > { %9495 = vst [vmem:[#allocation2 + $0x19] sm:$0xff] %v9463_v55  ;;  %v9432_v9 = vadd.f32 %v17906_v58, %v9392_v31  ;;  %v9235_v44 = vadd.f32 %v17635_v8, %v9009_v23  ;;  %v9011_v49 = vpop.f32.mrb[237].mxu0  ;;  %10610 = vmatprep.mubr.f32.mxu1 %v9463_v55 }
 0x94d   : > { %v9464_v19 = vmax.f32 %v9432_v9, 0.0  ;;  %v9393_v39 = vmul.f32 %v17903_v56, %v9235_v44 }
 0x94e   : > { %v9014_v20 = vpop.f32.mrb[238].mxu0 }
 0x94f   : > { %9496 = vst [vmem:[#allocation2 + $0x21] sm:$0xff] %v9464_v19  ;;  %v9433_v62 = vadd.f32 %v17906_v58, %v9393_v39  ;;  %v9240_v35 = vadd.f32 %v17633_v33, %v9014_v20  ;;  %v9016_v16 = vpop.f32.mrb[239].mxu0 }
 0x951   : > { %v9465_v38 = vmax.f32 %v9433_v62, 0.0  ;;  %v9394_v27 = vmul.f32 %v17903_v56, %v9240_v35 }
 0x952   : > { %v9019_v59 = vpop.f32.mrb[240].mxu0  ;;  %v17920_v0 = vld [vmem:[#allocation2 + $0x18] sm:$0xff] }
 0x953   : > { %9497 = vst [vmem:[#allocation2 + $0x31] sm:$0xff] %v9465_v38  ;;  %v9434_v8 = vadd.f32 %v17906_v58, %v9394_v27  ;;  %v9245_v2 = vadd.f32 %v17643_v50, %v9019_v59  ;;  %v9021_v24 = vpop.f32.mrb[241].mxu0  ;;  %10611 = vmatmul.mubr.f32.gmra.mrb[196].mxu1 %v17920_v0 }
 0x954   : > { %10615 = vmatprep.mubr.f32.mxu1 %v9464_v19 }
 0x955   : > { %v9466_v6 = vmax.f32 %v9434_v8, 0.0  ;;  %v9395_v60 = vmul.f32 %v17903_v56, %v9245_v2 }
 0x956   : > { %v9024_v33 = vpop.f32.mrb[242].mxu0  ;;  %v17926_v22 = vld [vmem:[#allocation2 + $0x20] sm:$0xff] }
 0x957   : > { %9498 = vst [vmem:[#allocation2 + $0x39] sm:$0xff] %v9466_v6  ;;  %v9435_v51 = vadd.f32 %v17906_v58, %v9395_v60  ;;  %v9250_v36 = vadd.f32 %v17641_v29, %v9024_v33  ;;  %v9026_v25 = vpop.f32.mrb[243].mxu0  ;;  %10616 = vmatmul.mubr.f32.gmra.mrb[198].mxu1 %v17926_v22 }
 0x958   : > { %10620 = vmatprep.mubr.f32.mxu1 %v9465_v38 }
 0x959   : > { %v9467_v50 = vmax.f32 %v9435_v51, 0.0  ;;  %v9396_v34 = vmul.f32 %v17903_v56, %v9250_v36 }
 0x95a   : > { %v9029_v32 = vpop.f32.mrb[244].mxu0  ;;  %v17932_v18 = vld [vmem:[#allocation2 + $0x30] sm:$0xff] }
 0x95b   : > { %9499 = vst [vmem:[#allocation2 + $0x49] sm:$0xff] %v9467_v50  ;;  %v9436_v3 = vadd.f32 %v17906_v58, %v9396_v34  ;;  %v9255_v7 = vadd.f32 %v17651_v30, %v9029_v32  ;;  %v9031_v45 = vpop.f32.mrb[245].mxu0  ;;  %10621 = vmatmul.mubr.f32.gmra.mrb[200].mxu1 %v17932_v18 }
 0x95c   : > { %10625 = vmatprep.mubr.f32.mxu1 %v9466_v6 }
 0x95d   : > { %v9468_v29 = vmax.f32 %v9436_v3, 0.0  ;;  %v9397_v26 = vmul.f32 %v17903_v56, %v9255_v7 }
 0x95e   : > { %v9034_v17 = vpop.f32.mrb[246].mxu0  ;;  %v17938_v4 = vld [vmem:[#allocation2 + $0x32] sm:$0xff]  ;;  %v17942_v41 = vld [vmem:[#allocation2 + $0x3a] sm:$0xff] }
 0x95f   : > { %v17940_v43 = vld [vmem:[#allocation2 + $0x38] sm:$0xff]  ;;  %9500 = vst [vmem:[#allocation2 + $0x51] sm:$0xff] %v9468_v29  ;;  %v9437_v53 = vadd.f32 %v17906_v58, %v9397_v26  ;;  %v9260_v21 = vadd.f32 %v17649_v61, %v9034_v17  ;;  %v9036_v30 = vpop.f32.mrb[247].mxu0  ;;  %12704 = vmatprep.mubr.f32.mxu0 %v17938_v4 }
 0x960   : > { %10626 = vmatmul.mubr.f32.gmra.mrb[202].mxu1 %v17940_v43  ;;  %12705 = vmatmul.mubr.f32.vlgmr.msra.gmra.mrb[40].mxu0 %v17942_v41 }
 0x961   : > { %10630 = vmatprep.mubr.f32.mxu1 %v9467_v50  ;;  %v9469_v54 = vmax.f32 %v9437_v53, 0.0  ;;  %v9398_v57 = vmul.f32 %v17903_v56, %v9260_v21 }
 0x962   : > { %v9039_v11 = vpop.f32.mrb[248].mxu0  ;;  %v17950_v55 = vld [vmem:[#allocation2 + $0x48] sm:$0xff] }
 0x963   : > { %9501 = vst [vmem:[#allocation2 + $0x61] sm:$0xff] %v9469_v54  ;;  %v9438_v31 = vadd.f32 %v17906_v58, %v9398_v57  ;;  %v9265_v23 = vadd.f32 %v17659_v47, %v9039_v11  ;;  %v9041_v61 = vpop.f32.mrb[249].mxu0 }
 0x964   : > { %10631 = vmatmul.mubr.f32.gmra.mrb[204].mxu1 %v17950_v55 }
 0x965   : > { %10635 = vmatprep.mubr.f32.mxu1 %v9468_v29  ;;  %v9470_v9 = vmax.f32 %v9438_v31, 0.0  ;;  %v9399_v44 = vmul.f32 %v17903_v56, %v9265_v23 }
 0x966   : > { %v9044_v49 = vpop.f32.mrb[250].mxu0  ;;  %v17956_v19 = vld [vmem:[#allocation2 + $0x4a] sm:$0xff]  ;;  %v17960_v20 = vld [vmem:[#allocation2 + $0x52] sm:$0xff] }
 0x967   : > { %v17958_v39 = vld [vmem:[#allocation2 + $0x50] sm:$0xff]  ;;  %9502 = vst [vmem:[#allocation2 + $0x69] sm:$0xff] %v9470_v9  ;;  %v9439_v62 = vadd.f32 %v17906_v58, %v9399_v44  ;;  %v9270_v35 = vadd.f32 %v17657_v46, %v9044_v49  ;;  %v9046_v47 = vpop.f32.mrb[251].mxu0  ;;  %12707 = vmatprep.mubr.f32.mxu0 %v17956_v19 }
 0x968   : > { %10636 = vmatmul.mubr.f32.gmra.mrb[206].mxu1 %v17958_v39  ;;  %12708 = vmatmul.mubr.f32.gmra.mrb[42].mxu0 %v17960_v20 }
 0x969   : > { %10640 = vmatprep.mubr.f32.mxu1 %v9469_v54  ;;  %v9471_v16 = vmax.f32 %v9439_v62, 0.0  ;;  %v9400_v38 = vmul.f32 %v17903_v56, %v9270_v35 }
 0x96a   : > { %v9049_v27 = vpop.f32.mrb[252].mxu0  ;;  %v17968_v59 = vld [vmem:[#allocation2 + $0x60] sm:$0xff] }
 0x96b   : > { %9503 = vst [vmem:[#allocation2 + $0x79] sm:$0xff] %v9471_v16  ;;  %v9440_v8 = vadd.f32 %v17906_v58, %v9400_v38  ;;  %v9275_v2 = vadd.f32 %v17667_v37, %v9049_v27  ;;  %v9051_v46 = vpop.f32.mrb[253].mxu0 }
 0x96c   : > { %10641 = vmatmul.mubr.f32.gmra.mrb[208].mxu1 %v17968_v59 }
 0x96d   : > { %10645 = vmatprep.mubr.f32.mxu1 %v9470_v9  ;;  %v9472_v24 = vmax.f32 %v9440_v8, 0.0  ;;  %v9401_v6 = vmul.f32 %v17903_v56, %v9275_v2 }
 0x96e   : > { %v9054_v60 = vpop.f32.mrb[254].mxu0  ;;  %v17974_v33 = vld [vmem:[#allocation2 + $0x62] sm:$0xff]  ;;  %v17978_v36 = vld [vmem:[#allocation2 + $0x6a] sm:$0xff] }
 0x96f   : > { %v17976_v51 = vld [vmem:[#allocation2 + $0x68] sm:$0xff]  ;;  %9504 = vst [vmem:[#allocation2 + $0x81] sm:$0xff] %v9472_v24  ;;  %v9441_v25 = vadd.f32 %v17906_v58, %v9401_v6  ;;  %v9280_v50 = vadd.f32 %v17665_v40, %v9054_v60  ;;  %v9056_v37 = vpop.f32.mrb[255].mxu0  ;;  %12710 = vmatprep.mubr.f32.mxu0 %v17974_v33 }
 0x970   : > { %10646 = vmatmul.mubr.f32.gmra.mrb[210].mxu1 %v17976_v51  ;;  %12711 = vmatmul.mubr.f32.gmra.mrb[44].mxu0 %v17978_v36 }
 0x971   : > { %10650 = vmatprep.mubr.f32.mxu1 %v9471_v16  ;;  %v9473_v34 = vmax.f32 %v9441_v25, 0.0  ;;  %v9402_v32 = vmul.f32 %v17903_v56, %v9280_v50 }
 0x972   : > { %v9059_v3 = vpop.f32.mrb[0].mxu0  ;;  %v17986_v7 = vld [vmem:[#allocation2 + $0x78] sm:$0xff] }
 0x973   : > { %9505 = vst [vmem:[#allocation2 + $0x91] sm:$0xff] %v9473_v34  ;;  %v9442_v45 = vadd.f32 %v17906_v58, %v9402_v32  ;;  %v9285_v29 = vadd.f32 %v17675_v5, %v9059_v3  ;;  %v9061_v40 = vpop.f32.mrb[1].mxu0 }
 0x974   : > { %10651 = vmatmul.mubr.f32.gmra.mrb[212].mxu1 %v17986_v7 }
 0x975   : > { %10655 = vmatprep.mubr.f32.mxu1 %v9472_v24  ;;  %v9474_v26 = vmax.f32 %v9442_v45, 0.0  ;;  %v9403_v17 = vmul.f32 %v17903_v56, %v9285_v29 }
 0x976   : > { %v9064_v53 = vpop.f32.mrb[2].mxu0  ;;  %v17992_v21 = vld [vmem:[#allocation2 + $0x7a] sm:$0xff]  ;;  %v17996_v54 = vld [vmem:[#allocation2 + $0x82] sm:$0xff] }
 0x977   : > { %v17994_v30 = vld [vmem:[#allocation2 + $0x80] sm:$0xff]  ;;  %9506 = vst [vmem:[#allocation2 + $0x99] sm:$0xff] %v9474_v26  ;;  %v9443_v57 = vadd.f32 %v17906_v58, %v9403_v17  ;;  %v9290_v11 = vadd.f32 %v17673_v1, %v9064_v53  ;;  %v9066_v5 = vpop.f32.mrb[3].mxu0  ;;  %12713 = vmatprep.mubr.f32.mxu0 %v17992_v21 }
 0x978   : > { %10656 = vmatmul.mubr.f32.gmra.mrb[214].mxu1 %v17994_v30  ;;  %12714 = vmatmul.mubr.f32.gmra.mrb[46].mxu0 %v17996_v54 }
 0x979   : > { %10660 = vmatprep.mubr.f32.mxu1 %v9473_v34  ;;  %v9475_v31 = vmax.f32 %v9443_v57, 0.0  ;;  %v9404_v23 = vmul.f32 %v17903_v56, %v9290_v11 }
 0x97a   : > { %v9069_v61 = vpop.f32.mrb[4].mxu0  ;;  %v18004_v9 = vld [vmem:[#allocation2 + $0x90] sm:$0xff] }
 0x97b   : > { %9507 = vst [vmem:[#allocation2 + $0xa9] sm:$0xff] %v9475_v31  ;;  %v9444_v44 = vadd.f32 %v17906_v58, %v9404_v23  ;;  %v9295_v49 = vadd.f32 %v17683_v52, %v9069_v61  ;;  %v9071_v1 = vpop.f32.mrb[5].mxu0 }
 0x97c   : > { %10661 = vmatmul.mubr.f32.gmra.mrb[216].mxu1 %v18004_v9 }
 0x97d   : > { %10665 = vmatprep.mubr.f32.mxu1 %v9474_v26  ;;  %v9476_v62 = vmax.f32 %v9444_v44, 0.0  ;;  %v9405_v35 = vmul.f32 %v17903_v56, %v9295_v49 }
 0x97e   : > { %v9074_v47 = vpop.f32.mrb[6].mxu0  ;;  %v18010_v16 = vld [vmem:[#allocation2 + $0x92] sm:$0xff]  ;;  %v18014_v27 = vld [vmem:[#allocation2 + $0x9a] sm:$0xff] }
 0x97f   : > { %v18012_v38 = vld [vmem:[#allocation2 + $0x98] sm:$0xff]  ;;  %9508 = vst [vmem:[#allocation2 + $0xb1] sm:$0xff] %v9476_v62  ;;  %v9445_v8 = vadd.f32 %v17906_v58, %v9405_v35  ;;  %v9300_v2 = vadd.f32 %v17681_v13, %v9074_v47  ;;  %v9076_v52 = vpop.f32.mrb[7].mxu0  ;;  %12716 = vmatprep.mubr.f32.mxu0 %v18010_v16 }
 0x980   : > { %10666 = vmatmul.mubr.f32.gmra.mrb[218].mxu1 %v18012_v38  ;;  %12717 = vmatmul.mubr.f32.gmra.mrb[48].mxu0 %v18014_v27 }
 0x981   : > { %10670 = vmatprep.mubr.f32.mxu1 %v9475_v31  ;;  %v9477_v46 = vmax.f32 %v9445_v8, 0.0  ;;  %v9406_v24 = vmul.f32 %v17903_v56, %v9300_v2 }
 0x982   : > { %v9079_v6 = vpop.f32.mrb[8].mxu0  ;;  %v18022_v60 = vld [vmem:[#allocation2 + $0xa8] sm:$0xff] }
 0x983   : > { %9509 = vst [vmem:[#allocation2 + $0xc1] sm:$0xff] %v9477_v46  ;;  %v9446_v25 = vadd.f32 %v17906_v58, %v9406_v24  ;;  %v9305_v50 = vadd.f32 %v17695_v10, %v9079_v6  ;;  %v9081_v13 = vpop.f32.mrb[9].mxu0 }
 0x984   : > { %10671 = vmatmul.mubr.f32.gmra.mrb[220].mxu1 %v18022_v60 }
 0x985   : > { %10675 = vmatprep.mubr.f32.mxu1 %v9476_v62  ;;  %v9478_v37 = vmax.f32 %v9446_v25, 0.0  ;;  %v9407_v34 = vmul.f32 %v17903_v56, %v9305_v50 }
 0x986   : > { %v9084_v32 = vpop.f32.mrb[10].mxu0  ;;  %v18028_v3 = vld [vmem:[#allocation2 + $0xaa] sm:$0xff]  ;;  %v18032_v29 = vld [vmem:[#allocation2 + $0xb2] sm:$0xff] }
 0x987   : > { %v18030_v45 = vld [vmem:[#allocation2 + $0xb0] sm:$0xff]  ;;  %9510 = vst [vmem:[#allocation2 + $0xc9] sm:$0xff] %v9478_v37  ;;  %v9447_v40 = vadd.f32 %v17906_v58, %v9407_v34  ;;  %v9310_v26 = vadd.f32 %v17693_v42, %v9084_v32  ;;  %v9086_v10 = vpop.f32.mrb[11].mxu0  ;;  %12719 = vmatprep.mubr.f32.mxu0 %v18028_v3 }
 0x988   : > { %10676 = vmatmul.mubr.f32.gmra.mrb[222].mxu1 %v18030_v45  ;;  %12720 = vmatmul.mubr.f32.gmra.mrb[50].mxu0 %v18032_v29 }
 0x989   : > { %10680 = vmatprep.mubr.f32.mxu1 %v9477_v46  ;;  %v9479_v17 = vmax.f32 %v9447_v40, 0.0  ;;  %v9408_v53 = vmul.f32 %v17903_v56, %v9310_v26  ;;  %v18848_v26 = vld [vmem:[#allocation21_spill] sm:$0xff] }
 0x98a   : > { %v9089_v57 = vpop.f32.mrb[12].mxu0  ;;  %v18040_v11 = vld [vmem:[#allocation2 + $0xc0] sm:$0xff] }
 0x98b   : > { %9511 = vst [vmem:[#allocation2 + $0xd9] sm:$0xff] %v9479_v17  ;;  %v9448_v5 = vadd.f32 %v17906_v58, %v9408_v53  ;;  %v9315_v31 = vadd.f32 %v17747_v63, %v9089_v57  ;;  %v9091_v42 = vpop.f32.mrb[13].mxu0 }
 0x98c   : > { %10681 = vmatmul.mubr.f32.gmra.mrb[224].mxu1 %v18040_v11  ;;  %v18849_v42 = vld [vmem:[#allocation31_spill] sm:$0xff] }
 0x98d   : > { %10685 = vmatprep.mubr.f32.mxu1 %v9478_v37  ;;  %v9480_v23 = vmax.f32 %v9448_v5, 0.0  ;;  %v9409_v61 = vmul.f32 %v17903_v56, %v9315_v31 }
 0x98e   : > { %v9094_v44 = vpop.f32.mrb[14].mxu0  ;;  %v18046_v49 = vld [vmem:[#allocation2 + $0xc2] sm:$0xff]  ;;  %v18050_v62 = vld [vmem:[#allocation2 + $0xca] sm:$0xff] }
 0x98f   : > { %v18048_v1 = vld [vmem:[#allocation2 + $0xc8] sm:$0xff]  ;;  %9512 = vst [vmem:[#allocation2 + $0xe1] sm:$0xff] %v9480_v23  ;;  %v9449_v35 = vadd.f32 %v17906_v58, %v9409_v61  ;;  %v9320_v47 = vadd.f32 %v17744_v14, %v9094_v44  ;;  %v9096_v63 = vpop.f32.mrb[15].mxu0  ;;  %12722 = vmatprep.mubr.f32.mxu0 %v18046_v49 }
 0x990   : > { %10686 = vmatmul.mubr.f32.gmra.mrb[226].mxu1 %v18048_v1  ;;  %12723 = vmatmul.mubr.f32.gmra.mrb[52].mxu0 %v18050_v62 }
 0x991   : > { %10690 = vmatprep.mubr.f32.mxu1 %v9479_v17  ;;  %v9481_v8 = vmax.f32 %v9449_v35, 0.0  ;;  %v9410_v2 = vmul.f32 %v17903_v56, %v9320_v47 }
 0x992   : > { %v9099_v52 = vpop.f32.mrb[16].mxu0  ;;  %v18058_v46 = vld [vmem:[#allocation2 + $0xd8] sm:$0xff] }
 0x993   : > { %9513 = vst [vmem:[#allocation2 + $0xf1] sm:$0xff] %v9481_v8  ;;  %v9450_v24 = vadd.f32 %v17906_v58, %v9410_v2  ;;  %v9325_v6 = vadd.f32 %v17759_v15, %v9099_v52  ;;  %v9101_v14 = vpop.f32.mrb[17].mxu0 }
 0x994   : > { %10691 = vmatmul.mubr.f32.gmra.mrb[228].mxu1 %v18058_v46 }
 0x995   : > { %10695 = vmatprep.mubr.f32.mxu1 %v9480_v23  ;;  %v9482_v25 = vmax.f32 %v9450_v24, 0.0  ;;  %v9411_v50 = vmul.f32 %v17903_v56, %v9325_v6  ;;  %v18850_v24 = vld [vmem:[#allocation30_spill] sm:$0xff] }
 0x996   : > { %v9104_v13 = vpop.f32.mrb[18].mxu0  ;;  %v18064_v37 = vld [vmem:[#allocation2 + $0xda] sm:$0xff]  ;;  %v18068_v32 = vld [vmem:[#allocation2 + $0xe2] sm:$0xff] }
 0x997   : > { %v18066_v34 = vld [vmem:[#allocation2 + $0xe0] sm:$0xff]  ;;  %9514 = vst [vmem:[#allocation2 + $0xf9] sm:$0xff] %v9482_v25  ;;  %v9451_v40 = vadd.f32 %v17906_v58, %v9411_v50  ;;  %v9330_v10 = vadd.f32 %v18848_v26, %v9104_v13  ;;  %v9106_v15 = vpop.f32.mrb[19].mxu0  ;;  %12725 = vmatprep.mubr.f32.mxu0 %v18064_v37 }
 0x998   : > { %10696 = vmatmul.mubr.f32.gmra.mrb[230].mxu1 %v18066_v34  ;;  %12726 = vmatmul.mubr.f32.gmra.mrb[54].mxu0 %v18068_v32 }
 0x999   : > { %10700 = vmatprep.mubr.f32.mxu1 %v9481_v8  ;;  %v9483_v17 = vmax.f32 %v9451_v40, 0.0  ;;  %v9412_v53 = vmul.f32 %v17903_v56, %v9330_v10  ;;  %v18851_v10 = vld [vmem:[#allocation33_spill] sm:$0xff] }
 0x99a   : > { %v9109_v57 = vpop.f32.mrb[20].mxu0  ;;  %v18076_v5 = vld [vmem:[#allocation2 + $0xf0] sm:$0xff] }
 0x99b   : > { %9515 = vst [vmem:[#allocation2 + $0x109] sm:$0xff] %v9483_v17  ;;  %v9452_v31 = vadd.f32 %v17906_v58, %v9412_v53  ;;  %v9335_v23 = vadd.f32 %v18849_v42, %v9109_v57  ;;  %v9111_v61 = vpop.f32.mrb[21].mxu0 }
 0x99c   : > { %10701 = vmatmul.mubr.f32.gmra.mrb[232].mxu1 %v18076_v5 }
 0x99d   : > { %10705 = vmatprep.mubr.f32.mxu1 %v9482_v25  ;;  %v9484_v44 = vmax.f32 %v9452_v31, 0.0  ;;  %v9413_v35 = vmul.f32 %v17903_v56, %v9335_v23 }
 0x99e   : > { %v9114_v47 = vpop.f32.mrb[22].mxu0  ;;  %v18082_v63 = vld [vmem:[#allocation2 + $0xf2] sm:$0xff]  ;;  %v18086_v2 = vld [vmem:[#allocation2 + $0xfa] sm:$0xff] }
 0x99f   : > { %v18084_v8 = vld [vmem:[#allocation2 + $0xf8] sm:$0xff]  ;;  %9516 = vst [vmem:[#allocation2 + $0x111] sm:$0xff] %v9484_v44  ;;  %v9453_v52 = vadd.f32 %v17906_v58, %v9413_v35  ;;  %v9340_v6 = vadd.f32 %v18850_v24, %v9114_v47  ;;  %v9116_v14 = vpop.f32.mrb[23].mxu0  ;;  %12728 = vmatprep.mubr.f32.mxu0 %v18082_v63  ;;  %v18853_v47 = vld [vmem:[#allocation32_spill] sm:$0xff] }
 0x9a0   : > { %10706 = vmatmul.mubr.f32.gmra.mrb[234].mxu1 %v18084_v8  ;;  %12729 = vmatmul.mubr.f32.gmra.mrb[56].mxu0 %v18086_v2 }
 0x9a1   : > { %10710 = vmatprep.mubr.f32.mxu1 %v9483_v17  ;;  %v9485_v25 = vmax.f32 %v9453_v52, 0.0  ;;  %v9414_v50 = vmul.f32 %v17903_v56, %v9340_v6 }
 0x9a2   : > { %v9119_v13 = vpop.f32.mrb[24].mxu0  ;;  %v18094_v40 = vld [vmem:[#allocation2 + $0x108] sm:$0xff] }
 0x9a3   : > { %9517 = vst [vmem:[#allocation2 + $0x121] sm:$0xff] %v9485_v25  ;;  %v9454_v26 = vadd.f32 %v17906_v58, %v9414_v50  ;;  %v9345_v15 = vadd.f32 %v18851_v10, %v9119_v13  ;;  %v9121_v53 = vpop.f32.mrb[25].mxu0 }
 0x9a4   : > { %10711 = vmatmul.mubr.f32.gmra.mrb[236].mxu1 %v18094_v40 }
 0x9a5   : > { %10715 = vmatprep.mubr.f32.mxu1 %v9484_v44  ;;  %v9486_v57 = vmax.f32 %v9454_v26, 0.0  ;;  %v9415_v31 = vmul.f32 %v17903_v56, %v9345_v15  ;;  %v18854_v26 = vld [vmem:[#allocation35_spill] sm:$0xff] }
 0x9a6   : > { %v9124_v42 = vpop.f32.mrb[26].mxu0  ;;  %v18100_v17 = vld [vmem:[#allocation2 + $0x10a] sm:$0xff]  ;;  %v18104_v61 = vld [vmem:[#allocation2 + $0x112] sm:$0xff] }
 0x9a7   : > { %v18102_v23 = vld [vmem:[#allocation2 + $0x110] sm:$0xff]  ;;  %18852 = vst [vmem:[#allocation20_spill] sm:$0xff] %v18104_v61  ;;  %9518 = vst [vmem:[#allocation2 + $0x129] sm:$0xff] %v9486_v57  ;;  %v9455_v35 = vadd.f32 %v17906_v58, %v9415_v31  ;;  %v9350_v52 = vadd.f32 %v18853_v47, %v9124_v42  ;;  %v9126_v24 = vpop.f32.mrb[27].mxu0  ;;  %12731 = vmatprep.mubr.f32.mxu0 %v18100_v17 }
 0x9a8   : > { %10716 = vmatmul.mubr.f32.gmra.mrb[238].mxu1 %v18102_v23  ;;  %12732 = vmatmul.mubr.f32.gmra.mrb[58].mxu0 %v18104_v61  ;;  %v18858_v24 = vld [vmem:[#allocation34_spill] sm:$0xff] }
 0x9a9   : > { %10720 = vmatprep.mubr.f32.mxu1 %v9485_v25  ;;  %v9487_v44 = vmax.f32 %v9455_v35, 0.0  ;;  %v9416_v6 = vmul.f32 %v17903_v56, %v9350_v52 }
 0x9aa   : > { %v9129_v14 = vpop.f32.mrb[28].mxu0  ;;  %v18112_v50 = vld [vmem:[#allocation2 + $0x120] sm:$0xff] }
 0x9ab   : > { %9519 = vst [vmem:[#allocation2 + $0x139] sm:$0xff] %v9487_v44  ;;  %v9456_v13 = vadd.f32 %v17906_v58, %v9416_v6  ;;  %v9355_v10 = vadd.f32 %v18854_v26, %v9129_v14  ;;  %v9131_v15 = vpop.f32.mrb[29].mxu0 }
 0x9ac   : > { %10721 = vmatmul.mubr.f32.gmra.mrb[240].mxu1 %v18112_v50 }
 0x9ad   : > { %10725 = vmatprep.mubr.f32.mxu1 %v9486_v57  ;;  %v9488_v53 = vmax.f32 %v9456_v13, 0.0  ;;  %v9417_v31 = vmul.f32 %v17903_v56, %v9355_v10 }
 0x9ae   : > { %v9134_v42 = vpop.f32.mrb[30].mxu0  ;;  %v18118_v25 = vld [vmem:[#allocation2 + $0x122] sm:$0xff]  ;;  %v18122_v47 = vld [vmem:[#allocation2 + $0x12a] sm:$0xff] }
 0x9af   : > { %18855 = vst [vmem:[#allocation37_spill] sm:$0xff] %v18118_v25  ;;  %v18120_v35 = vld [vmem:[#allocation2 + $0x128] sm:$0xff]  ;;  %18857 = vst [vmem:[#allocation23_spill] sm:$0xff] %v18122_v47  ;;  %v9457_v52 = vadd.f32 %v17906_v58, %v9417_v31  ;;  %v9360_v6 = vadd.f32 %v18858_v24, %v9134_v42  ;;  %v9136_v14 = vpop.f32.mrb[31].mxu0  ;;  %12734 = vmatprep.mubr.f32.mxu0 %v18118_v25  ;;  %v18859_v31 = vld [vmem:[#allocation22_spill] sm:$0xff] }
 0x9b0   : > { %18856 = vst [vmem:[#allocation39_spill] sm:$0xff] %v18120_v35  ;;  %9520 = vst [vmem:[#allocation2 + $0x141] sm:$0xff] %v9488_v53  ;;  %10726 = vmatmul.mubr.f32.gmra.mrb[242].mxu1 %v18120_v35  ;;  %12735 = vmatmul.mubr.f32.gmra.mrb[60].mxu0 %v18122_v47 }
 0x9b1   : > { %10730 = vmatprep.mubr.f32.mxu1 %v9487_v44  ;;  %v9489_v57 = vmax.f32 %v9457_v52, 0.0  ;;  %v9418_v13 = vmul.f32 %v17903_v56, %v9360_v6 }
 0x9b2   : > { %v9139_v26 = vpop.f32.mrb[32].mxu0  ;;  %v18130_v10 = vld [vmem:[#allocation2 + $0x138] sm:$0xff] }
 0x9b3   : > { %9521 = vst [vmem:[#allocation2 + $0x151] sm:$0xff] %v9489_v57  ;;  %v9458_v15 = vadd.f32 %v17906_v58, %v9418_v13  ;;  %v9365_v61 = vadd.f32 %v18859_v31, %v9139_v26  ;;  %v9141_v42 = vpop.f32.mrb[33].mxu0  ;;  %v18861_v13 = vld [vmem:[#allocation36_spill] sm:$0xff] }
 0x9b4   : > { %10731 = vmatmul.mubr.f32.gmra.mrb[244].mxu1 %v18130_v10 }
 0x9b5   : > { %10735 = vmatprep.mubr.f32.mxu1 %v9488_v53  ;;  %v9490_v24 = vmax.f32 %v9458_v15, 0.0  ;;  %v9419_v14 = vmul.f32 %v17903_v56, %v9365_v61 }
 0x9b6   : > { %v9144_v47 = vpop.f32.mrb[34].mxu0 }
 0x9b7   : > { %v18136_v44 = vld [vmem:[#allocation2 + $0x13a] sm:$0xff]  ;;  %v18140_v6 = vld [vmem:[#allocation2 + $0x142] sm:$0xff]  ;;  %9522 = vst [vmem:[#allocation2 + $0x159] sm:$0xff] %v9490_v24  ;;  %v9459_v25 = vadd.f32 %v17906_v58, %v9419_v14  ;;  %v9370_v35 = vadd.f32 %v18861_v13, %v9144_v47  ;;  %v9146_v26 = vpop.f32.mrb[35].mxu0 }
 0x9b8   : > { %v18138_v52 = vld [vmem:[#allocation2 + $0x140] sm:$0xff]  ;;  %18860 = vst [vmem:[#allocation24_spill] sm:$0xff] %v18140_v6  ;;  %12737 = vmatprep.mubr.f32.mxu0 %v18136_v44 }
 0x9b9   : > { %10736 = vmatmul.mubr.f32.gmra.mrb[246].mxu1 %v18138_v52  ;;  %12738 = vmatmul.mubr.f32.gmra.mrb[62].mxu0 %v18140_v6  ;;  %v18147_v61 = vmax.f32 %v9459_v25, 0.0  ;;  %v9420_v53 = vmul.f32 %v17903_v56, %v9370_v35 }
 0x9ba   : > { %10740 = vmatprep.mubr.f32.mxu1 %v9489_v57  ;;  %v9149_v15 = vpop.f32.mrb[36].mxu0  ;;  %v18150_v31 = vld [vmem:[#allocation2 + $0x150] sm:$0xff] }
 0x9bb   : > { %18862 = vst [vmem:[#allocation38_spill] sm:$0xff] %v18147_v61  ;;  %9523 = vst [vmem:[#allocation2 + $0x169] sm:$0xff] %v18147_v61  ;;  %v9460_v42 = vadd.f32 %v17906_v58, %v9420_v53  ;;  %v9375_v47 = vadd.f32 %v17900_v28, %v9149_v15  ;;  %v9151_v14 = vpop.f32.mrb[37].mxu0 }
 0x9bd   : > { %10741 = vmatmul.mubr.f32.gmra.mrb[248].mxu1 %v18150_v31  ;;  %v18156_v13 = vmax.f32 %v9460_v42, 0.0  ;;  %v9421_v25 = vmul.f32 %v17903_v56, %v9375_v47 }
 0x9be   : > { %10745 = vmatprep.mubr.f32.mxu1 %v9490_v24  ;;  %v9154_v57 = vpop.f32.mrb[38].mxu0  ;;  %v18159_v26 = vld [vmem:[#allocation2 + $0x152] sm:$0xff]  ;;  %v18163_v6 = vld [vmem:[#allocation2 + $0x15a] sm:$0xff] }
 0x9bf   : > { %18863 = vst [vmem:[#allocation25_spill] sm:$0xff] %v18156_v13  ;;  %v18161_v35 = vld [vmem:[#allocation2 + $0x158] sm:$0xff]  ;;  %9524 = vst [vmem:[#allocation2 + $0x171] sm:$0xff] %v18156_v13  ;;  %v18167_v53 = vadd.f32 %v17906_v58, %v9421_v25  ;;  %v9380_v28 = vadd.f32 %v17898_v48, %v9154_v57  ;;  %v9156_v15 = vpop.f32.mrb[39].mxu0  ;;  %12740 = vmatprep.mubr.f32.mxu0 %v18159_v26  ;;  %v10456_v25 = vld [vmem:[#allocation5 + $0x1400] sm:$0xff] }
 0x9c0   : > { %12741 = vmatmul.mubr.f32.gmra.mrb[64].mxu0 %v18163_v6  ;;  %v10457_v57 = vld [vmem:[#allocation5 + $0x1408] sm:$0xff] }
 0x9c1   : > { %18864 = vst [vmem:[#allocation41_spill] sm:$0xff] %v18167_v53  ;;  %10746 = vmatmul.mubr.f32.gmra.mrb[250].mxu1 %v18161_v35  ;;  %v18697_v24 = vmax.f32 %v18167_v53, 0.0  ;;  %v9422_v42 = vmul.f32 %v17903_v56, %v9380_v28  ;;  %v13745_v28 = vpack.c.bf16 %v10457_v57, %v10456_v25  ;;  %v9656_v53 = vld [vmem:[#allocation2 + $0xa] sm:$0xff]  ;;  %v10463_v25 = vld [vmem:[#allocation5 + $0x1438] sm:$0xff] }
 0x9c2   : > { %10750 = vmatprep.mubr.f32.mxu1 %v18147_v61  ;;  %v18176_v47 = vld [vmem:[#allocation2 + $0x168] sm:$0xff] }
 0x9c3   : > { %9525 = vst [vmem:[#allocation2 + $0x181] sm:$0xff] %v18697_v24  ;;  %v18181_v48 = vadd.f32 %v17906_v58, %v9422_v42  ;;  %v9655_v58 = vld [vmem:[#allocation2 + $0x2] sm:$0xff]  ;;  %v10458_v42 = vld [vmem:[#allocation5 + $0x1410] sm:$0xff]  ;;  %v10459_v24 = vld [vmem:[#allocation5 + $0x1418] sm:$0xff] }
 0x9c5   : > { %18865 = vst [vmem:[#allocation26_spill] sm:$0xff] %v18181_v48  ;;  %10751 = vmatmul.mubr.f32.gmra.mrb[252].mxu1 %v18176_v47  ;;  %v18699_v14 = vmax.f32 %v18181_v48, 0.0  ;;  %v10460_v48 = vld [vmem:[#allocation5 + $0x1420] sm:$0xff] }
 0x9c6   : > { %10755 = vmatprep.mubr.f32.mxu1 %v18156_v13  ;;  %v18186_v15 = vld [vmem:[#allocation2 + $0x16a] sm:$0xff]  ;;  %v18190_v56 = vld [vmem:[#allocation2 + $0x172] sm:$0xff] }
 0x9c7   : > { %18866 = vst [vmem:[#allocation40_spill] sm:$0xff] %v18186_v15  ;;  %v18188_v61 = vld [vmem:[#allocation2 + $0x170] sm:$0xff]  ;;  %18867 = vst [vmem:[#allocation27_spill] sm:$0xff] %v18190_v56  ;;  %12743 = vmatprep.mubr.f32.mxu0 %v18186_v15 }
 0x9c8   : > { %9526 = vst [vmem:[#allocation2 + $0x189] sm:$0xff] %v18699_v14  ;;  %12744 = vmatmul.mubr.f32.gmra.mrb[66].mxu0 %v18190_v56  ;;  %v13748_v14 = vpack.c.bf16 %v10459_v24, %v10458_v42  ;;  %v10461_v56 = vld [vmem:[#allocation5 + $0x1428] sm:$0xff]  ;;  %v10462_v24 = vld [vmem:[#allocation5 + $0x1430] sm:$0xff] }
 0x9c9   : > { %10756 = vmatmul.mubr.f32.gmra.mrb[254].mxu1 %v18188_v61  ;;  %v13754_v57 = vpack.c.bf16 %v10463_v25, %v10462_v24  ;;  %v10469_v42 = vld [vmem:[#allocation5 + $0x1468] sm:$0xff]  ;;  %v10471_v24 = vld [vmem:[#allocation5 + $0x1478] sm:$0xff] }
 0x9ca   : > { %10825 = vmatprep.mubr.f32.mxu1 %v17920_v0  ;;  %v13751_v0 = vpack.c.bf16 %v10461_v56, %v10460_v48  ;;  %v10467_v56 = vld [vmem:[#allocation5 + $0x1458] sm:$0xff]  ;;  %v10473_v25 = vld [vmem:[#allocation5 + $0x1488] sm:$0xff] }
 0x9cd   : > { %10826 = vmatmul.mubr.f32.vlgmr.msra.gmra.mrb[192].mxu1 %v9655_v58  ;;  %v18212_v58 = vld [vmem:[#allocation2 + $0x22] sm:$0xff] }
 0x9ce   : > { %10830 = vmatprep.mubr.f32.mxu1 %v17926_v22  ;;  %13746 = vmatpush1.bf16.msra.mxu1 %v13745_v28  ;;  %v18207_v22 = vld [vmem:[#allocation2 + $0x1a] sm:$0xff] }
 0x9cf   : > { %13747 = vmatprep.subr.bf16.mxu1 %v18745_v12  ;;  %v18200_v13 = vld [vmem:[#allocation2 + $0x182] sm:$0xff]  ;;  %v18202_v15 = vld [vmem:[#allocation2 + $0x18a] sm:$0xff] }
 0x9d0   : > { %12746 = vmatprep.mubr.f32.mxu0 %v18200_v13  ;;  %v10468_v28 = vld [vmem:[#allocation5 + $0x1460] sm:$0xff] }
 0x9d1   : > { %10831 = vmatmul.mubr.f32.gmra.mrb[194].mxu1 %v9656_v53  ;;  %12747 = vmatmul.mubr.f32.gmra.mrb[68].mxu0 %v18202_v15  ;;  %v10464_v53 = vld [vmem:[#allocation5 + $0x1440] sm:$0xff] }
 0x9d2   : > { %10835 = vmatprep.mubr.f32.mxu1 %v17932_v18  ;;  %13749 = vmatpush1.bf16.msra.mxu1 %v13748_v14  ;;  %v10465_v18 = vld [vmem:[#allocation5 + $0x1448] sm:$0xff]  ;;  %v10466_v14 = vld [vmem:[#allocation5 + $0x1450] sm:$0xff] }
 0x9d3   : > { %13750 = vmatprep.subr.bf16.mxu1 %v18745_v12  ;;  %v13757_v48 = vpack.c.bf16 %v10465_v18, %v10464_v53  ;;  %v10477_v53 = vld [vmem:[#allocation5 + $0x14a8] sm:$0xff]  ;;  %v10479_v18 = vld [vmem:[#allocation5 + $0x14b8] sm:$0xff] }
 0x9d5   : > { %10836 = vmatmul.mubr.f32.gmra.mrb[196].mxu1 %v18207_v22 }
 0x9d6   : > { %10840 = vmatprep.mubr.f32.mxu1 %v17940_v43  ;;  %13752 = vmatpush1.bf16.msra.mxu1 %v13751_v0  ;;  %v13760_v43 = vpack.c.bf16 %v10467_v56, %v10466_v14  ;;  %v10470_v0 = vld [vmem:[#allocation5 + $0x1470] sm:$0xff]  ;;  %v10483_v14 = vld [vmem:[#allocation5 + $0x14d8] sm:$0xff]  ;;  %v10485_v56 = vld [vmem:[#allocation5 + $0x14e8] sm:$0xff] }
 0x9d7   : > { %13753 = vmatprep.subr.bf16.mxu1 %v18745_v12 }
 0x9d9   : > { %10841 = vmatmul.mubr.f32.gmra.mrb[198].mxu1 %v18212_v58 }
 0x9da   : > { %10845 = vmatprep.mubr.f32.mxu1 %v17950_v55  ;;  %13755 = vmatpush1.bf16.msra.mxu1 %v13754_v57  ;;  %v13763_v55 = vpack.c.bf16 %v10469_v42, %v10468_v28  ;;  %v10475_v57 = vld [vmem:[#allocation5 + $0x1498] sm:$0xff]  ;;  %v10492_v42 = vld [vmem:[#allocation5 + $0x1520] sm:$0xff] }
 0x9db   : > { %13756 = vmatprep.subr.bf16.mxu1 %v18745_v12 }
 0x9dd   : > { %10846 = vmatmul.mubr.f32.gmra.mrb[200].mxu1 %v17938_v4  ;;  %v13766_v4 = vpack.c.bf16 %v10471_v24, %v10470_v0  ;;  %v9784_v0 = vld [vmem:[#allocation2 + $0x21] sm:$0xff] }
 0x9de   : > { %10850 = vmatprep.mubr.f32.mxu1 %v17958_v39  ;;  %13758 = vmatpush1.bf16.msra.mxu1 %v13757_v48  ;;  %v10472_v39 = vld [vmem:[#allocation5 + $0x1480] sm:$0xff]  ;;  %v10481_v48 = vld [vmem:[#allocation5 + $0x14c8] sm:$0xff] }
 0x9df   : > { %13759 = vmatprep.subr.bf16.mxu1 %v18745_v12 }
 0x9e1   : > { %10851 = vmatmul.mubr.f32.gmra.mrb[202].mxu1 %v17942_v41  ;;  %v13769_v41 = vpack.c.bf16 %v10473_v25, %v10472_v39  ;;  %v10495_v39 = vld [vmem:[#allocation5 + $0x1538] sm:$0xff] }
 0x9e2   : > { %10855 = vmatprep.mubr.f32.mxu1 %v17968_v59  ;;  %13761 = vmatpush1.bf16.msra.mxu1 %v13760_v43  ;;  %v10474_v59 = vld [vmem:[#allocation5 + $0x1490] sm:$0xff]  ;;  %v10487_v43 = vld [vmem:[#allocation5 + $0x14f8] sm:$0xff] }
 0x9e3   : > { %13762 = vmatprep.subr.bf16.mxu1 %v18745_v12  ;;  %v18309_v25 = vld [vmem:[#allocation2 + $0x31] sm:$0xff] }
 0x9e5   : > { %10856 = vmatmul.mubr.f32.gmra.mrb[204].mxu1 %v17956_v19  ;;  %v13772_v19 = vpack.c.bf16 %v10475_v57, %v10474_v59 }
 0x9e6   : > { %10860 = vmatprep.mubr.f32.mxu1 %v17976_v51  ;;  %13764 = vmatpush1.bf16.msra.mxu1 %v13763_v55  ;;  %v10476_v51 = vld [vmem:[#allocation5 + $0x14a0] sm:$0xff]  ;;  %v10493_v55 = vld [vmem:[#allocation5 + $0x1528] sm:$0xff] }
 0x9e7   : > { %13765 = vmatprep.subr.bf16.mxu1 %v18745_v12  ;;  %v13799_v24 = vpack.c.bf16 %v10493_v55, %v10492_v42  ;;  %v9855_v42 = vld [vmem:[#allocation2 + $0x7a] sm:$0xff] }
 0x9e9   : > { %10861 = vmatmul.mubr.f32.gmra.mrb[206].mxu1 %v17960_v20  ;;  %v13775_v20 = vpack.c.bf16 %v10477_v53, %v10476_v51  ;;  %v10497_v51 = vld [vmem:[#allocation5 + $0x1548] sm:$0xff]  ;;  %v18317_v53 = vld [vmem:[#allocation2 + $0x39] sm:$0xff] }
 0x9ea   : > { %10865 = vmatprep.mubr.f32.mxu1 %v17986_v7  ;;  %13767 = vmatpush1.bf16.msra.mxu1 %v13766_v4  ;;  %v10478_v7 = vld [vmem:[#allocation5 + $0x14b0] sm:$0xff] }
 0x9eb   : > { %13768 = vmatprep.subr.bf16.mxu1 %v18745_v12  ;;  %v10494_v4 = vld [vmem:[#allocation5 + $0x1530] sm:$0xff] }
 0x9ec   : > { %v13802_v57 = vpack.c.bf16 %v10495_v39, %v10494_v4  ;;  %v9856_v39 = vld [vmem:[#allocation2 + $0x82] sm:$0xff] }
 0x9ed   : > { %10866 = vmatmul.mubr.f32.gmra.mrb[208].mxu1 %v17974_v33  ;;  %v13778_v33 = vpack.c.bf16 %v10479_v18, %v10478_v7  ;;  %v10498_v18 = vld [vmem:[#allocation5 + $0x1550] sm:$0xff] }
 0x9ee   : > { %10870 = vmatprep.mubr.f32.mxu1 %v17994_v30  ;;  %13770 = vmatpush1.bf16.msra.mxu1 %v13769_v41  ;;  %v10480_v30 = vld [vmem:[#allocation5 + $0x14c0] sm:$0xff] }
 0x9ef   : > { %13771 = vmatprep.subr.bf16.mxu1 %v18745_v12 }
 0x9f1   : > { %10871 = vmatmul.mubr.f32.gmra.mrb[210].mxu1 %v17978_v36  ;;  %v13781_v36 = vpack.c.bf16 %v10481_v48, %v10480_v30  ;;  %v18321_v30 = vld [vmem:[#allocation2 + $0x49] sm:$0xff] }
 0x9f2   : > { %10875 = vmatprep.mubr.f32.mxu1 %v18004_v9  ;;  %13773 = vmatpush1.bf16.msra.mxu1 %v13772_v19  ;;  %v10482_v9 = vld [vmem:[#allocation5 + $0x14d0] sm:$0xff]  ;;  %v10496_v19 = vld [vmem:[#allocation5 + $0x1540] sm:$0xff] }
 0x9f3   : > { %13774 = vmatprep.subr.bf16.mxu1 %v18745_v12  ;;  %v13805_v7 = vpack.c.bf16 %v10497_v51, %v10496_v19  ;;  %v10508_v19 = vld [vmem:[#allocation5 + $0x15a0] sm:$0xff]  ;;  %v10509_v51 = vld [vmem:[#allocation5 + $0x15a8] sm:$0xff] }
 0x9f5   : > { %10876 = vmatmul.mubr.f32.gmra.mrb[212].mxu1 %v17992_v21  ;;  %v13784_v21 = vpack.c.bf16 %v10483_v14, %v10482_v9 }
 0x9f6   : > { %10880 = vmatprep.mubr.f32.mxu1 %v18012_v38  ;;  %13776 = vmatpush1.bf16.msra.mxu1 %v13775_v20  ;;  %v10484_v38 = vld [vmem:[#allocation5 + $0x14e0] sm:$0xff]  ;;  %v9851_v20 = vld [vmem:[#allocation2 + $0x4a] sm:$0xff] }
 0x9f7   : > { %13777 = vmatprep.subr.bf16.mxu1 %v18745_v12 }
 0x9f9   : > { %10881 = vmatmul.mubr.f32.gmra.mrb[214].mxu1 %v17996_v54  ;;  %v13787_v54 = vpack.c.bf16 %v10485_v56, %v10484_v38  ;;  %v10501_v38 = vld [vmem:[#allocation5 + $0x1568] sm:$0xff]  ;;  %v18329_v56 = vld [vmem:[#allocation2 + $0x51] sm:$0xff] }
 0x9fa   : > { %10885 = vmatprep.mubr.f32.mxu1 %v18022_v60  ;;  %13779 = vmatpush1.bf16.msra.mxu1 %v13778_v33  ;;  %v10486_v60 = vld [vmem:[#allocation5 + $0x14f0] sm:$0xff]  ;;  %v10499_v33 = vld [vmem:[#allocation5 + $0x1558] sm:$0xff] }
 0x9fb   : > { %13780 = vmatprep.subr.bf16.mxu1 %v18745_v12  ;;  %v13808_v14 = vpack.c.bf16 %v10499_v33, %v10498_v18  ;;  %v13823_v18 = vpack.c.bf16 %v10509_v51, %v10508_v19  ;;  %v10510_v33 = vld [vmem:[#allocation5 + $0x15b0] sm:$0xff]  ;;  %v10516_v19 = vld [vmem:[#allocation5 + $0x15e0] sm:$0xff]  ;;  %v10517_v51 = vld [vmem:[#allocation5 + $0x15e8] sm:$0xff] }
 0x9fd   : > { %10886 = vmatmul.mubr.f32.gmra.mrb[216].mxu1 %v18010_v16  ;;  %v13790_v16 = vpack.c.bf16 %v10487_v43, %v10486_v60  ;;  %v10502_v43 = vld [vmem:[#allocation5 + $0x1570] sm:$0xff] }
 0x9fe   : > { %10890 = vmatprep.mubr.f32.mxu1 %v18030_v45  ;;  %13782 = vmatpush1.bf16.msra.mxu1 %v13781_v36  ;;  %v18870_v45 = vld [vmem:[#allocation37_spill] sm:$0xff] }
 0x9ff   : > { %13783 = vmatprep.subr.bf16.mxu1 %v18745_v12  ;;  %v9852_v36 = vld [vmem:[#allocation2 + $0x52] sm:$0xff] }
 0xa01   : > { %10891 = vmatmul.mubr.f32.gmra.mrb[218].mxu1 %v18014_v27  ;;  %v18868_v27 = vld [vmem:[#allocation39_spill] sm:$0xff] }
 0xa02   : > { %10895 = vmatprep.mubr.f32.mxu1 %v18040_v11  ;;  %13785 = vmatpush1.bf16.msra.mxu1 %v13784_v21  ;;  %v10500_v21 = vld [vmem:[#allocation5 + $0x1560] sm:$0xff] }
 0xa03   : > { %13786 = vmatprep.subr.bf16.mxu1 %v18745_v12  ;;  %v13811_v60 = vpack.c.bf16 %v10501_v38, %v10500_v21  ;;  %v9858_v38 = vld [vmem:[#allocation2 + $0x9a] sm:$0xff] }
 0xa05   : > { %10896 = vmatmul.mubr.f32.gmra.mrb[220].mxu1 %v18028_v3  ;;  %v18869_v3 = vld [vmem:[#allocation20_spill] sm:$0xff] }
 0xa06   : > { %10900 = vmatprep.mubr.f32.mxu1 %v18048_v1  ;;  %13788 = vmatpush1.bf16.msra.mxu1 %v13787_v54  ;;  %v18872_v1 = vld [vmem:[#allocation24_spill] sm:$0xff]  ;;  %v9853_v54 = vld [vmem:[#allocation2 + $0x62] sm:$0xff] }
 0xa07   : > { %13789 = vmatprep.subr.bf16.mxu1 %v18745_v12 }
 0xa09   : > { %10901 = vmatmul.mubr.f32.gmra.mrb[222].mxu1 %v18032_v29  ;;  %v18871_v29 = vld [vmem:[#allocation23_spill] sm:$0xff] }
 0xa0a   : > { %10905 = vmatprep.mubr.f32.mxu1 %v18058_v46  ;;  %13791 = vmatpush1.bf16.msra.mxu1 %v13790_v16  ;;  %v10503_v16 = vld [vmem:[#allocation5 + $0x1578] sm:$0xff] }
 0xa0b   : > { %13792 = vmatprep.subr.bf16.mxu1 %v18745_v12 }
 0xa0d   : > { %10906 = vmatmul.mubr.f32.gmra.mrb[224].mxu1 %v18046_v49 }
 0xa0e   : > { %10910 = vmatprep.mubr.f32.mxu1 %v18066_v34 }
 0xa11   : > { %10911 = vmatmul.mubr.f32.gmra.mrb[226].mxu1 %v18050_v62 }
 0xa12   : > { %10915 = vmatprep.mubr.f32.mxu1 %v18076_v5  ;;  %v18295_v5 = vld [vmem:[#allocation2 + $0x188] sm:$0xff] }
 0xa15   : > { %10916 = vmatmul.mubr.f32.gmra.mrb[228].mxu1 %v18064_v37  ;;  %v18289_v37 = vld [vmem:[#allocation2 + $0x180] sm:$0xff] }
 0xa16   : > { %10920 = vmatprep.mubr.f32.mxu1 %v18084_v8 }
 0xa19   : > { %10921 = vmatmul.mubr.f32.gmra.mrb[230].mxu1 %v18068_v32  ;;  %v18873_v32 = vld [vmem:[#allocation40_spill] sm:$0xff] }
 0xa1a   : > { %10925 = vmatprep.mubr.f32.mxu1 %v18094_v40  ;;  %v10488_v40 = vld [vmem:[#allocation5 + $0x1500] sm:$0xff] }
 0xa1d   : > { %10926 = vmatmul.mubr.f32.gmra.mrb[232].mxu1 %v18082_v63 }
 0xa1e   : > { %10930 = vmatprep.mubr.f32.mxu1 %v18102_v23  ;;  %v10489_v23 = vld [vmem:[#allocation5 + $0x1508] sm:$0xff] }
 0xa21   : > { %10931 = vmatmul.mubr.f32.gmra.mrb[234].mxu1 %v18086_v2 }
 0xa22   : > { %10935 = vmatprep.mubr.f32.mxu1 %v18112_v50  ;;  %v18874_v50 = vld [vmem:[#allocation27_spill] sm:$0xff] }
 0xa25   : > { %10936 = vmatmul.mubr.f32.gmra.mrb[236].mxu1 %v18100_v17 }
 0xa26   : > { %10940 = vmatprep.mubr.f32.mxu1 %v18868_v27  ;;  %v18333_v27 = vld [vmem:[#allocation2 + $0x61] sm:$0xff] }
 0xa29   : > { %10941 = vmatmul.mubr.f32.gmra.mrb[238].mxu1 %v18869_v3 }
 0xa2a   : > { %10945 = vmatprep.mubr.f32.mxu1 %v18130_v10  ;;  %v13793_v10 = vpack.c.bf16 %v10489_v23, %v10488_v40  ;;  %v9854_v23 = vld [vmem:[#allocation2 + $0x6a] sm:$0xff] }
 0xa2d   : > { %10946 = vmatmul.mubr.f32.gmra.mrb[240].mxu1 %v18870_v45 }
 0xa2e   : > { %10950 = vmatprep.mubr.f32.mxu1 %v18138_v52  ;;  %v10490_v52 = vld [vmem:[#allocation5 + $0x1510] sm:$0xff] }
 0xa31   : > { %10951 = vmatmul.mubr.f32.gmra.mrb[242].mxu1 %v18871_v29 }
 0xa32   : > { %10955 = vmatprep.mubr.f32.mxu1 %v18150_v31  ;;  %v9783_v31 = vld [vmem:[#allocation2 + $0x19] sm:$0xff] }
 0xa33   : > { %v18274_v11 = vpop.f32.mrb[40].mxu0 }
 0xa34   : > { %v18277_v49 = vpop.f32.mrb[41].mxu0 }
 0xa35   : > { %10956 = vmatmul.mubr.f32.gmra.mrb[244].mxu1 %v18136_v44 }
 0xa36   : > { %10960 = vmatprep.mubr.f32.mxu1 %v18161_v35 }
 0xa39   : > { %10961 = vmatmul.mubr.f32.gmra.mrb[246].mxu1 %v18872_v1 }
 0xa3a   : > { %10965 = vmatprep.mubr.f32.mxu1 %v18176_v47 }
 0xa3b   : > { %v18282_v62 = vpop.f32.mrb[42].mxu0 }
 0xa3c   : > { %v18285_v46 = vpop.f32.mrb[43].mxu0 }
 0xa3d   : > { %10966 = vmatmul.mubr.f32.gmra.mrb[248].mxu1 %v18159_v26 }
 0xa3e   : > { %10970 = vmatprep.mubr.f32.mxu1 %v18188_v61  ;;  %v10491_v61 = vld [vmem:[#allocation5 + $0x1518] sm:$0xff] }
 0xa3f   : > { %v13796_v28 = vpack.c.bf16 %v10491_v61, %v10490_v52  ;;  %v13814_v52 = vpack.c.bf16 %v10503_v16, %v10502_v43  ;;  %v10504_v61 = vld [vmem:[#allocation5 + $0x1580] sm:$0xff]  ;;  %v10513_v16 = vld [vmem:[#allocation5 + $0x15c8] sm:$0xff] }
 0xa40   : > { %v10512_v43 = vld [vmem:[#allocation5 + $0x15c0] sm:$0xff] }
 0xa41   : > { %10971 = vmatmul.mubr.f32.gmra.mrb[250].mxu1 %v18163_v6 }
 0xa42   : > { %10975 = vmatprep.mubr.f32.mxu1 %v18289_v37 }
 0xa43   : > { %v18292_v34 = vpop.f32.mrb[44].mxu0 }
 0xa44   : > { %v18297_v8 = vpop.f32.mrb[45].mxu0 }
 0xa45   : > { %10976 = vmatmul.mubr.f32.gmra.mrb[252].mxu1 %v18873_v32 }
 0xa46   : > { %10980 = vmatprep.mubr.f32.mxu1 %v18295_v5 }
 0xa49   : > { %10981 = vmatmul.mubr.f32.gmra.mrb[254].mxu1 %v18874_v50 }
 0xa4a   : > { %11050 = vmatprep.mubr.f32.mxu1 %v18207_v22  ;;  %v9849_v22 = vld [vmem:[#allocation2 + $0x32] sm:$0xff] }
 0xa4b   : > { %v18302_v35 = vpop.f32.mrb[46].mxu0 }
 0xa4c   : > { %v18304_v47 = vpop.f32.mrb[47].mxu0 }
 0xa4d   : > { %11051 = vmatmul.mubr.f32.vlgmr.msra.gmra.mrb[192].mxu1 %v9783_v31  ;;  %v10505_v31 = vld [vmem:[#allocation5 + $0x1588] sm:$0xff] }
 0xa4e   : > { %11055 = vmatprep.mubr.f32.mxu1 %v18212_v58  ;;  %13794 = vmatpush1.bf16.msra.mxu1 %v13793_v10  ;;  %v9850_v58 = vld [vmem:[#allocation2 + $0x3a] sm:$0xff]  ;;  %v13817_v55 = vpack.c.bf16 %v10505_v31, %v10504_v61  ;;  %v13829_v61 = vpack.c.bf16 %v10513_v16, %v10512_v43  ;;  %v10514_v31 = vld [vmem:[#allocation5 + $0x15d0] sm:$0xff] }
 0xa4f   : > { %13795 = vmatprep.subr.bf16.mxu1 %v18745_v12  ;;  %v9862_v16 = vld [vmem:[#allocation2 + $0xca] sm:$0xff] }
 0xa51   : > { %11056 = vmatmul.mubr.f32.gmra.mrb[194].mxu1 %v9784_v0  ;;  %v10506_v0 = vld [vmem:[#allocation5 + $0x1590] sm:$0xff] }
 0xa52   : > { %11060 = vmatprep.mubr.f32.mxu1 %v9849_v22  ;;  %13797 = vmatpush1.bf16.msra.mxu1 %v13796_v28  ;;  %v18341_v28 = vld [vmem:[#allocation2 + $0x69] sm:$0xff]  ;;  %v10507_v22 = vld [vmem:[#allocation5 + $0x1598] sm:$0xff] }
 0xa53   : > { %13798 = vmatprep.subr.bf16.mxu1 %v18745_v12  ;;  %v18311_v41 = vpop.f32.mrb[48].mxu0 }
 0xa54   : > { %v18314_v59 = vpop.f32.mrb[49].mxu0 }
 0xa55   : > { %11061 = vmatmul.mubr.f32.gmra.mrb[196].mxu1 %v18309_v25 }
 0xa56   : > { %11065 = vmatprep.mubr.f32.mxu1 %v9850_v58  ;;  %13800 = vmatpush1.bf16.msra.mxu1 %v13799_v24  ;;  %v18345_v24 = vld [vmem:[#allocation2 + $0x79] sm:$0xff] }
 0xa57   : > { %13801 = vmatprep.subr.bf16.mxu1 %v18745_v12 }
 0xa59   : > { %11066 = vmatmul.mubr.f32.gmra.mrb[198].mxu1 %v18317_v53 }
 0xa5a   : > { %11070 = vmatprep.mubr.f32.mxu1 %v9851_v20  ;;  %13803 = vmatpush1.bf16.msra.mxu1 %v13802_v57  ;;  %v13820_v57 = vpack.c.bf16 %v10507_v22, %v10506_v0  ;;  %v18353_v20 = vld [vmem:[#allocation2 + $0x81] sm:$0xff]  ;;  %v9860_v22 = vld [vmem:[#allocation2 + $0xb2] sm:$0xff] }
 0xa5b   : > { %13804 = vmatprep.subr.bf16.mxu1 %v18745_v12  ;;  %v18323_v48 = vpop.f32.mrb[50].mxu0 }
 0xa5c   : > { %v18326_v9 = vpop.f32.mrb[51].mxu0 }
 0xa5d   : > { %11071 = vmatmul.mubr.f32.gmra.mrb[200].mxu1 %v18321_v30 }
 0xa5e   : > { %11075 = vmatprep.mubr.f32.mxu1 %v9852_v36  ;;  %13806 = vmatpush1.bf16.msra.mxu1 %v13805_v7  ;;  %v9857_v7 = vld [vmem:[#allocation2 + $0x92] sm:$0xff] }
 0xa5f   : > { %13807 = vmatprep.subr.bf16.mxu1 %v18745_v12  ;;  %v10511_v36 = vld [vmem:[#allocation5 + $0x15b8] sm:$0xff] }
 0xa61   : > { %11076 = vmatmul.mubr.f32.gmra.mrb[202].mxu1 %v18329_v56 }
 0xa62   : > { %11080 = vmatprep.mubr.f32.mxu1 %v9853_v54  ;;  %13809 = vmatpush1.bf16.msra.mxu1 %v13808_v14  ;;  %v18357_v14 = vld [vmem:[#allocation2 + $0x91] sm:$0xff] }
 0xa63   : > { %13810 = vmatprep.subr.bf16.mxu1 %v18745_v12  ;;  %v18335_v40 = vpop.f32.mrb[52].mxu0 }
 0xa64   : > { %v18338_v10 = vpop.f32.mrb[53].mxu0 }
 0xa65   : > { %11081 = vmatmul.mubr.f32.gmra.mrb[204].mxu1 %v18333_v27 }
 0xa66   : > { %11085 = vmatprep.mubr.f32.mxu1 %v9854_v23  ;;  %13812 = vmatpush1.bf16.msra.mxu1 %v13811_v60  ;;  %v13826_v60 = vpack.c.bf16 %v10511_v36, %v10510_v33  ;;  %v18365_v23 = vld [vmem:[#allocation2 + $0x99] sm:$0xff]  ;;  %v13835_v33 = vpack.c.bf16 %v10517_v51, %v10516_v19  ;;  %v10518_v36 = vld [vmem:[#allocation5 + $0x15f0] sm:$0xff]  ;;  %v9864_v19 = vld [vmem:[#allocation2 + $0xe2] sm:$0xff] }
 0xa67   : > { %13813 = vmatprep.subr.bf16.mxu1 %v18745_v12 }
 0xa69   : > { %11086 = vmatmul.mubr.f32.gmra.mrb[206].mxu1 %v18341_v28 }
 0xa6a   : > { %11090 = vmatprep.mubr.f32.mxu1 %v9855_v42  ;;  %13815 = vmatpush1.bf16.msra.mxu1 %v13814_v52  ;;  %v9859_v52 = vld [vmem:[#allocation2 + $0xaa] sm:$0xff]  ;;  %v10515_v42 = vld [vmem:[#allocation5 + $0x15d8] sm:$0xff] }
 0xa6b   : > { %13816 = vmatprep.subr.bf16.mxu1 %v18745_v12  ;;  %v18347_v4 = vpop.f32.mrb[54].mxu0 }
 0xa6c   : > { %v18350_v58 = vpop.f32.mrb[55].mxu0 }
 0xa6d   : > { %11091 = vmatmul.mubr.f32.gmra.mrb[208].mxu1 %v18345_v24 }
 0xa6e   : > { %11095 = vmatprep.mubr.f32.mxu1 %v9856_v39  ;;  %13818 = vmatpush1.bf16.msra.mxu1 %v13817_v55  ;;  %v18369_v55 = vld [vmem:[#allocation2 + $0xa9] sm:$0xff] }
 0xa6f   : > { %13819 = vmatprep.subr.bf16.mxu1 %v18745_v12 }
 0xa71   : > { %11096 = vmatmul.mubr.f32.gmra.mrb[210].mxu1 %v18353_v20 }
 0xa72   : > { %11100 = vmatprep.mubr.f32.mxu1 %v9857_v7  ;;  %13821 = vmatpush1.bf16.msra.mxu1 %v13820_v57  ;;  %v13832_v57 = vpack.c.bf16 %v10515_v42, %v10514_v31  ;;  %v18377_v7 = vld [vmem:[#allocation2 + $0xb1] sm:$0xff]  ;;  %v18389_v31 = vld [vmem:[#allocation2 + $0xc9] sm:$0xff]  ;;  %v9863_v42 = vld [vmem:[#allocation2 + $0xda] sm:$0xff] }
 0xa73   : > { %13822 = vmatprep.subr.bf16.mxu1 %v18745_v12  ;;  %v18359_v21 = vpop.f32.mrb[56].mxu0 }
 0xa74   : > { %v18362_v54 = vpop.f32.mrb[57].mxu0 }
 0xa75   : > { %11101 = vmatmul.mubr.f32.gmra.mrb[212].mxu1 %v18357_v14 }
 0xa76   : > { %11105 = vmatprep.mubr.f32.mxu1 %v9858_v38  ;;  %13824 = vmatpush1.bf16.msra.mxu1 %v13823_v18  ;;  %v9861_v18 = vld [vmem:[#allocation2 + $0xc2] sm:$0xff]  ;;  %v10519_v38 = vld [vmem:[#allocation5 + $0x15f8] sm:$0xff] }
 0xa77   : > { %13825 = vmatprep.subr.bf16.mxu1 %v18745_v12 }
 0xa79   : > { %11106 = vmatmul.mubr.f32.gmra.mrb[214].mxu1 %v18365_v23 }
 0xa7a   : > { %11110 = vmatprep.mubr.f32.mxu1 %v9859_v52  ;;  %13827 = vmatpush1.bf16.msra.mxu1 %v13826_v60  ;;  %v18381_v60 = vld [vmem:[#allocation2 + $0xc1] sm:$0xff] }
 0xa7b   : > { %13828 = vmatprep.subr.bf16.mxu1 %v18745_v12  ;;  %v18371_v0 = vpop.f32.mrb[58].mxu0 }
 0xa7c   : > { %v18374_v39 = vpop.f32.mrb[59].mxu0 }
 0xa7d   : > { %11111 = vmatmul.mubr.f32.gmra.mrb[216].mxu1 %v18369_v55 }
 0xa7e   : > { %11115 = vmatprep.mubr.f32.mxu1 %v9860_v22  ;;  %13830 = vmatpush1.bf16.msra.mxu1 %v13829_v61  ;;  %v13838_v61 = vpack.c.bf16 %v10519_v38, %v10518_v36  ;;  %v18392_v22 = vld [vmem:[#allocation2 + $0xd9] sm:$0xff] }
 0xa7f   : > { %13831 = vmatprep.subr.bf16.mxu1 %v18745_v12  ;;  %v18411_v38 = vld [vmem:[#allocation2 + $0xf9] sm:$0xff] }
 0xa81   : > { %11116 = vmatmul.mubr.f32.gmra.mrb[218].mxu1 %v18377_v7 }
 0xa82   : > { %11120 = vmatprep.mubr.f32.mxu1 %v9861_v18  ;;  %13833 = vmatpush1.bf16.msra.mxu1 %v13832_v57  ;;  %v18399_v18 = vld [vmem:[#allocation2 + $0xe1] sm:$0xff] }
 0xa83   : > { %13834 = vmatprep.subr.bf16.mxu1 %v18745_v12  ;;  %v18383_v43 = vpop.f32.mrb[60].mxu0 }
 0xa84   : > { %v18386_v52 = vpop.f32.mrb[61].mxu0 }
 0xa85   : > { %11121 = vmatmul.mubr.f32.gmra.mrb[220].mxu1 %v18381_v60 }
 0xa86   : > { %11125 = vmatprep.mubr.f32.mxu1 %v9862_v16  ;;  %13836 = vmatpush1.bf16.msra.mxu1 %v13835_v33  ;;  %v18415_v16 = vld [vmem:[#allocation2 + $0x109] sm:$0xff] }
 0xa87   : > { %13837 = vmatprep.subr.bf16.mxu1 %v18745_v12  ;;  %v18403_v12 = vld [vmem:[#allocation2 + $0xf1] sm:$0xff] }
 0xa89   : > { %11126 = vmatmul.mubr.f32.gmra.mrb[222].mxu1 %v18389_v31 }
 0xa8a   : > { %11130 = vmatprep.mubr.f32.mxu1 %v9863_v42  ;;  %13839 = vmatpush1.bf16.msra.mxu1 %v13838_v61  ;;  %v18423_v42 = vld [vmem:[#allocation2 + $0x111] sm:$0xff] }
 0xa8c   : > { %v18394_v57 = vpop.f32.mrb[62].mxu0 }
 0xa8d   : > { %11131 = vmatmul.mubr.f32.gmra.mrb[224].mxu1 %v18392_v22  ;;  %v18397_v51 = vpop.f32.mrb[63].mxu0 }
 0xa8e   : > { %11135 = vmatprep.mubr.f32.mxu1 %v9864_v19 }
 0xa91   : > { %11136 = vmatmul.mubr.f32.gmra.mrb[226].mxu1 %v18399_v18 }
 0xa92   : > { %11140 = vmatprep.mubr.f32.mxu1 %v18082_v63 }
 0xa93   : > { %v18405_v33 = vpop.f32.mrb[64].mxu0 }
 0xa94   : > { %18875 = vst [vmem:[#allocation43_spill] sm:$0xff] %v18405_v33  ;;  %v18408_v36 = vpop.f32.mrb[65].mxu0  ;;  %v18885_v33 = vld [vmem:[#allocation26_spill] sm:$0xff] }
 0xa95   : > { %11141 = vmatmul.mubr.f32.gmra.mrb[228].mxu1 %v18403_v12  ;;  %18876 = vst [vmem:[#allocation28_spill] sm:$0xff] %v18408_v36  ;;  %v18886_v36 = vmax.f32 %v18885_v33, 0.0  ;;  %v9933_v33 = vld [vmem:[#allocation2 + $0x138] sm:$0xff] }
 0xa96   : > { %11145 = vmatprep.mubr.f32.mxu1 %v18086_v2  ;;  %v18427_v2 = vld [vmem:[#allocation2 + $0x121] sm:$0xff] }
 0xa99   : > { %11146 = vmatmul.mubr.f32.gmra.mrb[230].mxu1 %v18411_v38 }
 0xa9a   : > { %11150 = vmatprep.mubr.f32.mxu1 %v18100_v17 }
 0xa9b   : > { %v18417_v61 = vpop.f32.mrb[66].mxu0 }
 0xa9c   : > { %18877 = vst [vmem:[#allocation42_spill] sm:$0xff] %v18417_v61  ;;  %v18420_v63 = vpop.f32.mrb[67].mxu0  ;;  %v18435_v61 = vld [vmem:[#allocation2 + $0x129] sm:$0xff] }
 0xa9d   : > { %11151 = vmatmul.mubr.f32.gmra.mrb[232].mxu1 %v18415_v16  ;;  %18878 = vst [vmem:[#allocation44_spill] sm:$0xff] %v18420_v63  ;;  %v18883_v63 = vld [vmem:[#allocation41_spill] sm:$0xff] }
 0xa9e   : > { %11155 = vmatprep.mubr.f32.mxu1 %v18869_v3  ;;  %v18439_v3 = vld [vmem:[#allocation2 + $0x139] sm:$0xff] }
 0xaa1   : > { %11156 = vmatmul.mubr.f32.gmra.mrb[234].mxu1 %v18423_v42 }
 0xaa2   : > { %11160 = vmatprep.mubr.f32.mxu1 %v18870_v45  ;;  %v18443_v45 = vld [vmem:[#allocation2 + $0x141] sm:$0xff] }
 0xaa4   : > { %v18429_v19 = vpop.f32.mrb[68].mxu0 }
 0xaa5   : > { %18879 = vst [vmem:[#allocation45_spill] sm:$0xff] %v18429_v19  ;;  %11161 = vmatmul.mubr.f32.gmra.mrb[236].mxu1 %v18427_v2  ;;  %v18432_v17 = vpop.f32.mrb[69].mxu0  ;;  %v18447_v19 = vld [vmem:[#allocation2 + $0x151] sm:$0xff] }
 0xaa6   : > { %18880 = vst [vmem:[#allocation29_spill] sm:$0xff] %v18432_v17  ;;  %11165 = vmatprep.mubr.f32.mxu1 %v18871_v29  ;;  %v18451_v29 = vld [vmem:[#allocation2 + $0x159] sm:$0xff] }
 0xaa7   : > { %v10069_v17 = vld [vmem:[#allocation2 + $0x19a] sm:$0xff] }
 0xaa8   : > { %12749 = vmatprep.mubr.f32.mxu0 %v10069_v17  ;;  %v9938_v17 = vld [vmem:[#allocation2 + $0x170] sm:$0xff] }
 0xaa9   : > { %11166 = vmatmul.mubr.f32.gmra.mrb[238].mxu1 %v18435_v61 }
 0xaaa   : > { %11170 = vmatprep.mubr.f32.mxu1 %v18136_v44  ;;  %v18881_v44 = vld [vmem:[#allocation38_spill] sm:$0xff] }
 0xaad   : > { %11171 = vmatmul.mubr.f32.gmra.mrb[240].mxu1 %v18439_v3 }
 0xaae   : > { %11175 = vmatprep.mubr.f32.mxu1 %v18872_v1  ;;  %v18882_v1 = vld [vmem:[#allocation25_spill] sm:$0xff] }
 0xab1   : > { %11176 = vmatmul.mubr.f32.gmra.mrb[242].mxu1 %v18443_v45 }
 0xab2   : > { %11180 = vmatprep.mubr.f32.mxu1 %v18159_v26  ;;  %v10070_v26 = vld [vmem:[#allocation2 + $0x1a2] sm:$0xff] }
 0xab3   : > { %12750 = vmatmul.mubr.f32.gmra.mrb[70].mxu0 %v10070_v26 }
 0xab5   : > { %11181 = vmatmul.mubr.f32.gmra.mrb[244].mxu1 %v18447_v19 }
 0xab6   : > { %11185 = vmatprep.mubr.f32.mxu1 %v18163_v6  ;;  %v18884_v6 = vmax.f32 %v18883_v63, 0.0  ;;  %v9914_v63 = vld [vmem:[#allocation2 + $0x50] sm:$0xff] }
 0xab9   : > { %11186 = vmatmul.mubr.f32.gmra.mrb[246].mxu1 %v18451_v29 }
 0xaba   : > { %11190 = vmatprep.mubr.f32.mxu1 %v18873_v32  ;;  %v9911_v32 = vld [vmem:[#allocation2 + $0x30] sm:$0xff] }
 0xabd   : > { %11191 = vmatmul.mubr.f32.gmra.mrb[248].mxu1 %v18881_v44  ;;  %v15028_v44 = vld [vmem:[#allocation2] sm:$0xff] }
 0xabe   : > { %11195 = vmatprep.mubr.f32.mxu1 %v18874_v50  ;;  %v9912_v50 = vld [vmem:[#allocation2 + $0x38] sm:$0xff] }
 0xac1   : > { %11196 = vmatmul.mubr.f32.gmra.mrb[250].mxu1 %v18882_v1 }
 0xac2   : > { %11200 = vmatprep.mubr.f32.mxu1 %v18200_v13  ;;  %v9913_v13 = vld [vmem:[#allocation2 + $0x48] sm:$0xff] }
 0xac5   : > { %11201 = vmatmul.mubr.f32.gmra.mrb[252].mxu1 %v18884_v6 }
 0xac6   : > { %11205 = vmatprep.mubr.f32.mxu1 %v18202_v15  ;;  %v9915_v15 = vld [vmem:[#allocation2 + $0x60] sm:$0xff] }
 0xac9   : > { %11206 = vmatmul.mubr.f32.gmra.mrb[254].mxu1 %v18886_v36  ;;  %v9934_v36 = vld [vmem:[#allocation2 + $0x140] sm:$0xff] }
 0xaca   : > { %11275 = vmatprep.mubr.f32.mxu1 %v18309_v25  ;;  %v9916_v25 = vld [vmem:[#allocation2 + $0x68] sm:$0xff] }
 0xacd   : > { %11276 = vmatmul.mubr.f32.vlgmr.msra.gmra.mrb[192].mxu1 %v9911_v32  ;;  %v18496_v32 = vld [vmem:[#allocation7 + $0x4] ss:$0 sm:$0xff] }
 0xace   : > { %11280 = vmatprep.mubr.f32.mxu1 %v18317_v53  ;;  %v9917_v53 = vld [vmem:[#allocation2 + $0x78] sm:$0xff] }
 0xad1   : > { %11281 = vmatmul.mubr.f32.gmra.mrb[194].mxu1 %v9912_v50 }
 0xad2   : > { %11285 = vmatprep.mubr.f32.mxu1 %v18321_v30  ;;  %v9918_v30 = vld [vmem:[#allocation2 + $0x80] sm:$0xff] }
 0xad5   : > { %11286 = vmatmul.mubr.f32.gmra.mrb[196].mxu1 %v9913_v13  ;;  %v18499_v13 = vld [vmem:[#allocation9 + $0x4] ss:$0 sm:$0xff] }
 0xad6   : > { %11290 = vmatprep.mubr.f32.mxu1 %v18329_v56  ;;  %v9919_v56 = vld [vmem:[#allocation2 + $0x90] sm:$0xff] }
 0xad9   : > { %11291 = vmatmul.mubr.f32.gmra.mrb[198].mxu1 %v9914_v63 }
 0xada   : > { %11295 = vmatprep.mubr.f32.mxu1 %v18333_v27  ;;  %v9920_v27 = vld [vmem:[#allocation2 + $0x98] sm:$0xff] }
 0xadd   : > { %11296 = vmatmul.mubr.f32.gmra.mrb[200].mxu1 %v9915_v15 }
 0xade   : > { %11300 = vmatprep.mubr.f32.mxu1 %v18341_v28  ;;  %v9921_v28 = vld [vmem:[#allocation2 + $0xa8] sm:$0xff] }
 0xae1   : > { %11301 = vmatmul.mubr.f32.gmra.mrb[202].mxu1 %v9916_v25 }
 0xae2   : > { %11305 = vmatprep.mubr.f32.mxu1 %v18345_v24  ;;  %v9922_v24 = vld [vmem:[#allocation2 + $0xb0] sm:$0xff] }
 0xae5   : > { %11306 = vmatmul.mubr.f32.gmra.mrb[204].mxu1 %v9917_v53 }
 0xae6   : > { %11310 = vmatprep.mubr.f32.mxu1 %v18353_v20  ;;  %v9923_v20 = vld [vmem:[#allocation2 + $0xc0] sm:$0xff] }
 0xae9   : > { %11311 = vmatmul.mubr.f32.gmra.mrb[206].mxu1 %v9918_v30 }
 0xaea   : > { %11315 = vmatprep.mubr.f32.mxu1 %v18357_v14  ;;  %v9924_v14 = vld [vmem:[#allocation2 + $0xc8] sm:$0xff] }
 0xaed   : > { %11316 = vmatmul.mubr.f32.gmra.mrb[208].mxu1 %v9919_v56 }
 0xaee   : > { %11320 = vmatprep.mubr.f32.mxu1 %v18365_v23  ;;  %v9925_v23 = vld [vmem:[#allocation2 + $0xd8] sm:$0xff] }
 0xaf1   : > { %11321 = vmatmul.mubr.f32.gmra.mrb[210].mxu1 %v9920_v27 }
 0xaf2   : > { %11325 = vmatprep.mubr.f32.mxu1 %v18369_v55  ;;  %v9926_v55 = vld [vmem:[#allocation2 + $0xe0] sm:$0xff] }
 0xaf5   : > { %11326 = vmatmul.mubr.f32.gmra.mrb[212].mxu1 %v9921_v28 }
 0xaf6   : > { %11330 = vmatprep.mubr.f32.mxu1 %v18377_v7  ;;  %v9927_v7 = vld [vmem:[#allocation2 + $0xf0] sm:$0xff] }
 0xaf9   : > { %11331 = vmatmul.mubr.f32.gmra.mrb[214].mxu1 %v9922_v24 }
 0xafa   : > { %11335 = vmatprep.mubr.f32.mxu1 %v18381_v60  ;;  %v9928_v60 = vld [vmem:[#allocation2 + $0xf8] sm:$0xff] }
 0xafd   : > { %11336 = vmatmul.mubr.f32.gmra.mrb[216].mxu1 %v9923_v20 }
 0xafe   : > { %11340 = vmatprep.mubr.f32.mxu1 %v18389_v31  ;;  %v9929_v31 = vld [vmem:[#allocation2 + $0x108] sm:$0xff] }
 0xb01   : > { %11341 = vmatmul.mubr.f32.gmra.mrb[218].mxu1 %v9924_v14 }
 0xb02   : > { %11345 = vmatprep.mubr.f32.mxu1 %v18392_v22  ;;  %v9930_v22 = vld [vmem:[#allocation2 + $0x110] sm:$0xff] }
 0xb05   : > { %11346 = vmatmul.mubr.f32.gmra.mrb[220].mxu1 %v9925_v23 }
 0xb06   : > { %11350 = vmatprep.mubr.f32.mxu1 %v18399_v18  ;;  %v9931_v18 = vld [vmem:[#allocation2 + $0x120] sm:$0xff] }
 0xb09   : > { %11351 = vmatmul.mubr.f32.gmra.mrb[222].mxu1 %v9926_v55 }
 0xb0a   : > { %11355 = vmatprep.mubr.f32.mxu1 %v18403_v12  ;;  %v9932_v12 = vld [vmem:[#allocation2 + $0x128] sm:$0xff] }
 0xb0d   : > { %11356 = vmatmul.mubr.f32.gmra.mrb[224].mxu1 %v9927_v7 }
 0xb0e   : > { %11360 = vmatprep.mubr.f32.mxu1 %v18411_v38  ;;  %v9935_v38 = vld [vmem:[#allocation2 + $0x150] sm:$0xff] }
 0xb11   : > { %11361 = vmatmul.mubr.f32.gmra.mrb[226].mxu1 %v9928_v60 }
 0xb12   : > { %11365 = vmatprep.mubr.f32.mxu1 %v18415_v16  ;;  %v9936_v16 = vld [vmem:[#allocation2 + $0x158] sm:$0xff] }
 0xb15   : > { %11366 = vmatmul.mubr.f32.gmra.mrb[228].mxu1 %v9929_v31 }
 0xb16   : > { %11370 = vmatprep.mubr.f32.mxu1 %v18423_v42  ;;  %v10001_v42 = vld [vmem:[#allocation2 + $0x169] sm:$0xff] }
 0xb19   : > { %11371 = vmatmul.mubr.f32.gmra.mrb[230].mxu1 %v9930_v22 }
 0xb1a   : > { %11375 = vmatprep.mubr.f32.mxu1 %v18427_v2  ;;  %v10002_v2 = vld [vmem:[#allocation2 + $0x171] sm:$0xff] }
 0xb1d   : > { %11376 = vmatmul.mubr.f32.gmra.mrb[232].mxu1 %v9931_v18 }
 0xb1e   : > { %11380 = vmatprep.mubr.f32.mxu1 %v18435_v61  ;;  %v9937_v61 = vld [vmem:[#allocation2 + $0x168] sm:$0xff] }
 0xb21   : > { %11381 = vmatmul.mubr.f32.gmra.mrb[234].mxu1 %v9932_v12 }
 0xb22   : > { %11385 = vmatprep.mubr.f32.mxu1 %v18439_v3  ;;  %v10003_v3 = vld [vmem:[#allocation2 + $0x181] sm:$0xff] }
 0xb25   : > { %11386 = vmatmul.mubr.f32.gmra.mrb[236].mxu1 %v9933_v33 }
 0xb26   : > { %11390 = vmatprep.mubr.f32.mxu1 %v18443_v45  ;;  %v10004_v45 = vld [vmem:[#allocation2 + $0x189] sm:$0xff] }
 0xb29   : > { %11391 = vmatmul.mubr.f32.gmra.mrb[238].mxu1 %v9934_v36 }
 0xb2a   : > { %11395 = vmatprep.mubr.f32.mxu1 %v18447_v19  ;;  %v10005_v19 = vld [vmem:[#allocation2 + $0x199] sm:$0xff] }
 0xb2d   : > { %11396 = vmatmul.mubr.f32.gmra.mrb[240].mxu1 %v9935_v38 }
 0xb2e   : > { %11400 = vmatprep.mubr.f32.mxu1 %v18451_v29  ;;  %v10006_v29 = vld [vmem:[#allocation2 + $0x1a1] sm:$0xff] }
 0xb31   : > { %11401 = vmatmul.mubr.f32.gmra.mrb[242].mxu1 %v9936_v16 }
 0xb32   : > { %11405 = vmatprep.mubr.f32.mxu1 %v10001_v42 }
 0xb35   : > { %11406 = vmatmul.mubr.f32.gmra.mrb[244].mxu1 %v9937_v61 }
 0xb36   : > { %11410 = vmatprep.mubr.f32.mxu1 %v10002_v2 }
 0xb39   : > { %11411 = vmatmul.mubr.f32.gmra.mrb[246].mxu1 %v9938_v17 }
 0xb3a   : > { %11415 = vmatprep.mubr.f32.mxu1 %v10003_v3 }
 0xb3d   : > { %11416 = vmatmul.mubr.f32.gmra.mrb[248].mxu1 %v18289_v37 }
 0xb3e   : > { %11420 = vmatprep.mubr.f32.mxu1 %v10004_v45 }
 0xb41   : > { %11421 = vmatmul.mubr.f32.gmra.mrb[250].mxu1 %v18295_v5 }
 0xb42   : > { %11425 = vmatprep.mubr.f32.mxu1 %v10005_v19 }
 0xb45   : > { %11426 = vmatmul.mubr.f32.gmra.mrb[252].mxu1 %v15028_v44 }
 0xb46   : > { %11430 = vmatprep.mubr.f32.mxu1 %v10006_v29 }
 0xb49   : > { %11431 = vmatmul.mubr.f32.gmra.mrb[254].mxu1 %v15028_v44 }
 0xb86   : > { %v18492_v1 = vpop.f32.mrb[70].mxu0 }
 0xb87   : > { %v18494_v26 = vpop.f32.mrb[71].mxu0 }
 0xba0   : > { %v11277_v6 = vpop.f32.mrb[192].mxu1 }
 0xba1   : > { %v11503_v37 = vadd.f32 %v18277_v49, %v11277_v6  ;;  %v11279_v50 = vpop.f32.mrb[193].mxu1 }
 0xba3   : > { %v11669_v5 = vmul.f32 %v18496_v32, %v11503_v37 }
 0xba4   : > { %v11282_v63 = vpop.f32.mrb[194].mxu1 }
 0xba5   : > { %v11709_v15 = vadd.f32 %v18499_v13, %v11669_v5  ;;  %v11508_v25 = vadd.f32 %v18274_v11, %v11282_v63  ;;  %v11284_v53 = vpop.f32.mrb[195].mxu1 }
 0xba7   : > { %v12076_v30 = vmul.f32 -1.442695, %v11709_v15  ;;  %v11670_v56 = vmul.f32 %v18496_v32, %v11508_v25 }
 0xba8   : > { %v11287_v27 = vpop.f32.mrb[196].mxu1 }
 0xba9   : > { %14857 = vpow2.f32 %v12076_v30  ;;  %v11710_v28 = vadd.f32 %v18499_v13, %v11670_v56  ;;  %v11513_v49 = vadd.f32 %v18285_v46, %v11287_v27  ;;  %v11289_v24 = vpop.f32.mrb[197].mxu1 }
 0xbab   : > { %v12077_v20 = vmul.f32 -1.442695, %v11710_v28  ;;  %v11671_v14 = vmul.f32 %v18496_v32, %v11513_v49 }
 0xbac   : > { %v11292_v23 = vpop.f32.mrb[198].mxu1 }
 0xbad   : > { %14859 = vpow2.f32 %v12077_v20  ;;  %v11711_v55 = vadd.f32 %v18499_v13, %v11671_v14  ;;  %v11518_v11 = vadd.f32 %v18282_v62, %v11292_v23  ;;  %v11294_v7 = vpop.f32.mrb[199].mxu1 }
 0xbaf   : > { %v12078_v60 = vmul.f32 -1.442695, %v11711_v55  ;;  %v11672_v31 = vmul.f32 %v18496_v32, %v11518_v11 }
 0xbb0   : > { %v11297_v22 = vpop.f32.mrb[200].mxu1 }
 0xbb1   : > { %14861 = vpow2.f32 %v12078_v60  ;;  %v11712_v18 = vadd.f32 %v18499_v13, %v11672_v31  ;;  %v11523_v46 = vadd.f32 %v18297_v8, %v11297_v22  ;;  %v11299_v12 = vpop.f32.mrb[201].mxu1 }
 0xbb3   : > { %v14858_v33 = vpop.eup %14857  ;;  %v12079_v36 = vmul.f32 -1.442695, %v11712_v18  ;;  %v11673_v38 = vmul.f32 %v18496_v32, %v11523_v46 }
 0xbb4   : > { %v11837_v16 = vadd.f32 1.0, %v14858_v33  ;;  %v11302_v42 = vpop.f32.mrb[202].mxu1 }
 0xbb5   : > { %14863 = vpow2.f32 %v12079_v36  ;;  %v11713_v62 = vadd.f32 %v18499_v13, %v11673_v38  ;;  %v11528_v61 = vadd.f32 %v18292_v34, %v11302_v42  ;;  %v11304_v2 = vpop.f32.mrb[203].mxu1 }
 0xbb6   : > { %14865 = vrcp.f32 %v11837_v16 }
 0xbb7   : > { %v14860_v17 = vpop.eup %14859  ;;  %v12080_v3 = vmul.f32 -1.442695, %v11713_v62  ;;  %v11674_v45 = vmul.f32 %v18496_v32, %v11528_v61 }
 0xbb8   : > { %v11838_v19 = vadd.f32 1.0, %v14860_v17  ;;  %v11307_v8 = vpop.f32.mrb[204].mxu1 }
 0xbb9   : > { %14867 = vpow2.f32 %v12080_v3  ;;  %v11714_v29 = vadd.f32 %v18499_v13, %v11674_v45  ;;  %v11533_v44 = vadd.f32 %v18304_v47, %v11307_v8  ;;  %v11309_v6 = vpop.f32.mrb[205].mxu1 }
 0xbba   : > { %14869 = vrcp.f32 %v11838_v19 }
 0xbbb   : > { %v14862_v37 = vpop.eup %14861  ;;  %v12081_v50 = vmul.f32 -1.442695, %v11714_v29  ;;  %v11675_v34 = vmul.f32 %v18496_v32, %v11533_v44 }
 0xbbc   : > { %v11839_v5 = vadd.f32 1.0, %v14862_v37  ;;  %v11312_v63 = vpop.f32.mrb[206].mxu1 }
 0xbbd   : > { %14871 = vpow2.f32 %v12081_v50  ;;  %v11715_v15 = vadd.f32 %v18499_v13, %v11675_v34  ;;  %v11538_v25 = vadd.f32 %v18302_v35, %v11312_v63  ;;  %v11314_v53 = vpop.f32.mrb[207].mxu1 }
 0xbbe   : > { %14873 = vrcp.f32 %v11839_v5 }
 0xbbf   : > { %v14864_v47 = vpop.eup %14863  ;;  %v12082_v30 = vmul.f32 -1.442695, %v11715_v15  ;;  %v11676_v56 = vmul.f32 %v18496_v32, %v11538_v25 }
 0xbc0   : > { %v14866_v27 = vpop.eup %14865  ;;  %v11840_v28 = vadd.f32 1.0, %v14864_v47  ;;  %v11317_v49 = vpop.f32.mrb[208].mxu1 }
 0xbc1   : > { %11933 = vst [vmem:[%s18527_s25] sm:$0xff] %v14866_v27  ;;  %14875 = vpow2.f32 %v12082_v30  ;;  %v11716_v35 = vadd.f32 %v18499_v13, %v11676_v56  ;;  %v11543_v24 = vadd.f32 %v18314_v59, %v11317_v49  ;;  %v11319_v20 = vpop.f32.mrb[209].mxu1 }
 0xbc2   : > { %14877 = vrcp.f32 %v11840_v28 }
 0xbc3   : > { %v14868_v14 = vpop.eup %14867  ;;  %v12083_v23 = vmul.f32 -1.442695, %v11716_v35  ;;  %v11677_v55 = vmul.f32 %v18496_v32, %v11543_v24 }
 0xbc4   : > { %v14870_v11 = vpop.eup %14869  ;;  %v11841_v7 = vadd.f32 1.0, %v14868_v14  ;;  %v11322_v60 = vpop.f32.mrb[210].mxu1 }
 0xbc5   : > { %11934 = vst [vmem:[%s18527_s25 + $0x8] sm:$0xff] %v14870_v11  ;;  %14879 = vpow2.f32 %v12083_v23  ;;  %v11717_v31 = vadd.f32 %v18499_v13, %v11677_v55  ;;  %v11548_v22 = vadd.f32 %v18311_v41, %v11322_v60  ;;  %v11324_v18 = vpop.f32.mrb[211].mxu1 }
 0xbc6   : > { %14881 = vrcp.f32 %v11841_v7 }
 0xbc7   : > { %v14872_v46 = vpop.eup %14871  ;;  %v12084_v59 = vmul.f32 -1.442695, %v11717_v31  ;;  %v11678_v12 = vmul.f32 %v18496_v32, %v11548_v22 }
 0xbc8   : > { %v14874_v33 = vpop.eup %14873  ;;  %v11842_v36 = vadd.f32 1.0, %v14872_v46  ;;  %v11327_v38 = vpop.f32.mrb[212].mxu1 }
 0xbc9   : > { %11935 = vst [vmem:[%s18527_s25 + $0x10] sm:$0xff] %v14874_v33  ;;  %14883 = vpow2.f32 %v12084_v59  ;;  %v11718_v16 = vadd.f32 %v18499_v13, %v11678_v12  ;;  %v11553_v42 = vadd.f32 %v18326_v9, %v11327_v38  ;;  %v11329_v62 = vpop.f32.mrb[213].mxu1 }
 0xbca   : > { %14885 = vrcp.f32 %v11842_v36 }
 0xbcb   : > { %v14876_v61 = vpop.eup %14875  ;;  %v12085_v41 = vmul.f32 -1.442695, %v11718_v16  ;;  %v11679_v2 = vmul.f32 %v18496_v32, %v11553_v42 }
 0xbcc   : > { %v14878_v17 = vpop.eup %14877  ;;  %v11843_v3 = vadd.f32 1.0, %v14876_v61  ;;  %v11332_v45 = vpop.f32.mrb[214].mxu1 }
 0xbcd   : > { %11936 = vst [vmem:[%s18527_s25 + $0x18] sm:$0xff] %v14878_v17  ;;  %14887 = vpow2.f32 %v12085_v41  ;;  %v11719_v19 = vadd.f32 %v18499_v13, %v11679_v2  ;;  %v11558_v8 = vadd.f32 %v18323_v48, %v11332_v45  ;;  %v11334_v29 = vpop.f32.mrb[215].mxu1 }
 0xbce   : > { %14889 = vrcp.f32 %v11843_v3 }
 0xbcf   : > { %v14880_v44 = vpop.eup %14879  ;;  %v12086_v9 = vmul.f32 -1.442695, %v11719_v19  ;;  %v11680_v6 = vmul.f32 %v18496_v32, %v11558_v8 }
 0xbd0   : > { %v14882_v37 = vpop.eup %14881  ;;  %v11844_v50 = vadd.f32 1.0, %v14880_v44  ;;  %v11337_v34 = vpop.f32.mrb[216].mxu1 }
 0xbd1   : > { %11937 = vst [vmem:[%s18527_s25 + $0x20] sm:$0xff] %v14882_v37  ;;  %14891 = vpow2.f32 %v12086_v9  ;;  %v11720_v5 = vadd.f32 %v18499_v13, %v11680_v6  ;;  %v11563_v63 = vadd.f32 %v18338_v10, %v11337_v34  ;;  %v11339_v15 = vpop.f32.mrb[217].mxu1 }
 0xbd2   : > { %14893 = vrcp.f32 %v11844_v50 }
 0xbd3   : > { %v14884_v25 = vpop.eup %14883  ;;  %v12087_v48 = vmul.f32 -1.442695, %v11720_v5  ;;  %v11681_v53 = vmul.f32 %v18496_v32, %v11563_v63 }
 0xbd4   : > { %v14886_v47 = vpop.eup %14885  ;;  %v11845_v30 = vadd.f32 1.0, %v14884_v25  ;;  %v11342_v56 = vpop.f32.mrb[218].mxu1 }
 0xbd5   : > { %11938 = vst [vmem:[%s18527_s25 + $0x28] sm:$0xff] %v14886_v47  ;;  %14895 = vpow2.f32 %v12087_v48  ;;  %v11721_v27 = vadd.f32 %v18499_v13, %v11681_v53  ;;  %v11568_v28 = vadd.f32 %v18335_v40, %v11342_v56  ;;  %v11344_v49 = vpop.f32.mrb[219].mxu1 }
 0xbd6   : > { %14897 = vrcp.f32 %v11845_v30 }
 0xbd7   : > { %v14888_v35 = vpop.eup %14887  ;;  %v12088_v10 = vmul.f32 -1.442695, %v11721_v27  ;;  %v11682_v24 = vmul.f32 %v18496_v32, %v11568_v28 }
 0xbd8   : > { %v14890_v20 = vpop.eup %14889  ;;  %v11846_v14 = vadd.f32 1.0, %v14888_v35  ;;  %v11347_v23 = vpop.f32.mrb[220].mxu1 }
 0xbd9   : > { %11939 = vst [vmem:[%s18527_s25 + $0x30] sm:$0xff] %v14890_v20  ;;  %14899 = vpow2.f32 %v12088_v10  ;;  %v11722_v55 = vadd.f32 %v18499_v13, %v11682_v24  ;;  %v11573_v11 = vadd.f32 %v18350_v58, %v11347_v23  ;;  %v11349_v7 = vpop.f32.mrb[221].mxu1 }
 0xbda   : > { %14901 = vrcp.f32 %v11846_v14 }
 0xbdb   : > { %v14892_v60 = vpop.eup %14891  ;;  %v12089_v40 = vmul.f32 -1.442695, %v11722_v55  ;;  %v11683_v31 = vmul.f32 %v18496_v32, %v11573_v11 }
 0xbdc   : > { %v14894_v22 = vpop.eup %14893  ;;  %v11847_v18 = vadd.f32 1.0, %v14892_v60  ;;  %v11352_v46 = vpop.f32.mrb[222].mxu1 }
 0xbdd   : > { %11940 = vst [vmem:[%s18527_s25 + $0x38] sm:$0xff] %v14894_v22  ;;  %14903 = vpow2.f32 %v12089_v40  ;;  %v11723_v59 = vadd.f32 %v18499_v13, %v11683_v31  ;;  %v11578_v12 = vadd.f32 %v18347_v4, %v11352_v46  ;;  %v11354_v33 = vpop.f32.mrb[223].mxu1 }
 0xbde   : > { %14905 = vrcp.f32 %v11847_v18 }
 0xbdf   : > { %v14896_v36 = vpop.eup %14895  ;;  %v12090_v58 = vmul.f32 -1.442695, %v11723_v59  ;;  %v11684_v38 = vmul.f32 %v18496_v32, %v11578_v12 }
 0xbe0   : > { %v14898_v16 = vpop.eup %14897  ;;  %v11848_v42 = vadd.f32 1.0, %v14896_v36  ;;  %v11357_v62 = vpop.f32.mrb[224].mxu1 }
 0xbe1   : > { %11941 = vst [vmem:[%s18527_s25 + $0x40] sm:$0xff] %v14898_v16  ;;  %14907 = vpow2.f32 %v12090_v58  ;;  %v11724_v61 = vadd.f32 %v18499_v13, %v11684_v38  ;;  %v11583_v41 = vadd.f32 %v18362_v54, %v11357_v62  ;;  %v11359_v2 = vpop.f32.mrb[225].mxu1 }
 0xbe2   : > { %14909 = vrcp.f32 %v11848_v42 }
 0xbe3   : > { %v14900_v17 = vpop.eup %14899  ;;  %v12091_v4 = vmul.f32 -1.442695, %v11724_v61  ;;  %v11685_v3 = vmul.f32 %v18496_v32, %v11583_v41 }
 0xbe4   : > { %v14902_v45 = vpop.eup %14901  ;;  %v11849_v19 = vadd.f32 1.0, %v14900_v17  ;;  %v11362_v8 = vpop.f32.mrb[226].mxu1 }
 0xbe5   : > { %11942 = vst [vmem:[%s18527_s25 + $0x48] sm:$0xff] %v14902_v45  ;;  %14911 = vpow2.f32 %v12091_v4  ;;  %v11725_v29 = vadd.f32 %v18499_v13, %v11685_v3  ;;  %v11588_v44 = vadd.f32 %v18359_v21, %v11362_v8  ;;  %v11364_v9 = vpop.f32.mrb[227].mxu1 }
 0xbe6   : > { %14913 = vrcp.f32 %v11849_v19 }
 0xbe7   : > { %v14904_v6 = vpop.eup %14903  ;;  %v12092_v54 = vmul.f32 -1.442695, %v11725_v29  ;;  %v11686_v37 = vmul.f32 %v18496_v32, %v11588_v44 }
 0xbe8   : > { %v14906_v50 = vpop.eup %14905  ;;  %v11850_v34 = vadd.f32 1.0, %v14904_v6  ;;  %v11367_v5 = vpop.f32.mrb[228].mxu1 }
 0xbe9   : > { %11943 = vst [vmem:[%s18527_s25 + $0x50] sm:$0xff] %v14906_v50  ;;  %14915 = vpow2.f32 %v12092_v54  ;;  %v11726_v63 = vadd.f32 %v18499_v13, %v11686_v37  ;;  %v11593_v15 = vadd.f32 %v18374_v39, %v11367_v5  ;;  %v11369_v25 = vpop.f32.mrb[229].mxu1  ;;  %v18887_v37 = vld [vmem:[#allocation28_spill] sm:$0xff] }
 0xbea   : > { %14917 = vrcp.f32 %v11850_v34 }
 0xbeb   : > { %v14908_v48 = vpop.eup %14907  ;;  %v12093_v21 = vmul.f32 -1.442695, %v11726_v63  ;;  %v11687_v53 = vmul.f32 %v18496_v32, %v11593_v15 }
 0xbec   : > { %v14910_v47 = vpop.eup %14909  ;;  %v11851_v30 = vadd.f32 1.0, %v14908_v48  ;;  %v11372_v56 = vpop.f32.mrb[230].mxu1 }
 0xbed   : > { %11944 = vst [vmem:[%s18527_s25 + $0x58] sm:$0xff] %v14910_v47  ;;  %14919 = vpow2.f32 %v12093_v21  ;;  %v11727_v27 = vadd.f32 %v18499_v13, %v11687_v53  ;;  %v11598_v28 = vadd.f32 %v18371_v0, %v11372_v56  ;;  %v11374_v49 = vpop.f32.mrb[231].mxu1  ;;  %v18888_v53 = vld [vmem:[#allocation43_spill] sm:$0xff] }
 0xbee   : > { %14921 = vrcp.f32 %v11851_v30 }
 0xbef   : > { %v14912_v35 = vpop.eup %14911  ;;  %v12094_v39 = vmul.f32 -1.442695, %v11727_v27  ;;  %v11688_v10 = vmul.f32 %v18496_v32, %v11598_v28 }
 0xbf0   : > { %v14914_v24 = vpop.eup %14913  ;;  %v11852_v20 = vadd.f32 1.0, %v14912_v35  ;;  %v11377_v14 = vpop.f32.mrb[232].mxu1 }
 0xbf1   : > { %11945 = vst [vmem:[%s18527_s25 + $0x60] sm:$0xff] %v14914_v24  ;;  %14923 = vpow2.f32 %v12094_v39  ;;  %v11728_v23 = vadd.f32 %v18499_v13, %v11688_v10  ;;  %v11603_v55 = vadd.f32 %v18386_v52, %v11377_v14  ;;  %v11379_v11 = vpop.f32.mrb[233].mxu1  ;;  %v18889_v24 = vld [vmem:[#allocation44_spill] sm:$0xff] }
 0xbf2   : > { %14925 = vrcp.f32 %v11852_v20 }
 0xbf3   : > { %v14916_v7 = vpop.eup %14915  ;;  %v12095_v0 = vmul.f32 -1.442695, %v11728_v23  ;;  %v11689_v60 = vmul.f32 %v18496_v32, %v11603_v55 }
 0xbf4   : > { %v14918_v40 = vpop.eup %14917  ;;  %v11853_v31 = vadd.f32 1.0, %v14916_v7  ;;  %v11382_v22 = vpop.f32.mrb[234].mxu1 }
 0xbf5   : > { %11946 = vst [vmem:[%s18527_s25 + $0x68] sm:$0xff] %v14918_v40  ;;  %14927 = vpow2.f32 %v12095_v0  ;;  %v11729_v18 = vadd.f32 %v18499_v13, %v11689_v60  ;;  %v11608_v46 = vadd.f32 %v18383_v43, %v11382_v22  ;;  %v11384_v59 = vpop.f32.mrb[235].mxu1 }
 0xbf6   : > { %14929 = vrcp.f32 %v11853_v31  ;;  %v18890_v31 = vld [vmem:[#allocation42_spill] sm:$0xff] }
 0xbf7   : > { %v14920_v12 = vpop.eup %14919  ;;  %v12096_v52 = vmul.f32 -1.442695, %v11729_v18  ;;  %v11690_v33 = vmul.f32 %v18496_v32, %v11608_v46 }
 0xbf8   : > { %v14922_v36 = vpop.eup %14921  ;;  %v11854_v58 = vadd.f32 1.0, %v14920_v12  ;;  %v11387_v38 = vpop.f32.mrb[236].mxu1 }
 0xbf9   : > { %11947 = vst [vmem:[%s18527_s25 + $0x70] sm:$0xff] %v14922_v36  ;;  %14931 = vpow2.f32 %v12096_v52  ;;  %v11730_v16 = vadd.f32 %v18499_v13, %v11690_v33  ;;  %v11613_v42 = vadd.f32 %v18397_v51, %v11387_v38  ;;  %v11389_v62 = vpop.f32.mrb[237].mxu1  ;;  %v18891_v38 = vld [vmem:[#allocation29_spill] sm:$0xff] }
 0xbfa   : > { %14933 = vrcp.f32 %v11854_v58 }
 0xbfb   : > { %v14924_v61 = vpop.eup %14923  ;;  %v12097_v43 = vmul.f32 -1.442695, %v11730_v16  ;;  %v11691_v41 = vmul.f32 %v18496_v32, %v11613_v42 }
 0xbfc   : > { %v14926_v2 = vpop.eup %14925  ;;  %v11855_v17 = vadd.f32 1.0, %v14924_v61  ;;  %v11392_v4 = vpop.f32.mrb[238].mxu1 }
 0xbfd   : > { %11948 = vst [vmem:[%s18527_s25 + $0x78] sm:$0xff] %v14926_v2  ;;  %14935 = vpow2.f32 %v12097_v43  ;;  %v11731_v3 = vadd.f32 %v18499_v13, %v11691_v41  ;;  %v11618_v45 = vadd.f32 %v18394_v57, %v11392_v4  ;;  %v11394_v19 = vpop.f32.mrb[239].mxu1 }
 0xbfe   : > { %14937 = vrcp.f32 %v11855_v17 }
 0xbff   : > { %v14928_v8 = vpop.eup %14927  ;;  %v12098_v51 = vmul.f32 -1.442695, %v11731_v3  ;;  %v11692_v29 = vmul.f32 %v18496_v32, %v11618_v45  ;;  %v18892_v3 = vld [vmem:[#allocation45_spill] sm:$0xff] }
 0xc00   : > { %v14930_v44 = vpop.eup %14929  ;;  %v11856_v9 = vadd.f32 1.0, %v14928_v8  ;;  %v11397_v6 = vpop.f32.mrb[240].mxu1 }
 0xc01   : > { %11949 = vst [vmem:[%s18527_s25 + $0x80] sm:$0xff] %v14930_v44  ;;  %14939 = vpow2.f32 %v12098_v51  ;;  %v11732_v54 = vadd.f32 %v18499_v13, %v11692_v29  ;;  %v11623_v50 = vadd.f32 %v18887_v37, %v11397_v6  ;;  %v11399_v34 = vpop.f32.mrb[241].mxu1 }
 0xc02   : > { %14941 = vrcp.f32 %v11856_v9 }
 0xc03   : > { %v14932_v5 = vpop.eup %14931  ;;  %v12099_v57 = vmul.f32 -1.442695, %v11732_v54  ;;  %v11693_v63 = vmul.f32 %v18496_v32, %v11623_v50 }
 0xc04   : > { %v14934_v15 = vpop.eup %14933  ;;  %v11857_v25 = vadd.f32 1.0, %v14932_v5  ;;  %v11402_v48 = vpop.f32.mrb[242].mxu1 }
 0xc05   : > { %11950 = vst [vmem:[%s18527_s25 + $0x88] sm:$0xff] %v14934_v15  ;;  %14943 = vpow2.f32 %v12099_v57  ;;  %v11733_v21 = vadd.f32 %v18499_v13, %v11693_v63  ;;  %v11628_v47 = vadd.f32 %v18888_v53, %v11402_v48  ;;  %v11404_v30 = vpop.f32.mrb[243].mxu1 }
 0xc06   : > { %14945 = vrcp.f32 %v11857_v25 }
 0xc07   : > { %v14936_v56 = vpop.eup %14935  ;;  %v12100_v27 = vmul.f32 -1.442695, %v11733_v21  ;;  %v11694_v28 = vmul.f32 %v18496_v32, %v11628_v47 }
 0xc08   : > { %v14938_v49 = vpop.eup %14937  ;;  %v11858_v35 = vadd.f32 1.0, %v14936_v56  ;;  %v11407_v39 = vpop.f32.mrb[244].mxu1 }
 0xc09   : > { %11951 = vst [vmem:[%s18527_s25 + $0x90] sm:$0xff] %v14938_v49  ;;  %14947 = vpow2.f32 %v12100_v27  ;;  %v11734_v10 = vadd.f32 %v18499_v13, %v11694_v28  ;;  %v11633_v20 = vadd.f32 %v18889_v24, %v11407_v39  ;;  %v11409_v14 = vpop.f32.mrb[245].mxu1 }
 0xc0a   : > { %14949 = vrcp.f32 %v11858_v35 }
 0xc0b   : > { %v14940_v23 = vpop.eup %14939  ;;  %v12101_v55 = vmul.f32 -1.442695, %v11734_v10  ;;  %v11695_v11 = vmul.f32 %v18496_v32, %v11633_v20 }
 0xc0c   : > { %v14942_v7 = vpop.eup %14941  ;;  %v11859_v0 = vadd.f32 1.0, %v14940_v23  ;;  %v11412_v60 = vpop.f32.mrb[246].mxu1 }
 0xc0d   : > { %11952 = vst [vmem:[%s18527_s25 + $0x98] sm:$0xff] %v14942_v7  ;;  %14951 = vpow2.f32 %v12101_v55  ;;  %v11735_v40 = vadd.f32 %v18499_v13, %v11695_v11  ;;  %v11638_v22 = vadd.f32 %v18890_v31, %v11412_v60  ;;  %v11414_v18 = vpop.f32.mrb[247].mxu1 }
 0xc0e   : > { %14953 = vrcp.f32 %v11859_v0 }
 0xc0f   : > { %v14944_v46 = vpop.eup %14943  ;;  %v12102_v59 = vmul.f32 -1.442695, %v11735_v40  ;;  %v11696_v12 = vmul.f32 %v18496_v32, %v11638_v22 }
 0xc10   : > { %v14946_v52 = vpop.eup %14945  ;;  %v11860_v33 = vadd.f32 1.0, %v14944_v46  ;;  %v11417_v36 = vpop.f32.mrb[248].mxu1 }
 0xc11   : > { %11953 = vst [vmem:[%s18527_s25 + $0xa0] sm:$0xff] %v14946_v52  ;;  %14955 = vpow2.f32 %v12102_v59  ;;  %v11736_v58 = vadd.f32 %v18499_v13, %v11696_v12  ;;  %v11643_v16 = vadd.f32 %v18891_v38, %v11417_v36  ;;  %v11419_v42 = vpop.f32.mrb[249].mxu1 }
 0xc12   : > { %14957 = vrcp.f32 %v11860_v33 }
 0xc13   : > { %v14948_v62 = vpop.eup %14947  ;;  %v12103_v61 = vmul.f32 -1.442695, %v11736_v58  ;;  %v11697_v43 = vmul.f32 %v18496_v32, %v11643_v16 }
 0xc14   : > { %v14950_v41 = vpop.eup %14949  ;;  %v11861_v2 = vadd.f32 1.0, %v14948_v62  ;;  %v11422_v17 = vpop.f32.mrb[250].mxu1 }
 0xc15   : > { %11954 = vst [vmem:[%s18527_s25 + $0xa8] sm:$0xff] %v14950_v41  ;;  %14959 = vpow2.f32 %v12103_v61  ;;  %v11737_v4 = vadd.f32 %v18499_v13, %v11697_v43  ;;  %v11648_v45 = vadd.f32 %v18892_v3, %v11422_v17  ;;  %v11424_v19 = vpop.f32.mrb[251].mxu1 }
 0xc16   : > { %14961 = vrcp.f32 %v11861_v2 }
 0xc17   : > { %v14952_v8 = vpop.eup %14951  ;;  %v12104_v51 = vmul.f32 -1.442695, %v11737_v4  ;;  %v11698_v29 = vmul.f32 %v18496_v32, %v11648_v45 }
 0xc18   : > { %v14954_v44 = vpop.eup %14953  ;;  %v11862_v9 = vadd.f32 1.0, %v14952_v8  ;;  %v11427_v6 = vpop.f32.mrb[252].mxu1 }
 0xc19   : > { %11955 = vst [vmem:[%s18527_s25 + $0xb0] sm:$0xff] %v14954_v44  ;;  %14963 = vpow2.f32 %v12104_v51  ;;  %v11738_v54 = vadd.f32 %v18499_v13, %v11698_v29  ;;  %v11653_v37 = vadd.f32 %v18494_v26, %v11427_v6  ;;  %v11429_v50 = vpop.f32.mrb[253].mxu1 }
 0xc1a   : > { %14965 = vrcp.f32 %v11862_v9 }
 0xc1b   : > { %v14956_v34 = vpop.eup %14955  ;;  %v12105_v5 = vmul.f32 -1.442695, %v11738_v54  ;;  %v11699_v57 = vmul.f32 %v18496_v32, %v11653_v37 }
 0xc1c   : > { %v14958_v63 = vpop.eup %14957  ;;  %v11863_v15 = vadd.f32 1.0, %v14956_v34  ;;  %v11432_v25 = vpop.f32.mrb[254].mxu1 }
 0xc1d   : > { %11956 = vst [vmem:[%s18527_s25 + $0xb8] sm:$0xff] %v14958_v63  ;;  %14967 = vpow2.f32 %v12105_v5  ;;  %v11739_v48 = vadd.f32 %v18499_v13, %v11699_v57  ;;  %v11658_v21 = vadd.f32 %v18492_v1, %v11432_v25  ;;  %v11434_v53 = vpop.f32.mrb[255].mxu1 }
 0xc1e   : > { %14969 = vrcp.f32 %v11863_v15 }
 0xc1f   : > { %v14960_v26 = vpop.eup %14959  ;;  %v12106_v47 = vmul.f32 -1.442695, %v11739_v48  ;;  %v11700_v30 = vmul.f32 %v18496_v32, %v11658_v21 }
 0xc20   : > { %v14962_v56 = vpop.eup %14961  ;;  %v11864_v27 = vadd.f32 1.0, %v14960_v26 }
 0xc21   : > { %11957 = vst [vmem:[%s18527_s25 + $0xc0] sm:$0xff] %v14962_v56  ;;  %14971 = vpow2.f32 %v12106_v47  ;;  %v11740_v28 = vadd.f32 %v18499_v13, %v11700_v30 }
 0xc22   : > { %14973 = vrcp.f32 %v11864_v27 }
 0xc23   : > { %v14964_v49 = vpop.eup %14963  ;;  %v12107_v35 = vmul.f32 -1.442695, %v11740_v28 }
 0xc24   : > { %v14966_v39 = vpop.eup %14965  ;;  %v11865_v1 = vadd.f32 1.0, %v14964_v49 }
 0xc25   : > { %11958 = vst [vmem:[%s18527_s25 + $0xc8] sm:$0xff] %v14966_v39  ;;  %14975 = vpow2.f32 %v12107_v35 }
 0xc26   : > { %14977 = vrcp.f32 %v11865_v1 }
 0xc27   : > { %v14968_v10 = vpop.eup %14967 }
 0xc28   : > { %v14970_v32 = vpop.eup %14969  ;;  %v11866_v24 = vadd.f32 1.0, %v14968_v10 }
 0xc29   : > { %11959 = vst [vmem:[%s18527_s25 + $0xd0] sm:$0xff] %v14970_v32 }
 0xc2a   : > { %14979 = vrcp.f32 %v11866_v24 }
 0xc2b   : > { %v14972_v20 = vpop.eup %14971 }
 0xc2c   : > { %v14974_v13 = vpop.eup %14973  ;;  %v11867_v14 = vadd.f32 1.0, %v14972_v20 }
 0xc2d   : > { %11960 = vst [vmem:[%s18527_s25 + $0xd8] sm:$0xff] %v14974_v13 }
 0xc2e   : > { %14981 = vrcp.f32 %v11867_v14 }
 0xc2f   : > { %v14976_v23 = vpop.eup %14975 }
 0xc30   : > { %v14978_v55 = vpop.eup %14977  ;;  %v11868_v11 = vadd.f32 1.0, %v14976_v23 }
 0xc31   : > { %11961 = vst [vmem:[%s18527_s25 + $0xe0] sm:$0xff] %v14978_v55 }
 0xc32   : > { %14983 = vrcp.f32 %v11868_v11 }
 0xc34   : > { %v14980_v7 = vpop.eup %14979 }
 0xc35   : > { %11962 = vst [vmem:[%s18527_s25 + $0xe8] sm:$0xff] %v14980_v7 }
 0xc38   : > { %v14982_v0 = vpop.eup %14981 }
 0xc39   : > { %11963 = vst [vmem:[%s18527_s25 + $0xf0] sm:$0xff] %v14982_v0 }
 0xc3c   : > { %v14984_v60 = vpop.eup %14983 }
 0xc3d   : > { %11964 = vst [vmem:[%s18527_s25 + $0xf8] sm:$0xff] %v14984_v60 }
 0xc3e PF: > { %s16_s15 = sadd.s32 1, %s15127_s15  }
 0xc3f   : > { %p13_p13 = scmp.ge.s32.totalorder %s16_s15, 4  }
 0xc41   :  { %15 = sbr.rel (!%p13_p13) target bundleno = 2 (0x2), region = 95 }
 0xc48   :  { %11986 = vsyncpa [#allocation6], 1 }
 0xc49   :  { %11988 = vsyncpa [#allocation6 + $0x1], 1 }
 0xc4a   :  { %11989 = vsyncpa [#allocation8], 1 }

</bundles_post_ra>
